<compile_context>
chip_gen: v7x
topology: tpu7x:2x2x1
jax: 0.10.0
libtpu: 0.0.40
codegen_flags: <defaults>
</compile_context>

<pallas_src>
import math

import jax
import jax.numpy as jnp
from jax.experimental import pallas as pl
from jax.experimental.pallas import tpu as pltpu

# ---- module hyper-parameters (constructor args), kept small but lane-aligned ----
INPUT_DIM = 6        # force-torque dimension
SEQ_LEN   = 8        # seq_len
D_MODEL   = 128      # d_model
NUM_HEADS = 4
Z_DIM     = 64       # output_dim
NUM_BLOCKS = 6
HEAD_DIM  = D_MODEL // NUM_HEADS
LN_EPS    = 1e-5

# ---- kernel tiling ----
BT     = 16                 # sequences stacked per grid step
M_ROWS = BT * SEQ_LEN       # matmul M dimension = 128
Z_PAD  = 128                # lane-dense output width (sliced back to Z_DIM in wrapper)

BATCH  = 32                 # demo batch (any B works; wrapper pads to a multiple of 2*BT)


# ----------------------------------------------------------------------------------
# shared math helpers
# ----------------------------------------------------------------------------------
def _gelu_tanh(x):
    c = math.sqrt(2.0 / math.pi)
    return 0.5 * x * (1.0 + jnp.tanh(c * (x + 0.044715 * x * x * x)))


def _layer_norm(x, w, b):
    # Centered form (matches the PyTorch LayerNorm / reference numerics).
    mu = jnp.mean(x, axis=-1, keepdims=True)
    xc = x - mu
    var = jnp.mean(xc * xc, axis=-1, keepdims=True)
    return xc * jax.lax.rsqrt(var + LN_EPS) * w + b


# ----------------------------------------------------------------------------------
# Pallas kernel: BT sequences per grid step, stacked TIME-MAJOR into (BT*T, D) rows
# (row r = t*BT + b_local).  All matmuls take bf16 operands with f32 accumulation.
# ----------------------------------------------------------------------------------
def encoder_kernel(x_ref, pe_ref, mask_ref,
                   wp_ref, bp_ref,
                   ln1w_ref, ln1b_ref, wqkv_ref, bqkv_ref, wo_ref, bo_ref,
                   ln2w_ref, ln2b_ref, w1_ref, b1_ref, w2_ref, b2_ref,
                   we_ref, be_ref, out_ref):
    bf16 = jnp.bfloat16

    # input projection + positional encoding (pe pre-tiled time-major on host)
    x = x_ref[...]                                                        # (M, F) f32
    h = jnp.dot(x.astype(bf16), wp_ref[...],
                preferred_element_type=jnp.float32) + bp_ref[...]
    h = h + pe_ref[...]                                                   # (M, D) f32

    def block_body(i, h):
        mask = mask_ref[...]                                              # (M, M) additive f32

        # --- causal multi-head self-attention (pre-LN), block-diag over sequences ---
        xn = _layer_norm(h, ln1w_ref[i], ln1b_ref[i])
        # 1/sqrt(HEAD_DIM) is pre-folded into the Q columns of wqkv/bqkv on the host.
        qkv = jnp.dot(xn.astype(bf16), wqkv_ref[i],
                      preferred_element_type=jnp.float32) + bqkv_ref[i]   # (M, 3D) f32
        qkv_b = qkv.astype(bf16)                                          # matmul operands

        heads = []
        for hh in range(NUM_HEADS):
            q = qkv_b[:, hh * HEAD_DIM:(hh + 1) * HEAD_DIM]               # (M, hd) bf16
            k = qkv_b[:, D_MODEL + hh * HEAD_DIM:D_MODEL + (hh + 1) * HEAD_DIM]
            v = qkv_b[:, 2 * D_MODEL + hh * HEAD_DIM:2 * D_MODEL + (hh + 1) * HEAD_DIM]
            # scores over the whole stacked block; mask enforces per-sequence causality
            s = jax.lax.dot_general(q, k, (((1,), (1,)), ((), ())),
                                    preferred_element_type=jnp.float32)   # (M, M) f32
            s = s + mask
            m = jnp.max(s, axis=-1, keepdims=True)
            e = jnp.exp(s - m)
            p = e * pl.reciprocal(jnp.sum(e, axis=-1, keepdims=True), approx=True)
            heads.append(jnp.dot(p.astype(bf16), v,
                                 preferred_element_type=jnp.float32))     # (M, hd) f32

        # single K=128 out-projection instead of 4 K=32 accumulated matmuls
        o_cat = jnp.concatenate(heads, axis=-1).astype(bf16)              # (M, D) bf16
        attn = jnp.dot(o_cat, wo_ref[i],
                       preferred_element_type=jnp.float32) + bo_ref[i]
        h = h + attn

        # --- MLP ---
        xn2 = _layer_norm(h, ln2w_ref[i], ln2b_ref[i])
        m1 = jnp.dot(xn2.astype(bf16), w1_ref[i],
                     preferred_element_type=jnp.float32) + b1_ref[i]
        m1 = _gelu_tanh(m1)
        m2 = jnp.dot(m1.astype(bf16), w2_ref[i],
                     preferred_element_type=jnp.float32) + b2_ref[i]
        return h + m2

    h = jax.lax.fori_loop(0, NUM_BLOCKS, block_body, h)

    # --- self.embed: flatten (T*D) then Linear(T*D -> Z).
    # Time-major rows make each per-timestep operand a contiguous (BT, D) sublane slice;
    # SEQ_LEN matmuls of (BT, D) @ (D, Z_PAD), lane-dense (Z padded to 128 on host). ---
    hb = h.astype(jnp.bfloat16)
    z = jnp.dot(hb[0:BT, :], we_ref[0], preferred_element_type=jnp.float32)
    for t in range(1, SEQ_LEN):
        z = z + jnp.dot(hb[t * BT:(t + 1) * BT, :], we_ref[t],
                        preferred_element_type=jnp.float32)
    out_ref[...] = z + be_ref[...]


# ----------------------------------------------------------------------------------
# host-side helpers + wrapper
# ----------------------------------------------------------------------------------
def _block_causal_mask_time_major(bt, t):
    """Additive mask for bt sequences of length t stacked time-major (row r = t_r*bt + b_r):
    0 where the key is in the same sequence and not in the future, -1e30 otherwise."""
    n = bt * t
    idx = jnp.arange(n)
    same_seq = (idx[:, None] % bt) == (idx[None, :] % bt)
    causal = (idx[None, :] // bt) <= (idx[:, None] // bt)
    return jnp.where(same_seq & causal, 0.0, -1e30).astype(jnp.float32)


def positional_encoding(seq_len, d_model):
    pos = jnp.arange(seq_len, dtype=jnp.float32)[:, None]                          # (T,1)
    div = jnp.exp(jnp.arange(0, d_model, 2, dtype=jnp.float32)
                  * (-math.log(10000.0) / d_model))                                # (D/2,)
    ang = pos * div                                                                # (T,D/2)
    pe = jnp.zeros((seq_len, d_model), jnp.float32)
    pe = pe.at[:, 0::2].set(jnp.sin(ang))
    pe = pe.at[:, 1::2].set(jnp.cos(ang))
    return pe


def transformer_ft_encoder(x, pe, params):
    """x: (B, SEQ_LEN, INPUT_DIM) -> (B, Z_DIM)."""
    B = x.shape[0]
    bf16 = jnp.bfloat16

    # pad B to a multiple of 2*BT so the "parallel" batch grid is even (v7x: 2 TCs)
    B_pad = int(pl.cdiv(B, 2 * BT)) * (2 * BT)
    nb = B_pad // BT
    if B_pad != B:
        x = jnp.pad(x, ((0, B_pad - B), (0, 0), (0, 0)))

    # time-major stacking within each BT-block: row r = t*BT + b_local
    x_tm = x.reshape(nb, BT, SEQ_LEN, INPUT_DIM).transpose(0, 2, 1, 3)
    x2d = x_tm.reshape(B_pad * SEQ_LEN, INPUT_DIM)

    # host-side weight prep (free, outside the kernel):
    scale = 1.0 / math.sqrt(HEAD_DIM)                              # fold attn scale into Q
    wqkv = params['wqkv'].at[:, :, :D_MODEL].multiply(scale).astype(bf16)
    bqkv = params['bqkv'].at[:, :, :D_MODEL].multiply(scale)       # bias stays f32
    we_pad = jnp.pad(params['we'],
                     ((0, 0), (0, 0), (0, Z_PAD - Z_DIM))).astype(bf16)  # lane-dense out
    be_pad = jnp.pad(params['be'], ((0, 0), (0, Z_PAD - Z_DIM)))
    wp_b = params['wp'].astype(bf16)
    wo_b = params['wo'].astype(bf16)
    w1_b = params['w1'].astype(bf16)
    w2_b = params['w2'].astype(bf16)
    pe_tm = jnp.repeat(pe, BT, axis=0)                             # time-major (BT*T, D)
    mask = _block_causal_mask_time_major(BT, SEQ_LEN)              # (BT*T, BT*T)

    args = (x2d, pe_tm, mask,
            wp_b, params['bp'],
            params['ln1w'], params['ln1b'], wqkv, bqkv,
            wo_b, params['bo'], params['ln2w'], params['ln2b'],
            w1_b, params['b1'], w2_b, params['b2'],
            we_pad, be_pad)

    def full_spec(a):
        nd = a.ndim
        return pl.BlockSpec(a.shape, lambda g, _nd=nd: (0,) * _nd)

    in_specs = [pl.BlockSpec((M_ROWS, INPUT_DIM), lambda g: (g, 0))]
    in_specs += [full_spec(a) for a in args[1:]]

    # advisory cost hint for XLA's scheduler around the custom call
    flops_per_step = (
        2 * M_ROWS * INPUT_DIM * D_MODEL
        + NUM_BLOCKS * (2 * M_ROWS * D_MODEL * 3 * D_MODEL                 # qkv
                        + NUM_HEADS * 2 * 2 * M_ROWS * M_ROWS * HEAD_DIM   # QK^T + PV
                        + 2 * M_ROWS * D_MODEL * D_MODEL                   # out-proj
                        + 2 * 2 * M_ROWS * D_MODEL * 4 * D_MODEL)          # MLP
        + SEQ_LEN * 2 * BT * D_MODEL * Z_PAD)                              # embed
    transc_per_step = NUM_BLOCKS * (NUM_HEADS * M_ROWS * M_ROWS + M_ROWS * 4 * D_MODEL)
    bytes_accessed = (sum(int(a.size) * a.dtype.itemsize for a in args)
                      + B_pad * Z_PAD * 4)
    cost = pl.CostEstimate(flops=nb * flops_per_step,
                           transcendentals=nb * transc_per_step,
                           bytes_accessed=bytes_accessed)

    out = pl.pallas_call(
        encoder_kernel,
        out_shape=jax.ShapeDtypeStruct((B_pad, Z_PAD), jnp.float32),
        grid=(nb,),
        in_specs=in_specs,
        out_specs=pl.BlockSpec((BT, Z_PAD), lambda g: (g, 0)),
        compiler_params=pltpu.CompilerParams(
            dimension_semantics=("parallel",),          # independent batch blocks (v7x megacore)
            vmem_limit_bytes=24 * 1024 * 1024),         # ~6 MiB resident (bf16 weights, 2x buf)
        cost_estimate=cost,
    )(*args)
    return out[:B, :Z_DIM]


# ----------------------------------------------------------------------------------
# deterministic parameter construction + pure-JAX (module-faithful, f32) reference
# ----------------------------------------------------------------------------------
def make_params(key):
    ks = iter(jax.random.split(key, 24))

    def w(shape, scale=0.02):
        return scale * jax.random.normal(next(ks), shape, dtype=jnp.float32)

    return dict(
        wp=w((INPUT_DIM, D_MODEL)),
        bp=w((1, D_MODEL), 0.01),
        ln1w=jnp.ones((NUM_BLOCKS, 1, D_MODEL), jnp.float32),
        ln1b=jnp.zeros((NUM_BLOCKS, 1, D_MODEL), jnp.float32),
        wqkv=w((NUM_BLOCKS, D_MODEL, 3 * D_MODEL)),
        bqkv=w((NUM_BLOCKS, 1, 3 * D_MODEL), 0.01),
        wo=w((NUM_BLOCKS, D_MODEL, D_MODEL)),
        bo=w((NUM_BLOCKS, 1, D_MODEL), 0.01),
        ln2w=jnp.ones((NUM_BLOCKS, 1, D_MODEL), jnp.float32),
        ln2b=jnp.zeros((NUM_BLOCKS, 1, D_MODEL), jnp.float32),
        w1=w((NUM_BLOCKS, D_MODEL, 4 * D_MODEL)),
        b1=w((NUM_BLOCKS, 1, 4 * D_MODEL), 0.01),
        w2=w((NUM_BLOCKS, 4 * D_MODEL, D_MODEL)),
        b2=w((NUM_BLOCKS, 1, D_MODEL), 0.01),
        # nn.Linear(seq_len*d_model, z_dim) weight, stored pre-reshaped to (T, D, Z):
        # flat index k = t*D + d -> we[t, d, z], so this matches x.reshape(B,-1) @ W.
        we=w((SEQ_LEN, D_MODEL, Z_DIM)),
        be=w((1, Z_DIM), 0.01),
    )


def _reference_one(x, pe, p):
    """Module-faithful per-sequence forward (all f32). x: (T, INPUT_DIM) -> (Z,)."""
    h = x @ p['wp'] + p['bp']
    h = h + pe
    t_idx = jnp.arange(SEQ_LEN)
    causal = t_idx[None, :] <= t_idx[:, None]
    for i in range(NUM_BLOCKS):
        xn = _layer_norm(h, p['ln1w'][i], p['ln1b'][i])
        qkv = xn @ p['wqkv'][i] + p['bqkv'][i]
        heads = []
        for hh in range(NUM_HEADS):
            q = qkv[:, hh * HEAD_DIM:(hh + 1) * HEAD_DIM]
            k = qkv[:, D_MODEL + hh * HEAD_DIM:D_MODEL + (hh + 1) * HEAD_DIM]
            v = qkv[:, 2 * D_MODEL + hh * HEAD_DIM:2 * D_MODEL + (hh + 1) * HEAD_DIM]
            s = (q @ k.T) * (1.0 / math.sqrt(HEAD_DIM))
            s = jnp.where(causal, s, -jnp.inf)
            heads.append(jax.nn.softmax(s, axis=-1) @ v)
        attn = jnp.concatenate(heads, axis=-1) @ p['wo'][i] + p['bo'][i]
        h = h + attn
        xn2 = _layer_norm(h, p['ln2w'][i], p['ln2b'][i])
        m1 = _gelu_tanh(xn2 @ p['w1'][i] + p['b1'][i])
        h = h + m1 @ p['w2'][i] + p['b2'][i]
    flat = h.reshape(1, SEQ_LEN * D_MODEL)
    we_flat = p['we'].reshape(SEQ_LEN * D_MODEL, Z_DIM)
    return (flat @ we_flat + p['be'])[0]


def reference(x, pe, params):
    return jax.vmap(lambda xb: _reference_one(xb, pe, params))(x)   # (B, Z)


if __name__ == "__main__":
    key = jax.random.PRNGKey(0)
    k_x, k_p = jax.random.split(key)

    x = jax.random.normal(k_x, (BATCH, SEQ_LEN, INPUT_DIM), dtype=jnp.float32)
    params = make_params(k_p)
    pe = positional_encoding(SEQ_LEN, D_MODEL)

    out = jax.block_until_ready(transformer_ft_encoder(x, pe, params))
    assert out.shape == (BATCH, Z_DIM), out.shape

    ref = jax.block_until_ready(reference(x, pe, params))
    # Tolerance accounts for bf16 matmul operands (f32 accumulate / f32 residual stream)
    # across 6 blocks + embed, plus the approx-reciprocal softmax normalization.
    max_err = float(jnp.max(jnp.abs(out - ref)))
    assert max_err < 2.5e-2, f"mismatch vs reference: {max_err}"

    print("KERNEL_OK")
</pallas_src>

<mosaic_0001>
module attributes {stable_mosaic.version = 11 : i64} {
  func.func @encoder_kernel(%arg0: i32, %arg1: memref<128x6xf32, #tpu.memory_space<vmem>>, %arg2: memref<128x128xf32, #tpu.memory_space<vmem>>, %arg3: memref<128x128xf32, #tpu.memory_space<vmem>>, %arg4: memref<6x128xbf16, #tpu.memory_space<vmem>>, %arg5: memref<1x128xf32, #tpu.memory_space<vmem>>, %arg6: memref<6x1x128xf32, #tpu.memory_space<vmem>>, %arg7: memref<6x1x128xf32, #tpu.memory_space<vmem>>, %arg8: memref<6x128x384xbf16, #tpu.memory_space<vmem>>, %arg9: memref<6x1x384xf32, #tpu.memory_space<vmem>>, %arg10: memref<6x128x128xbf16, #tpu.memory_space<vmem>>, %arg11: memref<6x1x128xf32, #tpu.memory_space<vmem>>, %arg12: memref<6x1x128xf32, #tpu.memory_space<vmem>>, %arg13: memref<6x1x128xf32, #tpu.memory_space<vmem>>, %arg14: memref<6x128x512xbf16, #tpu.memory_space<vmem>>, %arg15: memref<6x1x512xf32, #tpu.memory_space<vmem>>, %arg16: memref<6x512x128xbf16, #tpu.memory_space<vmem>>, %arg17: memref<6x1x128xf32, #tpu.memory_space<vmem>>, %arg18: memref<8x128x128xbf16, #tpu.memory_space<vmem>>, %arg19: memref<1x128xf32, #tpu.memory_space<vmem>>, %arg20: memref<16x128xf32, #tpu.memory_space<vmem>>) attributes {dimension_semantics = [#tpu.dimension_semantics<parallel>], iteration_bounds = array<i64: 2>, scalar_prefetch = 0 : i64, scratch_operands = 0 : i64, tpu.core_type = #tpu.core_type<tc>, window_params = [{transform_indices = @transform_0, window_bounds = array<i64: 128, 6>}, {pipeline_mode = #tpu.pipeline_mode<synchronous>, transform_indices = @transform_1, window_bounds = array<i64: 128, 128>}, {pipeline_mode = #tpu.pipeline_mode<synchronous>, transform_indices = @transform_2, window_bounds = array<i64: 128, 128>}, {pipeline_mode = #tpu.pipeline_mode<synchronous>, transform_indices = @transform_3, window_bounds = array<i64: 6, 128>}, {pipeline_mode = #tpu.pipeline_mode<synchronous>, transform_indices = @transform_4, window_bounds = array<i64: 1, 128>}, {pipeline_mode = #tpu.pipeline_mode<synchronous>, transform_indices = @transform_5, window_bounds = array<i64: 6, 1, 128>}, {pipeline_mode = #tpu.pipeline_mode<synchronous>, transform_indices = @transform_6, window_bounds = array<i64: 6, 1, 128>}, {pipeline_mode = #tpu.pipeline_mode<synchronous>, transform_indices = @transform_7, window_bounds = array<i64: 6, 128, 384>}, {pipeline_mode = #tpu.pipeline_mode<synchronous>, transform_indices = @transform_8, window_bounds = array<i64: 6, 1, 384>}, {pipeline_mode = #tpu.pipeline_mode<synchronous>, transform_indices = @transform_9, window_bounds = array<i64: 6, 128, 128>}, {pipeline_mode = #tpu.pipeline_mode<synchronous>, transform_indices = @transform_10, window_bounds = array<i64: 6, 1, 128>}, {pipeline_mode = #tpu.pipeline_mode<synchronous>, transform_indices = @transform_11, window_bounds = array<i64: 6, 1, 128>}, {pipeline_mode = #tpu.pipeline_mode<synchronous>, transform_indices = @transform_12, window_bounds = array<i64: 6, 1, 128>}, {pipeline_mode = #tpu.pipeline_mode<synchronous>, transform_indices = @transform_13, window_bounds = array<i64: 6, 128, 512>}, {pipeline_mode = #tpu.pipeline_mode<synchronous>, transform_indices = @transform_14, window_bounds = array<i64: 6, 1, 512>}, {pipeline_mode = #tpu.pipeline_mode<synchronous>, transform_indices = @transform_15, window_bounds = array<i64: 6, 512, 128>}, {pipeline_mode = #tpu.pipeline_mode<synchronous>, transform_indices = @transform_16, window_bounds = array<i64: 6, 1, 128>}, {pipeline_mode = #tpu.pipeline_mode<synchronous>, transform_indices = @transform_17, window_bounds = array<i64: 8, 128, 128>}, {pipeline_mode = #tpu.pipeline_mode<synchronous>, transform_indices = @transform_18, window_bounds = array<i64: 1, 128>}, {transform_indices = @transform_19, window_bounds = array<i64: 16, 128>}]} {
    %c0 = arith.constant 0 : index
    %c0_0 = arith.constant 0 : index
    %0 = vector.load %arg1[%c0, %c0_0] : memref<128x6xf32, #tpu.memory_space<vmem>>, vector<128x6xf32>
    %1 = arith.truncf %0 : vector<128x6xf32> to vector<128x6xbf16>
    %c0_1 = arith.constant 0 : index
    %c0_2 = arith.constant 0 : index
    %2 = vector.load %arg4[%c0_1, %c0_2] : memref<6x128xbf16, #tpu.memory_space<vmem>>, vector<6x128xbf16>
    %cst = arith.constant dense<0.000000e+00> : vector<128x128xf32>
    %3 = tpu.matmul %1, %2, %cst {dimension_numbers = #tpu.dot_dimension_numbers<[1], [0], [0], [1], [0, 0, 1, 1], [], []>} : vector<128x6xbf16>, vector<6x128xbf16>, vector<128x128xf32> -> vector<128x128xf32>
    %c0_3 = arith.constant 0 : index
    %c0_4 = arith.constant 0 : index
    %4 = vector.load %arg5[%c0_3, %c0_4] : memref<1x128xf32, #tpu.memory_space<vmem>>, vector<1x128xf32>
    %5 = vector.broadcast %4 : vector<1x128xf32> to vector<128x128xf32>
    %6 = arith.addf %3, %5 : vector<128x128xf32>
    %c0_5 = arith.constant 0 : index
    %c0_6 = arith.constant 0 : index
    %7 = vector.load %arg2[%c0_5, %c0_6] : memref<128x128xf32, #tpu.memory_space<vmem>>, vector<128x128xf32>
    %8 = arith.addf %6, %7 : vector<128x128xf32>
    %c0_i32 = arith.constant 0 : i32
    %c6_i32 = arith.constant 6 : i32
    %9 = arith.addi %c0_i32, %c6_i32 : i32
    %c1_i32 = arith.constant 1 : i32
    %10 = scf.for %arg21 = %c0_i32 to %9 step %c1_i32 iter_args(%arg22 = %8) -> (vector<128x128xf32>)  : i32 {
      %c0_37 = arith.constant 0 : index
      %c0_38 = arith.constant 0 : index
      %55 = vector.load %arg3[%c0_37, %c0_38] : memref<128x128xf32, #tpu.memory_space<vmem>>, vector<128x128xf32>
      %56 = arith.index_cast %arg21 : i32 to index
      %c0_39 = arith.constant 0 : index
      %c0_40 = arith.constant 0 : index
      %57 = vector.load %arg6[%56, %c0_39, %c0_40] : memref<6x1x128xf32, #tpu.memory_space<vmem>>, vector<1x1x128xf32>
      %58 = vector.shape_cast %57 : vector<1x1x128xf32> to vector<1x128xf32>
      %59 = arith.index_cast %arg21 : i32 to index
      %c0_41 = arith.constant 0 : index
      %c0_42 = arith.constant 0 : index
      %60 = vector.load %arg7[%59, %c0_41, %c0_42] : memref<6x1x128xf32, #tpu.memory_space<vmem>>, vector<1x1x128xf32>
      %61 = vector.shape_cast %60 : vector<1x1x128xf32> to vector<1x128xf32>
      %cst_43 = arith.constant dense<0.000000e+00> : vector<128xf32>
      %62 = vector.multi_reduction <add>, %arg22, %cst_43 [1] : vector<128x128xf32> to vector<128xf32>
      %63 = vector.shape_cast %62 : vector<128xf32> to vector<128x1xf32>
      %cst_44 = arith.constant 1.280000e+02 : f32
      %64 = vector.broadcast %cst_44 : f32 to vector<128x1xf32>
      %65 = arith.divf %63, %64 : vector<128x1xf32>
      %66 = vector.broadcast %65 : vector<128x1xf32> to vector<128x128xf32>
      %67 = arith.subf %arg22, %66 : vector<128x128xf32>
      %68 = arith.mulf %67, %67 : vector<128x128xf32>
      %cst_45 = arith.constant dense<0.000000e+00> : vector<128xf32>
      %69 = vector.multi_reduction <add>, %68, %cst_45 [1] : vector<128x128xf32> to vector<128xf32>
      %70 = vector.shape_cast %69 : vector<128xf32> to vector<128x1xf32>
      %cst_46 = arith.constant 1.280000e+02 : f32
      %71 = vector.broadcast %cst_46 : f32 to vector<128x1xf32>
      %72 = arith.divf %70, %71 : vector<128x1xf32>
      %cst_47 = arith.constant 9.99999974E-6 : f32
      %73 = vector.broadcast %cst_47 : f32 to vector<128x1xf32>
      %74 = arith.addf %72, %73 : vector<128x1xf32>
      %75 = math.rsqrt %74 : vector<128x1xf32>
      %76 = vector.broadcast %75 : vector<128x1xf32> to vector<128x128xf32>
      %77 = arith.mulf %67, %76 : vector<128x128xf32>
      %78 = vector.broadcast %58 : vector<1x128xf32> to vector<128x128xf32>
      %79 = arith.mulf %77, %78 : vector<128x128xf32>
      %80 = vector.broadcast %61 : vector<1x128xf32> to vector<128x128xf32>
      %81 = arith.addf %79, %80 : vector<128x128xf32>
      %82 = arith.truncf %81 : vector<128x128xf32> to vector<128x128xbf16>
      %83 = arith.index_cast %arg21 : i32 to index
      %c0_48 = arith.constant 0 : index
      %c0_49 = arith.constant 0 : index
      %84 = vector.load %arg8[%83, %c0_48, %c0_49] : memref<6x128x384xbf16, #tpu.memory_space<vmem>>, vector<1x128x384xbf16>
      %85 = vector.shape_cast %84 : vector<1x128x384xbf16> to vector<128x384xbf16>
      %cst_50 = arith.constant dense<0.000000e+00> : vector<128x384xf32>
      %86 = tpu.matmul %82, %85, %cst_50 {dimension_numbers = #tpu.dot_dimension_numbers<[1], [0], [0], [1], [0, 0, 1, 1], [], []>} : vector<128x128xbf16>, vector<128x384xbf16>, vector<128x384xf32> -> vector<128x384xf32>
      %87 = arith.index_cast %arg21 : i32 to index
      %c0_51 = arith.constant 0 : index
      %c0_52 = arith.constant 0 : index
      %88 = vector.load %arg9[%87, %c0_51, %c0_52] : memref<6x1x384xf32, #tpu.memory_space<vmem>>, vector<1x1x384xf32>
      %89 = vector.shape_cast %88 : vector<1x1x384xf32> to vector<1x384xf32>
      %90 = vector.broadcast %89 : vector<1x384xf32> to vector<128x384xf32>
      %91 = arith.addf %86, %90 : vector<128x384xf32>
      %92 = arith.truncf %91 : vector<128x384xf32> to vector<128x384xbf16>
      %93 = vector.extract_strided_slice %92 {offsets = [0, 0], sizes = [128, 32], strides = [1, 1]} : vector<128x384xbf16> to vector<128x32xbf16>
      %94 = vector.extract_strided_slice %92 {offsets = [0, 128], sizes = [128, 32], strides = [1, 1]} : vector<128x384xbf16> to vector<128x32xbf16>
      %95 = vector.extract_strided_slice %92 {offsets = [0, 256], sizes = [128, 32], strides = [1, 1]} : vector<128x384xbf16> to vector<128x32xbf16>
      %cst_53 = arith.constant dense<0.000000e+00> : vector<128x128xf32>
      %96 = tpu.matmul %93, %94, %cst_53 {dimension_numbers = #tpu.dot_dimension_numbers<[1], [1], [0], [0], [0, 0, 1, 0], [], []>} : vector<128x32xbf16>, vector<128x32xbf16>, vector<128x128xf32> -> vector<128x128xf32>
      %97 = arith.addf %96, %55 : vector<128x128xf32>
      %cst_54 = arith.constant dense<0xFF800000> : vector<128xf32>
      %98 = vector.multi_reduction <maximumf>, %97, %cst_54 [1] : vector<128x128xf32> to vector<128xf32>
      %99 = vector.shape_cast %98 : vector<128xf32> to vector<128x1xf32>
      %100 = vector.broadcast %99 : vector<128x1xf32> to vector<128x128xf32>
      %101 = arith.subf %97, %100 : vector<128x128xf32>
      %102 = math.exp %101 : vector<128x128xf32>
      %cst_55 = arith.constant dense<0.000000e+00> : vector<128xf32>
      %103 = vector.multi_reduction <add>, %102, %cst_55 [1] : vector<128x128xf32> to vector<128xf32>
      %104 = vector.shape_cast %103 : vector<128xf32> to vector<128x1xf32>
      %105 = tpu.reciprocal %104 {approx = true} : vector<128x1xf32> -> vector<128x1xf32>
      %106 = vector.broadcast %105 : vector<128x1xf32> to vector<128x128xf32>
      %107 = arith.mulf %102, %106 : vector<128x128xf32>
      %108 = arith.truncf %107 : vector<128x128xf32> to vector<128x128xbf16>
      %cst_56 = arith.constant dense<0.000000e+00> : vector<128x32xf32>
      %109 = tpu.matmul %108, %95, %cst_56 {dimension_numbers = #tpu.dot_dimension_numbers<[1], [0], [0], [1], [0, 0, 1, 1], [], []>} : vector<128x128xbf16>, vector<128x32xbf16>, vector<128x32xf32> -> vector<128x32xf32>
      %110 = vector.extract_strided_slice %92 {offsets = [0, 32], sizes = [128, 32], strides = [1, 1]} : vector<128x384xbf16> to vector<128x32xbf16>
      %111 = vector.extract_strided_slice %92 {offsets = [0, 160], sizes = [128, 32], strides = [1, 1]} : vector<128x384xbf16> to vector<128x32xbf16>
      %112 = vector.extract_strided_slice %92 {offsets = [0, 288], sizes = [128, 32], strides = [1, 1]} : vector<128x384xbf16> to vector<128x32xbf16>
      %cst_57 = arith.constant dense<0.000000e+00> : vector<128x128xf32>
      %113 = tpu.matmul %110, %111, %cst_57 {dimension_numbers = #tpu.dot_dimension_numbers<[1], [1], [0], [0], [0, 0, 1, 0], [], []>} : vector<128x32xbf16>, vector<128x32xbf16>, vector<128x128xf32> -> vector<128x128xf32>
      %114 = arith.addf %113, %55 : vector<128x128xf32>
      %cst_58 = arith.constant dense<0xFF800000> : vector<128xf32>
      %115 = vector.multi_reduction <maximumf>, %114, %cst_58 [1] : vector<128x128xf32> to vector<128xf32>
      %116 = vector.shape_cast %115 : vector<128xf32> to vector<128x1xf32>
      %117 = vector.broadcast %116 : vector<128x1xf32> to vector<128x128xf32>
      %118 = arith.subf %114, %117 : vector<128x128xf32>
      %119 = math.exp %118 : vector<128x128xf32>
      %cst_59 = arith.constant dense<0.000000e+00> : vector<128xf32>
      %120 = vector.multi_reduction <add>, %119, %cst_59 [1] : vector<128x128xf32> to vector<128xf32>
      %121 = vector.shape_cast %120 : vector<128xf32> to vector<128x1xf32>
      %122 = tpu.reciprocal %121 {approx = true} : vector<128x1xf32> -> vector<128x1xf32>
      %123 = vector.broadcast %122 : vector<128x1xf32> to vector<128x128xf32>
      %124 = arith.mulf %119, %123 : vector<128x128xf32>
      %125 = arith.truncf %124 : vector<128x128xf32> to vector<128x128xbf16>
      %cst_60 = arith.constant dense<0.000000e+00> : vector<128x32xf32>
      %126 = tpu.matmul %125, %112, %cst_60 {dimension_numbers = #tpu.dot_dimension_numbers<[1], [0], [0], [1], [0, 0, 1, 1], [], []>} : vector<128x128xbf16>, vector<128x32xbf16>, vector<128x32xf32> -> vector<128x32xf32>
      %127 = vector.extract_strided_slice %92 {offsets = [0, 64], sizes = [128, 32], strides = [1, 1]} : vector<128x384xbf16> to vector<128x32xbf16>
      %128 = vector.extract_strided_slice %92 {offsets = [0, 192], sizes = [128, 32], strides = [1, 1]} : vector<128x384xbf16> to vector<128x32xbf16>
      %129 = vector.extract_strided_slice %92 {offsets = [0, 320], sizes = [128, 32], strides = [1, 1]} : vector<128x384xbf16> to vector<128x32xbf16>
      %cst_61 = arith.constant dense<0.000000e+00> : vector<128x128xf32>
      %130 = tpu.matmul %127, %128, %cst_61 {dimension_numbers = #tpu.dot_dimension_numbers<[1], [1], [0], [0], [0, 0, 1, 0], [], []>} : vector<128x32xbf16>, vector<128x32xbf16>, vector<128x128xf32> -> vector<128x128xf32>
      %131 = arith.addf %130, %55 : vector<128x128xf32>
      %cst_62 = arith.constant dense<0xFF800000> : vector<128xf32>
      %132 = vector.multi_reduction <maximumf>, %131, %cst_62 [1] : vector<128x128xf32> to vector<128xf32>
      %133 = vector.shape_cast %132 : vector<128xf32> to vector<128x1xf32>
      %134 = vector.broadcast %133 : vector<128x1xf32> to vector<128x128xf32>
      %135 = arith.subf %131, %134 : vector<128x128xf32>
      %136 = math.exp %135 : vector<128x128xf32>
      %cst_63 = arith.constant dense<0.000000e+00> : vector<128xf32>
      %137 = vector.multi_reduction <add>, %136, %cst_63 [1] : vector<128x128xf32> to vector<128xf32>
      %138 = vector.shape_cast %137 : vector<128xf32> to vector<128x1xf32>
      %139 = tpu.reciprocal %138 {approx = true} : vector<128x1xf32> -> vector<128x1xf32>
      %140 = vector.broadcast %139 : vector<128x1xf32> to vector<128x128xf32>
      %141 = arith.mulf %136, %140 : vector<128x128xf32>
      %142 = arith.truncf %141 : vector<128x128xf32> to vector<128x128xbf16>
      %cst_64 = arith.constant dense<0.000000e+00> : vector<128x32xf32>
      %143 = tpu.matmul %142, %129, %cst_64 {dimension_numbers = #tpu.dot_dimension_numbers<[1], [0], [0], [1], [0, 0, 1, 1], [], []>} : vector<128x128xbf16>, vector<128x32xbf16>, vector<128x32xf32> -> vector<128x32xf32>
      %144 = vector.extract_strided_slice %92 {offsets = [0, 96], sizes = [128, 32], strides = [1, 1]} : vector<128x384xbf16> to vector<128x32xbf16>
      %145 = vector.extract_strided_slice %92 {offsets = [0, 224], sizes = [128, 32], strides = [1, 1]} : vector<128x384xbf16> to vector<128x32xbf16>
      %146 = vector.extract_strided_slice %92 {offsets = [0, 352], sizes = [128, 32], strides = [1, 1]} : vector<128x384xbf16> to vector<128x32xbf16>
      %cst_65 = arith.constant dense<0.000000e+00> : vector<128x128xf32>
      %147 = tpu.matmul %144, %145, %cst_65 {dimension_numbers = #tpu.dot_dimension_numbers<[1], [1], [0], [0], [0, 0, 1, 0], [], []>} : vector<128x32xbf16>, vector<128x32xbf16>, vector<128x128xf32> -> vector<128x128xf32>
      %148 = arith.addf %147, %55 : vector<128x128xf32>
      %cst_66 = arith.constant dense<0xFF800000> : vector<128xf32>
      %149 = vector.multi_reduction <maximumf>, %148, %cst_66 [1] : vector<128x128xf32> to vector<128xf32>
      %150 = vector.shape_cast %149 : vector<128xf32> to vector<128x1xf32>
      %151 = vector.broadcast %150 : vector<128x1xf32> to vector<128x128xf32>
      %152 = arith.subf %148, %151 : vector<128x128xf32>
      %153 = math.exp %152 : vector<128x128xf32>
      %cst_67 = arith.constant dense<0.000000e+00> : vector<128xf32>
      %154 = vector.multi_reduction <add>, %153, %cst_67 [1] : vector<128x128xf32> to vector<128xf32>
      %155 = vector.shape_cast %154 : vector<128xf32> to vector<128x1xf32>
      %156 = tpu.reciprocal %155 {approx = true} : vector<128x1xf32> -> vector<128x1xf32>
      %157 = vector.broadcast %156 : vector<128x1xf32> to vector<128x128xf32>
      %158 = arith.mulf %153, %157 : vector<128x128xf32>
      %159 = arith.truncf %158 : vector<128x128xf32> to vector<128x128xbf16>
      %cst_68 = arith.constant dense<0.000000e+00> : vector<128x32xf32>
      %160 = tpu.matmul %159, %146, %cst_68 {dimension_numbers = #tpu.dot_dimension_numbers<[1], [0], [0], [1], [0, 0, 1, 1], [], []>} : vector<128x128xbf16>, vector<128x32xbf16>, vector<128x32xf32> -> vector<128x32xf32>
      %161 = tpu.concatenate %109, %126, %143, %160 in 1 : vector<128x32xf32>, vector<128x32xf32>, vector<128x32xf32>, vector<128x32xf32> -> vector<128x128xf32>
      %162 = arith.truncf %161 : vector<128x128xf32> to vector<128x128xbf16>
      %163 = arith.index_cast %arg21 : i32 to index
      %c0_69 = arith.constant 0 : index
      %c0_70 = arith.constant 0 : index
      %164 = vector.load %arg10[%163, %c0_69, %c0_70] : memref<6x128x128xbf16, #tpu.memory_space<vmem>>, vector<1x128x128xbf16>
      %165 = vector.shape_cast %164 : vector<1x128x128xbf16> to vector<128x128xbf16>
      %cst_71 = arith.constant dense<0.000000e+00> : vector<128x128xf32>
      %166 = tpu.matmul %162, %165, %cst_71 {dimension_numbers = #tpu.dot_dimension_numbers<[1], [0], [0], [1], [0, 0, 1, 1], [], []>} : vector<128x128xbf16>, vector<128x128xbf16>, vector<128x128xf32> -> vector<128x128xf32>
      %167 = arith.index_cast %arg21 : i32 to index
      %c0_72 = arith.constant 0 : index
      %c0_73 = arith.constant 0 : index
      %168 = vector.load %arg11[%167, %c0_72, %c0_73] : memref<6x1x128xf32, #tpu.memory_space<vmem>>, vector<1x1x128xf32>
      %169 = vector.shape_cast %168 : vector<1x1x128xf32> to vector<1x128xf32>
      %170 = vector.broadcast %169 : vector<1x128xf32> to vector<128x128xf32>
      %171 = arith.addf %166, %170 : vector<128x128xf32>
      %172 = arith.addf %arg22, %171 : vector<128x128xf32>
      %173 = arith.index_cast %arg21 : i32 to index
      %c0_74 = arith.constant 0 : index
      %c0_75 = arith.constant 0 : index
      %174 = vector.load %arg12[%173, %c0_74, %c0_75] : memref<6x1x128xf32, #tpu.memory_space<vmem>>, vector<1x1x128xf32>
      %175 = vector.shape_cast %174 : vector<1x1x128xf32> to vector<1x128xf32>
      %176 = arith.index_cast %arg21 : i32 to index
      %c0_76 = arith.constant 0 : index
      %c0_77 = arith.constant 0 : index
      %177 = vector.load %arg13[%176, %c0_76, %c0_77] : memref<6x1x128xf32, #tpu.memory_space<vmem>>, vector<1x1x128xf32>
      %178 = vector.shape_cast %177 : vector<1x1x128xf32> to vector<1x128xf32>
      %cst_78 = arith.constant dense<0.000000e+00> : vector<128xf32>
      %179 = vector.multi_reduction <add>, %172, %cst_78 [1] : vector<128x128xf32> to vector<128xf32>
      %180 = vector.shape_cast %179 : vector<128xf32> to vector<128x1xf32>
      %cst_79 = arith.constant 1.280000e+02 : f32
      %181 = vector.broadcast %cst_79 : f32 to vector<128x1xf32>
      %182 = arith.divf %180, %181 : vector<128x1xf32>
      %183 = vector.broadcast %182 : vector<128x1xf32> to vector<128x128xf32>
      %184 = arith.subf %172, %183 : vector<128x128xf32>
      %185 = arith.mulf %184, %184 : vector<128x128xf32>
      %cst_80 = arith.constant dense<0.000000e+00> : vector<128xf32>
      %186 = vector.multi_reduction <add>, %185, %cst_80 [1] : vector<128x128xf32> to vector<128xf32>
      %187 = vector.shape_cast %186 : vector<128xf32> to vector<128x1xf32>
      %cst_81 = arith.constant 1.280000e+02 : f32
      %188 = vector.broadcast %cst_81 : f32 to vector<128x1xf32>
      %189 = arith.divf %187, %188 : vector<128x1xf32>
      %cst_82 = arith.constant 9.99999974E-6 : f32
      %190 = vector.broadcast %cst_82 : f32 to vector<128x1xf32>
      %191 = arith.addf %189, %190 : vector<128x1xf32>
      %192 = math.rsqrt %191 : vector<128x1xf32>
      %193 = vector.broadcast %192 : vector<128x1xf32> to vector<128x128xf32>
      %194 = arith.mulf %184, %193 : vector<128x128xf32>
      %195 = vector.broadcast %175 : vector<1x128xf32> to vector<128x128xf32>
      %196 = arith.mulf %194, %195 : vector<128x128xf32>
      %197 = vector.broadcast %178 : vector<1x128xf32> to vector<128x128xf32>
      %198 = arith.addf %196, %197 : vector<128x128xf32>
      %199 = arith.truncf %198 : vector<128x128xf32> to vector<128x128xbf16>
      %200 = arith.index_cast %arg21 : i32 to index
      %c0_83 = arith.constant 0 : index
      %c0_84 = arith.constant 0 : index
      %201 = vector.load %arg14[%200, %c0_83, %c0_84] : memref<6x128x512xbf16, #tpu.memory_space<vmem>>, vector<1x128x512xbf16>
      %202 = vector.shape_cast %201 : vector<1x128x512xbf16> to vector<128x512xbf16>
      %cst_85 = arith.constant dense<0.000000e+00> : vector<128x512xf32>
      %203 = tpu.matmul %199, %202, %cst_85 {dimension_numbers = #tpu.dot_dimension_numbers<[1], [0], [0], [1], [0, 0, 1, 1], [], []>} : vector<128x128xbf16>, vector<128x512xbf16>, vector<128x512xf32> -> vector<128x512xf32>
      %204 = arith.index_cast %arg21 : i32 to index
      %c0_86 = arith.constant 0 : index
      %c0_87 = arith.constant 0 : index
      %205 = vector.load %arg15[%204, %c0_86, %c0_87] : memref<6x1x512xf32, #tpu.memory_space<vmem>>, vector<1x1x512xf32>
      %206 = vector.shape_cast %205 : vector<1x1x512xf32> to vector<1x512xf32>
      %207 = vector.broadcast %206 : vector<1x512xf32> to vector<128x512xf32>
      %208 = arith.addf %203, %207 : vector<128x512xf32>
      %cst_88 = arith.constant 5.000000e-01 : f32
      %209 = vector.broadcast %cst_88 : f32 to vector<128x512xf32>
      %210 = arith.mulf %209, %208 : vector<128x512xf32>
      %cst_89 = arith.constant 4.471500e-02 : f32
      %211 = vector.broadcast %cst_89 : f32 to vector<128x512xf32>
      %212 = arith.mulf %211, %208 : vector<128x512xf32>
      %213 = arith.mulf %212, %208 : vector<128x512xf32>
      %214 = arith.mulf %213, %208 : vector<128x512xf32>
      %215 = arith.addf %208, %214 : vector<128x512xf32>
      %cst_90 = arith.constant 0.797884583 : f32
      %216 = vector.broadcast %cst_90 : f32 to vector<128x512xf32>
      %217 = arith.mulf %216, %215 : vector<128x512xf32>
      %218 = math.tanh %217 : vector<128x512xf32>
      %cst_91 = arith.constant 1.000000e+00 : f32
      %219 = vector.broadcast %cst_91 : f32 to vector<128x512xf32>
      %220 = arith.addf %219, %218 : vector<128x512xf32>
      %221 = arith.mulf %210, %220 : vector<128x512xf32>
      %222 = arith.truncf %221 : vector<128x512xf32> to vector<128x512xbf16>
      %223 = arith.index_cast %arg21 : i32 to index
      %c0_92 = arith.constant 0 : index
      %c0_93 = arith.constant 0 : index
      %224 = vector.load %arg16[%223, %c0_92, %c0_93] : memref<6x512x128xbf16, #tpu.memory_space<vmem>>, vector<1x512x128xbf16>
      %225 = vector.shape_cast %224 : vector<1x512x128xbf16> to vector<512x128xbf16>
      %cst_94 = arith.constant dense<0.000000e+00> : vector<128x128xf32>
      %226 = tpu.matmul %222, %225, %cst_94 {dimension_numbers = #tpu.dot_dimension_numbers<[1], [0], [0], [1], [0, 0, 1, 1], [], []>} : vector<128x512xbf16>, vector<512x128xbf16>, vector<128x128xf32> -> vector<128x128xf32>
      %227 = arith.index_cast %arg21 : i32 to index
      %c0_95 = arith.constant 0 : index
      %c0_96 = arith.constant 0 : index
      %228 = vector.load %arg17[%227, %c0_95, %c0_96] : memref<6x1x128xf32, #tpu.memory_space<vmem>>, vector<1x1x128xf32>
      %229 = vector.shape_cast %228 : vector<1x1x128xf32> to vector<1x128xf32>
      %230 = vector.broadcast %229 : vector<1x128xf32> to vector<128x128xf32>
      %231 = arith.addf %226, %230 : vector<128x128xf32>
      %232 = arith.addf %172, %231 : vector<128x128xf32>
      scf.yield %232 : vector<128x128xf32>
    }
    %c6_i32_7 = arith.constant 6 : i32
    %11 = arith.truncf %10 : vector<128x128xf32> to vector<128x128xbf16>
    %12 = vector.extract_strided_slice %11 {offsets = [0, 0], sizes = [16, 128], strides = [1, 1]} : vector<128x128xbf16> to vector<16x128xbf16>
    %c0_8 = arith.constant 0 : index
    %c0_9 = arith.constant 0 : index
    %c0_10 = arith.constant 0 : index
    %13 = vector.load %arg18[%c0_8, %c0_9, %c0_10] : memref<8x128x128xbf16, #tpu.memory_space<vmem>>, vector<1x128x128xbf16>
    %14 = vector.shape_cast %13 : vector<1x128x128xbf16> to vector<128x128xbf16>
    %cst_11 = arith.constant dense<0.000000e+00> : vector<16x128xf32>
    %15 = tpu.matmul %12, %14, %cst_11 {dimension_numbers = #tpu.dot_dimension_numbers<[1], [0], [0], [1], [0, 0, 1, 1], [], []>} : vector<16x128xbf16>, vector<128x128xbf16>, vector<16x128xf32> -> vector<16x128xf32>
    %16 = vector.extract_strided_slice %11 {offsets = [16, 0], sizes = [16, 128], strides = [1, 1]} : vector<128x128xbf16> to vector<16x128xbf16>
    %c1 = arith.constant 1 : index
    %c0_12 = arith.constant 0 : index
    %c0_13 = arith.constant 0 : index
    %17 = vector.load %arg18[%c1, %c0_12, %c0_13] : memref<8x128x128xbf16, #tpu.memory_space<vmem>>, vector<1x128x128xbf16>
    %18 = vector.shape_cast %17 : vector<1x128x128xbf16> to vector<128x128xbf16>
    %cst_14 = arith.constant dense<0.000000e+00> : vector<16x128xf32>
    %19 = tpu.matmul %16, %18, %cst_14 {dimension_numbers = #tpu.dot_dimension_numbers<[1], [0], [0], [1], [0, 0, 1, 1], [], []>} : vector<16x128xbf16>, vector<128x128xbf16>, vector<16x128xf32> -> vector<16x128xf32>
    %20 = arith.addf %15, %19 : vector<16x128xf32>
    %21 = vector.extract_strided_slice %11 {offsets = [32, 0], sizes = [16, 128], strides = [1, 1]} : vector<128x128xbf16> to vector<16x128xbf16>
    %c2 = arith.constant 2 : index
    %c0_15 = arith.constant 0 : index
    %c0_16 = arith.constant 0 : index
    %22 = vector.load %arg18[%c2, %c0_15, %c0_16] : memref<8x128x128xbf16, #tpu.memory_space<vmem>>, vector<1x128x128xbf16>
    %23 = vector.shape_cast %22 : vector<1x128x128xbf16> to vector<128x128xbf16>
    %cst_17 = arith.constant dense<0.000000e+00> : vector<16x128xf32>
    %24 = tpu.matmul %21, %23, %cst_17 {dimension_numbers = #tpu.dot_dimension_numbers<[1], [0], [0], [1], [0, 0, 1, 1], [], []>} : vector<16x128xbf16>, vector<128x128xbf16>, vector<16x128xf32> -> vector<16x128xf32>
    %25 = arith.addf %20, %24 : vector<16x128xf32>
    %26 = vector.extract_strided_slice %11 {offsets = [48, 0], sizes = [16, 128], strides = [1, 1]} : vector<128x128xbf16> to vector<16x128xbf16>
    %c3 = arith.constant 3 : index
    %c0_18 = arith.constant 0 : index
    %c0_19 = arith.constant 0 : index
    %27 = vector.load %arg18[%c3, %c0_18, %c0_19] : memref<8x128x128xbf16, #tpu.memory_space<vmem>>, vector<1x128x128xbf16>
    %28 = vector.shape_cast %27 : vector<1x128x128xbf16> to vector<128x128xbf16>
    %cst_20 = arith.constant dense<0.000000e+00> : vector<16x128xf32>
    %29 = tpu.matmul %26, %28, %cst_20 {dimension_numbers = #tpu.dot_dimension_numbers<[1], [0], [0], [1], [0, 0, 1, 1], [], []>} : vector<16x128xbf16>, vector<128x128xbf16>, vector<16x128xf32> -> vector<16x128xf32>
    %30 = arith.addf %25, %29 : vector<16x128xf32>
    %31 = vector.extract_strided_slice %11 {offsets = [64, 0], sizes = [16, 128], strides = [1, 1]} : vector<128x128xbf16> to vector<16x128xbf16>
    %c4 = arith.constant 4 : index
    %c0_21 = arith.constant 0 : index
    %c0_22 = arith.constant 0 : index
    %32 = vector.load %arg18[%c4, %c0_21, %c0_22] : memref<8x128x128xbf16, #tpu.memory_space<vmem>>, vector<1x128x128xbf16>
    %33 = vector.shape_cast %32 : vector<1x128x128xbf16> to vector<128x128xbf16>
    %cst_23 = arith.constant dense<0.000000e+00> : vector<16x128xf32>
    %34 = tpu.matmul %31, %33, %cst_23 {dimension_numbers = #tpu.dot_dimension_numbers<[1], [0], [0], [1], [0, 0, 1, 1], [], []>} : vector<16x128xbf16>, vector<128x128xbf16>, vector<16x128xf32> -> vector<16x128xf32>
    %35 = arith.addf %30, %34 : vector<16x128xf32>
    %36 = vector.extract_strided_slice %11 {offsets = [80, 0], sizes = [16, 128], strides = [1, 1]} : vector<128x128xbf16> to vector<16x128xbf16>
    %c5 = arith.constant 5 : index
    %c0_24 = arith.constant 0 : index
    %c0_25 = arith.constant 0 : index
    %37 = vector.load %arg18[%c5, %c0_24, %c0_25] : memref<8x128x128xbf16, #tpu.memory_space<vmem>>, vector<1x128x128xbf16>
    %38 = vector.shape_cast %37 : vector<1x128x128xbf16> to vector<128x128xbf16>
    %cst_26 = arith.constant dense<0.000000e+00> : vector<16x128xf32>
    %39 = tpu.matmul %36, %38, %cst_26 {dimension_numbers = #tpu.dot_dimension_numbers<[1], [0], [0], [1], [0, 0, 1, 1], [], []>} : vector<16x128xbf16>, vector<128x128xbf16>, vector<16x128xf32> -> vector<16x128xf32>
    %40 = arith.addf %35, %39 : vector<16x128xf32>
    %41 = vector.extract_strided_slice %11 {offsets = [96, 0], sizes = [16, 128], strides = [1, 1]} : vector<128x128xbf16> to vector<16x128xbf16>
    %c6 = arith.constant 6 : index
    %c0_27 = arith.constant 0 : index
    %c0_28 = arith.constant 0 : index
    %42 = vector.load %arg18[%c6, %c0_27, %c0_28] : memref<8x128x128xbf16, #tpu.memory_space<vmem>>, vector<1x128x128xbf16>
    %43 = vector.shape_cast %42 : vector<1x128x128xbf16> to vector<128x128xbf16>
    %cst_29 = arith.constant dense<0.000000e+00> : vector<16x128xf32>
    %44 = tpu.matmul %41, %43, %cst_29 {dimension_numbers = #tpu.dot_dimension_numbers<[1], [0], [0], [1], [0, 0, 1, 1], [], []>} : vector<16x128xbf16>, vector<128x128xbf16>, vector<16x128xf32> -> vector<16x128xf32>
    %45 = arith.addf %40, %44 : vector<16x128xf32>
    %46 = vector.extract_strided_slice %11 {offsets = [112, 0], sizes = [16, 128], strides = [1, 1]} : vector<128x128xbf16> to vector<16x128xbf16>
    %c7 = arith.constant 7 : index
    %c0_30 = arith.constant 0 : index
    %c0_31 = arith.constant 0 : index
    %47 = vector.load %arg18[%c7, %c0_30, %c0_31] : memref<8x128x128xbf16, #tpu.memory_space<vmem>>, vector<1x128x128xbf16>
    %48 = vector.shape_cast %47 : vector<1x128x128xbf16> to vector<128x128xbf16>
    %cst_32 = arith.constant dense<0.000000e+00> : vector<16x128xf32>
    %49 = tpu.matmul %46, %48, %cst_32 {dimension_numbers = #tpu.dot_dimension_numbers<[1], [0], [0], [1], [0, 0, 1, 1], [], []>} : vector<16x128xbf16>, vector<128x128xbf16>, vector<16x128xf32> -> vector<16x128xf32>
    %50 = arith.addf %45, %49 : vector<16x128xf32>
    %c0_33 = arith.constant 0 : index
    %c0_34 = arith.constant 0 : index
    %51 = vector.load %arg19[%c0_33, %c0_34] : memref<1x128xf32, #tpu.memory_space<vmem>>, vector<1x128xf32>
    %52 = vector.broadcast %51 : vector<1x128xf32> to vector<16x128xf32>
    %53 = arith.addf %50, %52 : vector<16x128xf32>
    %c0_35 = arith.constant 0 : index
    %c0_36 = arith.constant 0 : index
    %54 = vector.load %arg20[%c0_35, %c0_36] : memref<16x128xf32, #tpu.memory_space<vmem>>, vector<16x128xf32>
    tpu.vector_store %arg20[%c0_35, %c0_36], %53 {strides = array<i32>} : memref<16x128xf32, #tpu.memory_space<vmem>>, vector<16x128xf32>,
    return
  }
  func.func @transform_0(%arg0: i32) -> (i32, i32) {
    %c0_i32 = arith.constant 0 : i32
    %c0_i32_0 = arith.constant 0 : i32
    return %arg0, %c0_i32 : i32, i32
  }
  func.func @transform_1(%arg0: i32) -> (i32, i32) {
    %c0_i32 = arith.constant 0 : i32
    %c0_i32_0 = arith.constant 0 : i32
    %c0_i32_1 = arith.constant 0 : i32
    return %c0_i32, %c0_i32_0 : i32, i32
  }
  func.func @transform_2(%arg0: i32) -> (i32, i32) {
    %c0_i32 = arith.constant 0 : i32
    %c0_i32_0 = arith.constant 0 : i32
    %c0_i32_1 = arith.constant 0 : i32
    return %c0_i32, %c0_i32_0 : i32, i32
  }
  func.func @transform_3(%arg0: i32) -> (i32, i32) {
    %c0_i32 = arith.constant 0 : i32
    %c0_i32_0 = arith.constant 0 : i32
    %c0_i32_1 = arith.constant 0 : i32
    return %c0_i32, %c0_i32_0 : i32, i32
  }
  func.func @transform_4(%arg0: i32) -> (i32, i32) {
    %c0_i32 = arith.constant 0 : i32
    %c0_i32_0 = arith.constant 0 : i32
    %c0_i32_1 = arith.constant 0 : i32
    return %c0_i32, %c0_i32_0 : i32, i32
  }
  func.func @transform_5(%arg0: i32) -> (i32, i32, i32) {
    %c0_i32 = arith.constant 0 : i32
    %c0_i32_0 = arith.constant 0 : i32
    %c0_i32_1 = arith.constant 0 : i32
    %c0_i32_2 = arith.constant 0 : i32
    return %c0_i32, %c0_i32_0, %c0_i32_1 : i32, i32, i32
  }
  func.func @transform_6(%arg0: i32) -> (i32, i32, i32) {
    %c0_i32 = arith.constant 0 : i32
    %c0_i32_0 = arith.constant 0 : i32
    %c0_i32_1 = arith.constant 0 : i32
    %c0_i32_2 = arith.constant 0 : i32
    return %c0_i32, %c0_i32_0, %c0_i32_1 : i32, i32, i32
  }
  func.func @transform_7(%arg0: i32) -> (i32, i32, i32) {
    %c0_i32 = arith.constant 0 : i32
    %c0_i32_0 = arith.constant 0 : i32
    %c0_i32_1 = arith.constant 0 : i32
    %c0_i32_2 = arith.constant 0 : i32
    return %c0_i32, %c0_i32_0, %c0_i32_1 : i32, i32, i32
  }
  func.func @transform_8(%arg0: i32) -> (i32, i32, i32) {
    %c0_i32 = arith.constant 0 : i32
    %c0_i32_0 = arith.constant 0 : i32
    %c0_i32_1 = arith.constant 0 : i32
    %c0_i32_2 = arith.constant 0 : i32
    return %c0_i32, %c0_i32_0, %c0_i32_1 : i32, i32, i32
  }
  func.func @transform_9(%arg0: i32) -> (i32, i32, i32) {
    %c0_i32 = arith.constant 0 : i32
    %c0_i32_0 = arith.constant 0 : i32
    %c0_i32_1 = arith.constant 0 : i32
    %c0_i32_2 = arith.constant 0 : i32
    return %c0_i32, %c0_i32_0, %c0_i32_1 : i32, i32, i32
  }
  func.func @transform_10(%arg0: i32) -> (i32, i32, i32) {
    %c0_i32 = arith.constant 0 : i32
    %c0_i32_0 = arith.constant 0 : i32
    %c0_i32_1 = arith.constant 0 : i32
    %c0_i32_2 = arith.constant 0 : i32
    return %c0_i32, %c0_i32_0, %c0_i32_1 : i32, i32, i32
  }
  func.func @transform_11(%arg0: i32) -> (i32, i32, i32) {
    %c0_i32 = arith.constant 0 : i32
    %c0_i32_0 = arith.constant 0 : i32
    %c0_i32_1 = arith.constant 0 : i32
    %c0_i32_2 = arith.constant 0 : i32
    return %c0_i32, %c0_i32_0, %c0_i32_1 : i32, i32, i32
  }
  func.func @transform_12(%arg0: i32) -> (i32, i32, i32) {
    %c0_i32 = arith.constant 0 : i32
    %c0_i32_0 = arith.constant 0 : i32
    %c0_i32_1 = arith.constant 0 : i32
    %c0_i32_2 = arith.constant 0 : i32
    return %c0_i32, %c0_i32_0, %c0_i32_1 : i32, i32, i32
  }
  func.func @transform_13(%arg0: i32) -> (i32, i32, i32) {
    %c0_i32 = arith.constant 0 : i32
    %c0_i32_0 = arith.constant 0 : i32
    %c0_i32_1 = arith.constant 0 : i32
    %c0_i32_2 = arith.constant 0 : i32
    return %c0_i32, %c0_i32_0, %c0_i32_1 : i32, i32, i32
  }
  func.func @transform_14(%arg0: i32) -> (i32, i32, i32) {
    %c0_i32 = arith.constant 0 : i32
    %c0_i32_0 = arith.constant 0 : i32
    %c0_i32_1 = arith.constant 0 : i32
    %c0_i32_2 = arith.constant 0 : i32
    return %c0_i32, %c0_i32_0, %c0_i32_1 : i32, i32, i32
  }
  func.func @transform_15(%arg0: i32) -> (i32, i32, i32) {
    %c0_i32 = arith.constant 0 : i32
    %c0_i32_0 = arith.constant 0 : i32
    %c0_i32_1 = arith.constant 0 : i32
    %c0_i32_2 = arith.constant 0 : i32
    return %c0_i32, %c0_i32_0, %c0_i32_1 : i32, i32, i32
  }
  func.func @transform_16(%arg0: i32) -> (i32, i32, i32) {
    %c0_i32 = arith.constant 0 : i32
    %c0_i32_0 = arith.constant 0 : i32
    %c0_i32_1 = arith.constant 0 : i32
    %c0_i32_2 = arith.constant 0 : i32
    return %c0_i32, %c0_i32_0, %c0_i32_1 : i32, i32, i32
  }
  func.func @transform_17(%arg0: i32) -> (i32, i32, i32) {
    %c0_i32 = arith.constant 0 : i32
    %c0_i32_0 = arith.constant 0 : i32
    %c0_i32_1 = arith.constant 0 : i32
    %c0_i32_2 = arith.constant 0 : i32
    return %c0_i32, %c0_i32_0, %c0_i32_1 : i32, i32, i32
  }
  func.func @transform_18(%arg0: i32) -> (i32, i32) {
    %c0_i32 = arith.constant 0 : i32
    %c0_i32_0 = arith.constant 0 : i32
    %c0_i32_1 = arith.constant 0 : i32
    return %c0_i32, %c0_i32_0 : i32, i32
  }
  func.func @transform_19(%arg0: i32) -> (i32, i32) {
    %c0_i32 = arith.constant 0 : i32
    %c0_i32_0 = arith.constant 0 : i32
    return %arg0, %c0_i32 : i32, i32
  }
}

</mosaic_0001>

<bundles_post_ra>
// kernel: tpu_custom_call.1
= control target key start
LH: loop header
LB: loop body
LE: loop exit
PB: predicated region body
PF: predicated region fallthrough
CT: control target
= control target key end

     0   :  { %s12992_s0 = inlined_call_operand.vmem [shape: f32[256,6], index: 0, kind: input, shape index: {}]   ;;  %s12993_s1 = inlined_call_operand.vmem [shape: f32[128,128], index: 1, kind: input, shape index: {}]   ;;  %s12994_s2 = inlined_call_operand.vmem [shape: f32[128,128], index: 2, kind: input, shape index: {}]   ;;  %s12995_s3 = inlined_call_operand.hbm [shape: bf16[6,128], index: 3, kind: input, shape index: {}]   ;;  %s12996_s4 = inlined_call_operand.hbm [shape: f32[1,128], index: 4, kind: input, shape index: {}]   ;;  %s12997_s5 = inlined_call_operand.hbm [shape: f32[6,1,128], index: 5, kind: input, shape index: {}]   ;;  %s12998_s6 = inlined_call_operand.hbm [shape: f32[6,1,128], index: 6, kind: input, shape index: {}]   ;;  %s12999_s7 = inlined_call_operand.hbm [shape: bf16[6,128,384], index: 7, kind: input, shape index: {}]   ;;  %s13000_s8 = inlined_call_operand.vmem [shape: f32[6,1,384], index: 8, kind: input, shape index: {}]   ;;  %s13001_s9 = inlined_call_operand.hbm [shape: bf16[6,128,128], index: 9, kind: input, shape index: {}]   ;;  %s13002_s10 = inlined_call_operand.vmem [shape: f32[6,1,128], index: 10, kind: input, shape index: {}]   ;;  %s13003_s11 = inlined_call_operand.vmem [shape: f32[6,1,128], index: 11, kind: input, shape index: {}]   ;;  %s13004_s12 = inlined_call_operand.vmem [shape: f32[6,1,128], index: 12, kind: input, shape index: {}]   ;;  %s13005_s13 = inlined_call_operand.hbm [shape: bf16[6,128,512], index: 13, kind: input, shape index: {}]   ;;  %s13006_s14 = inlined_call_operand.vmem [shape: f32[6,1,512], index: 14, kind: input, shape index: {}]   ;;  %s13007_s15 = inlined_call_operand.hbm [shape: bf16[6,512,128], index: 15, kind: input, shape index: {}]   ;;  %s13008_s16 = inlined_call_operand.vmem [shape: f32[6,1,128], index: 16, kind: input, shape index: {}]   ;;  %s13009_s17 = inlined_call_operand.hbm [shape: bf16[8,128,128], index: 17, kind: input, shape index: {}]   ;;  %s13010_s18 = inlined_call_operand.vmem [shape: f32[1,128], index: 18, kind: input, shape index: {}]   ;;  %s13011_s19 = inlined_call_operand.hbm [shape: f32[32,128], index: 19, kind: output, shape index: {}]  }
   0x1   :  { %13147 = sst [smem:[#allocation86_spill]] %s12992_s0 }
   0x2   :  { %13148 = sst [smem:[#allocation87_spill]] %s12993_s1 }
   0x3   :  { %13149 = sst [smem:[#allocation88_spill]] %s12994_s2 }
   0x4   :  { %13150 = sst [smem:[#allocation89_spill]] %s12995_s3 }
   0x5   :  { %13151 = sst [smem:[#allocation90_spill]] %s12996_s4 }
   0x6   :  { %13152 = sst [smem:[#allocation91_spill]] %s12998_s6 }
   0x7   :  { %13153 = sst [smem:[#allocation92_spill]] %s13006_s14 }
   0x8   :  { %13154 = sst [smem:[#allocation93_spill]] %s13008_s16 }
   0x9   :  { %13155 = sst [smem:[#allocation94_spill]] %s13010_s18 }
   0xa   :  { %13156 = sst [smem:[#allocation95_spill]] %s13011_s19 }
   0xb   :  { %24 = vsyncpa [#allocation3], 0 }
   0xc   :  { %25 = vsyncpa [#allocation6], 0 }
   0xd   :  { %26 = vsyncpa [#allocation9], 0 }
   0xe   :  { %27 = vsyncpa [#allocation12], 0 }
   0xf   :  { %28 = vsyncpa [#allocation15], 0 }
  0x10   :  { %29 = vsyncpa [#allocation4], 0 }
  0x11   :  { %31 = vsyncpa [#allocation4 + $0x1], 0  ;;  %s9505_s0 = smov 0   ;;  %s9507_s30 = smov 0  }
  0x12   :  { %s9509_s20 = smov 0   ;;  %s9511_s21 = smov 0  }
  0x13 LB: > { %13157 = sst [smem:[#allocation24_spill]] %s9298_s0  ;;  %s9526_s1 = sadd.s32 4294967295, %s9310_s21   ;;  %s9310_s21 = sphi %s9511_s21, %s13487_s21   ;;  %s9306_s20 = sphi %s9509_s20, %s13489_s20   ;;  %s9302_s30 = sphi %s9507_s30, %s13491_s30   ;;  %s9298_s0 = sphi %s9505_s0, %s13490_s0  }
  0x14   : > { %13158 = sst [smem:[#allocation25_spill]] %s9306_s20  ;;  %s6690_s22 = sadd.s32 4294967294, %s9310_s21  }
  0x15   : > { %13159 = sst [smem:[#allocation26_spill]] %s9310_s21  ;;  %s9530_s2 = sadd.s32 1, %s9310_s21  }
  0x16   : > { %13160 = sst [smem:[#allocation27_spill]] %s9530_s2  ;;  %s448_s23 = sadd.s32 1, %s9306_s20 }
  0x17   : > { %s445_s24 = ssub.s32 %s9310_s21, %s9530_s2  ;;  %p458_p0 = scmp.ne.s32.totalorder %s9306_s20, %s9302_s30 }
  0x18   : > { %p446_p1 = scmp.eq.s32.totalorder %s445_s24, 0  ;;  %p459_p2 = scmp.eq.s32.totalorder %s9526_s1, 1 }
  0x19   : > { %p464_p3 = scmp.ne.s32.totalorder %s9302_s30, %s9298_s0  ;;  %p465_p4 = scmp.eq.s32.totalorder %s6690_s22, 1 }
  0x1a   : > { %s9541_s25 = scalar_select %p446_p1, %s9306_s20, %s448_s23  }
  0x1b   : > { %p9543_p5 = por %p459_p2, %p458_p0  ;;  %p9547_p6 = por %p465_p4, %p464_p3 }
  0x1c   : > { %13161 = sst [smem:[#allocation28_spill]] %s9541_s25  ;;  %p6691_p7 = scmp.ge.s32.totalorder %s9310_s21, 1 }
  0x1d   : > { %s13162_s3 = scalar_select %p9543_p5, 1, 0 }
  0x1e   : > { %s13164_s26 = scalar_select %p9547_p6, 1, 0 }
  0x1f   : > { %13163 = sst [smem:[#allocation29_spill]] %s13162_s3  ;;  %p472_p8 = scmp.lt.s32.totalorder %s9310_s21, 3 }
  0x20   : > { %13165 = sst [smem:[#allocation30_spill]] %s13164_s26  ;;  %p13022_p9 = scmp.eq.s32.totalorder %s9526_s1, 0 }
  0x21   : > { %p9554_p10 = pnand %p6691_p7, %p472_p8  ;;  %s9380_s28 = smov [#allocation5]  }
  0x22   : > { %s502_s29 = sshll.u32 %s9380_s28, 4  ;;  %s9381_s23 = smov [#allocation8]   ;;  %s503_s29 = int_to_ptr.vmem [resolvable:$true] %s502_s29 }
  0x23   : > { %s13166_s27 = scalar_select %p9554_p10, 1, 0 }
  0x24   : > { %p7897_p11 = pneg %p9554_p10  ;;  %s525_s24 = sshll.u32 %s9381_s23, 4  ;;  %s9566_s24 = int_to_ptr.vmem [resolvable:$true] %s525_s24 }
  0x25   : > { %s9382_s25 = smov [#allocation11]   ;;  %s13168_s4 = sld [smem:[#allocation90_spill]] }
  0x26   : > { %p9562_p12 = pnand %p13022_p9, %p7897_p11  ;;  %s9568_s20 = sshll.u32 %s9382_s25, 4  ;;  %s555_s20 = int_to_ptr.vmem [resolvable:$true] %s9568_s20 }
  0x28   : > { %p9578_p0 = pneg %p9562_p12 }
  0x2b   : > { %s8908_s28 = scalar_lea.hbm %s13168_s4, 16 }
  0x2c   : > { %p8909_p13 = scmp.ne.s32.totalorder %s13168_s4, %s8908_s28  ;;  %p8915_p3 = scmp.lt.u32.totalorder %s8908_s28, %s13168_s4 }
  0x2e   : > { %p8911_p1 = pnand %p9578_p0, %p8909_p13 }
  0x30   : > { %p8912_p2 = pneg %p8911_p1 }
  0x32   : > { %p8917_p4 = pnand %p8915_p3, %p8912_p2 }
  0x34   : > { %8920 = shalt.err (!%p8917_p4)
}
  0x35   : > { %s8921_s2 = scalar_lea.vmem %s503_s29, 16  ;;  %s8928_s0 = scalar_lea.vmem %s503_s29, 32 }
  0x36   : > { %p8922_p7 = scmp.ne.s32.totalorder %s503_s29, %s8921_s2  ;;  %p8929_p9 = scmp.lt.s32.totalorder %s503_s29, %s503_s29 }
  0x37   : > { %p8930_p6 = scmp.lt.s32.totalorder %s8928_s0, %s8921_s2 }
  0x38   : > { %p8924_p8 = pnand %p8922_p7, %p9578_p0 }
  0x39   : > { %p8931_p5 = por %p8930_p6, %p8929_p9 }
  0x3a   : > { %p8925_p11 = pneg %p8924_p8 }
  0x3c   : > { %p8932_p10 = pnand %p8931_p5, %p8925_p11 }
  0x3e   : > { %8935 = shalt.err (!%p8932_p10)
}
  0x3f   : > { %7903 = dma.hbm_to_vmem [thread:$0]  (!%p9562_p12), %s13168_s4, 16, %s503_s29, [#allocation6]  }
  0x40   : > { %s13170_s6 = sld [smem:[#allocation91_spill]] }
  0x46   : > { %s8936_s25 = scalar_lea.hbm %s13170_s6, 96 }
  0x47   : > { %p8937_p13 = scmp.ne.s32.totalorder %s13170_s6, %s8936_s25  ;;  %p8943_p5 = scmp.lt.u32.totalorder %s8936_s25, %s13170_s6 }
  0x49   : > { %p8939_p1 = pnand %p8937_p13, %p9578_p0 }
  0x4b   : > { %p8940_p6 = pneg %p8939_p1 }
  0x4d   : > { %p8945_p9 = pnand %p8943_p5, %p8940_p6 }
  0x4f   : > { %8948 = shalt.err (!%p8945_p9)
}
  0x50   : > { %s8949_s29 = scalar_lea.vmem %s9566_s24, 96  ;;  %p8957_p4 = scmp.lt.s32.totalorder %s9566_s24, %s9566_s24 }
  0x51   : > { %p8950_p10 = scmp.ne.s32.totalorder %s9566_s24, %s8949_s29  ;;  %p8958_p7 = scmp.lt.s32.totalorder %s8949_s29, %s8949_s29 }
  0x53   : > { %p8952_p2 = pnand %p8950_p10, %p9578_p0  ;;  %p8959_p8 = por %p8958_p7, %p8957_p4 }
  0x55   : > { %p8953_p3 = pneg %p8952_p2 }
  0x57   : > { %p8960_p11 = pnand %p8959_p8, %p8953_p3 }
  0x59   : > { %8963 = shalt.err (!%p8960_p11)
}
  0x5a   : > { %s13027_s18 = smov 16   ;;  %s13029_s3 = smov 1  }
  0x5b   : > { %7909 = dma.hbm_to_vmem [thread:$0]  (!%p9562_p12), %s13170_s6, 96, %s9566_s24, [#allocation9], %s13027_s18, %s13027_s18, %s13029_s3  }
  0x5c   : > { %s8964_s25 = scalar_lea.hbm %s13001_s9, 6144 }
  0x5d   : > { %p8965_p13 = scmp.ne.s32.totalorder %s13001_s9, %s8964_s25  ;;  %p8971_p5 = scmp.lt.u32.totalorder %s8964_s25, %s13001_s9 }
  0x5f   : > { %p8967_p1 = pnand %p8965_p13, %p9578_p0 }
  0x61   : > { %p8968_p6 = pneg %p8967_p1 }
  0x63   : > { %p8973_p9 = pnand %p8971_p5, %p8968_p6 }
  0x65   : > { %8976 = shalt.err (!%p8973_p9)
}
  0x66   : > { %s8977_s21 = scalar_lea.vmem %s555_s20, 6144  ;;  %p8985_p4 = scmp.lt.s32.totalorder %s555_s20, %s555_s20 }
  0x67   : > { %p8978_p10 = scmp.ne.s32.totalorder %s555_s20, %s8977_s21  ;;  %p8986_p7 = scmp.lt.s32.totalorder %s8977_s21, %s8977_s21 }
  0x69   : > { %p8980_p2 = pnand %p8978_p10, %p9578_p0  ;;  %p8987_p8 = por %p8986_p7, %p8985_p4 }
  0x6b   : > { %p8981_p3 = pneg %p8980_p2 }
  0x6d   : > { %p8988_p11 = pnand %p8987_p8, %p8981_p3 }
  0x6f   : > { %8991 = shalt.err (!%p8988_p11)
}
  0x70   : > { %s13030_s24 = smov 64   ;;  %s13031_s26 = smov 4  }
  0x71   : > { %7915 = dma.hbm_to_vmem [thread:$0]  (!%p9562_p12), %s13001_s9, 6144, %s555_s20, [#allocation12], %s13030_s24, %s13030_s24, %s13031_s26  }
  0x72   : > { %s9387_s23 = smov [#allocation14]   ;;  %s9388_s2 = smov [#allocation2]  }
  0x73   : > { %s592_s25 = sshll.u32 %s9387_s23, 4  ;;  %s491_s0 = sshll.u32 %s9388_s2, 4  ;;  %s593_s25 = int_to_ptr.vmem [resolvable:$true] %s592_s25  ;;  %s492_s0 = int_to_ptr.vmem [resolvable:$true] %s491_s0 }
  0x74   : > { %s8992_s18 = scalar_lea.hbm %s13007_s15, 24576 }
  0x75   : > { %p8993_p13 = scmp.ne.s32.totalorder %s13007_s15, %s8992_s18  ;;  %p8999_p5 = scmp.lt.u32.totalorder %s8992_s18, %s13007_s15 }
  0x77   : > { %p8995_p1 = pnand %p8993_p13, %p9578_p0 }
  0x79   : > { %p8996_p6 = pneg %p8995_p1 }
  0x7b   : > { %p9001_p9 = pnand %p8999_p5, %p8996_p6 }
  0x7d   : > { %9004 = shalt.err (!%p9001_p9)
}
  0x7e   : > { %s9005_s20 = scalar_lea.vmem %s593_s25, 24576  ;;  %p9013_p4 = scmp.lt.s32.totalorder %s593_s25, %s593_s25 }
  0x7f   : > { %p9006_p10 = scmp.ne.s32.totalorder %s593_s25, %s9005_s20  ;;  %p9014_p7 = scmp.lt.s32.totalorder %s9005_s20, %s9005_s20 }
  0x81   : > { %p9008_p2 = pnand %p9006_p10, %p9578_p0  ;;  %p9015_p8 = por %p9014_p7, %p9013_p4 }
  0x83   : > { %p9009_p3 = pneg %p9008_p2 }
  0x85   : > { %p9016_p11 = pnand %p9015_p8, %p9009_p3 }
  0x87   : > { %9019 = shalt.err (!%p9016_p11)
}
  0x88   : > { %7921 = dma.hbm_to_vmem [thread:$0]  (!%p9562_p12), %s13007_s15, 24576, %s593_s25, [#allocation15], %s13030_s24, %s13030_s24, %s13031_s26  }
  0x89   : > { %s13171_s3 = sld [smem:[#allocation89_spill]] }
  0x8f   : > { %s9020_s4 = scalar_lea.hbm %s13171_s3, 64 }
  0x90   : > { %p9021_p13 = scmp.ne.s32.totalorder %s13171_s3, %s9020_s4  ;;  %p9027_p5 = scmp.lt.u32.totalorder %s9020_s4, %s13171_s3 }
  0x92   : > { %p9023_p1 = pnand %p9021_p13, %p9578_p0 }
  0x94   : > { %p9024_p6 = pneg %p9023_p1 }
  0x96   : > { %p9029_p9 = pnand %p9027_p5, %p9024_p6 }
  0x98   : > { %9032 = shalt.err (!%p9029_p9)
}
  0x99   : > { %s9033_s21 = scalar_lea.vmem %s492_s0, 64  ;;  %p9041_p4 = scmp.lt.s32.totalorder %s492_s0, %s492_s0 }
  0x9a   : > { %p9034_p10 = scmp.ne.s32.totalorder %s492_s0, %s9033_s21  ;;  %p9042_p7 = scmp.lt.s32.totalorder %s9033_s21, %s9033_s21 }
  0x9c   : > { %p9036_p2 = pnand %p9034_p10, %p9578_p0  ;;  %p9043_p8 = por %p9042_p7, %p9041_p4 }
  0x9e   : > { %p9037_p3 = pneg %p9036_p2 }
  0xa0   : > { %p9044_p11 = pnand %p9043_p8, %p9037_p3 }
  0xa2   : > { %9047 = shalt.err (!%p9044_p11)
}
  0xa3   : > { %7900 = dma.hbm_to_vmem [thread:$0]  (!%p9562_p12), %s13171_s3, 64, %s492_s0, [#allocation3]  }
  0xa4   : > { %s9389_s6 = smov [#allocation7]   ;;  %s9390_s16 = smov [#allocation10]  }
  0xa5   : > { %s512_s14 = sshll.u32 %s9389_s6, 4  ;;  %s538_s18 = sshll.u32 %s9390_s16, 4  ;;  %s513_s14 = int_to_ptr.vmem [resolvable:$true] %s512_s14  ;;  %s539_s18 = int_to_ptr.vmem [resolvable:$true] %s538_s18 }
  0xa6   : > { %s9048_s23 = scalar_lea.hbm %s12997_s5, 96 }
  0xa7   : > { %p9049_p13 = scmp.ne.s32.totalorder %s12997_s5, %s9048_s23  ;;  %p9055_p5 = scmp.lt.u32.totalorder %s9048_s23, %s12997_s5 }
  0xa9   : > { %p9051_p1 = pnand %p9049_p13, %p9578_p0 }
  0xab   : > { %p9052_p6 = pneg %p9051_p1 }
  0xad   : > { %p9057_p9 = pnand %p9055_p5, %p9052_p6 }
  0xaf   : > { %9060 = shalt.err (!%p9057_p9)
}
  0xb0   : > { %s9061_s0 = scalar_lea.vmem %s513_s14, 96  ;;  %p9069_p4 = scmp.lt.s32.totalorder %s513_s14, %s513_s14 }
  0xb1   : > { %p9062_p10 = scmp.ne.s32.totalorder %s513_s14, %s9061_s0  ;;  %p9070_p7 = scmp.lt.s32.totalorder %s9061_s0, %s9061_s0 }
  0xb3   : > { %p9064_p2 = pnand %p9062_p10, %p9578_p0  ;;  %p9071_p8 = por %p9070_p7, %p9069_p4 }
  0xb5   : > { %p9065_p3 = pneg %p9064_p2 }
  0xb7   : > { %p9072_p11 = pnand %p9071_p8, %p9065_p3 }
  0xb9   : > { %9075 = shalt.err (!%p9072_p11)
}
  0xba   : > { %s13172_s20 = smov 1   ;;  %s13173_s6 = smov 16  }
  0xbb   : > { %7906 = dma.hbm_to_vmem [thread:$0]  (!%p9562_p12), %s12997_s5, 96, %s513_s14, [#allocation6], %s13173_s6, %s13173_s6, %s13172_s20  }
  0xbc   : > { %s9076_s2 = scalar_lea.hbm %s12999_s7, 18432 }
  0xbd   : > { %p9077_p13 = scmp.ne.s32.totalorder %s12999_s7, %s9076_s2  ;;  %p9083_p5 = scmp.lt.u32.totalorder %s9076_s2, %s12999_s7 }
  0xbf   : > { %p9079_p1 = pnand %p9077_p13, %p9578_p0 }
  0xc1   : > { %p9080_p6 = pneg %p9079_p1 }
  0xc3   : > { %p9085_p9 = pnand %p9083_p5, %p9080_p6 }
  0xc5   : > { %9088 = shalt.err (!%p9085_p9)
}
  0xc6   : > { %s9089_s16 = scalar_lea.vmem %s539_s18, 18432  ;;  %p9097_p4 = scmp.lt.s32.totalorder %s539_s18, %s539_s18 }
  0xc7   : > { %p9090_p10 = scmp.ne.s32.totalorder %s539_s18, %s9089_s16  ;;  %p9098_p7 = scmp.lt.s32.totalorder %s9089_s16, %s9089_s16 }
  0xc9   : > { %p9092_p2 = pnand %p9090_p10, %p9578_p0  ;;  %p9099_p8 = por %p9098_p7, %p9097_p4 }
  0xcb   : > { %p9093_p3 = pneg %p9092_p2 }
  0xcd   : > { %p9100_p11 = pnand %p9099_p8, %p9093_p3 }
  0xcf   : > { %9103 = shalt.err (!%p9100_p11)
}
  0xd0   : > { %s9391_s14 = smov 192   ;;  %s9392_s20 = smov 12  }
  0xd1   : > { %7912 = dma.hbm_to_vmem [thread:$0]  (!%p9562_p12), %s12999_s7, 18432, %s539_s18, [#allocation9], %s9391_s14, %s9391_s14, %s9392_s20  }
  0xd2   : > { %s9393_s23 = smov [#allocation13]   ;;  %s9104_s25 = scalar_lea.hbm %s13005_s13, 24576 }
  0xd3   : > { %s576_s2 = sshll.u32 %s9393_s23, 4  ;;  %p9105_p13 = scmp.ne.s32.totalorder %s13005_s13, %s9104_s25  ;;  %s577_s2 = int_to_ptr.vmem [resolvable:$true] %s576_s2 }
  0xd4   : > { %p9111_p5 = scmp.lt.u32.totalorder %s9104_s25, %s13005_s13 }
  0xd5   : > { %p9107_p1 = pnand %p9105_p13, %p9578_p0 }
  0xd7   : > { %p9108_p6 = pneg %p9107_p1 }
  0xd9   : > { %p9113_p9 = pnand %p9111_p5, %p9108_p6 }
  0xdb   : > { %9116 = shalt.err (!%p9113_p9)
}
  0xdc   : > { %s9117_s18 = scalar_lea.vmem %s577_s2, 24576  ;;  %p9125_p4 = scmp.lt.s32.totalorder %s577_s2, %s577_s2 }
  0xdd   : > { %p9118_p10 = scmp.ne.s32.totalorder %s577_s2, %s9117_s18  ;;  %p9126_p7 = scmp.lt.s32.totalorder %s9117_s18, %s9117_s18 }
  0xdf   : > { %p9120_p2 = pnand %p9118_p10, %p9578_p0  ;;  %p9127_p8 = por %p9126_p7, %p9125_p4 }
  0xe1   : > { %p9121_p3 = pneg %p9120_p2 }
  0xe3   : > { %p9128_p11 = pnand %p9127_p8, %p9121_p3 }
  0xe5   : > { %9131 = shalt.err (!%p9128_p11)
}
  0xe6   : > { %s9394_s14 = smov 256   ;;  %s9395_s26 = smov [#allocation16]  }
  0xe7   : > { %7918 = dma.hbm_to_vmem [thread:$0]  (!%p9562_p12), %s13005_s13, 24576, %s577_s2, [#allocation12], %s9394_s14, %s9394_s14, %s13173_s6  }
  0xe8   : > { %s608_s4 = sshll.u32 %s9395_s26, 4  ;;  %s9132_s29 = scalar_lea.hbm %s13009_s17, 8192  ;;  %s609_s4 = int_to_ptr.vmem [resolvable:$true] %s608_s4 }
  0xe9   : > { %p9133_p13 = scmp.ne.s32.totalorder %s13009_s17, %s9132_s29  ;;  %p9139_p5 = scmp.lt.u32.totalorder %s9132_s29, %s13009_s17 }
  0xeb   : > { %p9135_p1 = pnand %p9133_p13, %p9578_p0 }
  0xed   : > { %p9136_p6 = pneg %p9135_p1 }
  0xef   : > { %p9141_p9 = pnand %p9139_p5, %p9136_p6 }
  0xf1   : > { %9144 = shalt.err (!%p9141_p9)
}
  0xf2   : > { %s9145_s6 = scalar_lea.vmem %s609_s4, 8192  ;;  %p9153_p4 = scmp.lt.s32.totalorder %s609_s4, %s609_s4 }
  0xf3   : > { %p9146_p10 = scmp.ne.s32.totalorder %s609_s4, %s9145_s6  ;;  %p9154_p7 = scmp.lt.s32.totalorder %s9145_s6, %s9145_s6 }
  0xf5   : > { %p9148_p2 = pnand %p9146_p10, %p9578_p0  ;;  %p9155_p8 = por %p9154_p7, %p9153_p4 }
  0xf7   : > { %p9149_p3 = pneg %p9148_p2 }
  0xf9   : > { %p9156_p11 = pnand %p9155_p8, %p9149_p3 }
  0xfb   : > { %9159 = shalt.err (!%p9156_p11)
}
  0xfc   : > { %s13174_s2 = smov 4   ;;  %s13175_s18 = smov 64  }
  0xfd   : > { %7924 = dma.hbm_to_vmem [thread:$0]  (!%p9562_p12), %s13009_s17, 8192, %s609_s4, [#allocation15], %s13175_s18, %s13175_s18, %s13174_s2  }
  0xfe   : > { %p13176_p13 = scmp.ne.s32.totalorder %s13166_s27, 0 }
  0xff   : > { %p13177_p0 = scmp.eq.s32.totalorder (!%p13176_p13), %s9526_s1, 0 }
 0x100   : > { %636 = sbr.rel (%p13176_p13) target bundleno = 5363 (0x14f3), region = 96 }
 0x107   : > { %9273 = dma.done.wait (%p13177_p0), [#allocation3], 64   ;;  %p13178_p1 = pmov %p13177_p0 }
 0x108   : > { %p13179_p6 = pmov %p13177_p0 }
 0x109   : > { %9275 = vsyncadd (%p13178_p1), [#allocation3], 4294967232 }
 0x10a   : > { %9277 = dma.done.wait (%p13179_p6), [#allocation6], 112   ;;  %p13180_p5 = pmov %p13177_p0 }
 0x10b   : > { %p13181_p9 = pmov %p13177_p0 }
 0x10c   : > { %9279 = vsyncadd (%p13180_p5), [#allocation6], 4294967184 }
 0x10d   : > { %9281 = dma.done.wait (%p13181_p9), [#allocation9], 18528   ;;  %p13182_p12 = pmov %p13177_p0 }
 0x10e   : > { %p13183_p10 = pmov %p13177_p0 }
 0x10f   : > { %9283 = vsyncadd (%p13182_p12), [#allocation9], 4294948768 }
 0x110   : > { %9285 = dma.done.wait (%p13183_p10), [#allocation12], 30720   ;;  %p13184_p2 = pmov %p13177_p0 }
 0x111   : > { %p13185_p3 = pmov %p13177_p0 }
 0x112   : > { %9287 = vsyncadd (%p13184_p2), [#allocation12], 4294936576 }
 0x113   : > { %9289 = dma.done.wait (%p13185_p3), [#allocation15], 32768   ;;  %p13186_p4 = pmov %p13177_p0 }
 0x114   : > { %s721_s19 = sand.u32 1, %s9302_s30   ;;  %s6713_s27 = sshll.u32 %s9526_s1, 4  ;;  %vm789_vm0 = vcmask 1042432   ;;  %v756_v0 = vld [vmem:[#allocation2] sm:$0x7]  ;;  %vm764_vm1 = vcmask 48128  }
 0x115   : > { %9291 = vsyncadd (%p13186_p4), [#allocation15], 4294934528  ;;  %s9786_s22 = sshll.u32 %s721_s19, 4  ;;  %p725_p7 = scmp.lt.s32.totalorder %s6713_s27, 31  ;;  %7825 = vmatprep.subr.msk.bf16.mxu0 %vm789_vm0, %v756_v0  ;;  %7826 = vmatprep.subr.msk.bf16.mxu1 %vm789_vm0, %v756_v0  ;;  %v791_v3 = vsel %vm789_vm0, %v756_v0, 0 }
 0x116   : > { %s13187_s28 = sld [smem:[#allocation86_spill]]  ;;  %7310 = vmatpush3.bf16.msra.mxu0 %v791_v3  ;;  %7808 = vmatpush3.bf16.msra.mxu1 %v791_v3  ;;  %v6715_v26 = vld [vmem:[#allocation5] ss:$0 sm:$0xff]  ;;  %s13188_s25 = sld [smem:[#allocation87_spill]] }
 0x117   : > { %s13493_s27 = smov (!%p725_p7, %s6713_s27), 31  ;;  %s9866_s0 = scalar_lea.vmem [#allocation17], %s9786_s22 }
 0x118   : > { %s6714_s24 = sshll.u32 %s13493_s27, 3  ;;  %s9900_s22 = smov 0  }
 0x11c   : > { %s9791_s23 = scalar_lea.vmem %s13187_s28, %s6714_s24  ;;  %v892_v28 = vld [vmem:[%s13188_s25 + $0x10] sm:$0xff]  ;;  %v890_v34 = vld [vmem:[%s13188_s25] sm:$0xff]  ;;  %v893_v40 = vld [vmem:[%s13188_s25 + $0x18] sm:$0xff] }
 0x11d   : > { %v732_v1 = vld [vmem:[%s9791_s23] sm:$0xff]  ;;  %v733_v2 = vld [vmem:[%s9791_s23 + $0x8] sm:$0xff]  ;;  %v734_v7 = vld [vmem:[%s9791_s23 + $0x10] sm:$0xff] }
 0x11e   : > { %v748_v4 = vpack.c.bf16 %v733_v2, %v732_v1  ;;  %v740_v5 = vld [vmem:[%s9791_s23 + $0x40] sm:$0xff]  ;;  %v741_v6 = vld [vmem:[%s9791_s23 + $0x48] sm:$0xff]  ;;  %v735_v9 = vld [vmem:[%s9791_s23 + $0x18] sm:$0xff] }
 0x11f   : > { %v752_v8 = vpack.c.bf16 %v741_v6, %v740_v5  ;;  %v742_v10 = vld [vmem:[%s9791_s23 + $0x50] sm:$0xff]  ;;  %v743_v11 = vld [vmem:[%s9791_s23 + $0x58] sm:$0xff]  ;;  %v749_v12 = vpack.c.bf16 %v735_v9, %v734_v7  ;;  %v736_v14 = vld [vmem:[%s9791_s23 + $0x20] sm:$0xff] }
 0x120   : > { %7311 = vmatprep.mubr.msk.bf16.mxu0 %vm764_vm1, %v748_v4  ;;  %v753_v13 = vpack.c.bf16 %v743_v11, %v742_v10  ;;  %v737_v15 = vld [vmem:[%s9791_s23 + $0x28] sm:$0xff]  ;;  %v744_v16 = vld [vmem:[%s9791_s23 + $0x60] sm:$0xff]  ;;  %v738_v20 = vld [vmem:[%s9791_s23 + $0x30] sm:$0xff] }
 0x121   : > { %7319 = vmatprep.mubr.msk.bf16.mxu1 %vm764_vm1, %v752_v8  ;;  %v750_v17 = vpack.c.bf16 %v737_v15, %v736_v14  ;;  %v745_v18 = vld [vmem:[%s9791_s23 + $0x68] sm:$0xff]  ;;  %7312 = vmatmul.mubr.msk.bf16.vlgmr.msra.gmra.mrb[0].mxu0 %vm764_vm1, %v749_v12  ;;  %v739_v21 = vld [vmem:[%s9791_s23 + $0x38] sm:$0xff]  ;;  %v746_v22 = vld [vmem:[%s9791_s23 + $0x70] sm:$0xff] }
 0x122   : > { %7320 = vmatmul.mubr.msk.bf16.vlgmr.msra.gmra.mrb[0].mxu1 %vm764_vm1, %v753_v13  ;;  %v754_v19 = vpack.c.bf16 %v745_v18, %v744_v16  ;;  %v747_v23 = vld [vmem:[%s9791_s23 + $0x78] sm:$0xff]  ;;  %v751_v24 = vpack.c.bf16 %v739_v21, %v738_v20  ;;  %v900_v30 = vld [vmem:[%s13188_s25 + $0x50] sm:$0xff]  ;;  %v898_v36 = vld [vmem:[%s13188_s25 + $0x40] sm:$0xff] }
 0x123   : > { %7315 = vmatprep.mubr.msk.bf16.mxu0 %vm764_vm1, %v750_v17  ;;  %v755_v25 = vpack.c.bf16 %v747_v23, %v746_v22  ;;  %v901_v42 = vld [vmem:[%s13188_s25 + $0x58] sm:$0xff]  ;;  %v891_v48 = vld [vmem:[%s13188_s25 + $0x8] sm:$0xff]  ;;  %v896_v60 = vld [vmem:[%s13188_s25 + $0x30] sm:$0xff] }
 0x124   : > { %7323 = vmatprep.mubr.msk.bf16.mxu1 %vm764_vm1, %v754_v19  ;;  %v899_v50 = vld [vmem:[%s13188_s25 + $0x48] sm:$0xff]  ;;  %v904_v62 = vld [vmem:[%s13188_s25 + $0x70] sm:$0xff]  ;;  %v894_v2 = vld [vmem:[%s13188_s25 + $0x20] sm:$0xff] }
 0x125   : > { %v902_v4 = vld [vmem:[%s13188_s25 + $0x60] sm:$0xff]  ;;  %v897_v8 = vld [vmem:[%s13188_s25 + $0x38] sm:$0xff]  ;;  %v895_v16 = vld [vmem:[%s13188_s25 + $0x28] sm:$0xff] }
 0x126   : > { %v905_v10 = vld [vmem:[%s13188_s25 + $0x78] sm:$0xff]  ;;  %v903_v18 = vld [vmem:[%s13188_s25 + $0x68] sm:$0xff] }
 0x129   : > { %7316 = vmatmul.mubr.msk.bf16.gmra.mrb[4].mxu0 %vm764_vm1, %v751_v24 }
 0x12a   : > { %7324 = vmatmul.mubr.msk.bf16.gmra.mrb[4].mxu1 %vm764_vm1, %v755_v25 }
 0x1f4   : > { %v7313_v27 = vpop.f32.mrb[0].mxu0 }
 0x1f5   : > { %v7321_v29 = vpop.f32.mrb[0].mxu1  ;;  %v836_v31 = vadd.f32 %v7313_v27, %v6715_v26  ;;  %v827_v33 = vpop.f32.mrb[1].mxu0 }
 0x1f6   : > { %v868_v32 = vadd.f32 %v7321_v29, %v6715_v26  ;;  %v859_v35 = vpop.f32.mrb[1].mxu1  ;;  %v828_v37 = vadd.f32 %v6715_v26, %v827_v33  ;;  %v7314_v39 = vpop.f32.mrb[2].mxu0 }
 0x1f7   : > { %v860_v38 = vadd.f32 %v6715_v26, %v859_v35  ;;  %v7322_v41 = vpop.f32.mrb[2].mxu1  ;;  %v908_v43 = vadd.f32 %v892_v28, %v836_v31   ;;  %v839_v45 = vadd.f32 %v7314_v39, %v6715_v26  ;;  %v830_v47 = vpop.f32.mrb[3].mxu0 }
 0x1f8   : > { %v916_v44 = vadd.f32 %v900_v30, %v868_v32   ;;  %v871_v46 = vadd.f32 %v7322_v41, %v6715_v26  ;;  %v862_v49 = vpop.f32.mrb[3].mxu1  ;;  %v906_v51 = vadd.f32 %v890_v34, %v828_v37   ;;  %v831_v53 = vadd.f32 %v6715_v26, %v830_v47 }
 0x1f9   : > { %v914_v52 = vadd.f32 %v898_v36, %v860_v38   ;;  %v863_v54 = vadd.f32 %v6715_v26, %v862_v49  ;;  %v909_v55 = vadd.f32 %v893_v40, %v839_v45  }
 0x1fa   : > { %v917_v56 = vadd.f32 %v901_v42, %v871_v46   ;;  %v907_v57 = vadd.f32 %v891_v48, %v831_v53  }
 0x1fb   : > { %v915_v58 = vadd.f32 %v899_v50, %v863_v54  }
 0x1fc   : > { %v7317_v59 = vpop.f32.mrb[4].mxu0 }
 0x1fd   : > { %v7325_v61 = vpop.f32.mrb[4].mxu1  ;;  %v852_v63 = vadd.f32 %v7317_v59, %v6715_v26  ;;  %v843_v1 = vpop.f32.mrb[5].mxu0 }
 0x1fe   : > { %v884_v0 = vadd.f32 %v7325_v61, %v6715_v26  ;;  %v875_v3 = vpop.f32.mrb[5].mxu1  ;;  %v844_v5 = vadd.f32 %v6715_v26, %v843_v1  ;;  %v7318_v7 = vpop.f32.mrb[6].mxu0 }
 0x1ff   : > { %v876_v6 = vadd.f32 %v6715_v26, %v875_v3  ;;  %v7326_v9 = vpop.f32.mrb[6].mxu1  ;;  %v912_v11 = vadd.f32 %v896_v60, %v852_v63   ;;  %v855_v13 = vadd.f32 %v7318_v7, %v6715_v26  ;;  %v846_v15 = vpop.f32.mrb[7].mxu0 }
 0x200   : > { %v920_v12 = vadd.f32 %v904_v62, %v884_v0   ;;  %v887_v14 = vadd.f32 %v7326_v9, %v6715_v26  ;;  %v878_v17 = vpop.f32.mrb[7].mxu1  ;;  %v910_v19 = vadd.f32 %v894_v2, %v844_v5   ;;  %v847_v21 = vadd.f32 %v6715_v26, %v846_v15 }
 0x201   : > { %v918_v20 = vadd.f32 %v902_v4, %v876_v6   ;;  %v879_v22 = vadd.f32 %v6715_v26, %v878_v17  ;;  %v913_v23 = vadd.f32 %v897_v8, %v855_v13  }
 0x202   : > { %v921_v24 = vadd.f32 %v905_v10, %v887_v14   ;;  %v911_v25 = vadd.f32 %v895_v16, %v847_v21  }
 0x203   : > { %v919_v27 = vadd.f32 %v903_v18, %v879_v22  }
 0x204 LB: >> { %13189 = vst [vmem:[#allocation31_spill] sm:$0xff] %v9314_v24  ;;  %13190 = vst [vmem:[#allocation32_spill] sm:$0xff] %v9318_v12  ;;  %964 = vadd.xlane.f32.xlu0 %v9374_v51  ;;  %968 = vadd.xlane.f32.xlu1 %v9366_v43  ;;  %s6935_s16 = smul.u32 192, %s9378_s22  ;;  %s960_s2 = scalar_lea.vmem [#allocation7], %s9378_s22  ;;  %vm1609_vm2 = vcmask 261120   ;;  %vm3586_vm3 = vcmask 523264   ;;  %s9378_s22 = sphi %s9900_s22, %s927_s22   ;;  %v9374_v51 = vphi %v906_v51, %v13478_v51   ;;  %v9370_v57 = vphi %v907_v57, %v13477_v57   ;;  %v9366_v43 = vphi %v908_v43, %v13476_v43   ;;  %v9362_v55 = vphi %v909_v55, %v13475_v55   ;;  %v9358_v19 = vphi %v910_v19, %v13474_v19   ;;  %v9354_v25 = vphi %v911_v25, %v13473_v25   ;;  %v9350_v11 = vphi %v912_v11, %v13472_v11   ;;  %v9346_v23 = vphi %v913_v23, %v13471_v23   ;;  %v9342_v52 = vphi %v914_v52, %v13470_v52   ;;  %v9338_v58 = vphi %v915_v58, %v13469_v58   ;;  %v9334_v44 = vphi %v916_v44, %v13468_v44   ;;  %v9330_v56 = vphi %v917_v56, %v13467_v56   ;;  %v9326_v20 = vphi %v918_v20, %v13466_v20   ;;  %v9322_v27 = vphi %v919_v27, %v13465_v27   ;;  %v9318_v12 = vphi %v920_v12, %v13464_v12   ;;  %v9314_v24 = vphi %v921_v24, %v13463_v24  }
 0x205   : >> { %13191 = vst [vmem:[#allocation33_spill] sm:$0xff] %v9322_v27  ;;  %13192 = vst [vmem:[#allocation34_spill] sm:$0xff] %v9326_v20  ;;  %s962_s18 = scalar_lea.vmem [#allocation8], %s9378_s22  ;;  %s1228_s14 = smul.u32 3, %s9378_s22  ;;  %vm3603_vm4 = vcmask 785408  }
 0x206   : >> { %13193 = vst [vmem:[#allocation35_spill] sm:$0xff] %v9330_v56  ;;  %13194 = vst [vmem:[#allocation36_spill] sm:$0xff] %v9334_v44  ;;  %s9970_s6 = scalar_lea.vmem [#allocation10], %s6935_s16  ;;  %s9397_s26 = smov 96  }
 0x207   : >> { %13195 = vst [vmem:[#allocation37_spill] sm:$0xff] %v9338_v58  ;;  %13196 = vst [vmem:[#allocation38_spill] sm:$0xff] %v9342_v52  ;;  %v8260_v26 = vld [vmem:[%s9970_s6 + $0x4] ss:$12 sps:$4 sm:$0xff]   ;;  %v8262_v28 = vld [vmem:[%s9970_s6] ss:$12 sps:$4 sm:$0xff]   ;;  %s1229_s24 = scalar_lea.vmem %s13000_s8, %s1228_s14 }
 0x208   : >> { %13197 = vst [vmem:[#allocation39_spill] sm:$0xff] %v9346_v23  ;;  %13198 = vst [vmem:[#allocation40_spill] sm:$0xff] %v9350_v11  ;;  %966 = vadd.xlane.f32.xlu0 %v9370_v57  ;;  %970 = vadd.xlane.f32.xlu1 %v9362_v55  ;;  %v8263_v29 = vld [vmem:[%s9970_s6 + $0x1c] ss:$12 sps:$4 sm:$0xff]   ;;  %v8266_v15 = vld [vmem:[%s9970_s6 + $0x18] ss:$12 sps:$4 sm:$0xff]  }
 0x209   : >> { %13199 = vst [vmem:[#allocation41_spill] sm:$0xff] %v9354_v25  ;;  %13200 = vst [vmem:[#allocation42_spill] sm:$0xff] %v9358_v19  ;;  %1375 = vmatprep.subr.bf16.mxu0 %v8260_v26  ;;  %v8265_v30 = vld [vmem:[%s9970_s6 + $0x8] ss:$12 sps:$4 sm:$0xff]   ;;  %s13214_s23 = sld [smem:[#allocation88_spill]]  ;;  %s9398_s14 = smov 64  }
 0x20a   : >> { %13201 = vst [vmem:[#allocation43_spill] sm:$0xff] %v9362_v55  ;;  %13202 = vst [vmem:[#allocation44_spill] sm:$0xff] %v9366_v43  ;;  %1376 = vmatpush1.bf16.msra.mxu0 %v8262_v28  ;;  %7327 = vmatprep.subr.bf16.mxu1 %v8265_v30  ;;  %v8267_v26 = vld [vmem:[%s9970_s6 + $0x34] ss:$12 sps:$4 sm:$0xff]   ;;  %s9399_s20 = smov 32   ;;  %s6936_s4 = sshll.u32 %s9378_s22, 6 }
 0x20b   : >> { %13203 = vst [vmem:[#allocation45_spill] sm:$0xff] %v9370_v57  ;;  %13204 = vst [vmem:[#allocation46_spill] sm:$0xff] %v9374_v51  ;;  %1377 = vmatprep.subr.bf16.mxu0 %v8263_v29  ;;  %7328 = vmatpush3.bf16.msra.mxu1 %v8265_v30  ;;  %v8269_v28 = vld [vmem:[%s9970_s6 + $0x20] ss:$12 sps:$4 sm:$0xff]   ;;  %s3630_s28 = scalar_lea.vmem [#allocation11], %s6936_s4  ;;  %s6937_s29 = sshll.u32 %s9378_s22, 8 }
 0x20c   : >> { %972 = vadd.xlane.f32.xlu0 %v9358_v19  ;;  %974 = vadd.xlane.f32.xlu1 %v9354_v25  ;;  %s11599_s21 = scalar_lea.vmem [#allocation13], %s6937_s29  ;;  %s11609_s16 = scalar_lea.vmem [#allocation14], %s6937_s29 }
 0x20d   : >> { %7329 = vmatprep.subr.bf16.mxu1 %v8269_v28  ;;  %s3818_s4 = scalar_lea.vmem %s13004_s12, %s9378_s22 }
 0x20e   : >> { %1378 = vmatpush1.bf16.msra.mxu0 %v8266_v15  ;;  %v8282_v15 = vld [vmem:[%s9970_s6 + $0x78] ss:$12 sps:$4 sm:$0xff]  }
 0x20f   : >> { %1379 = vmatprep.subr.bf16.mxu0 %v8267_v26  ;;  %7330 = vmatpush3.bf16.msra.mxu1 %v8269_v28  ;;  %v8290_v26 = vld [vmem:[%s9970_s6 + $0xa8] ss:$12 sps:$4 sm:$0xff]   ;;  %v8291_v28 = vld [vmem:[%s9970_s6 + $0xb0] ss:$12 sps:$4 sm:$0xff]  }
 0x210   : >> { %976 = vadd.xlane.f32.xlu0 %v9350_v11  ;;  %978 = vadd.xlane.f32.xlu1 %v9346_v23 }
 0x214   : >> { %980 = vadd.xlane.f32.xlu0 %v9342_v52  ;;  %982 = vadd.xlane.f32.xlu1 %v9338_v58 }
 0x218   : >> { %984 = vadd.xlane.f32.xlu0 %v9334_v44  ;;  %986 = vadd.xlane.f32.xlu1 %v9330_v56 }
 0x21c   : >> { %988 = vadd.xlane.f32.xlu0 %v9326_v20  ;;  %990 = vadd.xlane.f32.xlu1 %v9322_v27 }
 0x220   : >> { %992 = vadd.xlane.f32.xlu0 %v9318_v12  ;;  %994 = vadd.xlane.f32.xlu1 %v9314_v24 }
 0x291   : >> { %v965_v31 = vpop.xlane.xlu0 %964  ;;  %v969_v32 = vpop.xlane.xlu1 %968 }
 0x292   : >> { %v997_v33 = vmul.f32 0.0078125, %v965_v31  ;;  %v999_v34 = vmul.f32 0.0078125, %v969_v32 }
 0x294   : >> { %v9977_v35 = vsub.f32 %v9374_v51, %v997_v33  ;;  %v9980_v36 = vsub.f32 %v9366_v43, %v999_v34  ;;  %v8270_v34 = vld [vmem:[%s9970_s6 + $0x30] ss:$12 sps:$4 sm:$0xff]  }
 0x295   : >> { %v967_v37 = vpop.xlane.xlu0 %966  ;;  %v971_v38 = vpop.xlane.xlu1 %970  ;;  %1380 = vmatpush1.bf16.msra.mxu0 %v8270_v34 }
 0x296   : >> { %v998_v39 = vmul.f32 0.0078125, %v967_v37  ;;  %v1029_v40 = vmul.f32 %v9977_v35, %v9977_v35  ;;  %v1000_v41 = vmul.f32 0.0078125, %v971_v38  ;;  %v1031_v42 = vmul.f32 %v9980_v36, %v9980_v36 }
 0x298   : >> { %1045 = vadd.xlane.f32.xlu0 %v1029_v40  ;;  %v9987_v45 = vsub.f32 %v9370_v57, %v998_v39  ;;  %v9990_v46 = vsub.f32 %v9362_v55, %v1000_v41 }
 0x299   : >> { %v973_v47 = vpop.xlane.xlu0 %972  ;;  %v975_v48 = vpop.xlane.xlu1 %974 }
 0x29a   : >> { %v1001_v49 = vmul.f32 0.0078125, %v973_v47  ;;  %v1030_v50 = vmul.f32 %v9987_v45, %v9987_v45  ;;  %v1002_v53 = vmul.f32 0.0078125, %v975_v48  ;;  %v1032_v59 = vmul.f32 %v9990_v46, %v9990_v46  ;;  %v8271_v47 = vld [vmem:[%s9970_s6 + $0x4c] ss:$12 sps:$4 sm:$0xff]  }
 0x29b   : >> { %v8273_v48 = vld [vmem:[%s9970_s6 + $0x38] ss:$12 sps:$4 sm:$0xff]   ;;  %1381 = vmatprep.subr.bf16.mxu0 %v8271_v47 }
 0x29c   : >> { %1049 = vadd.xlane.f32.xlu0 %v1031_v42  ;;  %1047 = vadd.xlane.f32.xlu1 %v1030_v50  ;;  %v9995_v54 = vsub.f32 %v9358_v19, %v1001_v49  ;;  %v10000_v60 = vsub.f32 %v9354_v25, %v1002_v53  ;;  %v8274_v53 = vld [vmem:[%s9970_s6 + $0x48] ss:$12 sps:$4 sm:$0xff]  }
 0x29d   : >> { %v977_v61 = vpop.xlane.xlu0 %976  ;;  %v979_v62 = vpop.xlane.xlu1 %978  ;;  %7331 = vmatprep.subr.bf16.mxu1 %v8273_v48  ;;  %1382 = vmatpush1.bf16.msra.mxu0 %v8274_v53 }
 0x29e   : >> { %v1003_v63 = vmul.f32 0.0078125, %v977_v61  ;;  %v1033_v0 = vmul.f32 %v9995_v54, %v9995_v54  ;;  %v1004_v1 = vmul.f32 0.0078125, %v979_v62  ;;  %v1034_v3 = vmul.f32 %v10000_v60, %v10000_v60  ;;  %7332 = vmatpush3.bf16.msra.mxu1 %v8273_v48 }
 0x2a0   : >> { %1053 = vadd.xlane.f32.xlu0 %v1033_v0  ;;  %1051 = vadd.xlane.f32.xlu1 %v1032_v59  ;;  %v10005_v2 = vsub.f32 %v9350_v11, %v1003_v63  ;;  %v10010_v4 = vsub.f32 %v9346_v23, %v1004_v1 }
 0x2a1   : >> { %v981_v5 = vpop.xlane.xlu0 %980  ;;  %v983_v6 = vpop.xlane.xlu1 %982 }
 0x2a2   : >> { %v1005_v7 = vmul.f32 0.0078125, %v981_v5  ;;  %v1035_v8 = vmul.f32 %v10005_v2, %v10005_v2  ;;  %v1006_v9 = vmul.f32 0.0078125, %v983_v6  ;;  %v1036_v13 = vmul.f32 %v10010_v4, %v10010_v4  ;;  %v8277_v5 = vld [vmem:[%s9970_s6 + $0x50] ss:$12 sps:$4 sm:$0xff]   ;;  %v8278_v6 = vld [vmem:[%s9970_s6 + $0x60] ss:$12 sps:$4 sm:$0xff]  }
 0x2a3   : >> { %7333 = vmatprep.subr.bf16.mxu1 %v8277_v5 }
 0x2a4   : >> { %1057 = vadd.xlane.f32.xlu0 %v1035_v8  ;;  %1055 = vadd.xlane.f32.xlu1 %v1034_v3  ;;  %v10015_v10 = vsub.f32 %v9342_v52, %v1005_v7  ;;  %v10020_v14 = vsub.f32 %v9338_v58, %v1006_v9  ;;  %v8275_v3 = vld [vmem:[%s9970_s6 + $0x64] ss:$12 sps:$4 sm:$0xff]   ;;  %v8279_v9 = vld [vmem:[%s9970_s6 + $0x7c] ss:$12 sps:$4 sm:$0xff]  }
 0x2a5   : >> { %v985_v16 = vpop.xlane.xlu0 %984  ;;  %v987_v17 = vpop.xlane.xlu1 %986  ;;  %1383 = vmatprep.subr.bf16.mxu0 %v8275_v3  ;;  %7334 = vmatpush3.bf16.msra.mxu1 %v8277_v5  ;;  %v10446_v58 = vld [vmem:[%s13214_s23 + $0x60] sm:$0xff] }
 0x2a6   : >> { %v1007_v18 = vmul.f32 0.0078125, %v985_v16  ;;  %v1037_v21 = vmul.f32 %v10015_v10, %v10015_v10  ;;  %v1008_v22 = vmul.f32 0.0078125, %v987_v17  ;;  %v1038_v30 = vmul.f32 %v10020_v14, %v10020_v14  ;;  %1384 = vmatpush1.bf16.msra.mxu0 %v8278_v6  ;;  %v8283_v16 = vld [vmem:[%s9970_s6 + $0x94] ss:$12 sps:$4 sm:$0xff]   ;;  %13221 = vst [vmem:[#allocation62_spill] sm:$0xff] %v10446_v58 }
 0x2a7   : >> { %1385 = vmatprep.subr.bf16.mxu0 %v8279_v9  ;;  %v8285_v17 = vld [vmem:[%s9970_s6 + $0x80] ss:$12 sps:$4 sm:$0xff]  }
 0x2a8   : >> { %1061 = vadd.xlane.f32.xlu0 %v1037_v21  ;;  %1059 = vadd.xlane.f32.xlu1 %v1036_v13  ;;  %v10028_v29 = vsub.f32 %v9334_v44, %v1007_v18  ;;  %v10033_v31 = vsub.f32 %v9330_v56, %v1008_v22  ;;  %v8281_v13 = vld [vmem:[%s9970_s6 + $0x68] ss:$12 sps:$4 sm:$0xff]   ;;  %v8286_v18 = vld [vmem:[%s9970_s6 + $0x90] ss:$12 sps:$4 sm:$0xff]   ;;  %v8287_v21 = vld [vmem:[%s9970_s6 + $0xac] ss:$12 sps:$4 sm:$0xff]  }
 0x2a9   : >> { %v989_v32 = vpop.xlane.xlu0 %988  ;;  %v991_v33 = vpop.xlane.xlu1 %990  ;;  %7335 = vmatprep.subr.bf16.mxu1 %v8281_v13  ;;  %v8289_v22 = vld [vmem:[%s9970_s6 + $0x98] ss:$12 sps:$4 sm:$0xff]   ;;  %s13429_s6 = sld [smem:[#allocation93_spill]] }
 0x2aa   : >> { %v1009_v37 = vmul.f32 0.0078125, %v989_v32  ;;  %v1039_v38 = vmul.f32 %v10028_v29, %v10028_v29  ;;  %v1010_v39 = vmul.f32 0.0078125, %v991_v33  ;;  %v1040_v41 = vmul.f32 %v10033_v31, %v10033_v31  ;;  %1386 = vmatpush1.bf16.msra.mxu0 %v8282_v15  ;;  %7336 = vmatpush3.bf16.msra.mxu1 %v8281_v13 }
 0x2ab   : >> { %1387 = vmatprep.subr.bf16.mxu0 %v8283_v16  ;;  %7337 = vmatprep.subr.bf16.mxu1 %v8285_v17 }
 0x2ac   : >> { %1065 = vadd.xlane.f32.xlu0 %v1039_v38  ;;  %1063 = vadd.xlane.f32.xlu1 %v1038_v30  ;;  %v10039_v40 = vsub.f32 %v9326_v20, %v1009_v37  ;;  %v10044_v42 = vsub.f32 %v9322_v27, %v1010_v39  ;;  %v13035_v30 = vmov 0   ;;  %v10433_v20 = vld [vmem:[%s13214_s23 + $0x70] sm:$0xff] }
 0x2ad   : >> { %v993_v49 = vpop.xlane.xlu0 %992  ;;  %v995_v50 = vpop.xlane.xlu1 %994  ;;  %1407 = vmatprep.mubr.bf16.mxu0 %v13035_v30  ;;  %13220 = vst [vmem:[#allocation61_spill] sm:$0xff] %v10433_v20 }
 0x2ae   : >> { %v1011_v59 = vmul.f32 0.0078125, %v993_v49  ;;  %v1041_v61 = vmul.f32 %v10039_v40, %v10039_v40  ;;  %v1012_v62 = vmul.f32 0.0078125, %v995_v50  ;;  %v1042_v0 = vmul.f32 %v10044_v42, %v10044_v42  ;;  %1388 = vmatpush1.bf16.msra.mxu0 %v8286_v18  ;;  %7338 = vmatpush3.bf16.msra.mxu1 %v8285_v17 }
 0x2af   : >> { %1389 = vmatprep.subr.bf16.mxu0 %v8287_v21  ;;  %7339 = vmatprep.subr.bf16.mxu1 %v8289_v22  ;;  %v10079_v21 = vld [vmem:[%s960_s2] ss:$0 sm:$0xff]  ;;  %s5167_s2 = scalar_lea.vmem %s13429_s6, %s9378_s22 }
 0x2b0   : >> { %1069 = vadd.xlane.f32.xlu0 %v1041_v61  ;;  %1067 = vadd.xlane.f32.xlu1 %v1040_v41  ;;  %v10052_v63 = vsub.f32 %v9318_v12, %v1011_v59  ;;  %v10057_v1 = vsub.f32 %v9314_v24, %v1012_v62 }
 0x2b2   : >> { %v1043_v7 = vmul.f32 %v10052_v63, %v10052_v63  ;;  %v1044_v8 = vmul.f32 %v10057_v1, %v10057_v1  ;;  %1390 = vmatpush1.bf16.msra.mxu0 %v8290_v26  ;;  %7340 = vmatpush3.bf16.msra.mxu1 %v8289_v22 }
 0x2b3   : >> { %7341 = vmatprep.subr.bf16.mxu1 %v8291_v28 }
 0x2b4   : >> { %1073 = vadd.xlane.f32.xlu0 %v1043_v7  ;;  %1071 = vadd.xlane.f32.xlu1 %v1042_v0 }
 0x2b6   : >> { %7342 = vmatpush3.bf16.msra.mxu1 %v8291_v28 }
 0x2b8   : >> { %1075 = vadd.xlane.f32.xlu1 %v1044_v8 }
 0x325   : >> { %v1046_v32 = vpop.xlane.xlu0 %1045 }
 0x326   : >> { %v1077_v33 = vmul.f32 0.0078125, %v1046_v32 }
 0x328   : >> { %v1093_v34 = vadd.f32 1e-05, %v1077_v33 }
 0x329   : >> { %v1050_v37 = vpop.xlane.xlu0 %1049  ;;  %v1048_v38 = vpop.xlane.xlu1 %1047 }
 0x32a   : >> { %8380 = vrsqrt.f32 %v1093_v34  ;;  %v1079_v39 = vmul.f32 0.0078125, %v1050_v37  ;;  %v1078_v41 = vmul.f32 0.0078125, %v1048_v38 }
 0x32c   : >> { %v1095_v47 = vadd.f32 1e-05, %v1079_v39  ;;  %v1094_v48 = vadd.f32 1e-05, %v1078_v41 }
 0x32d   : >> { %v1054_v49 = vpop.xlane.xlu0 %1053  ;;  %v1052_v50 = vpop.xlane.xlu1 %1051 }
 0x32e   : >> { %8382 = vrsqrt.f32 %v1095_v47  ;;  %v1081_v53 = vmul.f32 0.0078125, %v1054_v49  ;;  %v1080_v59 = vmul.f32 0.0078125, %v1052_v50 }
 0x32f   : >> { %8384 = vrsqrt.f32 %v1094_v48 }
 0x330   : >> { %v1097_v61 = vadd.f32 1e-05, %v1081_v53  ;;  %v1096_v62 = vadd.f32 1e-05, %v1080_v59 }
 0x331   : >> { %v1058_v0 = vpop.xlane.xlu0 %1057  ;;  %v1056_v3 = vpop.xlane.xlu1 %1055 }
 0x332   : >> { %8386 = vrsqrt.f32 %v1097_v61  ;;  %v1083_v5 = vmul.f32 0.0078125, %v1058_v0  ;;  %v1082_v6 = vmul.f32 0.0078125, %v1056_v3 }
 0x333   : >> { %8388 = vrsqrt.f32 %v1096_v62 }
 0x334   : >> { %v8381_v7 = vpop.eup %8380  ;;  %v1099_v8 = vadd.f32 1e-05, %v1083_v5  ;;  %v1098_v9 = vadd.f32 1e-05, %v1082_v6 }
 0x335   : >> { %v1062_v13 = vpop.xlane.xlu0 %1061  ;;  %v1060_v15 = vpop.xlane.xlu1 %1059  ;;  %v1125_v16 = vmul.f32 %v8381_v7, %v9977_v35  ;;  %v10083_v35 = vld [vmem:[%s962_s18] ss:$0 sm:$0xff]  ;;  %s3816_s18 = scalar_lea.vmem %s13003_s11, %s9378_s22 }
 0x336   : >> { %8390 = vrsqrt.f32 %v1099_v8  ;;  %v1085_v17 = vmul.f32 0.0078125, %v1062_v13  ;;  %v1084_v18 = vmul.f32 0.0078125, %v1060_v15 }
 0x337   : >> { %8392 = vrsqrt.f32 %v1098_v9  ;;  %v1147_v37 = vmul.f32 %v10079_v21, %v1125_v16 }
 0x338   : >> { %v8383_v22 = vpop.eup %8382  ;;  %v1101_v26 = vadd.f32 1e-05, %v1085_v17  ;;  %v1100_v28 = vadd.f32 1e-05, %v1084_v18 }
 0x339   : >> { %v8385_v32 = vpop.eup %8384  ;;  %v1066_v33 = vpop.xlane.xlu0 %1065  ;;  %v1127_v47 = vmul.f32 %v8383_v22, %v9980_v36  ;;  %v1169_v0 = vadd.f32 %v10083_v35, %v1147_v37 }
 0x33a   : >> { %v1064_v34 = vpop.xlane.xlu1 %1063  ;;  %8394 = vrsqrt.f32 %v1101_v26  ;;  %v1087_v38 = vmul.f32 0.0078125, %v1066_v33  ;;  %v1126_v41 = vmul.f32 %v8385_v32, %v9987_v45 }
 0x33b   : >> { %v1086_v39 = vmul.f32 0.0078125, %v1064_v34  ;;  %8396 = vrsqrt.f32 %v1100_v28  ;;  %v1149_v7 = vmul.f32 %v10079_v21, %v1127_v47 }
 0x33c   : >> { %v8387_v48 = vpop.eup %8386  ;;  %v1103_v49 = vadd.f32 1e-05, %v1087_v38  ;;  %v1148_v53 = vmul.f32 %v10079_v21, %v1126_v41 }
 0x33d   : >> { %v1102_v50 = vadd.f32 1e-05, %v1086_v39  ;;  %v8389_v59 = vpop.eup %8388  ;;  %v1070_v61 = vpop.xlane.xlu0 %1069  ;;  %v1129_v3 = vmul.f32 %v8387_v48, %v9995_v54  ;;  %v1171_v33 = vadd.f32 %v10083_v35, %v1149_v7 }
 0x33e   : >> { %v1068_v62 = vpop.xlane.xlu1 %1067  ;;  %8398 = vrsqrt.f32 %v1103_v49  ;;  %v1089_v5 = vmul.f32 0.0078125, %v1070_v61  ;;  %v1170_v45 = vadd.f32 %v10083_v35, %v1148_v53  ;;  %v1128_v36 = vmul.f32 %v8389_v59, %v9990_v46 }
 0x33f   : >> { %v1088_v6 = vmul.f32 0.0078125, %v1068_v62  ;;  %8400 = vrsqrt.f32 %v1102_v50  ;;  %v1151_v54 = vmul.f32 %v10079_v21, %v1129_v3 }
 0x340   : >> { %v8391_v8 = vpop.eup %8390  ;;  %v1105_v9 = vadd.f32 1e-05, %v1089_v5  ;;  %v1185_v15 = vpack.c.bf16 %v1170_v45, %v1169_v0  ;;  %v1150_v22 = vmul.f32 %v10079_v21, %v1128_v36 }
 0x341   : >> { %v1104_v13 = vadd.f32 1e-05, %v1088_v6  ;;  %v8393_v16 = vpop.eup %8392  ;;  %v1074_v17 = vpop.xlane.xlu0 %1073  ;;  %v1131_v26 = vmul.f32 %v8391_v8, %v10005_v2  ;;  %v1173_v49 = vadd.f32 %v10083_v35, %v1151_v54 }
 0x342   : >> { %v1072_v18 = vpop.xlane.xlu1 %1071  ;;  %8402 = vrsqrt.f32 %v1105_v9  ;;  %v1091_v28 = vmul.f32 0.0078125, %v1074_v17  ;;  %1408 = vmatmul.mubr.bf16.vlgmr.msra.gmra.mrb[0].mxu0 %v1185_v15  ;;  %7343 = vmatprep.mubr.bf16.mxu1 %v1185_v15  ;;  %v1130_v32 = vmul.f32 %v8393_v16, %v10000_v60  ;;  %v1172_v34 = vadd.f32 %v10083_v35, %v1150_v22 }
 0x343   : >> { %v1090_v46 = vmul.f32 0.0078125, %v1072_v18  ;;  %8404 = vrsqrt.f32 %v1104_v13  ;;  %1417 = vmatprep.mubr.bf16.mxu0 %v13035_v30  ;;  %v1153_v50 = vmul.f32 %v10079_v21, %v1131_v26 }
 0x344   : >> { %v8395_v37 = vpop.eup %8394  ;;  %v1107_v38 = vadd.f32 1e-05, %v1091_v28  ;;  %v1152_v41 = vmul.f32 %v10079_v21, %v1130_v32  ;;  %v1186_v47 = vpack.c.bf16 %v1172_v34, %v1171_v33 }
 0x345   : >> { %v1106_v39 = vadd.f32 1e-05, %v1090_v46  ;;  %v8397_v2 = vpop.eup %8396  ;;  %v1133_v60 = vmul.f32 %v8395_v37, %v10015_v10  ;;  %v1175_v45 = vadd.f32 %v10083_v35, %v1153_v50 }
 0x346   : >> { %v1076_v48 = vpop.xlane.xlu1 %1075  ;;  %8406 = vrsqrt.f32 %v1107_v38  ;;  %v1174_v59 = vadd.f32 %v10083_v35, %v1152_v41  ;;  %v1132_v61 = vmul.f32 %v8397_v2, %v10010_v4  ;;  %7344 = vmatmul.mubr.bf16.vlgmr.msra.gmra.mrb[0].mxu1 %v1186_v47 }
 0x347   : >> { %v1092_v53 = vmul.f32 0.0078125, %v1076_v48  ;;  %8408 = vrsqrt.f32 %v1106_v39  ;;  %v1155_v4 = vmul.f32 %v10079_v21, %v1133_v60  ;;  %v1230_v60 = vld [vmem:[%s1229_s24] sm:$0x7] }
 0x348   : >> { %v8399_v62 = vpop.eup %8398  ;;  %v1187_v3 = vpack.c.bf16 %v1174_v59, %v1173_v49  ;;  %v1154_v5 = vmul.f32 %v10079_v21, %v1132_v61 }
 0x349   : >> { %v1108_v0 = vadd.f32 1e-05, %v1092_v53  ;;  %v8401_v6 = vpop.eup %8400  ;;  %v1135_v36 = vmul.f32 %v8399_v62, %v10028_v29  ;;  %v1177_v29 = vadd.f32 %v10083_v35, %v1155_v4 }
 0x34a   : >> { %1418 = vmatmul.mubr.bf16.gmra.mrb[4].mxu0 %v1186_v47  ;;  %7347 = vmatprep.mubr.bf16.mxu1 %v1187_v3  ;;  %v1176_v10 = vadd.f32 %v10083_v35, %v1154_v5  ;;  %v1134_v7 = vmul.f32 %v8401_v6, %v10020_v14 }
 0x34b   : >> { %8410 = vrsqrt.f32 %v1108_v0  ;;  %1427 = vmatprep.mubr.bf16.mxu0 %v13035_v30  ;;  %v1157_v16 = vmul.f32 %v10079_v21, %v1135_v36 }
 0x34c   : >> { %v8403_v8 = vpop.eup %8402  ;;  %v1188_v9 = vpack.c.bf16 %v1176_v10, %v1175_v45  ;;  %v1156_v13 = vmul.f32 %v10079_v21, %v1134_v7 }
 0x34d   : >> { %v8405_v15 = vpop.eup %8404  ;;  %v1137_v22 = vmul.f32 %v8403_v8, %v10039_v40  ;;  %v1179_v46 = vadd.f32 %v10083_v35, %v1157_v16 }
 0x34e   : >> { %v1178_v17 = vadd.f32 %v10083_v35, %v1156_v13  ;;  %v1136_v18 = vmul.f32 %v8405_v15, %v10033_v31  ;;  %7348 = vmatmul.mubr.bf16.gmra.mrb[4].mxu1 %v1188_v9 }
 0x34f   : >> { %v1159_v31 = vmul.f32 %v10079_v21, %v1137_v22 }
 0x350   : >> { %v8407_v14 = vpop.eup %8406  ;;  %v1189_v54 = vpack.c.bf16 %v1178_v17, %v1177_v29  ;;  %v1158_v26 = vmul.f32 %v10079_v21, %v1136_v18 }
 0x351   : >> { %v8409_v28 = vpop.eup %8408  ;;  %v1139_v32 = vmul.f32 %v8407_v14, %v10052_v63  ;;  %v1181_v63 = vadd.f32 %v10083_v35, %v1159_v31 }
 0x352   : >> { %1428 = vmatmul.mubr.bf16.gmra.mrb[8].mxu0 %v1187_v3  ;;  %7351 = vmatprep.mubr.bf16.mxu1 %v1189_v54  ;;  %v1180_v33 = vadd.f32 %v10083_v35, %v1158_v26  ;;  %v1138_v34 = vmul.f32 %v8409_v28, %v10044_v42 }
 0x353   : >> { %1437 = vmatprep.mubr.bf16.mxu0 %v13035_v30  ;;  %v1161_v41 = vmul.f32 %v10079_v21, %v1139_v32 }
 0x354   : >> { %v1190_v37 = vpack.c.bf16 %v1180_v33, %v1179_v46  ;;  %v1160_v38 = vmul.f32 %v10079_v21, %v1138_v34 }
 0x355   : >> { %v8411_v40 = vpop.eup %8410  ;;  %v1183_v48 = vadd.f32 %v10083_v35, %v1161_v41 }
 0x356   : >> { %v1140_v39 = vmul.f32 %v8411_v40, %v10057_v1  ;;  %v1182_v2 = vadd.f32 %v10083_v35, %v1160_v38  ;;  %7352 = vmatmul.mubr.bf16.gmra.mrb[8].mxu1 %v1190_v37  ;;  %v1232_v1 = vlaneseq }
 0x358   : >> { %v1162_v47 = vmul.f32 %v10079_v21, %v1140_v39  ;;  %v1191_v42 = vpack.c.bf16 %v1182_v2, %v1181_v63  ;;  %v10139_v21 = vshrl.u32 %v1232_v1, 7 }
 0x35a   : >> { %v1184_v49 = vadd.f32 %v10083_v35, %v1162_v47  ;;  %1438 = vmatmul.mubr.bf16.gmra.mrb[12].mxu0 %v1188_v9  ;;  %7355 = vmatprep.mubr.bf16.mxu1 %v1191_v42  ;;  %13205 = vst [vmem:[#allocation47_spill] sm:$0xff] %v10139_v21  ;;  %v13034_v35 = vsub.s32 0, %v10139_v21  ;;  %v13032_v53 = vsub.s32 1, %v10139_v21  ;;  %v13033_v0 = vsub.s32 2, %v10139_v21  ;;  %v10415_v21 = vld [vmem:[%s13214_s23 + $0x40] sm:$0xff] }
 0x35b   : >> { %1447 = vmatprep.mubr.bf16.mxu0 %v13035_v30  ;;  %13218 = vst [vmem:[#allocation59_spill] sm:$0xff] %v10415_v21 }
 0x35c   : >> { %v1192_v50 = vpack.c.bf16 %v1184_v49, %v1183_v48  ;;  %v10148_v59 = vrot.slane %v1230_v60, %v13034_v35  ;;  %v10152_v62 = vrot.slane %v1230_v60, %v13032_v53  ;;  %v10161_v4 = vrot.slane %v1230_v60, %v13033_v0  ;;  %v10397_v53 = vld [vmem:[%s13214_s23 + $0x50] sm:$0xff]  ;;  %v10406_v35 = vld [vmem:[%s13214_s23 + $0x58] sm:$0xff] }
 0x35d   : >> { %13216 = vst [vmem:[#allocation57_spill] sm:$0xff] %v10397_v53  ;;  %13217 = vst [vmem:[#allocation58_spill] sm:$0xff] %v10406_v35 }
 0x35e   : >> { %7356 = vmatmul.mubr.bf16.gmra.mrb[12].mxu1 %v1192_v50 }
 0x362   : >> { %1448 = vmatmul.mubr.bf16.gmra.mrb[16].mxu0 %v1189_v54 }
 0x363   : >> { %1457 = vmatprep.mubr.bf16.mxu0 %v13035_v30 }
 0x36a   : >> { %1458 = vmatmul.mubr.bf16.gmra.mrb[20].mxu0 %v1190_v37 }
 0x36b   : >> { %1467 = vmatprep.mubr.bf16.mxu0 %v13035_v30 }
 0x372   : >> { %1468 = vmatmul.mubr.bf16.gmra.mrb[24].mxu0 %v1191_v42 }
 0x373   : >> { %1477 = vmatprep.mubr.bf16.mxu0 %v13035_v30 }
 0x37a   : >> { %1478 = vmatmul.mubr.bf16.gmra.mrb[28].mxu0 %v1192_v50 }
 0x415   : >> { %v1409_v61 = vpop.f32.mrb[0].mxu0 }
 0x416   : >> { %v1411_v3 = vpop.f32.mrb[1].mxu0  ;;  %v1410_v6 = vadd.f32 %v1409_v61, %v10148_v59 }
 0x417   : >> { %v1413_v5 = vpop.f32.mrb[2].mxu0  ;;  %v1412_v10 = vadd.f32 %v1411_v3, %v10152_v62 }
 0x418   : >> { %v1414_v45 = vadd.f32 %v1413_v5, %v10148_v59  ;;  %v1415_v36 = vpop.f32.mrb[3].mxu0 }
 0x419   : >> { %v1416_v7 = vadd.f32 %v1415_v36, %v10152_v62  ;;  %v7345_v9 = vpop.f32.mrb[0].mxu1 }
 0x41a   : >> { %v10163_v8 = vpack.c.bf16 %v1414_v45, %v1410_v6  ;;  %v1522_v15 = vpop.f32.mrb[1].mxu1  ;;  %v1531_v29 = vadd.f32 %v7345_v9, %v10161_v4 }
 0x41b   : >> { %v10165_v13 = vpack.c.bf16 %v1416_v7, %v1412_v10  ;;  %v7346_v16 = vpop.f32.mrb[2].mxu1  ;;  %v1523_v54 = vadd.f32 %v1522_v15, %v10161_v4 }
 0x41c   : >> { %7375 = vmatprep.mubr.msk.bf16.mxu0 %vm1609_vm2, %v10163_v8  ;;  %v1534_v17 = vadd.f32 %v7346_v16, %v10161_v4  ;;  %v1525_v18 = vpop.f32.mrb[3].mxu1 }
 0x41d   : >> { %2036 = vrot.lane.b32.xlu0 %v10165_v13, %s9397_s26  ;;  %v1419_v22 = vpop.f32.mrb[4].mxu0  ;;  %7827 = vmatprep.subr.msk.bf16.mxu0 %vm1609_vm2, %v10165_v13  ;;  %v1635_v14 = vsel %vm1609_vm2, %v10165_v13, 0  ;;  %v1526_v26 = vadd.f32 %v1525_v18, %v10161_v4 }
 0x41e   : >> { %v1420_v28 = vadd.f32 %v1419_v22, %v10148_v59  ;;  %v1421_v46 = vpop.f32.mrb[5].mxu0  ;;  %7360 = vmatpush3.bf16.xpose.msra.mxu0 %v1635_v14  ;;  %v10180_v32 = vpack.c.bf16 %v1534_v17, %v1531_v29 }
 0x41f   : >> { %v1423_v33 = vpop.f32.mrb[6].mxu0  ;;  %v10182_v34 = vpack.c.bf16 %v1526_v26, %v1523_v54  ;;  %v1422_v37 = vadd.f32 %v1421_v46, %v10152_v62 }
 0x420   : >> { %v1424_v31 = vadd.f32 %v1423_v33, %v10148_v59  ;;  %v1425_v40 = vpop.f32.mrb[7].mxu0 }
 0x421   : >> { %v1426_v38 = vadd.f32 %v1425_v40, %v10152_v62  ;;  %v7349_v41 = vpop.f32.mrb[4].mxu1  ;;  %7391 = vmatprep.subr.bf16.mxu1 %v10182_v34 }
 0x422   : >> { %v10187_v39 = vpack.c.bf16 %v1424_v31, %v1420_v28  ;;  %v1538_v2 = vpop.f32.mrb[5].mxu1  ;;  %7392 = vmatpush3.bf16.msra.mxu1 %v10182_v34  ;;  %v1547_v42 = vadd.f32 %v7349_v41, %v10161_v4 }
 0x423   : >> { %v10190_v63 = vpack.c.bf16 %v1426_v38, %v1422_v37  ;;  %v7350_v47 = vpop.f32.mrb[6].mxu1  ;;  %7393 = vmatprep.subr.bf16.mxu1 %v10180_v32  ;;  %v1539_v60 = vadd.f32 %v1538_v2, %v10161_v4 }
 0x424   : >> { %v1550_v48 = vadd.f32 %v7350_v47, %v10161_v4  ;;  %v1541_v49 = vpop.f32.mrb[7].mxu1 }
 0x425   : >> { %2038 = vrot.lane.b32.xlu1 %v10190_v63, %s9397_s26  ;;  %v1429_v50 = vpop.f32.mrb[8].mxu0  ;;  %7828 = vmatprep.subr.msk.bf16.mxu0 %vm1609_vm2, %v10190_v63  ;;  %v1638_v1 = vsel %vm1609_vm2, %v10190_v63, 0  ;;  %v1542_v61 = vadd.f32 %v1541_v49, %v10161_v4 }
 0x426   : >> { %v1430_v3 = vadd.f32 %v1429_v50, %v10148_v59  ;;  %v1431_v5 = vpop.f32.mrb[9].mxu0  ;;  %7362 = vmatpush3.bf16.xpose.msra.mxu0 %v1638_v1  ;;  %v10205_v6 = vpack.c.bf16 %v1550_v48, %v1547_v42  ;;  %7394 = vmatpush3.bf16.msra.mxu1 %v10180_v32 }
 0x427   : >> { %v1433_v45 = vpop.f32.mrb[10].mxu0  ;;  %v10208_v36 = vpack.c.bf16 %v1542_v61, %v1539_v60  ;;  %v1432_v9 = vadd.f32 %v1431_v5, %v10152_v62 }
 0x428   : >> { %v1434_v10 = vadd.f32 %v1433_v45, %v10148_v59  ;;  %v1435_v7 = vpop.f32.mrb[11].mxu0 }
 0x429   : >> { %v1436_v15 = vadd.f32 %v1435_v7, %v10152_v62  ;;  %v7353_v29 = vpop.f32.mrb[8].mxu1  ;;  %7395 = vmatprep.subr.bf16.mxu1 %v10208_v36 }
 0x42a   : >> { %v10213_v16 = vpack.c.bf16 %v1434_v10, %v1430_v3  ;;  %v1554_v18 = vpop.f32.mrb[9].mxu1  ;;  %7396 = vmatpush3.bf16.msra.mxu1 %v10208_v36  ;;  %v1563_v14 = vadd.f32 %v7353_v29, %v10161_v4 }
 0x42b   : >> { %v10216_v17 = vpack.c.bf16 %v1436_v15, %v1432_v9  ;;  %v7354_v22 = vpop.f32.mrb[10].mxu1  ;;  %7397 = vmatprep.subr.bf16.mxu1 %v10205_v6  ;;  %v1555_v33 = vadd.f32 %v1554_v18, %v10161_v4 }
 0x42c   : >> { %v1566_v54 = vadd.f32 %v7354_v22, %v10161_v4  ;;  %v1557_v26 = vpop.f32.mrb[11].mxu1 }
 0x42d   : >> { %13206 = vst [vmem:[#allocation48_spill] sm:$0xff] %v10216_v17  ;;  %v1439_v28 = vpop.f32.mrb[12].mxu0  ;;  %7829 = vmatprep.subr.msk.bf16.mxu0 %vm1609_vm2, %v10216_v17  ;;  %v1641_v46 = vsel %vm1609_vm2, %v10216_v17, 0  ;;  %v1558_v31 = vadd.f32 %v1557_v26, %v10161_v4 }
 0x42e   : >> { %v1440_v40 = vadd.f32 %v1439_v28, %v10148_v59  ;;  %v1441_v37 = vpop.f32.mrb[13].mxu0  ;;  %7364 = vmatpush3.bf16.xpose.msra.mxu0 %v1641_v46  ;;  %v10229_v38 = vpack.c.bf16 %v1566_v54, %v1563_v14  ;;  %7398 = vmatpush3.bf16.msra.mxu1 %v10205_v6 }
 0x42f   : >> { %v1443_v41 = vpop.f32.mrb[14].mxu0  ;;  %v10232_v2 = vpack.c.bf16 %v1558_v31, %v1555_v33  ;;  %v1442_v48 = vadd.f32 %v1441_v37, %v10152_v62 }
 0x430   : >> { %13207 = vst [vmem:[#allocation49_spill] sm:$0xff] %v10229_v38  ;;  %v1444_v47 = vadd.f32 %v1443_v41, %v10148_v59  ;;  %v1445_v42 = vpop.f32.mrb[15].mxu0 }
 0x431   : >> { %13208 = vst [vmem:[#allocation50_spill] sm:$0xff] %v10232_v2  ;;  %v1446_v49 = vadd.f32 %v1445_v42, %v10152_v62  ;;  %v7357_v1 = vpop.f32.mrb[12].mxu1  ;;  %7399 = vmatprep.subr.bf16.mxu1 %v10232_v2 }
 0x432   : >> { %v10237_v50 = vpack.c.bf16 %v1444_v47, %v1440_v40  ;;  %v1570_v61 = vpop.f32.mrb[13].mxu1  ;;  %7400 = vmatpush3.bf16.msra.mxu1 %v10232_v2  ;;  %v1579_v5 = vadd.f32 %v7357_v1, %v10161_v4 }
 0x433   : >> { %v10240_v60 = vpack.c.bf16 %v1446_v49, %v1442_v48  ;;  %v7358_v3 = vpop.f32.mrb[14].mxu1  ;;  %7401 = vmatprep.subr.bf16.mxu1 %v10229_v38  ;;  %v1571_v15 = vadd.f32 %v1570_v61, %v10161_v4 }
 0x434   : >> { %v1582_v45 = vadd.f32 %v7358_v3, %v10161_v4  ;;  %v1573_v10 = vpop.f32.mrb[15].mxu1 }
 0x435   : >> { %13209 = vst [vmem:[#allocation51_spill] sm:$0xff] %v10240_v60  ;;  %v1449_v7 = vpop.f32.mrb[16].mxu0  ;;  %7830 = vmatprep.subr.msk.bf16.mxu0 %vm1609_vm2, %v10240_v60  ;;  %v1644_v9 = vsel %vm1609_vm2, %v10240_v60, 0  ;;  %v1574_v29 = vadd.f32 %v1573_v10, %v10161_v4 }
 0x436   : >> { %v1450_v18 = vadd.f32 %v1449_v7, %v10148_v59  ;;  %v1451_v22 = vpop.f32.mrb[17].mxu0  ;;  %7366 = vmatpush3.bf16.xpose.msra.mxu0 %v1644_v9  ;;  %v10253_v14 = vpack.c.bf16 %v1582_v45, %v1579_v5  ;;  %7402 = vmatpush3.bf16.msra.mxu1 %v10229_v38 }
 0x437   : >> { %v1453_v54 = vpop.f32.mrb[18].mxu0  ;;  %v10256_v26 = vpack.c.bf16 %v1574_v29, %v1571_v15  ;;  %v1452_v33 = vadd.f32 %v1451_v22, %v10152_v62 }
 0x438   : >> { %13210 = vst [vmem:[#allocation52_spill] sm:$0xff] %v10253_v14  ;;  %v1454_v28 = vadd.f32 %v1453_v54, %v10148_v59  ;;  %v1455_v46 = vpop.f32.mrb[19].mxu0 }
 0x439   : >> { %13211 = vst [vmem:[#allocation53_spill] sm:$0xff] %v10256_v26  ;;  %v1456_v31 = vadd.f32 %v1455_v46, %v10152_v62  ;;  %7403 = vmatprep.subr.bf16.mxu1 %v10256_v26 }
 0x43a   : >> { %v10261_v40 = vpack.c.bf16 %v1454_v28, %v1450_v18  ;;  %7404 = vmatpush3.bf16.msra.mxu1 %v10256_v26 }
 0x43b   : >> { %v10264_v4 = vpack.c.bf16 %v1456_v31, %v1452_v33  ;;  %7405 = vmatprep.subr.bf16.mxu1 %v10253_v14 }
 0x43d   : >> { %13212 = vst [vmem:[#allocation54_spill] sm:$0xff] %v10264_v4  ;;  %v1459_v37 = vpop.f32.mrb[20].mxu0  ;;  %7831 = vmatprep.subr.msk.bf16.mxu0 %vm1609_vm2, %v10264_v4  ;;  %v1647_v41 = vsel %vm1609_vm2, %v10264_v4, 0 }
 0x43e   : >> { %v1460_v47 = vadd.f32 %v1459_v37, %v10148_v59  ;;  %v1461_v42 = vpop.f32.mrb[21].mxu0  ;;  %7368 = vmatpush3.bf16.xpose.msra.mxu0 %v1647_v41  ;;  %7406 = vmatpush3.bf16.msra.mxu1 %v10253_v14 }
 0x43f   : >> { %v1463_v48 = vpop.f32.mrb[22].mxu0  ;;  %v1462_v61 = vadd.f32 %v1461_v42, %v10152_v62 }
 0x440   : >> { %v1464_v49 = vadd.f32 %v1463_v48, %v10148_v59  ;;  %v1465_v1 = vpop.f32.mrb[23].mxu0 }
 0x441   : >> { %v1466_v3 = vadd.f32 %v1465_v1, %v10152_v62 }
 0x442   : >> { %v10277_v5 = vpack.c.bf16 %v1464_v49, %v1460_v47 }
 0x443   : >> { %v10279_v45 = vpack.c.bf16 %v1466_v3, %v1462_v61 }
 0x445   : >> { %13213 = vst [vmem:[#allocation55_spill] sm:$0xff] %v10279_v45  ;;  %v1469_v10 = vpop.f32.mrb[24].mxu0  ;;  %7832 = vmatprep.subr.msk.bf16.mxu0 %vm1609_vm2, %v10279_v45  ;;  %v1650_v7 = vsel %vm1609_vm2, %v10279_v45, 0 }
 0x446   : >> { %v1470_v9 = vadd.f32 %v1469_v10, %v10148_v59  ;;  %v1471_v15 = vpop.f32.mrb[25].mxu0  ;;  %7370 = vmatpush3.bf16.xpose.msra.mxu0 %v1650_v7 }
 0x447   : >> { %v1473_v29 = vpop.f32.mrb[26].mxu0  ;;  %v1472_v54 = vadd.f32 %v1471_v15, %v10152_v62  ;;  %v10335_v15 = vld [vmem:[%s13214_s23 + $0x18] sm:$0xff] }
 0x448   : >> { %v1474_v18 = vadd.f32 %v1473_v29, %v10148_v59  ;;  %v1475_v22 = vpop.f32.mrb[27].mxu0 }
 0x449   : >> { %v1476_v28 = vadd.f32 %v1475_v22, %v10152_v62  ;;  %v10343_v22 = vld [vmem:[%s13214_s23] sm:$0xff] }
 0x44a   : >> { %v10289_v46 = vpack.c.bf16 %v1474_v18, %v1470_v9 }
 0x44b   : >> { %v10291_v33 = vpack.c.bf16 %v1476_v28, %v1472_v54 }
 0x44d   : >> { %v1479_v31 = vpop.f32.mrb[28].mxu0  ;;  %7833 = vmatprep.subr.msk.bf16.mxu0 %vm1609_vm2, %v10291_v33  ;;  %v1653_v37 = vsel %vm1609_vm2, %v10291_v33, 0 }
 0x44e   : >> { %v1480_v41 = vadd.f32 %v1479_v31, %v10148_v59  ;;  %v1481_v47 = vpop.f32.mrb[29].mxu0  ;;  %7372 = vmatpush3.bf16.xpose.msra.mxu0 %v1653_v37  ;;  %v10352_v37 = vld [vmem:[%s13214_s23 + $0x8] sm:$0xff] }
 0x44f   : >> { %v1483_v42 = vpop.f32.mrb[30].mxu0  ;;  %v1482_v1 = vadd.f32 %v1481_v47, %v10152_v62  ;;  %v10361_v47 = vld [vmem:[%s13214_s23 + $0x30] sm:$0xff] }
 0x450   : >> { %v1484_v48 = vadd.f32 %v1483_v42, %v10148_v59  ;;  %v1485_v49 = vpop.f32.mrb[31].mxu0 }
 0x451   : >> { %v1486_v61 = vadd.f32 %v1485_v49, %v10152_v62  ;;  %v10330_v62 = vld [vmem:[%s13214_s23 + $0x10] sm:$0xff]  ;;  %v10370_v49 = vld [vmem:[%s13214_s23 + $0x38] sm:$0xff] }
 0x452   : >> { %v10301_v3 = vpack.c.bf16 %v1484_v48, %v1480_v41 }
 0x453   : >> { %v10303_v10 = vpack.c.bf16 %v1486_v61, %v1482_v1 }
 0x455   : >> { %7834 = vmatprep.subr.msk.bf16.mxu0 %vm1609_vm2, %v10303_v10  ;;  %v1656_v7 = vsel %vm1609_vm2, %v10303_v10, 0 }
 0x456   : >> { %7374 = vmatpush3.bf16.xpose.msra.mxu0 %v1656_v7  ;;  %v10379_v7 = vld [vmem:[%s13214_s23 + $0x20] sm:$0xff] }
 0x457   : >> { %13215 = vst [vmem:[#allocation56_spill] sm:$0xff] %v10379_v7 }
 0x45d   : >> { %7376 = vmatmul.mubr.msk.bf16.vlgmr.msra.gmra.mrb[32].mxu0 %vm1609_vm2, %v10187_v39 }
 0x45e   : >> { %7379 = vmatprep.mubr.msk.bf16.mxu0 %vm1609_vm2, %v10213_v16 }
 0x465   : >> { %7380 = vmatmul.mubr.msk.bf16.gmra.mrb[36].mxu0 %vm1609_vm2, %v10237_v50 }
 0x466   : >> { %7383 = vmatprep.mubr.msk.bf16.mxu0 %vm1609_vm2, %v10261_v40 }
 0x46d   : >> { %7384 = vmatmul.mubr.msk.bf16.gmra.mrb[40].mxu0 %vm1609_vm2, %v10277_v5 }
 0x46e   : >> { %7387 = vmatprep.mubr.msk.bf16.mxu0 %vm1609_vm2, %v10289_v46 }
 0x475   : >> { %7388 = vmatmul.mubr.msk.bf16.gmra.mrb[44].mxu0 %vm1609_vm2, %v10301_v3 }
 0x48f   : >> { %v10323_v59 = vpop.permute.xlu0 %2036 }
 0x490   : >> { %7835 = vmatprep.subr.msk.bf16.mxu1 %vm1609_vm2, %v10323_v59 }
 0x497   : >> { %v10475_v19 = vpop.permute.xlu1 %2038 }
 0x530   : >> { %v7377_v9 = vpop.f32.mrb[32].mxu0 }
 0x531   : >> { %v10338_v29 = vadd.f32 %v7377_v9, %v10330_v62  ;;  %v1692_v18 = vpop.f32.mrb[33].mxu0 }
 0x532   : >> { %v7378_v54 = vpop.f32.mrb[34].mxu0  ;;  %v10355_v41 = vadd.f32 %v1692_v18, %v10343_v22 }
 0x533   : >> { %v10346_v28 = vadd.f32 %v7378_v54, %v10335_v15  ;;  %1759 = vmax.xlane.f32.xlu0 %v10338_v29  ;;  %v1695_v31 = vpop.f32.mrb[35].mxu0 }
 0x534   : >> { %v10364_v42 = vadd.f32 %v1695_v31, %v10352_v37  ;;  %v10388_v31 = vld [vmem:[%s13214_s23 + $0x28] sm:$0xff] }
 0x535   : >> { %1761 = vmax.xlane.f32.xlu1 %v10346_v28 }
 0x537   : >> { %1755 = vmax.xlane.f32.xlu0 %v10355_v41 }
 0x538   : >> { %v7381_v48 = vpop.f32.mrb[36].mxu0 }
 0x539   : >> { %v10373_v1 = vadd.f32 %v7381_v48, %v10361_v47  ;;  %v1708_v61 = vpop.f32.mrb[37].mxu0  ;;  %1757 = vmax.xlane.f32.xlu1 %v10364_v42 }
 0x53a   : >> { %v7382_v9 = vpop.f32.mrb[38].mxu0  ;;  %v10391_v48 = vadd.f32 %v1708_v61, %v10379_v7 }
 0x53b   : >> { %v10382_v18 = vadd.f32 %v7382_v9, %v10370_v49  ;;  %v1711_v54 = vpop.f32.mrb[39].mxu0  ;;  %1767 = vmax.xlane.f32.xlu0 %v10373_v1 }
 0x53c   : >> { %v10400_v9 = vadd.f32 %v1711_v54, %v10388_v31 }
 0x53d   : >> { %1769 = vmax.xlane.f32.xlu1 %v10382_v18 }
 0x53f   : >> { %1763 = vmax.xlane.f32.xlu0 %v10391_v48 }
 0x540   : >> { %v7385_v0 = vpop.f32.mrb[40].mxu0 }
 0x541   : >> { %v10409_v61 = vadd.f32 %v7385_v0, %v10397_v53  ;;  %v1724_v30 = vpop.f32.mrb[41].mxu0  ;;  %1765 = vmax.xlane.f32.xlu1 %v10400_v9  ;;  %v10424_v0 = vld [vmem:[%s13214_s23 + $0x48] sm:$0xff] }
 0x542   : >> { %v7386_v54 = vpop.f32.mrb[42].mxu0  ;;  %13219 = vst [vmem:[#allocation60_spill] sm:$0xff] %v10424_v0  ;;  %v10427_v27 = vadd.f32 %v1724_v30, %v10415_v21 }
 0x543   : >> { %v10418_v24 = vadd.f32 %v7386_v54, %v10406_v35  ;;  %v1727_v12 = vpop.f32.mrb[43].mxu0  ;;  %1775 = vmax.xlane.f32.xlu0 %v10409_v61 }
 0x544   : >> { %v10436_v54 = vadd.f32 %v1727_v12, %v10424_v0 }
 0x545   : >> { %1777 = vmax.xlane.f32.xlu1 %v10418_v24 }
 0x547   : >> { %1771 = vmax.xlane.f32.xlu0 %v10427_v27 }
 0x548   : >> { %v7389_v56 = vpop.f32.mrb[44].mxu0 }
 0x549   : >> { %v10440_v44 = vadd.f32 %v7389_v56, %v10433_v20  ;;  %1773 = vmax.xlane.f32.xlu1 %v10436_v54  ;;  %v1740_v30 = vpop.f32.mrb[45].mxu0  ;;  %v10460_v56 = vld [vmem:[%s13214_s23 + $0x78] sm:$0xff] }
 0x54a   : >> { %v7390_v52 = vpop.f32.mrb[46].mxu0  ;;  %v10450_v12 = vadd.f32 %v1740_v30, %v10446_v58  ;;  %13222 = vst [vmem:[#allocation63_spill] sm:$0xff] %v10460_v56  ;;  %v10468_v30 = vld [vmem:[%s13214_s23 + $0x68] sm:$0xff] }
 0x54b   : >> { %1783 = vmax.xlane.f32.xlu0 %v10440_v44  ;;  %v1743_v23 = vpop.f32.mrb[47].mxu0  ;;  %v10463_v11 = vadd.f32 %v7390_v52, %v10460_v56  ;;  %13223 = vst [vmem:[#allocation64_spill] sm:$0xff] %v10468_v30 }
 0x54c   : >> { %v10472_v25 = vadd.f32 %v1743_v23, %v10468_v30 }
 0x54f   : >> { %1779 = vmax.xlane.f32.xlu0 %v10450_v12 }
 0x55a   : >> { %2042 = vrot.lane.b32.xlu1 %v10240_v60, %s9397_s26 }
 0x565   : >> { %2040 = vrot.lane.b32.xlu0 %v10216_v17, %s9397_s26 }
 0x57e   : >> { %1785 = vmax.xlane.f32.xlu1 %v10463_v11 }
 0x582   : >> { %1781 = vmax.xlane.f32.xlu1 %v10472_v25 }
 0x5c0   : >> { %v1760_v55 = vpop.xlane.xlu0 %1759 }
 0x5c1   : >> { %v1789_v43 = vsub.f32 %v10338_v29, %v1760_v55 }
 0x5c2   : >> { %v1762_v57 = vpop.xlane.xlu1 %1761 }
 0x5c3   : >> { %v1807_v52 = vmul.f32 1.442695, %v1789_v43  ;;  %v1790_v51 = vsub.f32 %v10346_v28, %v1762_v57 }
 0x5c4   : >> { %v1756_v56 = vpop.xlane.xlu0 %1755 }
 0x5c5   : >> { %8412 = vpow2.f32 %v1807_v52  ;;  %v1809_v17 = vmul.f32 1.442695, %v1790_v51  ;;  %v1787_v60 = vsub.f32 %v10355_v41, %v1756_v56 }
 0x5c6   : >> { %v1758_v58 = vpop.xlane.xlu1 %1757 }
 0x5c7   : >> { %8414 = vpow2.f32 %v1809_v17  ;;  %v1803_v23 = vmul.f32 1.442695, %v1787_v60  ;;  %v1788_v30 = vsub.f32 %v10364_v42, %v1758_v58 }
 0x5c8   : >> { %v1768_v57 = vpop.xlane.xlu0 %1767 }
 0x5c9   : >> { %8416 = vpow2.f32 %v1803_v23  ;;  %v1805_v20 = vmul.f32 1.442695, %v1788_v30  ;;  %v1793_v28 = vsub.f32 %v10373_v1, %v1768_v57 }
 0x5ca   : >> { %v1770_v17 = vpop.xlane.xlu1 %1769 }
 0x5cb   : >> { %8418 = vpow2.f32 %v1805_v20  ;;  %v1815_v56 = vmul.f32 1.442695, %v1793_v28  ;;  %v1794_v23 = vsub.f32 %v10382_v18, %v1770_v17 }
 0x5cc   : >> { %v1764_v58 = vpop.xlane.xlu0 %1763 }
 0x5cd   : >> { %v1791_v41 = vsub.f32 %v10391_v48, %v1764_v58  ;;  %8420 = vpow2.f32 %v1815_v56  ;;  %v1817_v35 = vmul.f32 1.442695, %v1794_v23 }
 0x5ce   : >> { %v1766_v29 = vpop.xlane.xlu1 %1765 }
 0x5cf   : >> { %v10481_v21 = vpop.eup %8412  ;;  %v1792_v30 = vsub.f32 %v10400_v9, %v1766_v29  ;;  %v1811_v0 = vmul.f32 1.442695, %v1791_v41 }
 0x5d0   : >> { %1839 = vadd.xlane.f32.xlu0 %v10481_v21  ;;  %v1776_v20 = vpop.xlane.xlu0 %1775 }
 0x5d1   : >> { %v10484_v43 = vpop.eup %8414  ;;  %8422 = vpow2.f32 %v1811_v0  ;;  %v1797_v7 = vsub.f32 %v10409_v61, %v1776_v20 }
 0x5d2   : >> { %1841 = vadd.xlane.f32.xlu1 %v10484_v43  ;;  %v1778_v52 = vpop.xlane.xlu1 %1777 }
 0x5d3   : >> { %v10487_v55 = vpop.eup %8416  ;;  %v1823_v9 = vmul.f32 1.442695, %v1797_v7  ;;  %v1798_v17 = vsub.f32 %v10418_v24, %v1778_v52 }
 0x5d4   : >> { %1835 = vadd.xlane.f32.xlu0 %v10487_v55  ;;  %v1772_v60 = vpop.xlane.xlu0 %1771 }
 0x5d5   : >> { %v10490_v51 = vpop.eup %8418  ;;  %v1795_v58 = vsub.f32 %v10427_v27, %v1772_v60 }
 0x5d6   : >> { %1837 = vadd.xlane.f32.xlu1 %v10490_v51  ;;  %v1774_v1 = vpop.xlane.xlu1 %1773 }
 0x5d7   : >> { %v1819_v0 = vmul.f32 1.442695, %v1795_v58  ;;  %v1796_v24 = vsub.f32 %v10436_v54, %v1774_v1 }
 0x5d8   : >> { %v1784_v42 = vpop.xlane.xlu0 %1783 }
 0x5d9   : >> { %v1821_v60 = vmul.f32 1.442695, %v1796_v24 }
 0x5da   : >> { %v10506_v29 = vpop.permute.xlu1 %2042 }
 0x5dc   : >> { %v1780_v53 = vpop.xlane.xlu0 %1779 }
 0x5dd   : >> { %v1799_v57 = vsub.f32 %v10450_v12, %v1780_v53  ;;  %v1825_v53 = vmul.f32 1.442695, %v1798_v17 }
 0x5df   : >> { %v1827_v18 = vmul.f32 1.442695, %v1799_v57 }
 0x5e0   : >> { %v2041_v23 = vpop.permute.xlu0 %2040 }
 0x5e7   : >> { %2046 = vrot.lane.b32.xlu1 %v10279_v45, %s9397_s26  ;;  %v1813_v45 = vmul.f32 1.442695, %v1792_v30 }
 0x5e9   : >> { %8424 = vpow2.f32 %v1813_v45 }
 0x5ea   : >> { %2044 = vrot.lane.b32.xlu0 %v10264_v4, %s9397_s26  ;;  %v1801_v4 = vsub.f32 %v10440_v44, %v1784_v42  ;;  %8426 = vpow2.f32 %v1817_v35  ;;  %v10508_v44 = vpop.eup %8420 }
 0x5eb   : >> { %v10511_v45 = vpop.eup %8422 }
 0x5ec   : >> { %v1831_v48 = vmul.f32 1.442695, %v1801_v4 }
 0x5ee   : >> { %8428 = vpow2.f32 %v1831_v48 }
 0x5ef   : >> { %8430 = vpow2.f32 %v1823_v9 }
 0x5f0   : >> { %8432 = vpow2.f32 %v1827_v18 }
 0x5f1   : >> { %8434 = vpow2.f32 %v1819_v0 }
 0x5f2   : >> { %8436 = vpow2.f32 %v1825_v53 }
 0x5f3   : >> { %v10514_v27 = vpop.eup %8424 }
 0x5f4   : >> { %v10519_v7 = vpop.eup %8426 }
 0x5f8   : >> { %v10522_v20 = vpop.eup %8428 }
 0x5f9   : >> { %v10526_v54 = vpop.eup %8430 }
 0x609   : >> { %1847 = vadd.xlane.f32.xlu0 %v10508_v44 }
 0x60b   : >> { %1843 = vadd.xlane.f32.xlu1 %v10511_v45  ;;  %v1786_v35 = vpop.xlane.xlu1 %1785 }
 0x60c   : >> { %v1802_v4 = vsub.f32 %v10463_v11, %v1786_v35  ;;  %v10529_v11 = vpop.eup %8432 }
 0x60d   : >> { %1845 = vadd.xlane.f32.xlu0 %v10514_v27  ;;  %v10532_v42 = vpop.eup %8434 }
 0x60e   : >> { %v1833_v61 = vmul.f32 1.442695, %v1802_v4  ;;  %v10535_v56 = vpop.eup %8436 }
 0x60f   : >> { %1849 = vadd.xlane.f32.xlu1 %v10519_v7  ;;  %v1782_v12 = vpop.xlane.xlu1 %1781 }
 0x610   : >> { %8438 = vpow2.f32 %v1833_v61  ;;  %v1800_v28 = vsub.f32 %v10472_v25, %v1782_v12 }
 0x611   : >> { %1863 = vadd.xlane.f32.xlu0 %v10522_v20  ;;  %8440 = vpow2.f32 %v1821_v60  ;;  %v2077_v60 = vsel %vm1609_vm2, %v10323_v59, 0 }
 0x612   : >> { %v1829_v41 = vmul.f32 1.442695, %v1800_v28 }
 0x613   : >> { %1855 = vadd.xlane.f32.xlu1 %v10526_v54 }
 0x614   : >> { %8442 = vpow2.f32 %v1829_v41 }
 0x615   : >> { %1859 = vadd.xlane.f32.xlu0 %v10529_v11 }
 0x617   : >> { %1851 = vadd.xlane.f32.xlu1 %v10532_v42 }
 0x61a   : >> { %v10537_v25 = vpop.eup %8438 }
 0x61b   : >> { %1857 = vadd.xlane.f32.xlu1 %v10535_v56  ;;  %1865 = vadd.xlane.f32.xlu0 %v10537_v25  ;;  %v10541_v30 = vpop.eup %8440 }
 0x61e   : >> { %v10544_v52 = vpop.eup %8442 }
 0x61f   : >> { %1853 = vadd.xlane.f32.xlu1 %v10541_v30 }
 0x623   : >> { %1861 = vadd.xlane.f32.xlu1 %v10544_v52 }
 0x631   : >> { %2048 = vrot.lane.b32.xlu0 %v10291_v33, %s9397_s26 }
 0x634   : >> { %2050 = vrot.lane.b32.xlu1 %v10303_v10, %s9397_s26 }
 0x635   : >> { %2012 = vrot.lane.b32.xlu0 %v10163_v8, %s9397_s26 }
 0x638   : >> { %2014 = vrot.lane.b32.xlu1 %v10187_v39, %s9397_s26 }
 0x639   : >> { %2016 = vrot.lane.b32.xlu0 %v10213_v16, %s9397_s26 }
 0x63c   : >> { %2018 = vrot.lane.b32.xlu1 %v10237_v50, %s9397_s26 }
 0x63d   : >> { %2020 = vrot.lane.b32.xlu0 %v10261_v40, %s9397_s26 }
 0x640   : >> { %2022 = vrot.lane.b32.xlu1 %v10277_v5, %s9397_s26 }
 0x641   : >> { %2024 = vrot.lane.b32.xlu0 %v10289_v46, %s9397_s26 }
 0x644   : >> { %2026 = vrot.lane.b32.xlu1 %v10301_v3, %s9397_s26 }
 0x645   : >> { %2357 = vrot.lane.b32.xlu0 %v10182_v34, %s9397_s26 }
 0x648   : >> { %2359 = vrot.lane.b32.xlu1 %v10180_v32, %s9397_s26 }
 0x649   : >> { %2361 = vrot.lane.b32.xlu0 %v10208_v36, %s9397_s26 }
 0x64c   : >> { %2363 = vrot.lane.b32.xlu1 %v10205_v6, %s9397_s26 }
 0x64d   : >> { %2365 = vrot.lane.b32.xlu0 %v10232_v2, %s9397_s26 }
 0x650   : >> { %2367 = vrot.lane.b32.xlu1 %v10229_v38, %s9397_s26 }
 0x651   : >> { %2369 = vrot.lane.b32.xlu0 %v10256_v26, %s9397_s26 }
 0x654   : >> { %2371 = vrot.lane.b32.xlu1 %v10253_v14, %s9397_s26 }
 0x655   : >> { %2494 = vrot.lane.b32.xlu0 %v10165_v13, %s9398_s14 }
 0x658   : >> { %2496 = vrot.lane.b32.xlu1 %v10190_v63, %s9398_s14 }
 0x65d   : >> { %v1840_v1 = vpop.xlane.xlu0 %1839 }
 0x65f   : >> { %v1842_v48 = vpop.xlane.xlu1 %1841 }
 0x660   : >> { %8444 = vrcp.f32 %v1842_v48 }
 0x661   : >> { %v1836_v57 = vpop.xlane.xlu0 %1835 }
 0x662   : >> { %8446 = vrcp.f32 %v1836_v57 }
 0x663   : >> { %8448 = vrcp.f32 %v1840_v1  ;;  %v1838_v9 = vpop.xlane.xlu1 %1837 }
 0x664   : >> { %8450 = vrcp.f32 %v1838_v9 }
 0x665   : >> { %v2045_v59 = vpop.permute.xlu0 %2044 }
 0x666   : >> { %v2089_v28 = vsel %vm1609_vm2, %v2045_v59, 0 }
 0x66a   : >> { %v8445_v58 = vpop.eup %8444 }
 0x66b   : >> { %v1886_v53 = vmul.f32 %v8445_v58, %v10484_v43  ;;  %v2080_v43 = vsel %vm1609_vm2, %v10475_v19, 0 }
 0x66c   : >> { %v8447_v18 = vpop.eup %8446 }
 0x66d   : >> { %v8449_v17 = vpop.eup %8448  ;;  %v1883_v35 = vmul.f32 %v8447_v18, %v10487_v55  ;;  %v2083_v55 = vsel %vm1609_vm2, %v2041_v23, 0 }
 0x66e   : >> { %v8451_v0 = vpop.eup %8450  ;;  %v1885_v4 = vmul.f32 %v8449_v17, %v10481_v21  ;;  %v2086_v21 = vsel %vm1609_vm2, %v10506_v29, 0 }
 0x66f   : >> { %v1884_v24 = vmul.f32 %v8451_v0, %v10490_v51  ;;  %v2047_v51 = vpop.permute.xlu1 %2046 }
 0x670   : >> { %v1900_v12 = vpack.c.bf16 %v1886_v53, %v1885_v4  ;;  %v2092_v1 = vsel %vm1609_vm2, %v2047_v51, 0 }
 0x671   : >> { %v1899_v61 = vpack.c.bf16 %v1884_v24, %v1883_v35 }
 0x673   : >> { %7407 = vmatprep.mubr.bf16.mxu1 %v1899_v61 }
 0x674   : >> { %7408 = vmatmul.mubr.bf16.vlgmr.msra.gmra.mrb[16].mxu1 %v1900_v12 }
 0x675   : >> { %7424 = vmatpush3.bf16.xpose.msra.mxu1 %v2077_v60 }
 0x676   : >> { %7836 = vmatprep.subr.msk.bf16.mxu1 %vm1609_vm2, %v10475_v19 }
 0x67d   : >> { %7426 = vmatpush3.bf16.xpose.msra.mxu1 %v2080_v43 }
 0x67e   : >> { %7837 = vmatprep.subr.msk.bf16.mxu1 %vm1609_vm2, %v2041_v23 }
 0x685   : >> { %7428 = vmatpush3.bf16.xpose.msra.mxu1 %v2083_v55 }
 0x686   : >> { %7838 = vmatprep.subr.msk.bf16.mxu1 %vm1609_vm2, %v10506_v29 }
 0x68d   : >> { %7430 = vmatpush3.bf16.xpose.msra.mxu1 %v2086_v21 }
 0x68e   : >> { %7839 = vmatprep.subr.msk.bf16.mxu1 %vm1609_vm2, %v2045_v59 }
 0x695   : >> { %7432 = vmatpush3.bf16.xpose.msra.mxu1 %v2089_v28 }
 0x696   : >> { %7840 = vmatprep.subr.msk.bf16.mxu1 %vm1609_vm2, %v2047_v51  ;;  %v1848_v19 = vpop.xlane.xlu0 %1847 }
 0x698   : >> { %v1844_v41 = vpop.xlane.xlu1 %1843 }
 0x699   : >> { %8452 = vrcp.f32 %v1844_v41 }
 0x69a   : >> { %8454 = vrcp.f32 %v1848_v19  ;;  %v1846_v23 = vpop.xlane.xlu0 %1845 }
 0x69b   : >> { %8456 = vrcp.f32 %v1846_v23 }
 0x69c   : >> { %v1850_v48 = vpop.xlane.xlu1 %1849 }
 0x69d   : >> { %7434 = vmatpush3.bf16.xpose.msra.mxu1 %v2092_v1  ;;  %8458 = vrcp.f32 %v1850_v48 }
 0x69e   : >> { %v1864_v29 = vpop.xlane.xlu0 %1863 }
 0x6a0   : >> { %v1856_v57 = vpop.xlane.xlu1 %1855 }
 0x6a2   : >> { %v1860_v18 = vpop.xlane.xlu0 %1859 }
 0x6a3   : >> { %v8453_v9 = vpop.eup %8452 }
 0x6a4   : >> { %v8455_v58 = vpop.eup %8454  ;;  %v1852_v17 = vpop.xlane.xlu1 %1851  ;;  %v1887_v53 = vmul.f32 %v8453_v9, %v10511_v45 }
 0x6a5   : >> { %v8457_v0 = vpop.eup %8456  ;;  %v1889_v60 = vmul.f32 %v8455_v58, %v10508_v44 }
 0x6a6   : >> { %v1888_v35 = vmul.f32 %v8457_v0, %v10514_v27 }
 0x6a7   : >> { %v8459_v24 = vpop.eup %8458 }
 0x6a8   : >> { %v1866_v4 = vpop.xlane.xlu0 %1865  ;;  %v1858_v61 = vpop.xlane.xlu1 %1857  ;;  %v1901_v12 = vpack.c.bf16 %v1888_v35, %v1887_v53  ;;  %v1890_v43 = vmul.f32 %v8459_v24, %v10519_v7 }
 0x6a9   : >> { %8460 = vrcp.f32 %v1858_v61 }
 0x6aa   : >> { %7411 = vmatprep.mubr.bf16.mxu1 %v1901_v12  ;;  %v1902_v55 = vpack.c.bf16 %v1890_v43, %v1889_v60  ;;  %8462 = vrcp.f32 %v1852_v17 }
 0x6ab   : >> { %8464 = vrcp.f32 %v1856_v57 }
 0x6ac   : >> { %v2049_v21 = vpop.permute.xlu0 %2048  ;;  %7412 = vmatmul.mubr.bf16.gmra.mrb[20].mxu1 %v1902_v55  ;;  %v1854_v59 = vpop.xlane.xlu1 %1853 }
 0x6ad   : >> { %8466 = vrcp.f32 %v1854_v59  ;;  %7841 = vmatprep.subr.msk.bf16.mxu1 %vm1609_vm2, %v2049_v21  ;;  %v2095_v45 = vsel %vm1609_vm2, %v2049_v21, 0 }
 0x6ae   : >> { %7436 = vmatpush3.bf16.xpose.msra.mxu1 %v2095_v45  ;;  %8468 = vrcp.f32 %v1860_v18 }
 0x6b0   : >> { %v2013_v27 = vpop.permute.xlu0 %2012  ;;  %v1862_v51 = vpop.xlane.xlu1 %1861 }
 0x6b1   : >> { %8470 = vrcp.f32 %v1862_v51 }
 0x6b2   : >> { %8472 = vrcp.f32 %v1866_v4 }
 0x6b3   : >> { %v8461_v44 = vpop.eup %8460  ;;  %8474 = vrcp.f32 %v1864_v29 }
 0x6b4   : >> { %v2017_v7 = vpop.permute.xlu0 %2016  ;;  %v2051_v28 = vpop.permute.xlu1 %2050  ;;  %v1894_v48 = vmul.f32 %v8461_v44, %v10535_v56 }
 0x6b5   : >> { %v8463_v19 = vpop.eup %8462  ;;  %7842 = vmatprep.subr.msk.bf16.mxu1 %vm1609_vm2, %v2051_v28  ;;  %v2098_v41 = vsel %vm1609_vm2, %v2051_v28, 0 }
 0x6b6   : >> { %v8465_v23 = vpop.eup %8464  ;;  %7438 = vmatpush3.bf16.xpose.msra.mxu1 %v2098_v41  ;;  %v1891_v58 = vmul.f32 %v8463_v19, %v10532_v42 }
 0x6b7   : >> { %v8467_v1 = vpop.eup %8466  ;;  %v1893_v29 = vmul.f32 %v8465_v23, %v10526_v54 }
 0x6b8   : >> { %v2021_v57 = vpop.permute.xlu0 %2020  ;;  %v2015_v9 = vpop.permute.xlu1 %2014  ;;  %v1892_v18 = vmul.f32 %v8467_v1, %v10541_v30 }
 0x6b9   : >> { %v8469_v17 = vpop.eup %8468  ;;  %v1904_v35 = vpack.c.bf16 %v1894_v48, %v1893_v29 }
 0x6ba   : >> { %v1903_v0 = vpack.c.bf16 %v1892_v18, %v1891_v58  ;;  %v1895_v12 = vmul.f32 %v8469_v17, %v10529_v11 }
 0x6bb   : >> { %v8471_v53 = vpop.eup %8470 }
 0x6bc   : >> { %v8473_v24 = vpop.eup %8472  ;;  %v2025_v4 = vpop.permute.xlu0 %2024  ;;  %7415 = vmatprep.mubr.bf16.mxu1 %v1903_v0  ;;  %v1896_v56 = vmul.f32 %v8471_v53, %v10544_v52 }
 0x6bd   : >> { %v2019_v61 = vpop.permute.xlu1 %2018  ;;  %7416 = vmatmul.mubr.bf16.gmra.mrb[24].mxu1 %v1904_v35  ;;  %v8475_v60 = vpop.eup %8474  ;;  %v1898_v42 = vmul.f32 %v8473_v24, %v10537_v25 }
 0x6be   : >> { %v1905_v43 = vpack.c.bf16 %v1896_v56, %v1895_v12  ;;  %v1897_v54 = vmul.f32 %v8475_v60, %v10522_v20 }
 0x6c0   : >> { %v2358_v30 = vpop.permute.xlu0 %2357  ;;  %7419 = vmatprep.mubr.bf16.mxu1 %v1905_v43  ;;  %v1906_v21 = vpack.c.bf16 %v1898_v42, %v1897_v54 }
 0x6c1   : >> { %v2023_v55 = vpop.permute.xlu1 %2022  ;;  %7455 = vmatprep.subr.bf16.mxu0 %v2358_v30 }
 0x6c2   : >> { %7456 = vmatpush3.bf16.msra.mxu0 %v2358_v30 }
 0x6c4   : >> { %v2362_v52 = vpop.permute.xlu0 %2361 }
 0x6c5   : >> { %v2027_v59 = vpop.permute.xlu1 %2026  ;;  %7420 = vmatmul.mubr.bf16.gmra.mrb[28].mxu1 %v1906_v21 }
 0x6c6   : >> { %7439 = vmatprep.mubr.msk.bf16.mxu1 %vm1609_vm2, %v2013_v27 }
 0x6c8   : >> { %v2366_v45 = vpop.permute.xlu0 %2365 }
 0x6c9   : >> { %v2360_v11 = vpop.permute.xlu1 %2359 }
 0x6ca   : >> { %7457 = vmatprep.subr.bf16.mxu0 %v2360_v11 }
 0x6cb   : >> { %7458 = vmatpush3.bf16.msra.mxu0 %v2360_v11  ;;  %v13240_v11 = vld [vmem:[#allocation56_spill] sm:$0xff] }
 0x6cc   : >> { %7459 = vmatprep.subr.bf16.mxu0 %v2362_v52  ;;  %v2370_v27 = vpop.permute.xlu0 %2369 }
 0x6cd   : >> { %7440 = vmatmul.mubr.msk.bf16.vlgmr.msra.gmra.mrb[32].mxu1 %vm1609_vm2, %v2015_v9  ;;  %v2364_v25 = vpop.permute.xlu1 %2363 }
 0x6ce   : >> { %7443 = vmatprep.mubr.msk.bf16.mxu1 %vm1609_vm2, %v2017_v7 }
 0x6cf   : >> { %7460 = vmatpush3.bf16.msra.mxu0 %v2362_v52 }
 0x6d0   : >> { %7461 = vmatprep.subr.bf16.mxu0 %v2364_v25  ;;  %v10630_v44 = vpop.permute.xlu0 %2494 }
 0x6d1   : >> { %v2368_v20 = vpop.permute.xlu1 %2367 }
 0x6d3   : >> { %7462 = vmatpush3.bf16.msra.mxu0 %v2364_v25  ;;  %v13241_v25 = vld [vmem:[#allocation58_spill] sm:$0xff] }
 0x6d4   : >> { %7463 = vmatprep.subr.bf16.mxu0 %v2366_v45 }
 0x6d5   : >> { %7444 = vmatmul.mubr.msk.bf16.gmra.mrb[36].mxu1 %vm1609_vm2, %v2019_v61  ;;  %v2372_v51 = vpop.permute.xlu1 %2371 }
 0x6d6   : >> { %7447 = vmatprep.mubr.msk.bf16.mxu1 %vm1609_vm2, %v2021_v57 }
 0x6d7   : >> { %7464 = vmatpush3.bf16.msra.mxu0 %v2366_v45 }
 0x6d8   : >> { %7465 = vmatprep.subr.bf16.mxu0 %v2368_v20 }
 0x6db   : >> { %7466 = vmatpush3.bf16.msra.mxu0 %v2368_v20  ;;  %v13242_v20 = vld [vmem:[#allocation57_spill] sm:$0xff] }
 0x6dc   : >> { %7467 = vmatprep.subr.bf16.mxu0 %v2370_v27 }
 0x6dd   : >> { %7448 = vmatmul.mubr.msk.bf16.gmra.mrb[40].mxu1 %vm1609_vm2, %v2023_v55 }
 0x6de   : >> { %7451 = vmatprep.mubr.msk.bf16.mxu1 %vm1609_vm2, %v2025_v4 }
 0x6df   : >> { %7468 = vmatpush3.bf16.msra.mxu0 %v2370_v27 }
 0x6e0   : >> { %7469 = vmatprep.subr.bf16.mxu0 %v2372_v51 }
 0x6e3   : >> { %7470 = vmatpush3.bf16.msra.mxu0 %v2372_v51 }
 0x6e4   : >> { %7843 = vmatprep.subr.msk.bf16.mxu0 %vm1609_vm2, %v10630_v44 }
 0x6e5   : >> { %7452 = vmatmul.mubr.msk.bf16.gmra.mrb[44].mxu1 %vm1609_vm2, %v2027_v59 }
 0x747   : >> { %v10635_v7 = vpop.f32.mrb[16].mxu1 }
 0x748   : >> { %13224 = vst [vmem:[#allocation65_spill] sm:$0xff] %v10635_v7  ;;  %v10637_v28 = vpop.f32.mrb[17].mxu1 }
 0x749   : >> { %13225 = vst [vmem:[#allocation66_spill] sm:$0xff] %v10637_v28  ;;  %v10639_v19 = vpop.f32.mrb[18].mxu1 }
 0x74a   : >> { %13226 = vst [vmem:[#allocation67_spill] sm:$0xff] %v10639_v19  ;;  %v10641_v41 = vpop.f32.mrb[19].mxu1 }
 0x74b   : >> { %13227 = vst [vmem:[#allocation68_spill] sm:$0xff] %v10641_v41  ;;  %v11019_v41 = vld [vmem:[%s13214_s23 + $0x48] sm:$0xff] }
 0x77f   : >> { %v10643_v23 = vpop.f32.mrb[20].mxu1 }
 0x780   : >> { %13228 = vst [vmem:[#allocation69_spill] sm:$0xff] %v10643_v23  ;;  %v10645_v1 = vpop.f32.mrb[21].mxu1 }
 0x781   : >> { %13229 = vst [vmem:[#allocation70_spill] sm:$0xff] %v10645_v1  ;;  %v10647_v48 = vpop.f32.mrb[22].mxu1 }
 0x782   : >> { %13230 = vst [vmem:[#allocation71_spill] sm:$0xff] %v10647_v48  ;;  %v10649_v57 = vpop.f32.mrb[23].mxu1 }
 0x783   : >> { %13231 = vst [vmem:[#allocation72_spill] sm:$0xff] %v10649_v57 }
 0x790   : >> { %v10651_v9 = vpop.f32.mrb[24].mxu1 }
 0x791   : >> { %13232 = vst [vmem:[#allocation73_spill] sm:$0xff] %v10651_v9  ;;  %v10653_v58 = vpop.f32.mrb[25].mxu1 }
 0x792   : >> { %13233 = vst [vmem:[#allocation74_spill] sm:$0xff] %v10653_v58  ;;  %v10655_v18 = vpop.f32.mrb[26].mxu1 }
 0x793   : >> { %13234 = vst [vmem:[#allocation75_spill] sm:$0xff] %v10655_v18  ;;  %v10657_v17 = vpop.f32.mrb[27].mxu1 }
 0x794   : >> { %13235 = vst [vmem:[#allocation76_spill] sm:$0xff] %v10657_v17 }
 0x798   : >> { %v10659_v29 = vpop.f32.mrb[28].mxu1 }
 0x799   : >> { %13236 = vst [vmem:[#allocation77_spill] sm:$0xff] %v10659_v29  ;;  %v10661_v0 = vpop.f32.mrb[29].mxu1 }
 0x79a   : >> { %13237 = vst [vmem:[#allocation78_spill] sm:$0xff] %v10661_v0  ;;  %v10663_v53 = vpop.f32.mrb[30].mxu1 }
 0x79b   : >> { %13238 = vst [vmem:[#allocation79_spill] sm:$0xff] %v10663_v53  ;;  %v10665_v35 = vpop.f32.mrb[31].mxu1 }
 0x79c   : >> { %13239 = vst [vmem:[#allocation80_spill] sm:$0xff] %v10665_v35 }
 0x7a0   : >> { %v7441_v24 = vpop.f32.mrb[32].mxu1 }
 0x7a1   : >> { %v2143_v4 = vadd.f32 %v7441_v24, %v10330_v62  ;;  %v2134_v61 = vpop.f32.mrb[33].mxu1 }
 0x7a2   : >> { %v7442_v12 = vpop.f32.mrb[34].mxu1  ;;  %v2135_v43 = vadd.f32 %v2134_v61, %v10343_v22  ;;  %v13244_v61 = vld [vmem:[#allocation59_spill] sm:$0xff] }
 0x7a3   : >> { %2201 = vmax.xlane.f32.xlu0 %v2143_v4  ;;  %v2137_v56 = vpop.f32.mrb[35].mxu1  ;;  %v2146_v30 = vadd.f32 %v7442_v12, %v10335_v15 }
 0x7a4   : >> { %v2138_v60 = vadd.f32 %v2137_v56, %v10352_v37 }
 0x7a6   : >> { %2199 = vmax.xlane.f32.xlu1 %v2138_v60 }
 0x7a7   : >> { %2197 = vmax.xlane.f32.xlu0 %v2135_v43 }
 0x7a8   : >> { %v7445_v42 = vpop.f32.mrb[36].mxu1 }
 0x7a9   : >> { %v2150_v55 = vpop.f32.mrb[37].mxu1  ;;  %v10675_v59 = vadd.f32 %v7445_v42, %v10361_v47 }
 0x7aa   : >> { %v7446_v54 = vpop.f32.mrb[38].mxu1  ;;  %v10683_v15 = vadd.f32 %v2150_v55, %v13240_v11 }
 0x7ab   : >> { %v10672_v21 = vadd.f32 %v7446_v54, %v10370_v49  ;;  %2203 = vmax.xlane.f32.xlu0 %v2146_v30  ;;  %v2153_v62 = vpop.f32.mrb[39].mxu1  ;;  %v13245_v54 = vld [vmem:[#allocation61_spill] sm:$0xff] }
 0x7ac   : >> { %v10679_v37 = vadd.f32 %v2153_v62, %v10388_v31  ;;  %v13243_v31 = vld [vmem:[#allocation60_spill] sm:$0xff] }
 0x7ad   : >> { %2211 = vmax.xlane.f32.xlu1 %v10672_v21 }
 0x7af   : >> { %2209 = vmax.xlane.f32.xlu0 %v10675_v59 }
 0x7b0   : >> { %v7449_v22 = vpop.f32.mrb[40].mxu1 }
 0x7b1   : >> { %2207 = vmax.xlane.f32.xlu1 %v10679_v37  ;;  %v2166_v49 = vpop.f32.mrb[41].mxu1  ;;  %v10691_v27 = vadd.f32 %v7449_v22, %v13242_v20  ;;  %v13246_v22 = vld [vmem:[#allocation62_spill] sm:$0xff]  ;;  %v13250_v20 = vld [vmem:[#allocation64_spill] sm:$0xff] }
 0x7b2   : >> { %v7450_v52 = vpop.f32.mrb[42].mxu1  ;;  %v10699_v12 = vadd.f32 %v2166_v49, %v13244_v61  ;;  %v13247_v49 = vld [vmem:[#allocation51_spill] sm:$0xff] }
 0x7b3   : >> { %v10687_v45 = vadd.f32 %v7450_v52, %v13241_v25  ;;  %2205 = vmax.xlane.f32.xlu0 %v10683_v15  ;;  %v2169_v47 = vpop.f32.mrb[43].mxu1  ;;  %v13248_v52 = vld [vmem:[#allocation48_spill] sm:$0xff]  ;;  %v13249_v25 = vld [vmem:[#allocation63_spill] sm:$0xff] }
 0x7b4   : >> { %v10695_v51 = vadd.f32 %v2169_v47, %v13243_v31 }
 0x7b5   : >> { %2219 = vmax.xlane.f32.xlu1 %v10687_v45 }
 0x7b7   : >> { %2217 = vmax.xlane.f32.xlu0 %v10691_v27 }
 0x7b8   : >> { %v7453_v24 = vpop.f32.mrb[44].mxu1 }
 0x7b9   : >> { %2215 = vmax.xlane.f32.xlu1 %v10695_v51  ;;  %v2182_v56 = vpop.f32.mrb[45].mxu1  ;;  %v10704_v62 = vadd.f32 %v7453_v24, %v13245_v54  ;;  %v10723_v24 = vpop.permute.xlu1 %2496 }
 0x7ba   : >> { %v7454_v42 = vpop.f32.mrb[46].mxu1  ;;  %v10708_v11 = vadd.f32 %v2182_v56, %v13246_v22 }
 0x7bb   : >> { %2213 = vmax.xlane.f32.xlu0 %v10699_v12  ;;  %v2185_v55 = vpop.f32.mrb[47].mxu1  ;;  %v10716_v47 = vadd.f32 %v7454_v42, %v13249_v25 }
 0x7bc   : >> { %v10720_v31 = vadd.f32 %v2185_v55, %v13250_v20 }
 0x7bf   : >> { %2225 = vmax.xlane.f32.xlu0 %v10704_v62 }
 0x7c3   : >> { %2221 = vmax.xlane.f32.xlu0 %v10708_v11 }
 0x7ca   : >> { %2500 = vrot.lane.b32.xlu1 %v13247_v49, %s9398_s14 }
 0x7d9   : >> { %2498 = vrot.lane.b32.xlu0 %v13248_v52, %s9398_s14 }
 0x7ee   : >> { %2227 = vmax.xlane.f32.xlu1 %v10716_v47 }
 0x7f2   : >> { %2223 = vmax.xlane.f32.xlu1 %v10720_v31 }
 0x830   : >> { %v2202_v61 = vpop.xlane.xlu0 %2201 }
 0x831   : >> { %v2231_v56 = vsub.f32 %v2143_v4, %v2202_v61 }
 0x833   : >> { %v2249_v54 = vmul.f32 1.442695, %v2231_v56  ;;  %v2200_v22 = vpop.xlane.xlu1 %2199 }
 0x834   : >> { %v2230_v0 = vsub.f32 %v2138_v60, %v2200_v22  ;;  %v2198_v35 = vpop.xlane.xlu0 %2197 }
 0x835   : >> { %8476 = vpow2.f32 %v2249_v54  ;;  %v2229_v29 = vsub.f32 %v2135_v43, %v2198_v35 }
 0x836   : >> { %v2247_v53 = vmul.f32 1.442695, %v2230_v0 }
 0x837   : >> { %v2245_v42 = vmul.f32 1.442695, %v2229_v29 }
 0x838   : >> { %8478 = vpow2.f32 %v2247_v53  ;;  %v2204_v25 = vpop.xlane.xlu0 %2203  ;;  %v13252_v53 = vld [vmem:[#allocation54_spill] sm:$0xff] }
 0x839   : >> { %8480 = vpow2.f32 %v2245_v42  ;;  %v2232_v58 = vsub.f32 %v2146_v30, %v2204_v25 }
 0x83a   : >> { %v2212_v60 = vpop.xlane.xlu1 %2211 }
 0x83b   : >> { %v2251_v55 = vmul.f32 1.442695, %v2232_v58  ;;  %v13251_v58 = vld [vmem:[#allocation55_spill] sm:$0xff]  ;;  %v2236_v9 = vsub.f32 %v10672_v21, %v2212_v60 }
 0x83c   : >> { %v2210_v29 = vpop.xlane.xlu0 %2209 }
 0x83d   : >> { %8482 = vpow2.f32 %v2251_v55  ;;  %v2235_v30 = vsub.f32 %v10675_v59, %v2210_v29  ;;  %v2259_v23 = vmul.f32 1.442695, %v2236_v9 }
 0x83e   : >> { %v2208_v61 = vpop.xlane.xlu1 %2207 }
 0x83f   : >> { %v10725_v20 = vpop.eup %8476  ;;  %v2257_v54 = vmul.f32 1.442695, %v2235_v30  ;;  %v2234_v42 = vsub.f32 %v10679_v37, %v2208_v61 }
 0x840   : >> { %2281 = vadd.xlane.f32.xlu1 %v10725_v20  ;;  %v2206_v35 = vpop.xlane.xlu0 %2205 }
 0x841   : >> { %v2233_v22 = vsub.f32 %v10683_v15, %v2206_v35  ;;  %8484 = vpow2.f32 %v2257_v54  ;;  %v2255_v1 = vmul.f32 1.442695, %v2234_v42 }
 0x842   : >> { %v10728_v17 = vpop.eup %8478  ;;  %v2220_v25 = vpop.xlane.xlu1 %2219 }
 0x843   : >> { %v10730_v4 = vpop.eup %8480  ;;  %2279 = vadd.xlane.f32.xlu0 %v10728_v17  ;;  %v2253_v18 = vmul.f32 1.442695, %v2233_v22  ;;  %v2240_v21 = vsub.f32 %v10687_v45, %v2220_v25 }
 0x844   : >> { %2277 = vadd.xlane.f32.xlu1 %v10730_v4  ;;  %v2218_v43 = vpop.xlane.xlu0 %2217 }
 0x845   : >> { %v2239_v57 = vsub.f32 %v10691_v27, %v2218_v43  ;;  %8486 = vpow2.f32 %v2253_v18 }
 0x846   : >> { %v2216_v48 = vpop.xlane.xlu1 %2215  ;;  %8488 = vpow2.f32 %v2255_v1 }
 0x847   : >> { %v10734_v0 = vpop.eup %8482  ;;  %v2265_v29 = vmul.f32 1.442695, %v2239_v57  ;;  %8490 = vpow2.f32 %v2259_v23  ;;  %v2267_v57 = vmul.f32 1.442695, %v2240_v21  ;;  %v2238_v18 = vsub.f32 %v10695_v51, %v2216_v48 }
 0x848   : >> { %2283 = vadd.xlane.f32.xlu1 %v10734_v0  ;;  %v2214_v56 = vpop.xlane.xlu0 %2213 }
 0x849   : >> { %v2237_v15 = vsub.f32 %v10699_v12, %v2214_v56  ;;  %8492 = vpow2.f32 %v2265_v29 }
 0x84a   : >> { %v10752_v9 = vpop.permute.xlu1 %2500 }
 0x84b   : >> { %v2261_v60 = vmul.f32 1.442695, %v2237_v15  ;;  %v10750_v61 = vpop.eup %8484 }
 0x84c   : >> { %v2226_v55 = vpop.xlane.xlu0 %2225 }
 0x84d   : >> { %v2243_v59 = vsub.f32 %v10704_v62, %v2226_v55  ;;  %v2263_v62 = vmul.f32 1.442695, %v2238_v18 }
 0x84f   : >> { %v2273_v37 = vmul.f32 1.442695, %v2243_v59  ;;  %v10756_v23 = vpop.eup %8486 }
 0x850   : >> { %v2222_v35 = vpop.xlane.xlu0 %2221  ;;  %v10758_v12 = vpop.eup %8488 }
 0x851   : >> { %v2241_v30 = vsub.f32 %v10708_v11, %v2222_v35  ;;  %8494 = vpow2.f32 %v2273_v37  ;;  %v10763_v43 = vpop.eup %8490 }
 0x852   : >> { %8496 = vpow2.f32 %v2261_v60 }
 0x853   : >> { %v2269_v1 = vmul.f32 1.442695, %v2241_v30  ;;  %v10765_v48 = vpop.eup %8492 }
 0x854   : >> { %v2499_v29 = vpop.permute.xlu0 %2498 }
 0x855   : >> { %8498 = vpow2.f32 %v2269_v1 }
 0x856   : >> { %8500 = vpow2.f32 %v2267_v57 }
 0x859   : >> { %2504 = vrot.lane.b32.xlu1 %v13251_v58, %s9398_s14  ;;  %2502 = vrot.lane.b32.xlu0 %v13252_v53, %s9398_s14 }
 0x85b   : >> { %v10770_v54 = vpop.eup %8494 }
 0x85c   : >> { %v10772_v22 = vpop.eup %8496 }
 0x85f   : >> { %v10776_v42 = vpop.eup %8498 }
 0x860   : >> { %v10778_v25 = vpop.eup %8500 }
 0x878   : >> { %2289 = vadd.xlane.f32.xlu0 %v10750_v61 }
 0x87b   : >> { %v2228_v27 = vpop.xlane.xlu1 %2227 }
 0x87c   : >> { %v2244_v45 = vsub.f32 %v10716_v47, %v2228_v27  ;;  %2285 = vadd.xlane.f32.xlu0 %v10756_v23 }
 0x87d   : >> { %2287 = vadd.xlane.f32.xlu1 %v10758_v12 }
 0x87e   : >> { %v2275_v11 = vmul.f32 1.442695, %v2244_v45 }
 0x87f   : >> { %v2224_v56 = vpop.xlane.xlu1 %2223 }
 0x880   : >> { %8502 = vpow2.f32 %v2275_v11  ;;  %v2242_v51 = vsub.f32 %v10720_v31, %v2224_v56  ;;  %2291 = vadd.xlane.f32.xlu0 %v10763_v43  ;;  %v2535_v11 = vsel %vm1609_vm2, %v10630_v44, 0 }
 0x881   : >> { %2297 = vadd.xlane.f32.xlu1 %v10765_v48  ;;  %8504 = vpow2.f32 %v2263_v62 }
 0x882   : >> { %v2271_v47 = vmul.f32 1.442695, %v2242_v51 }
 0x884   : >> { %2305 = vadd.xlane.f32.xlu0 %v10770_v54  ;;  %8506 = vpow2.f32 %v2271_v47 }
 0x885   : >> { %2293 = vadd.xlane.f32.xlu1 %v10772_v22 }
 0x888   : >> { %2301 = vadd.xlane.f32.xlu0 %v10776_v42 }
 0x889   : >> { %2299 = vadd.xlane.f32.xlu1 %v10778_v25 }
 0x88a   : >> { %v10782_v31 = vpop.eup %8502 }
 0x88b   : >> { %v10784_v55 = vpop.eup %8504 }
 0x88c   : >> { %2307 = vadd.xlane.f32.xlu0 %v10782_v31 }
 0x88d   : >> { %2295 = vadd.xlane.f32.xlu1 %v10784_v55 }
 0x88e   : >> { %v10788_v59 = vpop.eup %8506 }
 0x891   : >> { %2303 = vadd.xlane.f32.xlu1 %v10788_v59 }
 0x8a2   : >> { %2506 = vrot.lane.b32.xlu0 %v10291_v33, %s9398_s14  ;;  %2508 = vrot.lane.b32.xlu1 %v10303_v10, %s9398_s14 }
 0x8a6   : >> { %2478 = vrot.lane.b32.xlu0 %v10163_v8, %s9398_s14  ;;  %2480 = vrot.lane.b32.xlu1 %v10187_v39, %s9398_s14 }
 0x8aa   : >> { %2482 = vrot.lane.b32.xlu0 %v10213_v16, %s9398_s14  ;;  %2484 = vrot.lane.b32.xlu1 %v10237_v50, %s9398_s14 }
 0x8ae   : >> { %2486 = vrot.lane.b32.xlu0 %v10261_v40, %s9398_s14  ;;  %2488 = vrot.lane.b32.xlu1 %v10277_v5, %s9398_s14 }
 0x8b2   : >> { %2490 = vrot.lane.b32.xlu0 %v10289_v46, %s9398_s14  ;;  %2492 = vrot.lane.b32.xlu1 %v10301_v3, %s9398_s14 }
 0x8b6   : >> { %2807 = vrot.lane.b32.xlu0 %v10182_v34, %s9398_s14  ;;  %2809 = vrot.lane.b32.xlu1 %v10180_v32, %s9398_s14 }
 0x8ba   : >> { %2811 = vrot.lane.b32.xlu0 %v10208_v36, %s9398_s14  ;;  %2813 = vrot.lane.b32.xlu1 %v10205_v6, %s9398_s14 }
 0x8be   : >> { %2815 = vrot.lane.b32.xlu0 %v10232_v2, %s9398_s14  ;;  %2817 = vrot.lane.b32.xlu1 %v10229_v38, %s9398_s14 }
 0x8c2   : >> { %2819 = vrot.lane.b32.xlu0 %v10256_v26, %s9398_s14  ;;  %2821 = vrot.lane.b32.xlu1 %v10253_v14, %s9398_s14 }
 0x8c6   : >> { %2944 = vrot.lane.b32.xlu0 %v10165_v13, %s9399_s20  ;;  %2946 = vrot.lane.b32.xlu1 %v10190_v63, %s9399_s20 }
 0x8cd   : >> { %v2282_v15 = vpop.xlane.xlu1 %2281 }
 0x8d0   : >> { %v2280_v35 = vpop.xlane.xlu0 %2279 }
 0x8d1   : >> { %8508 = vrcp.f32 %v2280_v35  ;;  %v2278_v37 = vpop.xlane.xlu1 %2277 }
 0x8d2   : >> { %8510 = vrcp.f32 %v2278_v37 }
 0x8d3   : >> { %8512 = vrcp.f32 %v2282_v15 }
 0x8d4   : >> { %v2503_v44 = vpop.permute.xlu0 %2502 }
 0x8d5   : >> { %v2284_v30 = vpop.xlane.xlu1 %2283  ;;  %v2547_v56 = vsel %vm1609_vm2, %v2503_v44, 0 }
 0x8d6   : >> { %8514 = vrcp.f32 %v2284_v30 }
 0x8db   : >> { %v8509_v21 = vpop.eup %8508 }
 0x8dc   : >> { %v8511_v60 = vpop.eup %8510  ;;  %v2326_v1 = vmul.f32 %v8509_v21, %v10728_v17  ;;  %v2538_v17 = vsel %vm1609_vm2, %v10723_v24, 0 }
 0x8dd   : >> { %v2325_v57 = vmul.f32 %v8511_v60, %v10730_v4  ;;  %v8513_v18 = vpop.eup %8512  ;;  %v2544_v4 = vsel %vm1609_vm2, %v10752_v9, 0 }
 0x8de   : >> { %v2327_v63 = vmul.f32 %v8513_v18, %v10725_v20  ;;  %v2541_v20 = vsel %vm1609_vm2, %v2499_v29, 0 }
 0x8df   : >> { %v2341_v13 = vpack.c.bf16 %v2326_v1, %v2325_v57 }
 0x8e0   : >> { %v8515_v27 = vpop.eup %8514 }
 0x8e1   : >> { %v2328_v45 = vmul.f32 %v8515_v27, %v10734_v0  ;;  %7471 = vmatprep.mubr.bf16.mxu0 %v2341_v13 }
 0x8e3   : >> { %v2342_v62 = vpack.c.bf16 %v2328_v45, %v2327_v63 }
 0x8e5   : >> { %7472 = vmatmul.mubr.bf16.vlgmr.msra.gmra.mrb[48].mxu0 %v2342_v62 }
 0x8e6   : >> { %7488 = vmatpush3.bf16.xpose.msra.mxu0 %v2535_v11 }
 0x8e7   : >> { %7844 = vmatprep.subr.msk.bf16.mxu0 %vm1609_vm2, %v10723_v24  ;;  %v2505_v24 = vpop.permute.xlu1 %2504 }
 0x8e8   : >> { %v2550_v15 = vsel %vm1609_vm2, %v2505_v24, 0 }
 0x8ee   : >> { %7490 = vmatpush3.bf16.xpose.msra.mxu0 %v2538_v17 }
 0x8ef   : >> { %7845 = vmatprep.subr.msk.bf16.mxu0 %vm1609_vm2, %v2499_v29 }
 0x8f6   : >> { %7492 = vmatpush3.bf16.xpose.msra.mxu0 %v2541_v20 }
 0x8f7   : >> { %7846 = vmatprep.subr.msk.bf16.mxu0 %vm1609_vm2, %v10752_v9 }
 0x8fe   : >> { %7494 = vmatpush3.bf16.xpose.msra.mxu0 %v2544_v4 }
 0x8ff   : >> { %7847 = vmatprep.subr.msk.bf16.mxu0 %vm1609_vm2, %v2503_v44 }
 0x905   : >> { %v2290_v0 = vpop.xlane.xlu0 %2289 }
 0x906   : >> { %7496 = vmatpush3.bf16.xpose.msra.mxu0 %v2547_v56 }
 0x907   : >> { %7848 = vmatprep.subr.msk.bf16.mxu0 %vm1609_vm2, %v2505_v24 }
 0x909   : >> { %v2286_v51 = vpop.xlane.xlu0 %2285 }
 0x90a   : >> { %8516 = vrcp.f32 %v2286_v51  ;;  %v2288_v47 = vpop.xlane.xlu1 %2287 }
 0x90b   : >> { %8518 = vrcp.f32 %v2288_v47 }
 0x90c   : >> { %8520 = vrcp.f32 %v2290_v0 }
 0x90d   : >> { %v2292_v29 = vpop.xlane.xlu0 %2291 }
 0x90e   : >> { %8522 = vrcp.f32 %v2292_v29  ;;  %7498 = vmatpush3.bf16.xpose.msra.mxu0 %v2550_v15  ;;  %v2298_v9 = vpop.xlane.xlu1 %2297 }
 0x911   : >> { %v2306_v35 = vpop.xlane.xlu0 %2305 }
 0x912   : >> { %v2294_v37 = vpop.xlane.xlu1 %2293 }
 0x914   : >> { %v8517_v30 = vpop.eup %8516 }
 0x915   : >> { %v8519_v21 = vpop.eup %8518  ;;  %v2302_v60 = vpop.xlane.xlu0 %2301  ;;  %v2329_v1 = vmul.f32 %v8517_v30, %v10756_v23 }
 0x916   : >> { %v8521_v57 = vpop.eup %8520  ;;  %v2300_v18 = vpop.xlane.xlu1 %2299  ;;  %v2330_v13 = vmul.f32 %v8519_v21, %v10758_v12 }
 0x917   : >> { %8524 = vrcp.f32 %v2300_v18  ;;  %v2331_v62 = vmul.f32 %v8521_v57, %v10750_v61 }
 0x918   : >> { %v8523_v27 = vpop.eup %8522  ;;  %v2343_v63 = vpack.c.bf16 %v2330_v13, %v2329_v1  ;;  %8526 = vrcp.f32 %v2294_v37 }
 0x919   : >> { %v2308_v45 = vpop.xlane.xlu0 %2307  ;;  %v2332_v11 = vmul.f32 %v8523_v27, %v10763_v43  ;;  %8528 = vrcp.f32 %v2298_v9 }
 0x91a   : >> { %7475 = vmatprep.mubr.bf16.mxu0 %v2343_v63  ;;  %v2296_v17 = vpop.xlane.xlu1 %2295 }
 0x91b   : >> { %8530 = vrcp.f32 %v2296_v17  ;;  %v2344_v20 = vpack.c.bf16 %v2332_v11, %v2331_v62 }
 0x91c   : >> { %8532 = vrcp.f32 %v2302_v60 }
 0x91d   : >> { %v2507_v23 = vpop.permute.xlu0 %2506  ;;  %7476 = vmatmul.mubr.bf16.gmra.mrb[52].mxu0 %v2344_v20 }
 0x91e   : >> { %7849 = vmatprep.subr.msk.bf16.mxu0 %vm1609_vm2, %v2507_v23  ;;  %v2304_v12 = vpop.xlane.xlu1 %2303  ;;  %v2553_v4 = vsel %vm1609_vm2, %v2507_v23, 0 }
 0x91f   : >> { %8534 = vrcp.f32 %v2304_v12  ;;  %7500 = vmatpush3.bf16.xpose.msra.mxu0 %v2553_v4 }
 0x920   : >> { %8536 = vrcp.f32 %v2308_v45 }
 0x921   : >> { %v2479_v44 = vpop.permute.xlu0 %2478  ;;  %v8525_v61 = vpop.eup %8524  ;;  %8538 = vrcp.f32 %v2306_v35 }
 0x922   : >> { %v2509_v43 = vpop.permute.xlu1 %2508  ;;  %v8527_v0 = vpop.eup %8526  ;;  %v2336_v47 = vmul.f32 %v8525_v61, %v10778_v25 }
 0x923   : >> { %7850 = vmatprep.subr.msk.bf16.mxu0 %vm1609_vm2, %v2509_v43  ;;  %v8529_v56 = vpop.eup %8528  ;;  %v2556_v15 = vsel %vm1609_vm2, %v2509_v43, 0  ;;  %v2333_v9 = vmul.f32 %v8527_v0, %v10772_v22 }
 0x924   : >> { %v2335_v35 = vmul.f32 %v8529_v56, %v10765_v48 }
 0x925   : >> { %v8531_v24 = vpop.eup %8530  ;;  %v2483_v51 = vpop.permute.xlu0 %2482 }
 0x926   : >> { %v2481_v29 = vpop.permute.xlu1 %2480  ;;  %v2334_v37 = vmul.f32 %v8531_v24, %v10784_v55  ;;  %v8533_v30 = vpop.eup %8532  ;;  %v2346_v57 = vpack.c.bf16 %v2336_v47, %v2335_v35 }
 0x927   : >> { %7502 = vmatpush3.bf16.xpose.msra.mxu0 %v2556_v15  ;;  %v2337_v25 = vmul.f32 %v8533_v30, %v10776_v42 }
 0x928   : >> { %v2345_v21 = vpack.c.bf16 %v2334_v37, %v2333_v9  ;;  %v10992_v9 = vld [vmem:[%s13214_s23 + $0x20] sm:$0xff] }
 0x929   : >> { %v8535_v60 = vpop.eup %8534  ;;  %v2487_v1 = vpop.permute.xlu0 %2486 }
 0x92a   : >> { %v8537_v18 = vpop.eup %8536  ;;  %7479 = vmatprep.mubr.bf16.mxu0 %v2345_v21  ;;  %v2485_v13 = vpop.permute.xlu1 %2484  ;;  %v2338_v27 = vmul.f32 %v8535_v60, %v10788_v59 }
 0x92b   : >> { %7480 = vmatmul.mubr.bf16.gmra.mrb[56].mxu0 %v2346_v57  ;;  %v8539_v63 = vpop.eup %8538  ;;  %v2340_v55 = vmul.f32 %v8537_v18, %v10782_v31  ;;  %v10974_v18 = vld [vmem:[%s13214_s23 + $0x30] sm:$0xff] }
 0x92c   : >> { %v2347_v22 = vpack.c.bf16 %v2338_v27, %v2337_v25  ;;  %v2339_v48 = vmul.f32 %v8539_v63, %v10770_v54 }
 0x92d   : >> { %v2491_v45 = vpop.permute.xlu0 %2490 }
 0x92e   : >> { %7483 = vmatprep.mubr.bf16.mxu0 %v2347_v22  ;;  %v2489_v62 = vpop.permute.xlu1 %2488  ;;  %v2348_v17 = vpack.c.bf16 %v2340_v55, %v2339_v48 }
 0x931   : >> { %v2808_v11 = vpop.permute.xlu0 %2807 }
 0x932   : >> { %7519 = vmatprep.subr.bf16.mxu1 %v2808_v11  ;;  %v2493_v20 = vpop.permute.xlu1 %2492 }
 0x933   : >> { %7484 = vmatmul.mubr.bf16.gmra.mrb[60].mxu0 %v2348_v17  ;;  %7520 = vmatpush3.bf16.msra.mxu1 %v2808_v11 }
 0x934   : >> { %7503 = vmatprep.mubr.msk.bf16.mxu0 %vm1609_vm2, %v2479_v44 }
 0x935   : >> { %v2812_v59 = vpop.permute.xlu0 %2811 }
 0x936   : >> { %v2810_v42 = vpop.permute.xlu1 %2809 }
 0x937   : >> { %7521 = vmatprep.subr.bf16.mxu1 %v2810_v42 }
 0x938   : >> { %7522 = vmatpush3.bf16.msra.mxu1 %v2810_v42  ;;  %v10939_v42 = vld [vmem:[%s13214_s23 + $0x8] sm:$0xff] }
 0x939   : >> { %7523 = vmatprep.subr.bf16.mxu1 %v2812_v59  ;;  %v2816_v54 = vpop.permute.xlu0 %2815 }
 0x93a   : >> { %v2814_v31 = vpop.permute.xlu1 %2813 }
 0x93b   : >> { %7504 = vmatmul.mubr.msk.bf16.vlgmr.msra.gmra.mrb[64].mxu0 %vm1609_vm2, %v2481_v29 }
 0x93c   : >> { %7507 = vmatprep.mubr.msk.bf16.mxu0 %vm1609_vm2, %v2483_v51  ;;  %7524 = vmatpush3.bf16.msra.mxu1 %v2812_v59 }
 0x93d   : >> { %7525 = vmatprep.subr.bf16.mxu1 %v2814_v31  ;;  %v2820_v12 = vpop.permute.xlu0 %2819 }
 0x93e   : >> { %v2818_v23 = vpop.permute.xlu1 %2817 }
 0x940   : >> { %7526 = vmatpush3.bf16.msra.mxu1 %v2814_v31  ;;  %v10947_v31 = vld [vmem:[%s13214_s23] sm:$0xff] }
 0x941   : >> { %7527 = vmatprep.subr.bf16.mxu1 %v2816_v54  ;;  %v10874_v44 = vpop.permute.xlu0 %2944 }
 0x942   : >> { %v2822_v4 = vpop.permute.xlu1 %2821 }
 0x943   : >> { %7508 = vmatmul.mubr.msk.bf16.gmra.mrb[68].mxu0 %vm1609_vm2, %v2485_v13 }
 0x944   : >> { %7511 = vmatprep.mubr.msk.bf16.mxu0 %vm1609_vm2, %v2487_v1  ;;  %7528 = vmatpush3.bf16.msra.mxu1 %v2816_v54  ;;  %v10983_v1 = vld [vmem:[%s13214_s23 + $0x28] sm:$0xff] }
 0x945   : >> { %7529 = vmatprep.subr.bf16.mxu1 %v2818_v23 }
 0x948   : >> { %7530 = vmatpush3.bf16.msra.mxu1 %v2818_v23 }
 0x949   : >> { %7531 = vmatprep.subr.bf16.mxu1 %v2820_v12 }
 0x94b   : >> { %7512 = vmatmul.mubr.msk.bf16.gmra.mrb[72].mxu0 %vm1609_vm2, %v2489_v62  ;;  %v10930_v62 = vld [vmem:[%s13214_s23 + $0x10] sm:$0xff] }
 0x94c   : >> { %7515 = vmatprep.mubr.msk.bf16.mxu0 %vm1609_vm2, %v2491_v45  ;;  %7532 = vmatpush3.bf16.msra.mxu1 %v2820_v12  ;;  %v10957_v12 = vld [vmem:[%s13214_s23 + $0x18] sm:$0xff] }
 0x94d   : >> { %7533 = vmatprep.subr.bf16.mxu1 %v2822_v4 }
 0x950   : >> { %7534 = vmatpush3.bf16.msra.mxu1 %v2822_v4 }
 0x951   : >> { %7851 = vmatprep.subr.msk.bf16.mxu1 %vm1609_vm2, %v10874_v44 }
 0x953   : >> { %7516 = vmatmul.mubr.msk.bf16.gmra.mrb[76].mxu0 %vm1609_vm2, %v2493_v20 }
 0x9b8   : >> { %v10879_v61 = vpop.f32.mrb[48].mxu0 }
 0x9b9   : >> { %13253 = vst [vmem:[#allocation56_spill] sm:$0xff] %v10879_v61  ;;  %v10881_v43 = vpop.f32.mrb[49].mxu0 }
 0x9ba   : >> { %13254 = vst [vmem:[#allocation58_spill] sm:$0xff] %v10881_v43  ;;  %v10883_v0 = vpop.f32.mrb[50].mxu0 }
 0x9bb   : >> { %13255 = vst [vmem:[#allocation57_spill] sm:$0xff] %v10883_v0  ;;  %v10887_v24 = vpop.f32.mrb[51].mxu0 }
 0x9bc   : >> { %13256 = vst [vmem:[#allocation60_spill] sm:$0xff] %v10887_v24 }
 0x9f0   : >> { %v10891_v47 = vpop.f32.mrb[52].mxu0 }
 0x9f1   : >> { %13257 = vst [vmem:[#allocation59_spill] sm:$0xff] %v10891_v47  ;;  %v10893_v29 = vpop.f32.mrb[53].mxu0 }
 0x9f2   : >> { %13258 = vst [vmem:[#allocation61_spill] sm:$0xff] %v10893_v29  ;;  %v10895_v15 = vpop.f32.mrb[54].mxu0 }
 0x9f3   : >> { %13259 = vst [vmem:[#allocation62_spill] sm:$0xff] %v10895_v15  ;;  %v10899_v37 = vpop.f32.mrb[55].mxu0 }
 0x9f4   : >> { %13260 = vst [vmem:[#allocation51_spill] sm:$0xff] %v10899_v37 }
 0x9fe   : >> { %v10903_v35 = vpop.f32.mrb[56].mxu0 }
 0x9ff   : >> { %13261 = vst [vmem:[#allocation48_spill] sm:$0xff] %v10903_v35  ;;  %v10905_v21 = vpop.f32.mrb[57].mxu0 }
 0xa00   : >> { %13262 = vst [vmem:[#allocation63_spill] sm:$0xff] %v10905_v21  ;;  %v10907_v60 = vpop.f32.mrb[58].mxu0 }
 0xa01   : >> { %13263 = vst [vmem:[#allocation64_spill] sm:$0xff] %v10907_v60  ;;  %v10911_v57 = vpop.f32.mrb[59].mxu0 }
 0xa02   : >> { %13264 = vst [vmem:[#allocation55_spill] sm:$0xff] %v10911_v57 }
 0xa06   : >> { %v10915_v13 = vpop.f32.mrb[60].mxu0 }
 0xa07   : >> { %13265 = vst [vmem:[#allocation54_spill] sm:$0xff] %v10915_v13  ;;  %v10917_v25 = vpop.f32.mrb[61].mxu0 }
 0xa08   : >> { %13266 = vst [vmem:[#allocation81_spill] sm:$0xff] %v10917_v25  ;;  %v10919_v27 = vpop.f32.mrb[62].mxu0 }
 0xa09   : >> { %13267 = vst [vmem:[#allocation82_spill] sm:$0xff] %v10919_v27  ;;  %v10923_v22 = vpop.f32.mrb[63].mxu0 }
 0xa0a   : >> { %13268 = vst [vmem:[#allocation83_spill] sm:$0xff] %v10923_v22  ;;  %v11028_v22 = vld [vmem:[%s13214_s23 + $0x40] sm:$0xff] }
 0xa0e   : >> { %v7505_v55 = vpop.f32.mrb[64].mxu0 }
 0xa0f   : >> { %v10933_v48 = vadd.f32 %v10930_v62, %v7505_v55  ;;  %v2592_v11 = vpop.f32.mrb[65].mxu0 }
 0xa10   : >> { %v7506_v17 = vpop.f32.mrb[66].mxu0  ;;  %v10950_v54 = vadd.f32 %v10947_v31, %v2592_v11  ;;  %v10965_v11 = vld [vmem:[%s13214_s23 + $0x38] sm:$0xff] }
 0xa11   : >> { %2659 = vmax.xlane.f32.xlu0 %v10933_v48  ;;  %v2595_v20 = vpop.f32.mrb[67].mxu0  ;;  %v10960_v4 = vadd.f32 %v10957_v12, %v7506_v17 }
 0xa12   : >> { %v10942_v59 = vadd.f32 %v10939_v42, %v2595_v20 }
 0xa14   : >> { %2657 = vmax.xlane.f32.xlu1 %v10942_v59 }
 0xa15   : >> { %2655 = vmax.xlane.f32.xlu0 %v10950_v54 }
 0xa16   : >> { %v7509_v23 = vpop.f32.mrb[68].mxu0 }
 0xa17   : >> { %v2608_v55 = vpop.f32.mrb[69].mxu0  ;;  %v10977_v17 = vadd.f32 %v10974_v18, %v7509_v23 }
 0xa18   : >> { %v7510_v20 = vpop.f32.mrb[70].mxu0  ;;  %v10995_v23 = vadd.f32 %v10992_v9, %v2608_v55  ;;  %v11010_v55 = vld [vmem:[%s13214_s23 + $0x50] sm:$0xff] }
 0xa19   : >> { %v10968_v45 = vadd.f32 %v10965_v11, %v7510_v20  ;;  %2661 = vmax.xlane.f32.xlu0 %v10960_v4  ;;  %v2611_v63 = vpop.f32.mrb[71].mxu0 }
 0xa1a   : >> { %v10986_v20 = vadd.f32 %v10983_v1, %v2611_v63  ;;  %v11001_v63 = vld [vmem:[%s13214_s23 + $0x58] sm:$0xff] }
 0xa1b   : >> { %2669 = vmax.xlane.f32.xlu1 %v10968_v45 }
 0xa1d   : >> { %2667 = vmax.xlane.f32.xlu0 %v10977_v17 }
 0xa1e   : >> { %v7513_v30 = vpop.f32.mrb[72].mxu0 }
 0xa1f   : >> { %2665 = vmax.xlane.f32.xlu1 %v10986_v20  ;;  %v2624_v51 = vpop.f32.mrb[73].mxu0  ;;  %v11013_v28 = vadd.f32 %v11010_v55, %v7513_v30 }
 0xa20   : >> { %v7514_v56 = vpop.f32.mrb[74].mxu0  ;;  %v11031_v30 = vadd.f32 %v11028_v22, %v2624_v51  ;;  %v11047_v51 = vld [vmem:[%s13214_s23 + $0x60] sm:$0xff] }
 0xa21   : >> { %v11004_v7 = vadd.f32 %v11001_v63, %v7514_v56  ;;  %2663 = vmax.xlane.f32.xlu0 %v10995_v23  ;;  %v2627_v19 = vpop.f32.mrb[75].mxu0 }
 0xa22   : >> { %v11022_v56 = vadd.f32 %v11019_v41, %v2627_v19  ;;  %v11038_v19 = vld [vmem:[%s13214_s23 + $0x70] sm:$0xff] }
 0xa23   : >> { %2677 = vmax.xlane.f32.xlu1 %v11004_v7 }
 0xa25   : >> { %2675 = vmax.xlane.f32.xlu0 %v11013_v28 }
 0xa26   : >> { %v7517_v25 = vpop.f32.mrb[76].mxu0 }
 0xa27   : >> { %2673 = vmax.xlane.f32.xlu1 %v11022_v56  ;;  %v2640_v13 = vpop.f32.mrb[77].mxu0  ;;  %v11041_v57 = vadd.f32 %v11038_v19, %v7517_v25  ;;  %v11060_v25 = vld [vmem:[%s13214_s23 + $0x78] sm:$0xff] }
 0xa28   : >> { %v7518_v27 = vpop.f32.mrb[78].mxu0  ;;  %v11050_v35 = vadd.f32 %v11047_v51, %v2640_v13  ;;  %13269 = vst [vmem:[#allocation84_spill] sm:$0xff] %v11060_v25  ;;  %v11069_v13 = vld [vmem:[%s13214_s23 + $0x68] sm:$0xff] }
 0xa29   : >> { %2671 = vmax.xlane.f32.xlu0 %v11031_v30  ;;  %v2643_v21 = vpop.f32.mrb[79].mxu0  ;;  %v11063_v60 = vadd.f32 %v11060_v25, %v7518_v27  ;;  %13270 = vst [vmem:[#allocation85_spill] sm:$0xff] %v11069_v13 }
 0xa2d   : >> { %2683 = vmax.xlane.f32.xlu0 %v11041_v57 }
 0xa31   : >> { %2679 = vmax.xlane.f32.xlu0 %v11050_v35 }
 0xa38   : >> { %2950 = vrot.lane.b32.xlu1 %v13247_v49, %s9399_s20  ;;  %v11072_v49 = vadd.f32 %v11069_v13, %v2643_v21 }
 0xa47   : >> { %2948 = vrot.lane.b32.xlu0 %v13248_v52, %s9399_s20  ;;  %v11075_v52 = vpop.permute.xlu1 %2946 }
 0xa5c   : >> { %2685 = vmax.xlane.f32.xlu1 %v11063_v60 }
 0xa60   : >> { %2681 = vmax.xlane.f32.xlu1 %v11072_v49 }
 0xa9e   : >> { %v2660_v29 = vpop.xlane.xlu0 %2659 }
 0xa9f   : >> { %v2689_v37 = vsub.f32 %v10933_v48, %v2660_v29 }
 0xaa1   : >> { %v2707_v47 = vmul.f32 1.442695, %v2689_v37  ;;  %v2658_v27 = vpop.xlane.xlu1 %2657 }
 0xaa2   : >> { %v2688_v15 = vsub.f32 %v10942_v59, %v2658_v27  ;;  %v2656_v43 = vpop.xlane.xlu0 %2655 }
 0xaa3   : >> { %8540 = vpow2.f32 %v2707_v47  ;;  %v2687_v24 = vsub.f32 %v10950_v54, %v2656_v43 }
 0xaa4   : >> { %v2705_v61 = vmul.f32 1.442695, %v2688_v15 }
 0xaa5   : >> { %v2703_v0 = vmul.f32 1.442695, %v2687_v24 }
 0xaa6   : >> { %8542 = vpow2.f32 %v2705_v61  ;;  %v2662_v21 = vpop.xlane.xlu0 %2661 }
 0xaa7   : >> { %8544 = vpow2.f32 %v2703_v0  ;;  %v2690_v26 = vsub.f32 %v10960_v4, %v2662_v21 }
 0xaa9   : >> { %v2709_v14 = vmul.f32 1.442695, %v2690_v26  ;;  %v2670_v26 = vpop.xlane.xlu1 %2669 }
 0xaaa   : >> { %v2668_v61 = vpop.xlane.xlu0 %2667  ;;  %v2694_v21 = vsub.f32 %v10968_v45, %v2670_v26 }
 0xaab   : >> { %8546 = vpow2.f32 %v2709_v14  ;;  %v2693_v24 = vsub.f32 %v10977_v17, %v2668_v61 }
 0xaac   : >> { %v2717_v2 = vmul.f32 1.442695, %v2694_v21 }
 0xaad   : >> { %v11081_v13 = vpop.eup %8540  ;;  %v2666_v47 = vpop.xlane.xlu1 %2665  ;;  %v2715_v48 = vmul.f32 1.442695, %v2693_v24 }
 0xaae   : >> { %2739 = vadd.xlane.f32.xlu1 %v11081_v13  ;;  %v2664_v14 = vpop.xlane.xlu0 %2663  ;;  %v2692_v54 = vsub.f32 %v10986_v20, %v2666_v47 }
 0xaaf   : >> { %v2691_v59 = vsub.f32 %v10995_v23, %v2664_v14  ;;  %8548 = vpow2.f32 %v2715_v48 }
 0xab0   : >> { %v11084_v29 = vpop.eup %8542  ;;  %v2713_v25 = vmul.f32 1.442695, %v2692_v54 }
 0xab1   : >> { %v11086_v37 = vpop.eup %8544  ;;  %2737 = vadd.xlane.f32.xlu0 %v11084_v29  ;;  %v2678_v4 = vpop.xlane.xlu1 %2677 }
 0xab2   : >> { %2735 = vadd.xlane.f32.xlu1 %v11086_v37  ;;  %v2676_v0 = vpop.xlane.xlu0 %2675  ;;  %v2698_v45 = vsub.f32 %v11004_v7, %v2678_v4 }
 0xab5   : >> { %v11090_v43 = vpop.eup %8546  ;;  %v2674_v38 = vpop.xlane.xlu1 %2673 }
 0xab6   : >> { %2741 = vadd.xlane.f32.xlu1 %v11090_v43  ;;  %v2672_v15 = vpop.xlane.xlu0 %2671 }
 0xab7   : >> { %v2695_v23 = vsub.f32 %v11031_v30, %v2672_v15  ;;  %v2696_v30 = vsub.f32 %v11022_v56, %v2674_v38 }
 0xab9   : >> { %v2719_v26 = vmul.f32 1.442695, %v2695_v23  ;;  %v11106_v47 = vpop.eup %8548  ;;  %v2721_v15 = vmul.f32 1.442695, %v2696_v30  ;;  %v2985_v23 = vsel %vm1609_vm2, %v10874_v44, 0 }
 0xaba   : >> { %v2684_v27 = vpop.xlane.xlu0 %2683 }
 0xabb   : >> { %v2701_v17 = vsub.f32 %v11041_v57, %v2684_v27 }
 0xabd   : >> { %v2731_v20 = vmul.f32 1.442695, %v2701_v17 }
 0xabe   : >> { %v2680_v14 = vpop.xlane.xlu0 %2679 }
 0xabf   : >> { %v2699_v24 = vsub.f32 %v11050_v35, %v2680_v14 }
 0xac1   : >> { %v2727_v57 = vmul.f32 1.442695, %v2699_v24 }
 0xac7   : >> { %2954 = vrot.lane.b32.xlu1 %v13251_v58, %s9399_s20  ;;  %2952 = vrot.lane.b32.xlu0 %v13252_v53, %s9399_s20  ;;  %v2711_v58 = vmul.f32 1.442695, %v2691_v59  ;;  %v2697_v53 = vsub.f32 %v11013_v28, %v2676_v0  ;;  %v11108_v28 = vpop.permute.xlu1 %2950 }
 0xac9   : >> { %8550 = vpow2.f32 %v2711_v58  ;;  %v2723_v61 = vmul.f32 1.442695, %v2697_v53 }
 0xaca   : >> { %8552 = vpow2.f32 %v2713_v25  ;;  %v2725_v25 = vmul.f32 1.442695, %v2698_v45 }
 0xacb   : >> { %8554 = vpow2.f32 %v2717_v2 }
 0xacc   : >> { %8556 = vpow2.f32 %v2723_v61 }
 0xacd   : >> { %8558 = vpow2.f32 %v2731_v20 }
 0xace   : >> { %8560 = vpow2.f32 %v2719_v26 }
 0xacf   : >> { %8562 = vpow2.f32 %v2727_v57 }
 0xad0   : >> { %8564 = vpow2.f32 %v2725_v25 }
 0xad3   : >> { %v11112_v2 = vpop.eup %8550 }
 0xad4   : >> { %v11114_v35 = vpop.eup %8552 }
 0xad5   : >> { %v11119_v59 = vpop.eup %8554 }
 0xad6   : >> { %v11121_v38 = vpop.eup %8556 }
 0xad7   : >> { %v11126_v4 = vpop.eup %8558 }
 0xad8   : >> { %v11128_v27 = vpop.eup %8560 }
 0xad9   : >> { %v11132_v21 = vpop.eup %8562 }
 0xada   : >> { %v11134_v58 = vpop.eup %8564 }
 0xae6   : >> { %2747 = vadd.xlane.f32.xlu0 %v11106_v47 }
 0xae9   : >> { %v2686_v0 = vpop.xlane.xlu1 %2685 }
 0xaea   : >> { %v2702_v7 = vsub.f32 %v11063_v60, %v2686_v0  ;;  %2743 = vadd.xlane.f32.xlu0 %v11112_v2 }
 0xaeb   : >> { %2745 = vadd.xlane.f32.xlu1 %v11114_v35 }
 0xaec   : >> { %v2733_v48 = vmul.f32 1.442695, %v2702_v7 }
 0xaed   : >> { %v2682_v54 = vpop.xlane.xlu1 %2681 }
 0xaee   : >> { %8566 = vpow2.f32 %v2733_v48  ;;  %v2700_v56 = vsub.f32 %v11072_v49, %v2682_v54  ;;  %2749 = vadd.xlane.f32.xlu0 %v11119_v59 }
 0xaef   : >> { %2755 = vadd.xlane.f32.xlu1 %v11121_v38  ;;  %8568 = vpow2.f32 %v2721_v15 }
 0xaf0   : >> { %v2729_v60 = vmul.f32 1.442695, %v2700_v56 }
 0xaf2   : >> { %2763 = vadd.xlane.f32.xlu0 %v11126_v4  ;;  %8570 = vpow2.f32 %v2729_v60 }
 0xaf3   : >> { %2751 = vadd.xlane.f32.xlu1 %v11128_v27 }
 0xaf6   : >> { %2759 = vadd.xlane.f32.xlu0 %v11132_v21 }
 0xaf7   : >> { %2757 = vadd.xlane.f32.xlu1 %v11134_v58 }
 0xaf8   : >> { %v11138_v49 = vpop.eup %8566 }
 0xaf9   : >> { %v11140_v53 = vpop.eup %8568 }
 0xafa   : >> { %2765 = vadd.xlane.f32.xlu0 %v11138_v49 }
 0xafb   : >> { %2753 = vadd.xlane.f32.xlu1 %v11140_v53 }
 0xafc   : >> { %v11144_v17 = vpop.eup %8570 }
 0xaff   : >> { %2761 = vadd.xlane.f32.xlu1 %v11144_v17 }
 0xb10   : >> { %2956 = vrot.lane.b32.xlu0 %v10291_v33, %s9399_s20  ;;  %2958 = vrot.lane.b32.xlu1 %v10303_v10, %s9399_s20 }
 0xb14   : >> { %2928 = vrot.lane.b32.xlu0 %v10163_v8, %s9399_s20  ;;  %2930 = vrot.lane.b32.xlu1 %v10187_v39, %s9399_s20  ;;  %v2949_v8 = vpop.permute.xlu0 %2948 }
 0xb18   : >> { %2932 = vrot.lane.b32.xlu0 %v10213_v16, %s9399_s20  ;;  %2934 = vrot.lane.b32.xlu1 %v10237_v50, %s9399_s20 }
 0xb1c   : >> { %2936 = vrot.lane.b32.xlu0 %v10261_v40, %s9399_s20  ;;  %2938 = vrot.lane.b32.xlu1 %v10277_v5, %s9399_s20 }
 0xb20   : >> { %2940 = vrot.lane.b32.xlu0 %v10289_v46, %s9399_s20  ;;  %2942 = vrot.lane.b32.xlu1 %v10301_v3, %s9399_s20 }
 0xb24   : >> { %3257 = vrot.lane.b32.xlu0 %v10182_v34, %s9399_s20  ;;  %3259 = vrot.lane.b32.xlu1 %v10180_v32, %s9399_s20 }
 0xb28   : >> { %3261 = vrot.lane.b32.xlu0 %v10208_v36, %s9399_s20 }
 0xb2c   : >> { %3263 = vrot.lane.b32.xlu0 %v10205_v6, %s9399_s20 }
 0xb3b   : >> { %v2740_v39 = vpop.xlane.xlu1 %2739 }
 0xb3e   : >> { %v2738_v16 = vpop.xlane.xlu0 %2737 }
 0xb3f   : >> { %8572 = vrcp.f32 %v2738_v16  ;;  %v2736_v50 = vpop.xlane.xlu1 %2735 }
 0xb40   : >> { %8574 = vrcp.f32 %v2736_v50 }
 0xb41   : >> { %8576 = vrcp.f32 %v2740_v39 }
 0xb42   : >> { %v2953_v44 = vpop.permute.xlu0 %2952 }
 0xb43   : >> { %v2742_v40 = vpop.xlane.xlu1 %2741  ;;  %v2997_v14 = vsel %vm1609_vm2, %v2953_v44, 0 }
 0xb44   : >> { %8578 = vrcp.f32 %v2742_v40 }
 0xb49   : >> { %v8573_v5 = vpop.eup %8572 }
 0xb4a   : >> { %v8575_v34 = vpop.eup %8574  ;;  %v2784_v46 = vmul.f32 %v8573_v5, %v11084_v29  ;;  %v2988_v29 = vsel %vm1609_vm2, %v11075_v52, 0 }
 0xb4b   : >> { %v2783_v32 = vmul.f32 %v8575_v34, %v11086_v37  ;;  %v8577_v33 = vpop.eup %8576  ;;  %v2994_v37 = vsel %vm1609_vm2, %v11108_v28, 0 }
 0xb4c   : >> { %v2785_v6 = vmul.f32 %v8577_v33, %v11081_v13  ;;  %v2991_v13 = vsel %vm1609_vm2, %v2949_v8, 0 }
 0xb4d   : >> { %v2799_v36 = vpack.c.bf16 %v2784_v46, %v2783_v32 }
 0xb4e   : >> { %v8579_v3 = vpop.eup %8578 }
 0xb4f   : >> { %v2786_v10 = vmul.f32 %v8579_v3, %v11090_v43  ;;  %7535 = vmatprep.mubr.bf16.mxu1 %v2799_v36 }
 0xb51   : >> { %v2800_v61 = vpack.c.bf16 %v2786_v10, %v2785_v6 }
 0xb53   : >> { %7536 = vmatmul.mubr.bf16.vlgmr.msra.gmra.mrb[48].mxu1 %v2800_v61 }
 0xb54   : >> { %7552 = vmatpush3.bf16.xpose.msra.mxu1 %v2985_v23 }
 0xb55   : >> { %7852 = vmatprep.subr.msk.bf16.mxu1 %vm1609_vm2, %v11075_v52  ;;  %v2955_v52 = vpop.permute.xlu1 %2954 }
 0xb56   : >> { %v3000_v26 = vsel %vm1609_vm2, %v2955_v52, 0 }
 0xb5c   : >> { %7554 = vmatpush3.bf16.xpose.msra.mxu1 %v2988_v29 }
 0xb5d   : >> { %7853 = vmatprep.subr.msk.bf16.mxu1 %vm1609_vm2, %v2949_v8 }
 0xb64   : >> { %7556 = vmatpush3.bf16.xpose.msra.mxu1 %v2991_v13 }
 0xb65   : >> { %7854 = vmatprep.subr.msk.bf16.mxu1 %vm1609_vm2, %v11108_v28 }
 0xb6c   : >> { %7558 = vmatpush3.bf16.xpose.msra.mxu1 %v2994_v37 }
 0xb6d   : >> { %7855 = vmatprep.subr.msk.bf16.mxu1 %vm1609_vm2, %v2953_v44 }
 0xb73   : >> { %v2748_v43 = vpop.xlane.xlu0 %2747 }
 0xb74   : >> { %7560 = vmatpush3.bf16.xpose.msra.mxu1 %v2997_v14 }
 0xb75   : >> { %7856 = vmatprep.subr.msk.bf16.mxu1 %vm1609_vm2, %v2955_v52 }
 0xb77   : >> { %v2744_v20 = vpop.xlane.xlu0 %2743 }
 0xb78   : >> { %8580 = vrcp.f32 %v2744_v20  ;;  %v2746_v24 = vpop.xlane.xlu1 %2745 }
 0xb79   : >> { %8582 = vrcp.f32 %v2746_v24 }
 0xb7a   : >> { %8584 = vrcp.f32 %v2748_v43 }
 0xb7b   : >> { %v2750_v45 = vpop.xlane.xlu0 %2749 }
 0xb7c   : >> { %8586 = vrcp.f32 %v2750_v45  ;;  %7562 = vmatpush3.bf16.xpose.msra.mxu1 %v3000_v26  ;;  %v2756_v28 = vpop.xlane.xlu1 %2755 }
 0xb7f   : >> { %v2764_v57 = vpop.xlane.xlu0 %2763 }
 0xb80   : >> { %v2752_v25 = vpop.xlane.xlu1 %2751 }
 0xb82   : >> { %v8581_v30 = vpop.eup %8580 }
 0xb83   : >> { %v8583_v0 = vpop.eup %8582  ;;  %v2760_v7 = vpop.xlane.xlu0 %2759  ;;  %v2787_v15 = vmul.f32 %v8581_v30, %v11112_v2 }
 0xb84   : >> { %v8585_v48 = vpop.eup %8584  ;;  %v2758_v54 = vpop.xlane.xlu1 %2757  ;;  %v2788_v56 = vmul.f32 %v8583_v0, %v11114_v35 }
 0xb85   : >> { %8588 = vrcp.f32 %v2758_v54  ;;  %v2789_v16 = vmul.f32 %v8585_v48, %v11106_v47 }
 0xb86   : >> { %v8587_v60 = vpop.eup %8586  ;;  %v2801_v8 = vpack.c.bf16 %v2788_v56, %v2787_v15  ;;  %8590 = vrcp.f32 %v2752_v25 }
 0xb87   : >> { %v2766_v39 = vpop.xlane.xlu0 %2765  ;;  %v2790_v50 = vmul.f32 %v8587_v60, %v11119_v59  ;;  %8592 = vrcp.f32 %v2756_v28 }
 0xb88   : >> { %7539 = vmatprep.mubr.bf16.mxu1 %v2801_v8  ;;  %v2754_v40 = vpop.xlane.xlu1 %2753 }
 0xb89   : >> { %8594 = vrcp.f32 %v2754_v40  ;;  %v2802_v5 = vpack.c.bf16 %v2790_v50, %v2789_v16 }
 0xb8a   : >> { %8596 = vrcp.f32 %v2760_v7 }
 0xb8b   : >> { %v2957_v2 = vpop.permute.xlu0 %2956  ;;  %7540 = vmatmul.mubr.bf16.gmra.mrb[52].mxu1 %v2802_v5 }
 0xb8c   : >> { %7857 = vmatprep.subr.msk.bf16.mxu1 %vm1609_vm2, %v2957_v2  ;;  %v2762_v35 = vpop.xlane.xlu1 %2761  ;;  %v3003_v34 = vsel %vm1609_vm2, %v2957_v2, 0 }
 0xb8d   : >> { %8598 = vrcp.f32 %v2762_v35  ;;  %7564 = vmatpush3.bf16.xpose.msra.mxu1 %v3003_v34 }
 0xb8e   : >> { %8600 = vrcp.f32 %v2766_v39 }
 0xb8f   : >> { %v2929_v46 = vpop.permute.xlu0 %2928  ;;  %v8589_v47 = vpop.eup %8588  ;;  %8602 = vrcp.f32 %v2764_v57 }
 0xb90   : >> { %v2959_v59 = vpop.permute.xlu1 %2958  ;;  %v8591_v32 = vpop.eup %8590  ;;  %v2794_v6 = vmul.f32 %v8589_v47, %v11134_v58 }
 0xb91   : >> { %7858 = vmatprep.subr.msk.bf16.mxu1 %vm1609_vm2, %v2959_v59  ;;  %v8593_v33 = vpop.eup %8592  ;;  %v3006_v61 = vsel %vm1609_vm2, %v2959_v59, 0  ;;  %v2791_v23 = vmul.f32 %v8591_v32, %v11128_v27 }
 0xb92   : >> { %v2793_v37 = vmul.f32 %v8593_v33, %v11121_v38 }
 0xb93   : >> { %v8595_v36 = vpop.eup %8594  ;;  %v2933_v3 = vpop.permute.xlu0 %2932 }
 0xb94   : >> { %v2931_v10 = vpop.permute.xlu1 %2930  ;;  %v2792_v29 = vmul.f32 %v8595_v36, %v11140_v53  ;;  %v8597_v13 = vpop.eup %8596  ;;  %v2804_v52 = vpack.c.bf16 %v2794_v6, %v2793_v37 }
 0xb95   : >> { %7566 = vmatpush3.bf16.xpose.msra.mxu1 %v3006_v61  ;;  %v2795_v58 = vmul.f32 %v8597_v13, %v11132_v21 }
 0xb96   : >> { %v2803_v44 = vpack.c.bf16 %v2792_v29, %v2791_v23 }
 0xb97   : >> { %v8599_v43 = vpop.eup %8598  ;;  %v2937_v14 = vpop.permute.xlu0 %2936 }
 0xb98   : >> { %v8601_v20 = vpop.eup %8600  ;;  %7543 = vmatprep.mubr.bf16.mxu1 %v2803_v44  ;;  %v2935_v24 = vpop.permute.xlu1 %2934  ;;  %v2796_v45 = vmul.f32 %v8599_v43, %v11144_v17 }
 0xb99   : >> { %7544 = vmatmul.mubr.bf16.gmra.mrb[56].mxu1 %v2804_v52  ;;  %v8603_v26 = vpop.eup %8602  ;;  %v2798_v53 = vmul.f32 %v8601_v20, %v11138_v49 }
 0xb9a   : >> { %v2805_v27 = vpack.c.bf16 %v2796_v45, %v2795_v58  ;;  %v2797_v38 = vmul.f32 %v8603_v26, %v11126_v4  ;;  %v13271_v4 = vmov 0  }
 0xb9b   : >> { %v2941_v28 = vpop.permute.xlu0 %2940 }
 0xb9c   : >> { %7547 = vmatprep.mubr.bf16.mxu1 %v2805_v27  ;;  %v2939_v57 = vpop.permute.xlu1 %2938  ;;  %v2806_v30 = vpack.c.bf16 %v2798_v53, %v2797_v38 }
 0xb9f   : >> { %v3258_v25 = vpop.permute.xlu0 %3257 }
 0xba0   : >> { %7583 = vmatprep.subr.bf16.mxu0 %v3258_v25  ;;  %v2943_v0 = vpop.permute.xlu1 %2942 }
 0xba1   : >> { %7548 = vmatmul.mubr.bf16.gmra.mrb[60].mxu1 %v2806_v30  ;;  %7584 = vmatpush3.bf16.msra.mxu0 %v3258_v25  ;;  %v13273_v25 = vld [vmem:[#allocation50_spill] sm:$0xff]  ;;  %v13274_v30 = vld [vmem:[#allocation84_spill] sm:$0xff] }
 0xba2   : >> { %7567 = vmatprep.mubr.msk.bf16.mxu1 %vm1609_vm2, %v2929_v46 }
 0xba3   : >> { %v3262_v21 = vpop.permute.xlu0 %3261 }
 0xba4   : >> { %v3260_v17 = vpop.permute.xlu1 %3259 }
 0xba5   : >> { %7585 = vmatprep.subr.bf16.mxu0 %v3260_v17 }
 0xba6   : >> { %7586 = vmatpush3.bf16.msra.mxu0 %v3260_v17 }
 0xba7   : >> { %7587 = vmatprep.subr.bf16.mxu0 %v3262_v21  ;;  %v3264_v49 = vpop.permute.xlu0 %3263 }
 0xba9   : >> { %7568 = vmatmul.mubr.msk.bf16.vlgmr.msra.gmra.mrb[64].mxu1 %vm1609_vm2, %v2931_v10 }
 0xbaa   : >> { %7571 = vmatprep.mubr.msk.bf16.mxu1 %vm1609_vm2, %v2933_v3  ;;  %7588 = vmatpush3.bf16.msra.mxu0 %v3262_v21 }
 0xbab   : >> { %7589 = vmatprep.subr.bf16.mxu0 %v3264_v49 }
 0xbae   : >> { %7590 = vmatpush3.bf16.msra.mxu0 %v3264_v49 }
 0xbb1   : >> { %7572 = vmatmul.mubr.msk.bf16.gmra.mrb[68].mxu1 %vm1609_vm2, %v2935_v24 }
 0xbb2   : >> { %7575 = vmatprep.mubr.msk.bf16.mxu1 %vm1609_vm2, %v2937_v14 }
 0xbb9   : >> { %7576 = vmatmul.mubr.msk.bf16.gmra.mrb[72].mxu1 %vm1609_vm2, %v2939_v57 }
 0xbba   : >> { %7579 = vmatprep.mubr.msk.bf16.mxu1 %vm1609_vm2, %v2941_v28 }
 0xbc1   : >> { %7580 = vmatmul.mubr.msk.bf16.gmra.mrb[76].mxu1 %vm1609_vm2, %v2943_v0 }
 0xbc2   : >> { %4299 = vmatprep.mubr.bf16.mxu1 %v13271_v4 }
 0xc26   : >> { %v11220_v7 = vpop.f32.mrb[48].mxu1 }
 0xc27   : >> { %v11222_v15 = vpop.f32.mrb[49].mxu1 }
 0xc28   : >> { %v11224_v48 = vpop.f32.mrb[50].mxu1 }
 0xc29   : >> { %v8155_v54 = vpack.i.bf16 %v11224_v48, %v11220_v7  ;;  %v11228_v56 = vpop.f32.mrb[51].mxu1 }
 0xc2a   : >> { %v8150_v60 = vpack.i.bf16 %v11228_v56, %v11222_v15 }
 0xc5e   : >> { %v11232_v8 = vpop.f32.mrb[52].mxu1 }
 0xc5f   : >> { %v11234_v39 = vpop.f32.mrb[53].mxu1 }
 0xc60   : >> { %v11236_v16 = vpop.f32.mrb[54].mxu1 }
 0xc61   : >> { %v8185_v50 = vpack.i.bf16 %v11236_v16, %v11232_v8  ;;  %v11240_v40 = vpop.f32.mrb[55].mxu1 }
 0xc62   : >> { %v8180_v5 = vpack.i.bf16 %v11240_v40, %v11234_v39 }
 0xc6c   : >> { %v11244_v2 = vpop.f32.mrb[56].mxu1 }
 0xc6d   : >> { %v11246_v35 = vpop.f32.mrb[57].mxu1 }
 0xc6e   : >> { %v11248_v34 = vpop.f32.mrb[58].mxu1 }
 0xc6f   : >> { %v8215_v46 = vpack.i.bf16 %v11248_v34, %v11244_v2  ;;  %v11252_v47 = vpop.f32.mrb[59].mxu1  ;;  %v13297_v2 = vld [vmem:[#allocation54_spill] sm:$0xff] }
 0xc70   : >> { %v8210_v59 = vpack.i.bf16 %v11252_v47, %v11246_v35  ;;  %v13299_v35 = vld [vmem:[#allocation83_spill] sm:$0xff]  ;;  %v13300_v47 = vld [vmem:[#allocation81_spill] sm:$0xff] }
 0xc74   : >> { %v11256_v32 = vpop.f32.mrb[60].mxu1 }
 0xc75   : >> { %v11258_v33 = vpop.f32.mrb[61].mxu1 }
 0xc76   : >> { %v11260_v36 = vpop.f32.mrb[62].mxu1 }
 0xc77   : >> { %v8245_v3 = vpack.i.bf16 %v11260_v36, %v11256_v32  ;;  %v11264_v6 = vpop.f32.mrb[63].mxu1 }
 0xc78   : >> { %v8240_v10 = vpack.i.bf16 %v11264_v6, %v11258_v33  ;;  %v13303_v6 = vld [vmem:[#allocation66_spill] sm:$0xff] }
 0xc7c   : >> { %v7569_v61 = vpop.f32.mrb[64].mxu1 }
 0xc7d   : >> { %v3051_v23 = vadd.f32 %v10930_v62, %v7569_v61  ;;  %v3042_v29 = vpop.f32.mrb[65].mxu1 }
 0xc7e   : >> { %v7570_v13 = vpop.f32.mrb[66].mxu1  ;;  %v3043_v43 = vadd.f32 %v10947_v31, %v3042_v29 }
 0xc7f   : >> { %3109 = vmax.xlane.f32.xlu0 %v3051_v23  ;;  %v3045_v37 = vpop.f32.mrb[67].mxu1  ;;  %v3054_v52 = vadd.f32 %v10957_v12, %v7570_v13 }
 0xc80   : >> { %v3046_v44 = vadd.f32 %v10939_v42, %v3045_v37 }
 0xc82   : >> { %3107 = vmax.xlane.f32.xlu1 %v3046_v44 }
 0xc83   : >> { %3105 = vmax.xlane.f32.xlu0 %v3043_v43 }
 0xc84   : >> { %v7573_v14 = vpop.f32.mrb[68].mxu1 }
 0xc85   : >> { %v3058_v20 = vpop.f32.mrb[69].mxu1  ;;  %v3067_v62 = vadd.f32 %v10974_v18, %v7573_v14 }
 0xc86   : >> { %v7574_v24 = vpop.f32.mrb[70].mxu1  ;;  %v3059_v31 = vadd.f32 %v10992_v9, %v3058_v20 }
 0xc87   : >> { %v3070_v58 = vadd.f32 %v10965_v11, %v7574_v24  ;;  %3111 = vmax.xlane.f32.xlu0 %v3054_v52  ;;  %v3061_v45 = vpop.f32.mrb[71].mxu1 }
 0xc88   : >> { %v11275_v26 = vadd.f32 %v10983_v1, %v3061_v45 }
 0xc89   : >> { %3119 = vmax.xlane.f32.xlu1 %v3070_v58 }
 0xc8b   : >> { %3117 = vmax.xlane.f32.xlu0 %v3067_v62 }
 0xc8c   : >> { %v7577_v42 = vpop.f32.mrb[72].mxu1 }
 0xc8d   : >> { %3115 = vmax.xlane.f32.xlu1 %v11275_v26  ;;  %v3074_v27 = vpop.f32.mrb[73].mxu1  ;;  %v11283_v53 = vadd.f32 %v11010_v55, %v7577_v42 }
 0xc8e   : >> { %v7578_v12 = vpop.f32.mrb[74].mxu1  ;;  %v11291_v18 = vadd.f32 %v11028_v22, %v3074_v27  ;;  %v13272_v22 = vld [vmem:[#allocation49_spill] sm:$0xff] }
 0xc8f   : >> { %v11280_v28 = vadd.f32 %v11001_v63, %v7578_v12  ;;  %3113 = vmax.xlane.f32.xlu0 %v3059_v31  ;;  %v3077_v11 = vpop.f32.mrb[75].mxu1 }
 0xc90   : >> { %v11287_v1 = vadd.f32 %v11019_v41, %v3077_v11 }
 0xc91   : >> { %3127 = vmax.xlane.f32.xlu1 %v11280_v28 }
 0xc93   : >> { %3125 = vmax.xlane.f32.xlu0 %v11283_v53 }
 0xc94   : >> { %v7581_v9 = vpop.f32.mrb[76].mxu1 }
 0xc95   : >> { %3123 = vmax.xlane.f32.xlu1 %v11287_v1  ;;  %v3090_v63 = vpop.f32.mrb[77].mxu1  ;;  %v11296_v55 = vadd.f32 %v11038_v19, %v7581_v9  ;;  %v13275_v19 = vld [vmem:[#allocation85_spill] sm:$0xff] }
 0xc96   : >> { %v7582_v57 = vpop.f32.mrb[78].mxu1  ;;  %v11300_v41 = vadd.f32 %v11047_v51, %v3090_v63 }
 0xc97   : >> { %3121 = vmax.xlane.f32.xlu0 %v11291_v18  ;;  %v3093_v38 = vpop.f32.mrb[79].mxu1  ;;  %v11308_v0 = vadd.f32 %v13274_v30, %v7582_v57 }
 0xc98   : >> { %v11312_v21 = vadd.f32 %v13275_v19, %v3093_v38 }
 0xc9b   : >> { %3133 = vmax.xlane.f32.xlu0 %v11296_v55 }
 0xc9f   : >> { %3129 = vmax.xlane.f32.xlu0 %v11300_v41 }
 0xca6   : >> { %3267 = vrot.lane.b32.xlu1 %v13272_v22, %s9399_s20 }
 0xcb5   : >> { %3265 = vrot.lane.b32.xlu0 %v13273_v25, %s9399_s20 }
 0xcca   : >> { %3135 = vmax.xlane.f32.xlu1 %v11308_v0 }
 0xcce   : >> { %3131 = vmax.xlane.f32.xlu1 %v11312_v21 }
 0xd0c   : >> { %v3110_v51 = vpop.xlane.xlu0 %3109 }
 0xd0d   : >> { %v3139_v17 = vsub.f32 %v3051_v23, %v3110_v51 }
 0xd0f   : >> { %v3157_v49 = vmul.f32 1.442695, %v3139_v17  ;;  %v3108_v29 = vpop.xlane.xlu1 %3107 }
 0xd10   : >> { %v3106_v61 = vpop.xlane.xlu0 %3105  ;;  %v3138_v14 = vsub.f32 %v3046_v44, %v3108_v29 }
 0xd11   : >> { %8604 = vpow2.f32 %v3157_v49  ;;  %v3137_v13 = vsub.f32 %v3043_v43, %v3106_v61 }
 0xd12   : >> { %v3155_v27 = vmul.f32 1.442695, %v3138_v14 }
 0xd13   : >> { %v3153_v37 = vmul.f32 1.442695, %v3137_v13 }
 0xd14   : >> { %v3112_v20 = vpop.xlane.xlu0 %3111 }
 0xd15   : >> { %8606 = vpow2.f32 %v3153_v37  ;;  %v3140_v24 = vsub.f32 %v3054_v52, %v3112_v20 }
 0xd16   : >> { %v3120_v45 = vpop.xlane.xlu1 %3119 }
 0xd17   : >> { %v3159_v42 = vmul.f32 1.442695, %v3140_v24  ;;  %v3144_v12 = vsub.f32 %v3070_v58, %v3120_v45  ;;  %v13276_v24 = vld [vmem:[#allocation52_spill] sm:$0xff]  ;;  %v13277_v45 = vld [vmem:[#allocation53_spill] sm:$0xff] }
 0xd18   : >> { %v3118_v11 = vpop.xlane.xlu0 %3117 }
 0xd19   : >> { %8608 = vpow2.f32 %v3159_v42  ;;  %v3143_v9 = vsub.f32 %v3067_v62, %v3118_v11  ;;  %v3167_v38 = vmul.f32 1.442695, %v3144_v12 }
 0xd1a   : >> { %v3116_v63 = vpop.xlane.xlu1 %3115  ;;  %8610 = vpow2.f32 %v3155_v27 }
 0xd1b   : >> { %v11315_v57 = vpop.eup %8604  ;;  %v3165_v23 = vmul.f32 1.442695, %v3143_v9  ;;  %v3142_v44 = vsub.f32 %v11275_v26, %v3116_v63 }
 0xd1c   : >> { %v3114_v22 = vpop.xlane.xlu0 %3113  ;;  %3189 = vadd.xlane.f32.xlu1 %v11315_v57 }
 0xd1d   : >> { %8612 = vpow2.f32 %v3165_v23  ;;  %v3141_v43 = vsub.f32 %v3059_v31, %v3114_v22  ;;  %v3163_v62 = vmul.f32 1.442695, %v3142_v44 }
 0xd1e   : >> { %8614 = vpow2.f32 %v3167_v38  ;;  %v3128_v17 = vpop.xlane.xlu1 %3127 }
 0xd1f   : >> { %v11319_v52 = vpop.eup %8606  ;;  %v3161_v25 = vmul.f32 1.442695, %v3141_v43  ;;  %v3148_v27 = vsub.f32 %v11280_v28, %v3128_v17 }
 0xd20   : >> { %v3126_v58 = vpop.xlane.xlu0 %3125  ;;  %3185 = vadd.xlane.f32.xlu1 %v11319_v52 }
 0xd21   : >> { %8616 = vpow2.f32 %v3161_v25  ;;  %v3175_v9 = vmul.f32 1.442695, %v3148_v27  ;;  %v3147_v63 = vsub.f32 %v11283_v53, %v3126_v58 }
 0xd22   : >> { %8618 = vpow2.f32 %v3163_v62  ;;  %v3124_v29 = vpop.xlane.xlu1 %3123 }
 0xd23   : >> { %v11322_v30 = vpop.eup %8608  ;;  %v3146_v12 = vsub.f32 %v11287_v1, %v3124_v29  ;;  %v3173_v22 = vmul.f32 1.442695, %v3147_v63 }
 0xd24   : >> { %v3122_v19 = vpop.xlane.xlu0 %3121  ;;  %3191 = vadd.xlane.f32.xlu1 %v11322_v30  ;;  %v11325_v51 = vpop.eup %8610 }
 0xd25   : >> { %v3145_v42 = vsub.f32 %v11291_v18, %v3122_v19  ;;  %v3171_v23 = vmul.f32 1.442695, %v3146_v12 }
 0xd26   : >> { %v3268_v20 = vpop.permute.xlu1 %3267 }
 0xd27   : >> { %v11327_v26 = vpop.eup %8612  ;;  %v3169_v11 = vmul.f32 1.442695, %v3145_v42 }
 0xd28   : >> { %v3134_v31 = vpop.xlane.xlu0 %3133  ;;  %3197 = vadd.xlane.f32.xlu0 %v11327_v26  ;;  %3187 = vadd.xlane.f32.xlu1 %v11325_v51  ;;  %v11331_v49 = vpop.eup %8614 }
 0xd29   : >> { %8620 = vpow2.f32 %v3169_v11  ;;  %v3151_v28 = vsub.f32 %v11296_v55, %v3134_v31 }
 0xd2a   : >> { %8622 = vpow2.f32 %v3175_v9 }
 0xd2b   : >> { %v11333_v61 = vpop.eup %8616  ;;  %8624 = vpow2.f32 %v3171_v23  ;;  %v3181_v58 = vmul.f32 1.442695, %v3151_v28 }
 0xd2c   : >> { %v3130_v13 = vpop.xlane.xlu0 %3129  ;;  %3193 = vadd.xlane.f32.xlu1 %v11333_v61  ;;  %3199 = vadd.xlane.f32.xlu0 %v11331_v49  ;;  %v11337_v37 = vpop.eup %8618  ;;  %8626 = vpow2.f32 %v3173_v22 }
 0xd2d   : >> { %v3149_v44 = vsub.f32 %v11300_v41, %v3130_v13  ;;  %v13278_v13 = vld [vmem:[#allocation57_spill] sm:$0xff] }
 0xd2f   : >> { %v3177_v1 = vmul.f32 1.442695, %v3149_v44 }
 0xd30   : >> { %v3266_v14 = vpop.permute.xlu0 %3265  ;;  %3195 = vadd.xlane.f32.xlu0 %v11337_v37 }
 0xd31   : >> { %7591 = vmatprep.subr.bf16.mxu0 %v3266_v14 }
 0xd32   : >> { %7592 = vmatpush3.bf16.msra.mxu0 %v3266_v14  ;;  %v13279_v14 = vld [vmem:[#allocation56_spill] sm:$0xff] }
 0xd33   : >> { %7593 = vmatprep.subr.bf16.mxu0 %v3268_v20  ;;  %v11352_v19 = vpop.eup %8620 }
 0xd34   : >> { %v11355_v17 = vpop.eup %8622 }
 0xd35   : >> { %v11357_v41 = vpop.eup %8624 }
 0xd36   : >> { %7594 = vmatpush3.bf16.msra.mxu0 %v3268_v20  ;;  %v11361_v55 = vpop.eup %8626  ;;  %v13280_v20 = vpack.i.bf16 %v13278_v13, %v13279_v14 }
 0xd3d   : >> { %3271 = vrot.lane.b32.xlu1 %v13276_v24, %s9399_s20  ;;  %v13281_v24 = vld [vmem:[#allocation60_spill] sm:$0xff] }
 0xd46   : >> { %3269 = vrot.lane.b32.xlu0 %v13277_v45, %s9399_s20  ;;  %v13282_v45 = vld [vmem:[#allocation58_spill] sm:$0xff] }
 0xd47   : >> { %v13283_v42 = vpack.i.bf16 %v13281_v24, %v13282_v45 }
 0xd57   : >> { %v3136_v38 = vpop.xlane.xlu1 %3135 }
 0xd58   : >> { %v3152_v25 = vsub.f32 %v11308_v0, %v3136_v38 }
 0xd5a   : >> { %v3183_v53 = vmul.f32 1.442695, %v3152_v25 }
 0xd5b   : >> { %v3132_v43 = vpop.xlane.xlu1 %3131 }
 0xd5c   : >> { %v3150_v18 = vsub.f32 %v11312_v21, %v3132_v43 }
 0xd5e   : >> { %v3179_v62 = vmul.f32 1.442695, %v3150_v18 }
 0xd60   : >> { %8628 = vpow2.f32 %v3179_v62 }
 0xd61   : >> { %3201 = vadd.xlane.f32.xlu1 %v11352_v19  ;;  %8630 = vpow2.f32 %v3177_v1 }
 0xd62   : >> { %8632 = vpow2.f32 %v3183_v53 }
 0xd63   : >> { %8634 = vpow2.f32 %v3181_v58 }
 0xd65   : >> { %3207 = vadd.xlane.f32.xlu1 %v11355_v17  ;;  %3203 = vadd.xlane.f32.xlu0 %v11357_v41 }
 0xd69   : >> { %3205 = vadd.xlane.f32.xlu0 %v11361_v55 }
 0xd6a   : >> { %v11364_v0 = vpop.eup %8628 }
 0xd6b   : >> { %3211 = vadd.xlane.f32.xlu1 %v11364_v0  ;;  %v11367_v21 = vpop.eup %8630 }
 0xd6c   : >> { %v11370_v31 = vpop.eup %8632 }
 0xd6d   : >> { %3209 = vadd.xlane.f32.xlu0 %v11367_v21  ;;  %v11373_v29 = vpop.eup %8634 }
 0xd6f   : >> { %3215 = vadd.xlane.f32.xlu1 %v11370_v31 }
 0xd71   : >> { %3213 = vadd.xlane.f32.xlu0 %v11373_v29 }
 0xd80   : >> { %8146 = vrot.lane.b32.xlu1 %v13280_v20, %s9399_s20 }
 0xd84   : >> { %8151 = vrot.lane.b32.xlu1 %v8150_v60, %s9398_s14 }
 0xd87   : >> { %8141 = vrot.lane.b32.xlu0 %v13283_v42, %s9399_s20 }
 0xd88   : >> { %8156 = vrot.lane.b32.xlu1 %v8155_v54, %s9398_s14 }
 0xda9   : >> { %v3190_v27 = vpop.xlane.xlu1 %3189 }
 0xdad   : >> { %v3186_v12 = vpop.xlane.xlu1 %3185 }
 0xdae   : >> { %8636 = vrcp.f32 %v3186_v12 }
 0xdb1   : >> { %v3192_v11 = vpop.xlane.xlu1 %3191 }
 0xdb2   : >> { %8638 = vrcp.f32 %v3192_v11 }
 0xdb5   : >> { %v3198_v9 = vpop.xlane.xlu0 %3197  ;;  %v3188_v63 = vpop.xlane.xlu1 %3187 }
 0xdb6   : >> { %8640 = vrcp.f32 %v3188_v63 }
 0xdb7   : >> { %8642 = vrcp.f32 %v3190_v27 }
 0xdb8   : >> { %v8637_v23 = vpop.eup %8636 }
 0xdb9   : >> { %v3200_v15 = vpop.xlane.xlu0 %3199  ;;  %v3194_v56 = vpop.xlane.xlu1 %3193  ;;  %v3233_v48 = vmul.f32 %v8637_v23, %v11319_v52 }
 0xdba   : >> { %8644 = vrcp.f32 %v3194_v56 }
 0xdbc   : >> { %v8639_v38 = vpop.eup %8638 }
 0xdbd   : >> { %v3196_v60 = vpop.xlane.xlu0 %3195  ;;  %v3272_v43 = vpop.permute.xlu1 %3271  ;;  %v3236_v25 = vmul.f32 %v8639_v38, %v11322_v30 }
 0xdbe   : >> { %8646 = vrcp.f32 %v3196_v60 }
 0xdbf   : >> { %8648 = vrcp.f32 %v3200_v15 }
 0xdc0   : >> { %v8641_v22 = vpop.eup %8640  ;;  %8650 = vrcp.f32 %v3198_v9 }
 0xdc1   : >> { %v3270_v7 = vpop.permute.xlu0 %3269  ;;  %v3234_v54 = vmul.f32 %v8641_v22, %v11325_v51  ;;  %v8643_v44 = vpop.eup %8642 }
 0xdc2   : >> { %7595 = vmatprep.subr.bf16.mxu0 %v3270_v7  ;;  %v3235_v1 = vmul.f32 %v8643_v44, %v11315_v57 }
 0xdc3   : >> { %7596 = vmatpush3.bf16.msra.mxu0 %v3270_v7  ;;  %v3249_v18 = vpack.c.bf16 %v3234_v54, %v3233_v48 }
 0xdc4   : >> { %7597 = vmatprep.subr.bf16.mxu0 %v3272_v43  ;;  %v8645_v28 = vpop.eup %8644  ;;  %v3250_v53 = vpack.c.bf16 %v3236_v25, %v3235_v1  ;;  %v8296_v1 = vld [vmem:[%s3630_s28 + $0x20] sm:$0xff]  }
 0xdc5   : >> { %7599 = vmatprep.mubr.bf16.mxu0 %v3249_v18  ;;  %v3237_v13 = vmul.f32 %v8645_v28, %v11333_v61  ;;  %v8293_v28 = vld [vmem:[%s3630_s28 + $0x8] sm:$0xff]  }
 0xdc7   : >> { %7598 = vmatpush3.bf16.msra.mxu0 %v3272_v43 }
 0xdc8   : >> { %v8647_v62 = vpop.eup %8646 }
 0xdc9   : >> { %v8649_v58 = vpop.eup %8648  ;;  %v3238_v52 = vmul.f32 %v8647_v62, %v11337_v37  ;;  %v8299_v62 = vld [vmem:[%s3630_s28 + $0x38] sm:$0xff]  }
 0xdca   : >> { %7600 = vmatmul.mubr.bf16.vlgmr.msra.gmra.mrb[80].mxu0 %v3250_v53  ;;  %v8651_v51 = vpop.eup %8650  ;;  %v3240_v20 = vmul.f32 %v8649_v58, %v11331_v49 }
 0xdcb   : >> { %v3251_v14 = vpack.c.bf16 %v3238_v52, %v3237_v13  ;;  %v3239_v30 = vmul.f32 %v8651_v51, %v11327_v26 }
 0xdcd   : >> { %7603 = vmatprep.mubr.bf16.mxu0 %v3251_v14  ;;  %v3252_v24 = vpack.c.bf16 %v3240_v20, %v3239_v30  ;;  %v13284_v30 = vld [vmem:[#allocation62_spill] sm:$0xff] }
 0xdd2   : >> { %7604 = vmatmul.mubr.bf16.gmra.mrb[84].mxu0 %v3252_v24  ;;  %v13285_v24 = vld [vmem:[#allocation59_spill] sm:$0xff] }
 0xdee   : >> { %v3202_v57 = vpop.xlane.xlu1 %3201 }
 0xdef   : >> { %8652 = vrcp.f32 %v3202_v57  ;;  %v13286_v57 = vpack.i.bf16 %v13284_v30, %v13285_v24 }
 0xdf2   : >> { %v3204_v45 = vpop.xlane.xlu0 %3203  ;;  %v3208_v42 = vpop.xlane.xlu1 %3207 }
 0xdf3   : >> { %8654 = vrcp.f32 %v3204_v45 }
 0xdf4   : >> { %8656 = vrcp.f32 %v3208_v42  ;;  %v13287_v42 = vld [vmem:[#allocation51_spill] sm:$0xff] }
 0xdf6   : >> { %v3206_v27 = vpop.xlane.xlu0 %3205 }
 0xdf7   : >> { %8658 = vrcp.f32 %v3206_v27  ;;  %v13288_v27 = vld [vmem:[#allocation61_spill] sm:$0xff] }
 0xdf8   : >> { %v3212_v61 = vpop.xlane.xlu1 %3211 }
 0xdf9   : >> { %8660 = vrcp.f32 %v3212_v61  ;;  %v8653_v12 = vpop.eup %8652  ;;  %v13289_v61 = vpack.i.bf16 %v13287_v42, %v13288_v27 }
 0xdfa   : >> { %v3210_v37 = vpop.xlane.xlu0 %3209  ;;  %v3241_v26 = vmul.f32 %v8653_v12, %v11352_v19 }
 0xdfb   : >> { %8662 = vrcp.f32 %v3210_v37 }
 0xdfc   : >> { %v3216_v11 = vpop.xlane.xlu1 %3215 }
 0xdfd   : >> { %v8655_v49 = vpop.eup %8654  ;;  %8664 = vrcp.f32 %v3216_v11 }
 0xdfe   : >> { %v3214_v9 = vpop.xlane.xlu0 %3213  ;;  %v3242_v63 = vmul.f32 %v8655_v49, %v11357_v41  ;;  %v8657_v15 = vpop.eup %8656 }
 0xdff   : >> { %8666 = vrcp.f32 %v3214_v9  ;;  %v3244_v38 = vmul.f32 %v8657_v15, %v11355_v17  ;;  %v8292_v17 = vld [vmem:[%s3630_s28] sm:$0xff]   ;;  %v13293_v15 = vld [vmem:[#allocation55_spill] sm:$0xff] }
 0xe00   : >> { %v3253_v56 = vpack.c.bf16 %v3242_v63, %v3241_v26  ;;  %7615 = vmatprep.subr.bf16.mxu0 %v8292_v17  ;;  %v13290_v9 = vld [vmem:[#allocation64_spill] sm:$0xff] }
 0xe01   : >> { %v8659_v60 = vpop.eup %8658  ;;  %7616 = vmatpush3.bf16.msra.mxu0 %v8292_v17  ;;  %v13291_v26 = vld [vmem:[#allocation48_spill] sm:$0xff] }
 0xe02   : >> { %7607 = vmatprep.mubr.bf16.mxu0 %v3253_v56  ;;  %v3243_v23 = vmul.f32 %v8659_v60, %v11361_v55  ;;  %7617 = vmatprep.subr.bf16.mxu0 %v8293_v28  ;;  %v13292_v63 = vpack.i.bf16 %v13290_v9, %v13291_v26  ;;  %v13294_v56 = vld [vmem:[#allocation63_spill] sm:$0xff] }
 0xe03   : >> { %v8661_v22 = vpop.eup %8660  ;;  %v13295_v60 = vpack.i.bf16 %v13293_v15, %v13294_v56 }
 0xe04   : >> { %v3254_v7 = vpack.c.bf16 %v3244_v38, %v3243_v23  ;;  %v3246_v19 = vmul.f32 %v8661_v22, %v11364_v0  ;;  %v8295_v0 = vld [vmem:[%s3630_s28 + $0x18] sm:$0xff]   ;;  %v13296_v38 = vld [vmem:[#allocation82_spill] sm:$0xff] }
 0xe05   : >> { %v8663_v48 = vpop.eup %8662  ;;  %7618 = vmatpush3.bf16.msra.mxu0 %v8293_v28  ;;  %v13298_v34 = vpack.i.bf16 %v13296_v38, %v13297_v2  ;;  %v13308_v2 = vld [vmem:[#allocation72_spill] sm:$0xff] }
 0xe06   : >> { %7608 = vmatmul.mubr.bf16.gmra.mrb[88].mxu0 %v3254_v7  ;;  %v3245_v54 = vmul.f32 %v8663_v48, %v11367_v21  ;;  %v8294_v21 = vld [vmem:[%s3630_s28 + $0x10] sm:$0xff]  }
 0xe07   : >> { %v8665_v44 = vpop.eup %8664  ;;  %7619 = vmatprep.subr.bf16.mxu0 %v8294_v21 }
 0xe08   : >> { %v3255_v41 = vpack.c.bf16 %v3246_v19, %v3245_v54  ;;  %v3248_v18 = vmul.f32 %v8665_v44, %v11370_v31  ;;  %v8298_v31 = vld [vmem:[%s3630_s28 + $0x30] sm:$0xff]   ;;  %v8147_v19 = vpop.permute.xlu1 %8146 }
 0xe09   : >> { %v8667_v43 = vpop.eup %8666  ;;  %7620 = vmatpush3.bf16.msra.mxu0 %v8294_v21  ;;  %v8148_v17 = vunpack.i.l.bf16 %v8147_v19  ;;  %v13302_v21 = vld [vmem:[#allocation68_spill] sm:$0xff] }
 0xe0a   : >> { %7611 = vmatprep.mubr.bf16.mxu0 %v3255_v41  ;;  %v3247_v25 = vmul.f32 %v8667_v43, %v11373_v29  ;;  %7621 = vmatprep.subr.bf16.mxu0 %v8295_v0  ;;  %v8297_v29 = vld [vmem:[%s3630_s28 + $0x28] sm:$0xff]   ;;  %v8142_v41 = vpop.permute.xlu0 %8141  ;;  %s6798_s28 = sshll.u32 %s9378_s22, 2 }
 0xe0c   : >> { %v3256_v55 = vpack.c.bf16 %v3248_v18, %v3247_v25  ;;  %v8152_v44 = vpop.permute.xlu1 %8151  ;;  %v8144_v25 = vunpack.i.h.bf16 %v8142_v41  ;;  %v8143_v18 = vunpack.i.l.bf16 %v8142_v41 }
 0xe0d   : >> { %7622 = vmatpush3.bf16.msra.mxu0 %v8295_v0  ;;  %v8154_v36 = vunpack.i.h.bf16 %v8152_v44 }
 0xe0e   : >> { %7612 = vmatmul.mubr.bf16.gmra.mrb[92].mxu0 %v3256_v55  ;;  %7623 = vmatprep.subr.bf16.mxu0 %v8296_v1  ;;  %v8149_v55 = vunpack.i.h.bf16 %v8147_v19  ;;  %v3571_v33 = vsel %vm1609_vm2, %v13302_v21, %v8144_v25 }
 0xe0f   : >> { %v3588_v30 = vsel %vm3586_vm3, %v3571_v33, %v8154_v36 }
 0xe10   : >> { %v8157_v43 = vpop.permute.xlu1 %8156 }
 0xe11   : >> { %7624 = vmatpush3.bf16.msra.mxu0 %v8296_v1  ;;  %v8159_v28 = vunpack.i.h.bf16 %v8157_v43  ;;  %v8158_v32 = vunpack.i.l.bf16 %v8157_v43  ;;  %v13304_v1 = vld [vmem:[#allocation67_spill] sm:$0xff] }
 0xe12   : >> { %7625 = vmatprep.subr.bf16.mxu0 %v8297_v29 }
 0xe15   : >> { %7626 = vmatpush3.bf16.msra.mxu0 %v8297_v29  ;;  %v3573_v29 = vsel %vm1609_vm2, %v13304_v1, %v8149_v55 }
 0xe16   : >> { %7627 = vmatprep.subr.bf16.mxu0 %v8298_v31 }
 0xe19   : >> { %7628 = vmatpush3.bf16.msra.mxu0 %v8298_v31  ;;  %v13305_v31 = vld [vmem:[#allocation65_spill] sm:$0xff] }
 0xe1a   : >> { %7629 = vmatprep.subr.bf16.mxu0 %v8299_v62 }
 0xe1d   : >> { %7630 = vmatpush3.bf16.msra.mxu0 %v8299_v62  ;;  %v3572_v62 = vsel %vm1609_vm2, %v13305_v31, %v8148_v17 }
 0xe9d   : >> { %v7601_v53 = vpop.f32.mrb[80].mxu0 }
 0xe9e   : >> { %v3315_v58 = vpop.f32.mrb[81].mxu0 }
 0xe9f   : >> { %v7602_v13 = vpop.f32.mrb[82].mxu0 }
 0xea0   : >> { %v8165_v52 = vpack.i.bf16 %v7602_v13, %v7601_v53  ;;  %v3318_v51 = vpop.f32.mrb[83].mxu0 }
 0xea1   : >> { %v8160_v14 = vpack.i.bf16 %v3318_v51, %v3315_v58  ;;  %v3590_v51 = vsel %vm3586_vm3, %v3573_v29, %v8159_v28 }
 0xea2   : >> { %8166 = vrot.lane.b32.xlu1 %v8165_v52, %s9397_s26  ;;  %v3589_v52 = vsel %vm3586_vm3, %v3572_v62, %v8158_v32 }
 0xea3   : >> { %8161 = vrot.lane.b32.xlu0 %v8160_v14, %s9397_s26 }
 0xea5   : >> { %v7605_v20 = vpop.f32.mrb[84].mxu0 }
 0xea6   : >> { %8176 = vrot.lane.b32.xlu1 %v13286_v57, %s9399_s20  ;;  %v3331_v45 = vpop.f32.mrb[85].mxu0 }
 0xea7   : >> { %8171 = vrot.lane.b32.xlu0 %v13289_v61, %s9399_s20  ;;  %v7606_v37 = vpop.f32.mrb[86].mxu0 }
 0xea8   : >> { %v8195_v12 = vpack.i.bf16 %v7606_v37, %v7605_v20  ;;  %v3334_v11 = vpop.f32.mrb[87].mxu0 }
 0xea9   : >> { %v8190_v49 = vpack.i.bf16 %v3334_v11, %v3331_v45 }
 0xeaa   : >> { %8186 = vrot.lane.b32.xlu1 %v8185_v50, %s9398_s14 }
 0xeab   : >> { %8181 = vrot.lane.b32.xlu0 %v8180_v5, %s9398_s14 }
 0xeae   : >> { %8196 = vrot.lane.b32.xlu1 %v8195_v12, %s9397_s26 }
 0xeaf   : >> { %8191 = vrot.lane.b32.xlu0 %v8190_v49, %s9397_s26 }
 0xeb2   : >> { %8206 = vrot.lane.b32.xlu1 %v13292_v63, %s9399_s20 }
 0xeb3   : >> { %8201 = vrot.lane.b32.xlu0 %v13295_v60, %s9399_s20 }
 0xeb6   : >> { %8216 = vrot.lane.b32.xlu1 %v8215_v46, %s9398_s14 }
 0xeb7   : >> { %8211 = vrot.lane.b32.xlu0 %v8210_v59, %s9398_s14  ;;  %v13301_v59 = vpack.i.bf16 %v13299_v35, %v13300_v47 }
 0xed9   : >> { %v7609_v8 = vpop.f32.mrb[88].mxu0 }
 0xeda   : >> { %v3347_v39 = vpop.f32.mrb[89].mxu0 }
 0xedb   : >> { %v7610_v16 = vpop.f32.mrb[90].mxu0 }
 0xedc   : >> { %v8225_v50 = vpack.i.bf16 %v7610_v16, %v7609_v8  ;;  %v3350_v40 = vpop.f32.mrb[91].mxu0 }
 0xedd   : >> { %v8220_v5 = vpack.i.bf16 %v3350_v40, %v3347_v39 }
 0xede   : >> { %8226 = vrot.lane.b32.xlu1 %v8225_v50, %s9397_s26  ;;  %v13306_v50 = vld [vmem:[#allocation71_spill] sm:$0xff] }
 0xedf   : >> { %8221 = vrot.lane.b32.xlu0 %v8220_v5, %s9397_s26  ;;  %v13307_v5 = vld [vmem:[#allocation69_spill] sm:$0xff] }
 0xee1   : >> { %v7613_v23 = vpop.f32.mrb[92].mxu0 }
 0xee2   : >> { %8236 = vrot.lane.b32.xlu1 %v13298_v34, %s9399_s20  ;;  %v3363_v46 = vpop.f32.mrb[93].mxu0 }
 0xee3   : >> { %8231 = vrot.lane.b32.xlu0 %v13301_v59, %s9399_s20  ;;  %v7614_v22 = vpop.f32.mrb[94].mxu0  ;;  %s3647_s20 = scalar_lea.vmem %s13002_s10, %s9378_s22  ;;  %s927_s22 = sadd.s32 1, %s9378_s22  }
 0xee4   : >> { %v8255_v7 = vpack.i.bf16 %v7614_v22, %v7613_v23  ;;  %v3366_v48 = vpop.f32.mrb[95].mxu0  ;;  %p12783_p8 = scmp.ge.s32.totalorder %s927_s22, 6  }
 0xee5   : >> { %v8250_v54 = vpack.i.bf16 %v3366_v48, %v3363_v46  ;;  %v13309_v46 = vld [vmem:[#allocation70_spill] sm:$0xff]  ;;  %vm9401_vm5 = vmmov (%p12783_p8), 0   ;;  %s13479_s24 = sld [smem:[#allocation94_spill]] (%p12783_p8)  ;;  %s9402_s6 = smov (%p12783_p8), [#allocation17]  }
 0xee6   : >> { %8246 = vrot.lane.b32.xlu1 %v8245_v3, %s9398_s14  ;;  %v8153_v3 = vunpack.i.l.bf16 %v8152_v44 }
 0xee7   : >> { %8241 = vrot.lane.b32.xlu0 %v8240_v10, %s9398_s14  ;;  %v3570_v10 = vsel %vm1609_vm2, %v13303_v6, %v8143_v18 }
 0xee8   : >> { %v3587_v24 = vsel %vm3586_vm3, %v3570_v10, %v8153_v3 }
 0xeea   : >> { %8256 = vrot.lane.b32.xlu1 %v8255_v7, %s9397_s26 }
 0xeeb   : >> { %8251 = vrot.lane.b32.xlu0 %v8250_v54, %s9397_s26  ;;  %s6469_s26 = sshll.u32 (%p12783_p8), %s9866_s0, 4  ;;  %s12945_s26 = int_to_ptr.vmem [resolvable:$true] %s6469_s26 }
 0xf14   : >> { %v8167_v0 = vpop.permute.xlu1 %8166 }
 0xf15   : >> { %v8169_v53 = vunpack.i.h.bf16 %v8167_v0  ;;  %v8168_v58 = vunpack.i.l.bf16 %v8167_v0  ;;  %v8162_v13 = vpop.permute.xlu0 %8161 }
 0xf16   : >> { %v8164_v14 = vunpack.i.h.bf16 %v8162_v13  ;;  %v8163_v20 = vunpack.i.l.bf16 %v8162_v13  ;;  %v13311_v13 = vld [vmem:[#allocation73_spill] sm:$0xff] }
 0xf17   : >> { %v3606_v57 = vsel %vm3603_vm4, %v3589_v52, %v8168_v58  ;;  %v3607_v45 = vsel %vm3603_vm4, %v3590_v51, %v8169_v53  ;;  %v13310_v53 = vld [vmem:[#allocation75_spill] sm:$0xff] }
 0xf18   : >> { %v3621_v42 = vpack.c.bf16 %v3607_v45, %v3606_v57  ;;  %v8177_v27 = vpop.permute.xlu1 %8176  ;;  %v3604_v61 = vsel %vm3603_vm4, %v3587_v24, %v8163_v20  ;;  %v3605_v37 = vsel %vm3603_vm4, %v3588_v30, %v8164_v14  ;;  %v13312_v14 = vld [vmem:[#allocation76_spill] sm:$0xff]  ;;  %v13313_v30 = vld [vmem:[#allocation74_spill] sm:$0xff] }
 0xf19   : >> { %v8172_v12 = vpop.permute.xlu0 %8171  ;;  %v3620_v11 = vpack.c.bf16 %v3605_v37, %v3604_v61  ;;  %v8179_v49 = vunpack.i.h.bf16 %v8177_v27  ;;  %v8178_v9 = vunpack.i.l.bf16 %v8177_v27 }
 0xf1a   : >> { %v8174_v63 = vunpack.i.h.bf16 %v8172_v12  ;;  %v8173_v15 = vunpack.i.l.bf16 %v8172_v12 }
 0xf1b   : >> { %7631 = vmatprep.mubr.bf16.mxu0 %v3620_v11  ;;  %v3577_v40 = vsel %vm1609_vm2, %v13306_v50, %v8179_v49  ;;  %v3576_v23 = vsel %vm1609_vm2, %v13307_v5, %v8178_v9 }
 0xf1c   : >> { %v8187_v26 = vpop.permute.xlu1 %8186  ;;  %7632 = vmatmul.mubr.bf16.vlgmr.msra.gmra.mrb[96].mxu0 %v3621_v42  ;;  %v3575_v34 = vsel %vm1609_vm2, %v13308_v2, %v8174_v63  ;;  %v3574_v35 = vsel %vm1609_vm2, %v13309_v46, %v8173_v15 }
 0xf1d   : >> { %v8182_v56 = vpop.permute.xlu0 %8181  ;;  %v8189_v60 = vunpack.i.h.bf16 %v8187_v26  ;;  %v8188_v8 = vunpack.i.l.bf16 %v8187_v26 }
 0xf1e   : >> { %v8184_v39 = vunpack.i.h.bf16 %v8182_v56  ;;  %v8183_v16 = vunpack.i.l.bf16 %v8182_v56 }
 0xf1f   : >> { %v3593_v7 = vsel %vm3586_vm3, %v3576_v23, %v8188_v8  ;;  %v3594_v48 = vsel %vm3586_vm3, %v3577_v40, %v8189_v60 }
 0xf20   : >> { %v8197_v38 = vpop.permute.xlu1 %8196  ;;  %v3591_v44 = vsel %vm3586_vm3, %v3574_v35, %v8183_v16  ;;  %v3592_v41 = vsel %vm3586_vm3, %v3575_v34, %v8184_v39 }
 0xf21   : >> { %v8199_v47 = vunpack.i.h.bf16 %v8197_v38  ;;  %v8198_v59 = vunpack.i.l.bf16 %v8197_v38  ;;  %v8192_v22 = vpop.permute.xlu0 %8191 }
 0xf22   : >> { %v8194_v54 = vunpack.i.h.bf16 %v8192_v22  ;;  %v8193_v19 = vunpack.i.l.bf16 %v8192_v22  ;;  %v13315_v22 = vld [vmem:[#allocation77_spill] sm:$0xff] }
 0xf23   : >> { %v3610_v43 = vsel %vm3603_vm4, %v3593_v7, %v8198_v59  ;;  %v3611_v25 = vsel %vm3603_vm4, %v3594_v48, %v8199_v47  ;;  %v13314_v47 = vld [vmem:[#allocation79_spill] sm:$0xff] }
 0xf24   : >> { %v3608_v18 = vsel %vm3603_vm4, %v3591_v44, %v8193_v19  ;;  %v3609_v55 = vsel %vm3603_vm4, %v3592_v41, %v8194_v54  ;;  %v3623_v17 = vpack.c.bf16 %v3611_v25, %v3610_v43  ;;  %v8207_v32 = vpop.permute.xlu1 %8206  ;;  %v13316_v54 = vld [vmem:[#allocation80_spill] sm:$0xff]  ;;  %v13317_v44 = vld [vmem:[#allocation78_spill] sm:$0xff] }
 0xf25   : >> { %v3622_v28 = vpack.c.bf16 %v3609_v55, %v3608_v18  ;;  %v8202_v36 = vpop.permute.xlu0 %8201  ;;  %v8209_v21 = vunpack.i.h.bf16 %v8207_v32  ;;  %v8208_v33 = vunpack.i.l.bf16 %v8207_v32 }
 0xf26   : >> { %v8204_v10 = vunpack.i.h.bf16 %v8202_v36  ;;  %v8203_v0 = vunpack.i.l.bf16 %v8202_v36 }
 0xf27   : >> { %7635 = vmatprep.mubr.bf16.mxu0 %v3622_v28  ;;  %v3581_v58 = vsel %vm1609_vm2, %v13310_v53, %v8209_v21  ;;  %v3580_v52 = vsel %vm1609_vm2, %v13311_v13, %v8208_v33 }
 0xf28   : >> { %7636 = vmatmul.mubr.bf16.gmra.mrb[100].mxu0 %v3623_v17  ;;  %v8217_v3 = vpop.permute.xlu1 %8216  ;;  %v3579_v20 = vsel %vm1609_vm2, %v13312_v14, %v8204_v10  ;;  %v3578_v24 = vsel %vm1609_vm2, %v13313_v30, %v8203_v0  ;;  %v13320_v30 = vld [vmem:[#allocation45_spill] sm:$0xff] }
 0xf29   : >> { %v8212_v6 = vpop.permute.xlu0 %8211  ;;  %v8219_v1 = vunpack.i.h.bf16 %v8217_v3  ;;  %v8218_v29 = vunpack.i.l.bf16 %v8217_v3 }
 0xf2a   : >> { %v8214_v31 = vunpack.i.h.bf16 %v8212_v6  ;;  %v8213_v62 = vunpack.i.l.bf16 %v8212_v6 }
 0xf2b   : >> { %v3597_v27 = vsel %vm3586_vm3, %v3580_v52, %v8218_v29  ;;  %v3598_v61 = vsel %vm3586_vm3, %v3581_v58, %v8219_v1  ;;  %v6785_v29 = vld [vmem:[%s3647_s20] ss:$0 sm:$0xff]  ;;  %s13365_s20 = sld [smem:[#allocation92_spill]] }
 0xf2c   : >> { %v3595_v11 = vsel %vm3586_vm3, %v3578_v24, %v8213_v62  ;;  %v3596_v49 = vsel %vm3586_vm3, %v3579_v20, %v8214_v31 }
 0xf31   : >> { %s4084_s29 = scalar_lea.vmem %s13365_s20, %s6798_s28  ;;  %s6939_s28 = sshll.u32 (%p12783_p8), %s9526_s1, 8 }
 0xf32   : > { %s9160_s1 = scalar_lea.vmem (%p12783_p8), %s12945_s26, 256 }
 0xf33   : > { %p9161_p11 = scmp.ne.s32.totalorder (%p12783_p8), %s12945_s26, %s9160_s1 }
 0xf50   : >> { %v8227_v51 = vpop.permute.xlu1 %8226 }
 0xf51   : >> { %v8229_v57 = vunpack.i.h.bf16 %v8227_v51  ;;  %v8228_v45 = vunpack.i.l.bf16 %v8227_v51  ;;  %v8222_v42 = vpop.permute.xlu0 %8221  ;;  %v13318_v51 = vld [vmem:[#allocation46_spill] sm:$0xff] }
 0xf52   : >> { %v8224_v37 = vunpack.i.h.bf16 %v8222_v42  ;;  %v8223_v12 = vunpack.i.l.bf16 %v8222_v42 }
 0xf53   : >> { %v3614_v9 = vsel %vm3603_vm4, %v3597_v27, %v8228_v45  ;;  %v3615_v26 = vsel %vm3603_vm4, %v3598_v61, %v8229_v57  ;;  %v13322_v57 = vld [vmem:[#allocation44_spill] sm:$0xff]  ;;  %v13324_v27 = vld [vmem:[#allocation43_spill] sm:$0xff] }
 0xf54   : >> { %v8237_v63 = vpop.permute.xlu1 %8236  ;;  %v3612_v15 = vsel %vm3603_vm4, %v3595_v11, %v8223_v12  ;;  %v3613_v56 = vsel %vm3603_vm4, %v3596_v49, %v8224_v37  ;;  %v3625_v60 = vpack.c.bf16 %v3615_v26, %v3614_v9 }
 0xf55   : >> { %v8232_v8 = vpop.permute.xlu0 %8231  ;;  %v3624_v39 = vpack.c.bf16 %v3613_v56, %v3612_v15  ;;  %v8239_v16 = vunpack.i.h.bf16 %v8237_v63  ;;  %v8238_v50 = vunpack.i.l.bf16 %v8237_v63  ;;  %v13326_v63 = vld [vmem:[#allocation42_spill] sm:$0xff] }
 0xf56   : >> { %v8234_v5 = vunpack.i.h.bf16 %v8232_v8  ;;  %v8233_v23 = vunpack.i.l.bf16 %v8232_v8  ;;  %v13328_v8 = vld [vmem:[#allocation41_spill] sm:$0xff] }
 0xf57   : >> { %7639 = vmatprep.mubr.bf16.mxu0 %v3624_v39  ;;  %v3585_v59 = vsel %vm1609_vm2, %v13314_v47, %v8239_v16  ;;  %v3584_v7 = vsel %vm1609_vm2, %v13315_v22, %v8238_v50  ;;  %v13330_v16 = vld [vmem:[#allocation40_spill] sm:$0xff]  ;;  %v13334_v47 = vld [vmem:[#allocation38_spill] sm:$0xff] }
 0xf58   : >> { %v8247_v40 = vpop.permute.xlu1 %8246  ;;  %7640 = vmatmul.mubr.bf16.gmra.mrb[104].mxu0 %v3625_v60  ;;  %v3583_v19 = vsel %vm1609_vm2, %v13316_v54, %v8234_v5  ;;  %v3582_v41 = vsel %vm1609_vm2, %v13317_v44, %v8233_v23 }
 0xf59   : >> { %v8242_v38 = vpop.permute.xlu0 %8241  ;;  %v8249_v2 = vunpack.i.h.bf16 %v8247_v40  ;;  %v8248_v34 = vunpack.i.l.bf16 %v8247_v40  ;;  %v13332_v40 = vld [vmem:[#allocation39_spill] sm:$0xff] }
 0xf5a   : >> { %v8244_v46 = vunpack.i.h.bf16 %v8242_v38  ;;  %v8243_v35 = vunpack.i.l.bf16 %v8242_v38 }
 0xf5b   : >> { %v3601_v55 = vsel %vm3586_vm3, %v3584_v7, %v8248_v34  ;;  %v3602_v17 = vsel %vm3586_vm3, %v3585_v59, %v8249_v2 }
 0xf5c   : >> { %v8257_v48 = vpop.permute.xlu1 %8256  ;;  %v3599_v36 = vsel %vm3586_vm3, %v3582_v41, %v8243_v35  ;;  %v3600_v3 = vsel %vm3586_vm3, %v3583_v19, %v8244_v46  ;;  %v13338_v19 = vld [vmem:[#allocation36_spill] sm:$0xff]  ;;  %v13340_v41 = vld [vmem:[#allocation35_spill] sm:$0xff] }
 0xf5d   : >> { %v8259_v43 = vunpack.i.h.bf16 %v8257_v48  ;;  %v8258_v25 = vunpack.i.l.bf16 %v8257_v48  ;;  %v8252_v18 = vpop.permute.xlu0 %8251  ;;  %v13336_v48 = vld [vmem:[#allocation37_spill] sm:$0xff] }
 0xf5e   : >> { %v8254_v28 = vunpack.i.h.bf16 %v8252_v18  ;;  %v8253_v32 = vunpack.i.l.bf16 %v8252_v18 }
 0xf5f   : >> { %v3618_v21 = vsel %vm3603_vm4, %v3601_v55, %v8258_v25  ;;  %v3619_v33 = vsel %vm3603_vm4, %v3602_v17, %v8259_v43 }
 0xf60   : >> { %v3616_v6 = vsel %vm3603_vm4, %v3599_v36, %v8253_v32  ;;  %v3617_v10 = vsel %vm3603_vm4, %v3600_v3, %v8254_v28  ;;  %v3627_v0 = vpack.c.bf16 %v3619_v33, %v3618_v21  ;;  %v13342_v36 = vld [vmem:[#allocation34_spill] sm:$0xff] }
 0xf61   : >> { %v3626_v1 = vpack.c.bf16 %v3617_v10, %v3616_v6  ;;  %v13344_v6 = vld [vmem:[#allocation33_spill] sm:$0xff] }
 0xf63   : >> { %7643 = vmatprep.mubr.bf16.mxu0 %v3626_v1 }
 0xf64   : >> { %7644 = vmatmul.mubr.bf16.gmra.mrb[108].mxu0 %v3627_v0  ;;  %v13346_v0 = vld [vmem:[#allocation32_spill] sm:$0xff] }
 0xf65   : >> { %4412 = vmatprep.mubr.bf16.mxu0 %v13271_v4 }
 0xfef   : >> { %v7633_v31 = vpop.f32.mrb[96].mxu0 }
 0xff0   : >> { %v3737_v62 = vpop.f32.mrb[97].mxu0  ;;  %v3746_v52 = vadd.f32 %v7633_v31, %v6785_v29  ;;  %v13348_v31 = vld [vmem:[#allocation31_spill] sm:$0xff] }
 0xff1   : >> { %v3738_v53 = vadd.f32 %v6785_v29, %v3737_v62  ;;  %v7634_v58 = vpop.f32.mrb[98].mxu0 }
 0xff2   : >> { %v3740_v13 = vpop.f32.mrb[99].mxu0  ;;  %v11542_v45 = vadd.f32 %v13322_v57, %v3746_v52  ;;  %v3749_v42 = vadd.f32 %v7634_v58, %v6785_v29  ;;  %v8303_v58 = vld [vmem:[%s11599_s21 + $0x8] ss:$16 sps:$4 sm:$0xff]   ;;  %v8306_v52 = vld [vmem:[%s11599_s21 + $0x20] ss:$16 sps:$4 sm:$0xff]  }
 0xff3   : >> { %v11535_v14 = vadd.f32 %v13318_v51, %v3738_v53  ;;  %v3741_v20 = vadd.f32 %v6785_v29, %v3740_v13  ;;  %v8302_v53 = vld [vmem:[%s11599_s21 + $0x4] ss:$16 sps:$4 sm:$0xff]   ;;  %v8305_v13 = vld [vmem:[%s11599_s21 + $0xc] ss:$16 sps:$4 sm:$0xff]  }
 0xff4   : >> { %13323 = vst [vmem:[#allocation84_spill] sm:$0xff] %v11542_v45  ;;  %v11547_v61 = vadd.f32 %v13324_v27, %v3749_v42  ;;  %4267 = vmatprep.subr.bf16.mxu1 %v8302_v53  ;;  %v8308_v51 = vld [vmem:[%s11599_s21 + $0x24] ss:$16 sps:$4 sm:$0xff]   ;;  %4380 = vmatprep.subr.bf16.mxu0 %v8305_v13  ;;  %v8324_v13 = vld [vmem:[%s11599_s21 + $0x80] ss:$16 sps:$4 sm:$0xff]  }
 0xff5   : >> { %13319 = vst [vmem:[#allocation49_spill] sm:$0xff] %v11535_v14  ;;  %v11538_v24 = vadd.f32 %v13320_v30, %v3741_v20  ;;  %3820 = vadd.xlane.f32.xlu0 %v11535_v14  ;;  %v8309_v20 = vld [vmem:[%s11599_s21 + $0x28] ss:$16 sps:$4 sm:$0xff]   ;;  %4381 = vmatpush1.bf16.msra.mxu0 %v8303_v58  ;;  %v8311_v30 = vld [vmem:[%s11599_s21 + $0x2c] ss:$16 sps:$4 sm:$0xff]  }
 0xff6   : >> { %13325 = vst [vmem:[#allocation85_spill] sm:$0xff] %v11547_v61  ;;  %4382 = vmatprep.subr.bf16.mxu0 %v8311_v30  ;;  %v8326_v53 = vld [vmem:[%s11599_s21 + $0x84] ss:$16 sps:$4 sm:$0xff]   ;;  %v8329_v58 = vld [vmem:[%s11599_s21 + $0x8c] ss:$16 sps:$4 sm:$0xff]  }
 0xff7   : >> { %13321 = vst [vmem:[#allocation50_spill] sm:$0xff] %v11538_v24  ;;  %3822 = vadd.xlane.f32.xlu1 %v11538_v24  ;;  %v8330_v30 = vld [vmem:[%s11599_s21 + $0xa0] ss:$16 sps:$4 sm:$0xff]  }
 0xff9   : >> { %3824 = vadd.xlane.f32.xlu0 %v11542_v45  ;;  %4383 = vmatpush1.bf16.msra.mxu0 %v8309_v20  ;;  %v8335_v20 = vld [vmem:[%s11599_s21 + $0xac] ss:$16 sps:$4 sm:$0xff]  }
 0xffb   : >> { %v7637_v37 = vpop.f32.mrb[100].mxu0 }
 0xffc   : >> { %v3753_v12 = vpop.f32.mrb[101].mxu0  ;;  %v3762_v26 = vadd.f32 %v7637_v37, %v6785_v29 }
 0xffd   : >> { %v3754_v11 = vadd.f32 %v6785_v29, %v3753_v12  ;;  %v7638_v49 = vpop.f32.mrb[102].mxu0  ;;  %3826 = vadd.xlane.f32.xlu0 %v11547_v61 }
 0xffe   : >> { %v3756_v9 = vpop.f32.mrb[103].mxu0  ;;  %v3765_v60 = vadd.f32 %v7638_v49, %v6785_v29  ;;  %v11558_v50 = vadd.f32 %v13330_v16, %v3762_v26 }
 0xfff   : >> { %v11551_v15 = vadd.f32 %v13326_v63, %v3754_v11  ;;  %v3757_v56 = vadd.f32 %v6785_v29, %v3756_v9 }
0x1000   : >> { %13331 = vst [vmem:[#allocation57_spill] sm:$0xff] %v11558_v50  ;;  %v11562_v5 = vadd.f32 %v13332_v40, %v3765_v60 }
0x1001   : >> { %13327 = vst [vmem:[#allocation52_spill] sm:$0xff] %v11551_v15  ;;  %v11554_v39 = vadd.f32 %v13328_v8, %v3757_v56  ;;  %3828 = vadd.xlane.f32.xlu0 %v11551_v15 }
0x1002   : >> { %13333 = vst [vmem:[#allocation56_spill] sm:$0xff] %v11562_v5 }
0x1003   : >> { %13329 = vst [vmem:[#allocation53_spill] sm:$0xff] %v11554_v39  ;;  %3830 = vadd.xlane.f32.xlu1 %v11554_v39 }
0x1005   : >> { %3832 = vadd.xlane.f32.xlu0 %v11558_v50 }
0x1007   : >> { %3834 = vadd.xlane.f32.xlu1 %v11562_v5 }
0x102b   : >> { %v7641_v23 = vpop.f32.mrb[104].mxu0 }
0x102c   : >> { %v3769_v38 = vpop.f32.mrb[105].mxu0  ;;  %v3778_v35 = vadd.f32 %v7641_v23, %v6785_v29 }
0x102d   : >> { %v3770_v2 = vadd.f32 %v6785_v29, %v3769_v38  ;;  %v7642_v34 = vpop.f32.mrb[106].mxu0 }
0x102e   : >> { %v3772_v46 = vpop.f32.mrb[107].mxu0  ;;  %v3781_v7 = vadd.f32 %v7642_v34, %v6785_v29  ;;  %v11574_v44 = vadd.f32 %v13338_v19, %v3778_v35 }
0x102f   : >> { %v11567_v59 = vadd.f32 %v13334_v47, %v3770_v2  ;;  %v3773_v22 = vadd.f32 %v6785_v29, %v3772_v46 }
0x1030   : >> { %13339 = vst [vmem:[#allocation62_spill] sm:$0xff] %v11574_v44  ;;  %v11578_v43 = vadd.f32 %v13340_v41, %v3781_v7 }
0x1031   : >> { %13335 = vst [vmem:[#allocation60_spill] sm:$0xff] %v11567_v59  ;;  %v11570_v54 = vadd.f32 %v13336_v48, %v3773_v22  ;;  %3836 = vadd.xlane.f32.xlu0 %v11567_v59 }
0x1032   : >> { %13341 = vst [vmem:[#allocation59_spill] sm:$0xff] %v11578_v43 }
0x1033   : >> { %13337 = vst [vmem:[#allocation58_spill] sm:$0xff] %v11570_v54  ;;  %3838 = vadd.xlane.f32.xlu1 %v11570_v54 }
0x1035   : >> { %3840 = vadd.xlane.f32.xlu0 %v11574_v44 }
0x1037   : >> { %v7645_v25 = vpop.f32.mrb[108].mxu0  ;;  %3842 = vadd.xlane.f32.xlu1 %v11578_v43 }
0x1038   : >> { %v3785_v18 = vpop.f32.mrb[109].mxu0  ;;  %v3794_v32 = vadd.f32 %v7645_v25, %v6785_v29 }
0x1039   : >> { %v3786_v55 = vadd.f32 %v6785_v29, %v3785_v18  ;;  %v7646_v17 = vpop.f32.mrb[110].mxu0 }
0x103a   : >> { %v3788_v28 = vpop.f32.mrb[111].mxu0  ;;  %v3797_v33 = vadd.f32 %v7646_v17, %v6785_v29  ;;  %v11590_v1 = vadd.f32 %v13346_v0, %v3794_v32  ;;  %v8317_v32 = vld [vmem:[%s11599_s21 + $0x4c] ss:$16 sps:$4 sm:$0xff]  }
0x103b   : >> { %v11583_v3 = vadd.f32 %v13342_v36, %v3786_v55  ;;  %v3789_v21 = vadd.f32 %v6785_v29, %v3788_v28  ;;  %v8300_v29 = vld [vmem:[%s11599_s21] ss:$16 sps:$4 sm:$0xff]   ;;  %v8314_v28 = vld [vmem:[%s11599_s21 + $0x44] ss:$16 sps:$4 sm:$0xff]   ;;  %4384 = vmatprep.subr.bf16.mxu0 %v8317_v32  ;;  %v8323_v0 = vld [vmem:[%s11599_s21 + $0x6c] ss:$16 sps:$4 sm:$0xff]  }
0x103c   : >> { %13347 = vst [vmem:[#allocation64_spill] sm:$0xff] %v11590_v1  ;;  %v11594_v62 = vadd.f32 %v13348_v31, %v3797_v33  ;;  %4268 = vmatpush1.bf16.msra.mxu1 %v8300_v29  ;;  %v8312_v36 = vld [vmem:[%s11599_s21 + $0x40] ss:$16 sps:$4 sm:$0xff]   ;;  %v8321_v29 = vld [vmem:[%s11599_s21 + $0x68] ss:$16 sps:$4 sm:$0xff]  }
0x103d   : >> { %13343 = vst [vmem:[#allocation51_spill] sm:$0xff] %v11583_v3  ;;  %v11586_v10 = vadd.f32 %v13344_v6, %v3789_v21  ;;  %3844 = vadd.xlane.f32.xlu0 %v11583_v3  ;;  %4269 = vmatprep.subr.bf16.mxu1 %v8308_v51  ;;  %v8315_v21 = vld [vmem:[%s11599_s21 + $0x48] ss:$16 sps:$4 sm:$0xff]   ;;  %v8320_v6 = vld [vmem:[%s11599_s21 + $0x64] ss:$16 sps:$4 sm:$0xff]  }
0x103e   : >> { %13349 = vst [vmem:[#allocation48_spill] sm:$0xff] %v11594_v62  ;;  %4385 = vmatpush1.bf16.msra.mxu0 %v8315_v21  ;;  %v8318_v31 = vld [vmem:[%s11599_s21 + $0x60] ss:$16 sps:$4 sm:$0xff]   ;;  %v8332_v51 = vld [vmem:[%s11599_s21 + $0xa4] ss:$16 sps:$4 sm:$0xff]  }
0x103f   : >> { %13345 = vst [vmem:[#allocation61_spill] sm:$0xff] %v11586_v10  ;;  %3846 = vadd.xlane.f32.xlu1 %v11586_v10  ;;  %4386 = vmatprep.subr.bf16.mxu0 %v8323_v0 }
0x1040   : >> { %4270 = vmatpush1.bf16.msra.mxu1 %v8306_v52  ;;  %v8327_v52 = vld [vmem:[%s11599_s21 + $0x88] ss:$16 sps:$4 sm:$0xff]  }
0x1041   : >> { %3848 = vadd.xlane.f32.xlu0 %v11590_v1  ;;  %4271 = vmatprep.subr.bf16.mxu1 %v8314_v28 }
0x1042   : >> { %4387 = vmatpush1.bf16.msra.mxu0 %v8321_v29 }
0x1043   : >> { %3850 = vadd.xlane.f32.xlu1 %v11594_v62  ;;  %4388 = vmatprep.subr.bf16.mxu0 %v8329_v58 }
0x1044   : >> { %4272 = vmatpush1.bf16.msra.mxu1 %v8312_v36 }
0x1045   : >> { %4273 = vmatprep.subr.bf16.mxu1 %v8320_v6 }
0x1046   : >> { %4389 = vmatpush1.bf16.msra.mxu0 %v8327_v52 }
0x1047   : >> { %4390 = vmatprep.subr.bf16.mxu0 %v8335_v20 }
0x1048   : >> { %4274 = vmatpush1.bf16.msra.mxu1 %v8318_v31 }
0x1049   : >> { %4275 = vmatprep.subr.bf16.mxu1 %v8326_v53 }
0x104c   : >> { %4276 = vmatpush1.bf16.msra.mxu1 %v8324_v13 }
0x104d   : >> { %4277 = vmatprep.subr.bf16.mxu1 %v8332_v51 }
0x1050   : >> { %4278 = vmatpush1.bf16.msra.mxu1 %v8330_v30 }
0x1082   : >> { %v3821_v57 = vpop.xlane.xlu0 %3820 }
0x1083   : >> { %v3852_v42 = vmul.f32 0.0078125, %v3821_v57  ;;  %v8333_v57 = vld [vmem:[%s11599_s21 + $0xa8] ss:$16 sps:$4 sm:$0xff]  }
0x1084   : >> { %v3823_v27 = vpop.xlane.xlu1 %3822  ;;  %4391 = vmatpush1.bf16.msra.mxu0 %v8333_v57 }
0x1085   : >> { %v11612_v37 = vsub.f32 %v11535_v14, %v3852_v42  ;;  %v3853_v12 = vmul.f32 0.0078125, %v3823_v27  ;;  %v8338_v42 = vld [vmem:[%s11599_s21 + $0xc4] ss:$16 sps:$4 sm:$0xff]   ;;  %v8341_v27 = vld [vmem:[%s11599_s21 + $0xcc] ss:$16 sps:$4 sm:$0xff]  }
0x1086   : >> { %v3825_v11 = vpop.xlane.xlu0 %3824  ;;  %4279 = vmatprep.subr.bf16.mxu1 %v8338_v42  ;;  %4392 = vmatprep.subr.bf16.mxu0 %v8341_v27  ;;  %v8348_v27 = vld [vmem:[%s11609_s16 + $0x40] sm:$0xff]  }
0x1087   : >> { %v11615_v49 = vsub.f32 %v11538_v24, %v3853_v12  ;;  %v3854_v9 = vmul.f32 0.0078125, %v3825_v11  ;;  %v3884_v26 = vmul.f32 %v11612_v37, %v11612_v37  ;;  %v8336_v12 = vld [vmem:[%s11599_s21 + $0xc0] ss:$16 sps:$4 sm:$0xff]   ;;  %v8339_v11 = vld [vmem:[%s11599_s21 + $0xc8] ss:$16 sps:$4 sm:$0xff]  }
0x1088   : >> { %4280 = vmatpush1.bf16.msra.mxu1 %v8336_v12  ;;  %4393 = vmatpush1.bf16.msra.mxu0 %v8339_v11 }
0x1089   : >> { %v11620_v63 = vsub.f32 %v11542_v45, %v3854_v9  ;;  %3900 = vadd.xlane.f32.xlu0 %v3884_v26  ;;  %v3885_v56 = vmul.f32 %v11615_v49, %v11615_v49  ;;  %v8344_v9 = vld [vmem:[%s11599_s21 + $0xe4] ss:$16 sps:$4 sm:$0xff]   ;;  %v8347_v26 = vld [vmem:[%s11599_s21 + $0xec] ss:$16 sps:$4 sm:$0xff]  }
0x108a   : >> { %v3827_v60 = vpop.xlane.xlu0 %3826  ;;  %4281 = vmatprep.subr.bf16.mxu1 %v8344_v9  ;;  %4394 = vmatprep.subr.bf16.mxu0 %v8347_v26 }
0x108b   : >> { %v3855_v8 = vmul.f32 0.0078125, %v3827_v60  ;;  %3902 = vadd.xlane.f32.xlu1 %v3885_v56  ;;  %v3886_v16 = vmul.f32 %v11620_v63, %v11620_v63  ;;  %v8342_v56 = vld [vmem:[%s11599_s21 + $0xe0] ss:$16 sps:$4 sm:$0xff]   ;;  %v8345_v60 = vld [vmem:[%s11599_s21 + $0xe8] ss:$16 sps:$4 sm:$0xff]  }
0x108c   : >> { %4282 = vmatpush1.bf16.msra.mxu1 %v8342_v56  ;;  %4395 = vmatpush1.bf16.msra.mxu0 %v8345_v60 }
0x108d   : >> { %v11627_v40 = vsub.f32 %v11547_v61, %v3855_v8  ;;  %3904 = vadd.xlane.f32.xlu0 %v3886_v16  ;;  %7109 = vmatprep.subr.bf16.mxu1 %v8348_v27 }
0x108e   : >> { %v3829_v23 = vpop.xlane.xlu0 %3828 }
0x108f   : >> { %v3856_v38 = vmul.f32 0.0078125, %v3829_v23  ;;  %v3887_v2 = vmul.f32 %v11627_v40, %v11627_v40 }
0x1090   : >> { %v3831_v34 = vpop.xlane.xlu1 %3830 }
0x1091   : >> { %v11632_v46 = vsub.f32 %v11551_v15, %v3856_v38  ;;  %v3857_v35 = vmul.f32 0.0078125, %v3831_v34  ;;  %3906 = vadd.xlane.f32.xlu1 %v3887_v2 }
0x1092   : >> { %v3833_v47 = vpop.xlane.xlu0 %3832 }
0x1093   : >> { %v11635_v22 = vsub.f32 %v11554_v39, %v3857_v35  ;;  %v3858_v7 = vmul.f32 0.0078125, %v3833_v47  ;;  %v3888_v48 = vmul.f32 %v11632_v46, %v11632_v46 }
0x1094   : >> { %v3835_v19 = vpop.xlane.xlu1 %3834 }
0x1095   : >> { %v11640_v41 = vsub.f32 %v11558_v50, %v3858_v7  ;;  %v3859_v25 = vmul.f32 0.0078125, %v3835_v19  ;;  %3908 = vadd.xlane.f32.xlu0 %v3888_v48  ;;  %v3889_v18 = vmul.f32 %v11635_v22, %v11635_v22 }
0x1097   : >> { %v11645_v55 = vsub.f32 %v11562_v5, %v3859_v25  ;;  %3910 = vadd.xlane.f32.xlu1 %v3889_v18  ;;  %v3890_v17 = vmul.f32 %v11640_v41, %v11640_v41 }
0x1099   : >> { %3912 = vadd.xlane.f32.xlu0 %v3890_v17  ;;  %v3891_v33 = vmul.f32 %v11645_v55, %v11645_v55 }
0x109b   : >> { %3914 = vadd.xlane.f32.xlu1 %v3891_v33 }
0x10be   : >> { %v3837_v8 = vpop.xlane.xlu0 %3836 }
0x10bf   : >> { %v3860_v16 = vmul.f32 0.0078125, %v3837_v8 }
0x10c0   : >> { %v3839_v23 = vpop.xlane.xlu1 %3838 }
0x10c1   : >> { %v11676_v38 = vsub.f32 %v11567_v59, %v3860_v16  ;;  %v3861_v2 = vmul.f32 0.0078125, %v3839_v23 }
0x10c2   : >> { %v3841_v34 = vpop.xlane.xlu0 %3840 }
0x10c3   : >> { %v11679_v35 = vsub.f32 %v11570_v54, %v3861_v2  ;;  %v3862_v47 = vmul.f32 0.0078125, %v3841_v34  ;;  %v3892_v7 = vmul.f32 %v11676_v38, %v11676_v38 }
0x10c4   : >> { %v3843_v48 = vpop.xlane.xlu1 %3842 }
0x10c5   : >> { %v11684_v19 = vsub.f32 %v11574_v44, %v3862_v47  ;;  %v3863_v25 = vmul.f32 0.0078125, %v3843_v48  ;;  %3916 = vadd.xlane.f32.xlu0 %v3892_v7  ;;  %v3893_v18 = vmul.f32 %v11679_v35, %v11679_v35 }
0x10c7   : >> { %v11689_v17 = vsub.f32 %v11578_v43, %v3863_v25  ;;  %3918 = vadd.xlane.f32.xlu1 %v3893_v18  ;;  %v3894_v28 = vmul.f32 %v11684_v19, %v11684_v19 }
0x10c9   : >> { %3920 = vadd.xlane.f32.xlu0 %v3894_v28  ;;  %v3895_v32 = vmul.f32 %v11689_v17, %v11689_v17  ;;  %v11720_v28 = vld [vmem:[%s3816_s18] ss:$0 sm:$0xff] }
0x10ca   : >> { %v3845_v36 = vpop.xlane.xlu0 %3844 }
0x10cb   : >> { %v3864_v21 = vmul.f32 0.0078125, %v3845_v36  ;;  %3922 = vadd.xlane.f32.xlu1 %v3895_v32 }
0x10cc   : >> { %v3847_v33 = vpop.xlane.xlu1 %3846 }
0x10cd   : >> { %v11696_v6 = vsub.f32 %v11583_v3, %v3864_v21  ;;  %v3865_v0 = vmul.f32 0.0078125, %v3847_v33 }
0x10ce   : >> { %v3849_v31 = vpop.xlane.xlu0 %3848 }
0x10cf   : >> { %v11699_v29 = vsub.f32 %v11586_v10, %v3865_v0  ;;  %v3866_v53 = vmul.f32 0.0078125, %v3849_v31  ;;  %v3896_v58 = vmul.f32 %v11696_v6, %v11696_v6 }
0x10d0   : >> { %v3851_v13 = vpop.xlane.xlu1 %3850 }
0x10d1   : >> { %v11704_v52 = vsub.f32 %v11590_v1, %v3866_v53  ;;  %v3867_v51 = vmul.f32 0.0078125, %v3851_v13  ;;  %3924 = vadd.xlane.f32.xlu0 %v3896_v58  ;;  %v3897_v20 = vmul.f32 %v11699_v29, %v11699_v29 }
0x10d3   : >> { %v11709_v30 = vsub.f32 %v11594_v62, %v3867_v51  ;;  %3926 = vadd.xlane.f32.xlu1 %v3897_v20  ;;  %v3898_v57 = vmul.f32 %v11704_v52, %v11704_v52 }
0x10d5   : >> { %3928 = vadd.xlane.f32.xlu0 %v3898_v57  ;;  %v3899_v42 = vmul.f32 %v11709_v30, %v11709_v30 }
0x10d7   : >> { %3930 = vadd.xlane.f32.xlu1 %v3899_v42  ;;  %v11729_v42 = vld [vmem:[%s3818_s4] ss:$0 sm:$0xff]  ;;  %s13480_s4 = sld [smem:[#allocation29_spill]] (%p12783_p8) }
0x10dd   : > { %p13482_p13 = scmp.ne.s32.totalorder (%p12783_p8), %s13480_s4, 0 }
0x10df   : > { %p9162_p0 = pnand (%p12783_p8), %p9161_p11, %p13482_p13 }
0x10e1   : > { %p9163_p1 = pneg (%p12783_p8), %p9162_p0 }
0x1116   : >> { %v3901_v12 = vpop.xlane.xlu0 %3900 }
0x1117   : >> { %v3932_v11 = vmul.f32 0.0078125, %v3901_v12 }
0x1118   : >> { %v3903_v9 = vpop.xlane.xlu1 %3902 }
0x1119   : >> { %v3948_v26 = vadd.f32 1e-05, %v3932_v11  ;;  %v3933_v56 = vmul.f32 0.0078125, %v3903_v9 }
0x111a   : >> { %v3905_v60 = vpop.xlane.xlu0 %3904 }
0x111b   : >> { %8668 = vrsqrt.f32 %v3948_v26  ;;  %v3949_v8 = vadd.f32 1e-05, %v3933_v56  ;;  %v3934_v16 = vmul.f32 0.0078125, %v3905_v60 }
0x111d   : >> { %8670 = vrsqrt.f32 %v3949_v8  ;;  %v3950_v23 = vadd.f32 1e-05, %v3934_v16  ;;  %v8349_v8 = vld [vmem:[%s11609_s16] sm:$0xff]  }
0x111e   : >> { %v3907_v2 = vpop.xlane.xlu1 %3906 }
0x111f   : >> { %8672 = vrsqrt.f32 %v3950_v23  ;;  %v3935_v34 = vmul.f32 0.0078125, %v3907_v2 }
0x1121   : >> { %v3951_v47 = vadd.f32 1e-05, %v3935_v34 }
0x1122   : >> { %v3909_v7 = vpop.xlane.xlu0 %3908 }
0x1123   : >> { %8674 = vrsqrt.f32 %v3951_v47  ;;  %v3936_v48 = vmul.f32 0.0078125, %v3909_v7 }
0x1124   : >> { %v3911_v25 = vpop.xlane.xlu1 %3910 }
0x1125   : >> { %v8669_v18 = vpop.eup %8668  ;;  %v3952_v32 = vadd.f32 1e-05, %v3936_v48  ;;  %v3937_v36 = vmul.f32 0.0078125, %v3911_v25 }
0x1126   : >> { %v3980_v21 = vmul.f32 %v8669_v18, %v11612_v37  ;;  %v3913_v33 = vpop.xlane.xlu0 %3912 }
0x1127   : >> { %v8671_v0 = vpop.eup %8670  ;;  %8676 = vrsqrt.f32 %v3952_v32  ;;  %v3953_v31 = vadd.f32 1e-05, %v3937_v36  ;;  %v3938_v53 = vmul.f32 0.0078125, %v3913_v33 }
0x1128   : >> { %v4002_v58 = vmul.f32 %v11720_v28, %v3980_v21  ;;  %v3981_v13 = vmul.f32 %v8671_v0, %v11615_v49  ;;  %v3915_v51 = vpop.xlane.xlu1 %3914 }
0x1129   : >> { %v8673_v20 = vpop.eup %8672  ;;  %8678 = vrsqrt.f32 %v3953_v31  ;;  %v3939_v57 = vmul.f32 0.0078125, %v3915_v51  ;;  %v3954_v27 = vadd.f32 1e-05, %v3938_v53 }
0x112a   : >> { %v4003_v37 = vmul.f32 %v11720_v28, %v3981_v13  ;;  %v4024_v11 = vadd.f32 %v11729_v42, %v4002_v58  ;;  %v3982_v26 = vmul.f32 %v8673_v20, %v11620_v63 }
0x112b   : >> { %v3955_v12 = vadd.f32 1e-05, %v3939_v57 }
0x112c   : >> { %v4025_v9 = vadd.f32 %v11729_v42, %v4003_v37  ;;  %v4004_v16 = vmul.f32 %v11720_v28, %v3982_v26 }
0x112d   : >> { %v8675_v56 = vpop.eup %8674  ;;  %8680 = vrsqrt.f32 %v3955_v12 }
0x112e   : >> { %v4040_v49 = vpack.c.bf16 %v4025_v9, %v4024_v11  ;;  %v3983_v60 = vmul.f32 %v8675_v56, %v11627_v40  ;;  %8682 = vrsqrt.f32 %v3954_v27  ;;  %v4026_v47 = vadd.f32 %v11729_v42, %v4004_v16 }
0x1130   : >> { %4300 = vmatmul.mubr.bf16.vlgmr.msra.gmra.mrb[80].mxu1 %v4040_v49  ;;  %4413 = vmatmul.mubr.bf16.vlgmr.msra.gmra.mrb[112].mxu0 %v4040_v49  ;;  %v4005_v23 = vmul.f32 %v11720_v28, %v3983_v60 }
0x1131   : >> { %v8677_v2 = vpop.eup %8676  ;;  %4309 = vmatprep.mubr.bf16.mxu1 %v13271_v4  ;;  %4422 = vmatprep.mubr.bf16.mxu0 %v13271_v4 }
0x1132   : >> { %v4027_v63 = vadd.f32 %v11729_v42, %v4005_v23  ;;  %7110 = vmatpush3.bf16.msra.mxu1 %v8349_v8  ;;  %v3984_v40 = vmul.f32 %v8677_v2, %v11632_v46 }
0x1133   : >> { %v8679_v34 = vpop.eup %8678 }
0x1134   : >> { %v3985_v7 = vmul.f32 %v8679_v34, %v11635_v22  ;;  %v4041_v48 = vpack.c.bf16 %v4027_v63, %v4026_v47  ;;  %v4006_v32 = vmul.f32 %v11720_v28, %v3984_v40 }
0x1136   : >> { %v4007_v25 = vmul.f32 %v11720_v28, %v3985_v7  ;;  %v4028_v46 = vadd.f32 %v11729_v42, %v4006_v32 }
0x1137   : >> { %v8681_v18 = vpop.eup %8680 }
0x1138   : >> { %4310 = vmatmul.mubr.bf16.gmra.mrb[84].mxu1 %v4041_v48  ;;  %4423 = vmatmul.mubr.bf16.gmra.mrb[116].mxu0 %v4041_v48  ;;  %v8683_v36 = vpop.eup %8682  ;;  %v4029_v21 = vadd.f32 %v11729_v42, %v4007_v25  ;;  %v3987_v33 = vmul.f32 %v8681_v18, %v11645_v55 }
0x1139   : >> { %4319 = vmatprep.mubr.bf16.mxu1 %v13271_v4  ;;  %4432 = vmatprep.mubr.bf16.mxu0 %v13271_v4  ;;  %v3986_v22 = vmul.f32 %v8683_v36, %v11640_v41 }
0x113a   : >> { %v4042_v0 = vpack.c.bf16 %v4029_v21, %v4028_v46  ;;  %v4009_v31 = vmul.f32 %v11720_v28, %v3987_v33 }
0x113b   : >> { %v4008_v53 = vmul.f32 %v11720_v28, %v3986_v22 }
0x113c   : >> { %v4031_v58 = vadd.f32 %v11729_v42, %v4009_v31 }
0x113d   : >> { %v4030_v13 = vadd.f32 %v11729_v42, %v4008_v53 }
0x113f   : >> { %v4043_v55 = vpack.c.bf16 %v4031_v58, %v4030_v13 }
0x1140   : >> { %4320 = vmatmul.mubr.bf16.gmra.mrb[88].mxu1 %v4042_v0  ;;  %4433 = vmatmul.mubr.bf16.gmra.mrb[120].mxu0 %v4042_v0 }
0x1141   : >> { %4329 = vmatprep.mubr.bf16.mxu1 %v13271_v4  ;;  %4442 = vmatprep.mubr.bf16.mxu0 %v13271_v4 }
0x1148   : >> { %4330 = vmatmul.mubr.bf16.gmra.mrb[92].mxu1 %v4043_v55  ;;  %4443 = vmatmul.mubr.bf16.gmra.mrb[124].mxu0 %v4043_v55 }
0x1149   : >> { %4339 = vmatprep.mubr.bf16.mxu1 %v13271_v4  ;;  %4452 = vmatprep.mubr.bf16.mxu0 %v13271_v4 }
0x1152   : >> { %v3917_v41 = vpop.xlane.xlu0 %3916 }
0x1153   : >> { %v3940_v51 = vmul.f32 0.0078125, %v3917_v41 }
0x1154   : >> { %v3919_v20 = vpop.xlane.xlu1 %3918 }
0x1155   : >> { %v3956_v57 = vadd.f32 1e-05, %v3940_v51  ;;  %v3941_v37 = vmul.f32 0.0078125, %v3919_v20 }
0x1156   : >> { %v3921_v27 = vpop.xlane.xlu0 %3920 }
0x1157   : >> { %8684 = vrsqrt.f32 %v3956_v57  ;;  %v3957_v12 = vadd.f32 1e-05, %v3941_v37  ;;  %v3942_v11 = vmul.f32 0.0078125, %v3921_v27 }
0x1158   : >> { %v3923_v9 = vpop.xlane.xlu1 %3922 }
0x1159   : >> { %8686 = vrsqrt.f32 %v3957_v12  ;;  %v3958_v26 = vadd.f32 1e-05, %v3942_v11  ;;  %v3943_v56 = vmul.f32 0.0078125, %v3923_v9 }
0x115b   : >> { %8688 = vrsqrt.f32 %v3958_v26  ;;  %v3959_v49 = vadd.f32 1e-05, %v3943_v56 }
0x115d   : >> { %8690 = vrsqrt.f32 %v3959_v49 }
0x115e   : >> { %v3925_v60 = vpop.xlane.xlu0 %3924 }
0x115f   : >> { %v3944_v8 = vmul.f32 0.0078125, %v3925_v60 }
0x1160   : >> { %v3927_v16 = vpop.xlane.xlu1 %3926 }
0x1161   : >> { %v8685_v23 = vpop.eup %8684  ;;  %v3960_v2 = vadd.f32 1e-05, %v3944_v8  ;;  %v3945_v63 = vmul.f32 0.0078125, %v3927_v16 }
0x1162   : >> { %v3929_v34 = vpop.xlane.xlu0 %3928  ;;  %v3988_v47 = vmul.f32 %v8685_v23, %v11676_v38  ;;  %v8350_v23 = vld [vmem:[%s11609_s16 + $0xc0] sm:$0xff]  }
0x1163   : >> { %v8687_v40 = vpop.eup %8686  ;;  %8692 = vrsqrt.f32 %v3960_v2  ;;  %v3961_v7 = vadd.f32 1e-05, %v3945_v63  ;;  %v3946_v48 = vmul.f32 0.0078125, %v3929_v34  ;;  %7173 = vmatprep.subr.bf16.mxu0 %v8350_v23  ;;  %v11793_v2 = vld [vmem:[%s11609_s16 + $0x80] sm:$0xff]   ;;  %v8354_v63 = vld [vmem:[%s11609_s16 + $0x8] sm:$0xff]   ;;  %v8356_v34 = vld [vmem:[%s11609_s16 + $0x50] sm:$0xff]  }
0x1164   : >> { %v3931_v25 = vpop.xlane.xlu1 %3930  ;;  %v3989_v18 = vmul.f32 %v8687_v40, %v11679_v35  ;;  %v4010_v32 = vmul.f32 %v11720_v28, %v3988_v47  ;;  %13350 = vst [vmem:[#allocation55_spill] sm:$0xff] %v11793_v2  ;;  %7174 = vmatpush3.bf16.msra.mxu0 %v11793_v2  ;;  %v11808_v47 = vld [vmem:[%s11609_s16 + $0xd0] sm:$0xff]  }
0x1165   : >> { %v8689_v36 = vpop.eup %8688  ;;  %8694 = vrsqrt.f32 %v3961_v7  ;;  %v3947_v21 = vmul.f32 0.0078125, %v3931_v25  ;;  %v3962_v22 = vadd.f32 1e-05, %v3946_v48  ;;  %13353 = vst [vmem:[#allocation54_spill] sm:$0xff] %v11808_v47  ;;  %v8358_v40 = vld [vmem:[%s11609_s16 + $0x10] sm:$0xff]   ;;  %v8360_v48 = vld [vmem:[%s11609_s16 + $0x58] sm:$0xff]  }
0x1166   : >> { %v4011_v33 = vmul.f32 %v11720_v28, %v3989_v18  ;;  %v4032_v31 = vadd.f32 %v11729_v42, %v4010_v32  ;;  %v3990_v53 = vmul.f32 %v8689_v36, %v11684_v19  ;;  %v11813_v7 = vld [vmem:[%s11609_s16 + $0x90] sm:$0xff]   ;;  %v11818_v25 = vld [vmem:[%s11609_s16 + $0xd8] sm:$0xff]   ;;  %v8364_v36 = vld [vmem:[%s11609_s16 + $0x60] sm:$0xff]  }
0x1167   : >> { %v8691_v46 = vpop.eup %8690  ;;  %v3963_v0 = vadd.f32 1e-05, %v3947_v21  ;;  %13354 = vst [vmem:[#allocation83_spill] sm:$0xff] %v11813_v7  ;;  %13355 = vst [vmem:[#allocation81_spill] sm:$0xff] %v11818_v25  ;;  %v8362_v18 = vld [vmem:[%s11609_s16 + $0x18] sm:$0xff]   ;;  %v11828_v21 = vld [vmem:[%s11609_s16 + $0xe0] sm:$0xff]  }
0x1168   : >> { %v4033_v38 = vadd.f32 %v11729_v42, %v4011_v33  ;;  %v3991_v58 = vmul.f32 %v8691_v46, %v11689_v17  ;;  %v4012_v55 = vmul.f32 %v11720_v28, %v3990_v53  ;;  %v11822_v32 = vld [vmem:[%s11609_s16 + $0x98] sm:$0xff]   ;;  %13357 = vst [vmem:[#allocation66_spill] sm:$0xff] %v11828_v21  ;;  %v8366_v33 = vld [vmem:[%s11609_s16 + $0x20] sm:$0xff]   ;;  %v8372_v53 = vld [vmem:[%s11609_s16 + $0x70] sm:$0xff]  }
0x1169   : >> { %8696 = vrsqrt.f32 %v3963_v0  ;;  %13356 = vst [vmem:[#allocation68_spill] sm:$0xff] %v11822_v32  ;;  %v11832_v46 = vld [vmem:[%s11609_s16 + $0xa0] sm:$0xff]   ;;  %v11838_v0 = vld [vmem:[%s11609_s16 + $0xe8] sm:$0xff]  }
0x116a   : >> { %v4044_v35 = vpack.c.bf16 %v4033_v38, %v4032_v31  ;;  %v4013_v13 = vmul.f32 %v11720_v28, %v3991_v58  ;;  %8698 = vrsqrt.f32 %v3962_v22  ;;  %v4034_v19 = vadd.f32 %v11729_v42, %v4012_v55  ;;  %13358 = vst [vmem:[#allocation67_spill] sm:$0xff] %v11832_v46  ;;  %v8368_v22 = vld [vmem:[%s11609_s16 + $0x68] sm:$0xff]   ;;  %13359 = vst [vmem:[#allocation65_spill] sm:$0xff] %v11838_v0  ;;  %v11848_v58 = vld [vmem:[%s11609_s16 + $0xf0] sm:$0xff]  }
0x116b   : >> { %v8370_v31 = vld [vmem:[%s11609_s16 + $0x28] sm:$0xff]   ;;  %13361 = vst [vmem:[#allocation69_spill] sm:$0xff] %v11848_v58  ;;  %v8376_v55 = vld [vmem:[%s11609_s16 + $0x78] sm:$0xff]  }
0x116c   : >> { %4340 = vmatmul.mubr.bf16.gmra.mrb[96].mxu1 %v4044_v35  ;;  %4453 = vmatmul.mubr.bf16.gmra.mrb[128].mxu0 %v4044_v35  ;;  %v4035_v51 = vadd.f32 %v11729_v42, %v4013_v13  ;;  %v11842_v38 = vld [vmem:[%s11609_s16 + $0xa8] sm:$0xff]   ;;  %v8374_v35 = vld [vmem:[%s11609_s16 + $0x30] sm:$0xff]  }
0x116d   : >> { %v8693_v41 = vpop.eup %8692  ;;  %4349 = vmatprep.mubr.bf16.mxu1 %v13271_v4  ;;  %4462 = vmatprep.mubr.bf16.mxu0 %v13271_v4  ;;  %13360 = vst [vmem:[#allocation71_spill] sm:$0xff] %v11842_v38  ;;  %v11852_v13 = vld [vmem:[%s11609_s16 + $0xb0] sm:$0xff]  }
0x116e   : >> { %v3992_v17 = vmul.f32 %v8693_v41, %v11696_v6  ;;  %v4045_v37 = vpack.c.bf16 %v4035_v51, %v4034_v19  ;;  %13362 = vst [vmem:[#allocation72_spill] sm:$0xff] %v11852_v13  ;;  %v11858_v41 = vld [vmem:[%s11609_s16 + $0xf8] sm:$0xff]   ;;  %v4085_v19 = vld [vmem:[%s4084_s29] sm:$0xf]  ;;  %s13481_s29 = sld [smem:[#allocation95_spill]] (%p12783_p8) }
0x116f   : >> { %v8695_v20 = vpop.eup %8694  ;;  %13363 = vst [vmem:[#allocation70_spill] sm:$0xff] %v11858_v41  ;;  %v8378_v51 = vld [vmem:[%s11609_s16 + $0x38] sm:$0xff]  }
0x1170   : >> { %v3993_v57 = vmul.f32 %v8695_v20, %v11699_v29  ;;  %v4014_v11 = vmul.f32 %v11720_v28, %v3992_v17  ;;  %v11862_v20 = vld [vmem:[%s11609_s16 + $0xb8] sm:$0xff]  }
0x1171   : >> { %13364 = vst [vmem:[#allocation75_spill] sm:$0xff] %v11862_v20  ;;  %v13366_v17 = vld [vmem:[#allocation47_spill] sm:$0xff] }
0x1172   : >> { %v4015_v27 = vmul.f32 %v11720_v28, %v3993_v57  ;;  %v4036_v29 = vadd.f32 %v11729_v42, %v4014_v11  ;;  %v4101_v57 = vsub.s32 3, %v13366_v17 }
0x1173   : >> { %v8697_v12 = vpop.eup %8696 }
0x1174   : >> { %4350 = vmatmul.mubr.bf16.gmra.mrb[100].mxu1 %v4045_v37  ;;  %4463 = vmatmul.mubr.bf16.gmra.mrb[132].mxu0 %v4045_v37  ;;  %v8699_v9 = vpop.eup %8698  ;;  %v4037_v26 = vadd.f32 %v11729_v42, %v4015_v27  ;;  %v3995_v6 = vmul.f32 %v8697_v12, %v11709_v30  ;;  %v13367_v37 = vsub.s32 0, %v13366_v17  ;;  %v13369_v12 = vsub.s32 2, %v13366_v17  ;;  %s12943_s21 = scalar_lea.hbm (%p12783_p8), %s13481_s29, %s6939_s28 }
0x1175   : >> { %4359 = vmatprep.mubr.bf16.mxu1 %v13271_v4  ;;  %4472 = vmatprep.mubr.bf16.mxu0 %v13271_v4  ;;  %v3994_v56 = vmul.f32 %v8699_v9, %v11704_v52  ;;  %v13371_v9 = vsub.s32 1, %v13366_v17 }
0x1176   : >> { %v4046_v49 = vpack.c.bf16 %v4037_v26, %v4036_v29  ;;  %v4017_v60 = vmul.f32 %v11720_v28, %v3995_v6  ;;  %v11873_v27 = vrot.slane %v4085_v19, %v13367_v37  ;;  %v11877_v11 = vrot.slane %v4085_v19, %v13369_v12 }
0x1177   : >> { %v4016_v8 = vmul.f32 %v11720_v28, %v3994_v56  ;;  %v8352_v28 = vld [vmem:[%s11609_s16 + $0x48] sm:$0xff]   ;;  %v11881_v26 = vrot.slane %v4085_v19, %v13371_v9  ;;  %v11883_v6 = vrot.slane %v4085_v19, %v4101_v57 }
0x1178   : >> { %v4039_v30 = vadd.f32 %v11729_v42, %v4017_v60  ;;  %7111 = vmatprep.subr.bf16.mxu1 %v8352_v28  ;;  %13368 = vst [vmem:[#allocation73_spill] sm:$0xff] %v11873_v27  ;;  %13370 = vst [vmem:[#allocation76_spill] sm:$0xff] %v11877_v11 }
0x1179   : >> { %v4038_v16 = vadd.f32 %v11729_v42, %v4016_v8  ;;  %v11802_v42 = vld [vmem:[%s11609_s16 + $0x88] sm:$0xff]   ;;  %7112 = vmatpush3.bf16.msra.mxu1 %v8354_v63  ;;  %13372 = vst [vmem:[#allocation74_spill] sm:$0xff] %v11881_v26  ;;  %13373 = vst [vmem:[#allocation79_spill] sm:$0xff] %v11883_v6 }
0x117a   : >> { %13352 = vst [vmem:[#allocation82_spill] sm:$0xff] %v11802_v42  ;;  %7113 = vmatprep.subr.bf16.mxu1 %v8356_v34 }
0x117b   : >> { %v4047_v52 = vpack.c.bf16 %v4039_v30, %v4038_v16 }
0x117c   : >> { %4360 = vmatmul.mubr.bf16.gmra.mrb[104].mxu1 %v4046_v49  ;;  %4473 = vmatmul.mubr.bf16.gmra.mrb[136].mxu0 %v4046_v49 }
0x117d   : >> { %4369 = vmatprep.mubr.bf16.mxu1 %v13271_v4  ;;  %4482 = vmatprep.mubr.bf16.mxu0 %v13271_v4  ;;  %v11798_v4 = vld [vmem:[%s11609_s16 + $0xc8] sm:$0xff]   ;;  %s12951_s16 = scalar_lea.sflag (%p12783_p8), [#allocation4], %s721_s19 }
0x117e   : >> { %13351 = vst [vmem:[#allocation63_spill] sm:$0xff] %v11798_v4  ;;  %7175 = vmatprep.subr.bf16.mxu0 %v11798_v4  ;;  %7114 = vmatpush3.bf16.msra.mxu1 %v8358_v40 }
0x117f   : >> { %7176 = vmatpush3.bf16.msra.mxu0 %v11802_v42  ;;  %7115 = vmatprep.subr.bf16.mxu1 %v8360_v48 }
0x1180   : >> { %7177 = vmatprep.subr.bf16.mxu0 %v11808_v47 }
0x1182   : >> { %7116 = vmatpush3.bf16.msra.mxu1 %v8362_v18 }
0x1183   : >> { %7178 = vmatpush3.bf16.msra.mxu0 %v11813_v7  ;;  %7117 = vmatprep.subr.bf16.mxu1 %v8364_v36 }
0x1184   : >> { %4370 = vmatmul.mubr.bf16.gmra.mrb[108].mxu1 %v4047_v52  ;;  %4483 = vmatmul.mubr.bf16.gmra.mrb[140].mxu0 %v4047_v52 }
0x1185   : >> { %7179 = vmatprep.subr.bf16.mxu0 %v11818_v25 }
0x1186   : >> { %7118 = vmatpush3.bf16.msra.mxu1 %v8366_v33 }
0x1187   : >> { %7180 = vmatpush3.bf16.msra.mxu0 %v11822_v32  ;;  %7119 = vmatprep.subr.bf16.mxu1 %v8368_v22 }
0x1188   : >> { %7181 = vmatprep.subr.bf16.mxu0 %v11828_v21 }
0x118a   : >> { %7120 = vmatpush3.bf16.msra.mxu1 %v8370_v31 }
0x118b   : >> { %7182 = vmatpush3.bf16.msra.mxu0 %v11832_v46  ;;  %7121 = vmatprep.subr.bf16.mxu1 %v8372_v53 }
0x118c   : >> { %7183 = vmatprep.subr.bf16.mxu0 %v11838_v0 }
0x118e   : >> { %7122 = vmatpush3.bf16.msra.mxu1 %v8374_v35 }
0x118f   : >> { %7184 = vmatpush3.bf16.msra.mxu0 %v11842_v38  ;;  %7123 = vmatprep.subr.bf16.mxu1 %v8376_v55 }
0x1190   : >> { %7185 = vmatprep.subr.bf16.mxu0 %v11848_v58 }
0x1192   : >> { %7124 = vmatpush3.bf16.msra.mxu1 %v8378_v51 }
0x1193   : >> { %7186 = vmatpush3.bf16.msra.mxu0 %v11852_v13  ;;  %7809 = vmatprep.subr.bf16.mxu1 %v8350_v23 }
0x1194   : >> { %7187 = vmatprep.subr.bf16.mxu0 %v11858_v41 }
0x1197   : >> { %7188 = vmatpush3.bf16.msra.mxu0 %v11862_v20 }
0x1203   : >> { %v4301_v29 = vpop.f32.mrb[80].mxu1  ;;  %v4414_v56 = vpop.f32.mrb[112].mxu0 }
0x1204   : >> { %v4302_v49 = vadd.f32 %v4301_v29, %v11873_v27  ;;  %v4415_v60 = vadd.f32 %v4414_v56, %v11877_v11  ;;  %v4303_v8 = vpop.f32.mrb[81].mxu1  ;;  %v4416_v30 = vpop.f32.mrb[113].mxu0 }
0x1205   : >> { %v11888_v16 = vadd.f32 %v4303_v8, %v11881_v26  ;;  %v11891_v52 = vadd.f32 %v4416_v30, %v11883_v6  ;;  %v4305_v23 = vpop.f32.mrb[82].mxu1  ;;  %v4418_v28 = vpop.f32.mrb[114].mxu0 }
0x1206   : >> { %v4557_v63 = vmul.f32 0.044715, %v4302_v49  ;;  %v4559_v34 = vmul.f32 0.044715, %v4415_v60  ;;  %v4306_v48 = vadd.f32 %v4305_v23, %v11873_v27  ;;  %v4419_v18 = vadd.f32 %v4418_v28, %v11877_v11  ;;  %v4307_v36 = vpop.f32.mrb[83].mxu1  ;;  %v4420_v33 = vpop.f32.mrb[115].mxu0 }
0x1207   : >> { %v4558_v40 = vmul.f32 0.044715, %v11888_v16  ;;  %v4560_v53 = vmul.f32 0.044715, %v11891_v52  ;;  %v11898_v35 = vadd.f32 %v4307_v36, %v11881_v26  ;;  %v11901_v57 = vadd.f32 %v4420_v33, %v11883_v6 }
0x1208   : >> { %v4621_v22 = vmul.f32 %v4557_v63, %v4302_v49  ;;  %v4623_v31 = vmul.f32 %v4559_v34, %v4415_v60  ;;  %v4561_v55 = vmul.f32 0.044715, %v4306_v48  ;;  %v4563_v17 = vmul.f32 0.044715, %v4419_v18 }
0x1209   : >> { %v4622_v37 = vmul.f32 %v4558_v40, %v11888_v16  ;;  %v4624_v8 = vmul.f32 %v4560_v53, %v11891_v52  ;;  %v4562_v23 = vmul.f32 0.044715, %v11898_v35 }
0x120a   : >> { %v4685_v51 = vmul.f32 %v4621_v22, %v4302_v49  ;;  %v4687_v19 = vmul.f32 %v4623_v31, %v4415_v60  ;;  %v4625_v12 = vmul.f32 %v4561_v55, %v4306_v48  ;;  %v4627_v30 = vmul.f32 %v4563_v17, %v4419_v18 }
0x120b   : >> { %v4311_v9 = vpop.f32.mrb[84].mxu1  ;;  %v4424_v29 = vpop.f32.mrb[116].mxu0  ;;  %v11912_v55 = vmul.f32 0.5, %v4302_v49  ;;  %v4564_v17 = vmul.f32 0.044715, %v11901_v57  ;;  %v11930_v44 = vmul.f32 %v4624_v8, %v11891_v52 }
0x120c   : >> { %v4749_v56 = vadd.f32 %v4685_v51, %v4302_v49  ;;  %v4313_v28 = vpop.f32.mrb[85].mxu1  ;;  %v4426_v63 = vpop.f32.mrb[117].mxu0  ;;  %v4751_v34 = vadd.f32 %v4687_v19, %v4415_v60  ;;  %v4689_v36 = vmul.f32 %v4625_v12, %v4306_v48  ;;  %v11907_v22 = vadd.f32 %v4311_v9, %v11873_v27 }
0x120d   : >> { %v11910_v33 = vadd.f32 %v4424_v29, %v11877_v11  ;;  %v4315_v40 = vpop.f32.mrb[86].mxu1  ;;  %v4428_v31 = vpop.f32.mrb[118].mxu0  ;;  %v11914_v51 = vmul.f32 0.5, %v4415_v60  ;;  %v4691_v53 = vmul.f32 %v4627_v30, %v4419_v18  ;;  %v11917_v19 = vmul.f32 0.5, %v4306_v48 }
0x120e   : >> { %v4317_v62 = vpop.f32.mrb[87].mxu1  ;;  %v4430_v1 = vpop.f32.mrb[119].mxu0  ;;  %v4813_v10 = vmul.f32 0.7978846, %v4749_v56  ;;  %v4753_v12 = vadd.f32 %v4689_v36, %v4306_v48  ;;  %v11919_v9 = vmul.f32 0.5, %v4419_v18  ;;  %v11924_v49 = vadd.f32 %v4313_v28, %v11881_v26 }
0x120f   : >> { %13374 = vst [vmem:[#allocation77_spill] sm:$0xff] %v11910_v33  ;;  %v4755_v3 = vadd.f32 %v4691_v53, %v4419_v18  ;;  %v4565_v29 = vmul.f32 0.044715, %v11907_v22  ;;  %v4567_v43 = vmul.f32 0.044715, %v11910_v33  ;;  %v11927_v30 = vmul.f32 %v4622_v37, %v11888_v16 }
0x1210   : >> { %v4815_v60 = vmul.f32 0.7978846, %v4751_v34  ;;  %v4626_v56 = vmul.f32 %v4562_v23, %v11898_v35  ;;  %v4628_v48 = vmul.f32 %v4564_v17, %v11901_v57  ;;  %v4566_v18 = vmul.f32 0.044715, %v11924_v49 }
0x1211   : >> { %v11936_v36 = vadd.f32 %v4426_v63, %v11883_v6  ;;  %v11939_v53 = vadd.f32 %v4315_v40, %v11873_v27  ;;  %8700 = vtanh.f32 %v4813_v10  ;;  %v4817_v28 = vmul.f32 0.7978846, %v4753_v12 }
0x1212   : >> { %v4819_v34 = vmul.f32 0.7978846, %v4755_v3  ;;  %v11942_v37 = vadd.f32 %v4428_v31, %v11877_v11  ;;  %v4629_v23 = vmul.f32 %v4565_v29, %v11907_v22  ;;  %v4631_v17 = vmul.f32 %v4567_v43, %v11910_v33 }
0x1213   : >> { %13375 = vst [vmem:[#allocation80_spill] sm:$0xff] %v11939_v53  ;;  %v4321_v8 = vpop.f32.mrb[88].mxu1  ;;  %v4434_v54 = vpop.f32.mrb[120].mxu0  ;;  %v4568_v59 = vmul.f32 0.044715, %v11936_v36  ;;  %v4630_v40 = vmul.f32 %v4566_v18, %v11924_v49  ;;  %v11951_v3 = vadd.f32 %v4317_v62, %v11881_v26  ;;  %v11954_v31 = vadd.f32 %v4430_v1, %v11883_v6 }
0x1214   : >> { %13376 = vst [vmem:[#allocation78_spill] sm:$0xff] %v11942_v37  ;;  %v4569_v63 = vmul.f32 0.044715, %v11939_v53  ;;  %v4323_v5 = vpop.f32.mrb[89].mxu1  ;;  %v4436_v50 = vpop.f32.mrb[121].mxu0  ;;  %8702 = vtanh.f32 %v4815_v60  ;;  %v11957_v43 = vmul.f32 %v4626_v56, %v11898_v35  ;;  %v11960_v39 = vadd.f32 %v4321_v8, %v11873_v27 }
0x1215   : >> { %v4571_v10 = vmul.f32 0.044715, %v11942_v37  ;;  %v4325_v12 = vpop.f32.mrb[90].mxu1  ;;  %v4438_v29 = vpop.f32.mrb[122].mxu0  ;;  %v11963_v15 = vadd.f32 %v4434_v54, %v11877_v11  ;;  %8704 = vtanh.f32 %v4817_v28  ;;  %v11966_v62 = vmul.f32 %v4628_v48, %v11901_v57 }
0x1216   : >> { %v4327_v18 = vpop.f32.mrb[91].mxu1  ;;  %v4440_v61 = vpop.f32.mrb[123].mxu0  ;;  %v4632_v1 = vmul.f32 %v4568_v59, %v11936_v36  ;;  %v4570_v45 = vmul.f32 0.044715, %v11951_v3  ;;  %v11971_v60 = vmul.f32 %v4629_v23, %v11907_v22  ;;  %v4633_v56 = vmul.f32 %v4569_v63, %v11939_v53 }
0x1217   : >> { %v4572_v8 = vmul.f32 0.044715, %v11954_v31  ;;  %v11976_v54 = vadd.f32 %v4323_v5, %v11881_v26  ;;  %8706 = vtanh.f32 %v4819_v34  ;;  %v11979_v28 = vmul.f32 %v4631_v17, %v11910_v33 }
0x1218   : >> { %13377 = vst [vmem:[#allocation46_spill] sm:$0xff] %v11971_v60  ;;  %v11982_v48 = vmul.f32 %v4630_v40, %v11924_v49  ;;  %v4635_v59 = vmul.f32 %v4571_v10, %v11942_v37  ;;  %v4573_v24 = vmul.f32 0.044715, %v11960_v39  ;;  %v4575_v23 = vmul.f32 0.044715, %v11963_v15 }
0x1219   : >> { %13378 = vst [vmem:[#allocation45_spill] sm:$0xff] %v11979_v28  ;;  %v11988_v63 = vadd.f32 %v4436_v50, %v11883_v6  ;;  %v11991_v14 = vadd.f32 %v4325_v12, %v11873_v27  ;;  %v11994_v5 = vmul.f32 %v4632_v1, %v11936_v36  ;;  %v4634_v34 = vmul.f32 %v4570_v45, %v11951_v3 }
0x121a   : >> { %v4574_v17 = vmul.f32 0.044715, %v11976_v54  ;;  %v11999_v40 = vadd.f32 %v4438_v29, %v11877_v11  ;;  %v12002_v41 = vmul.f32 %v4633_v56, %v11939_v53  ;;  %v4636_v50 = vmul.f32 %v4572_v8, %v11954_v31 }
0x121b   : >> { %v4331_v10 = vpop.f32.mrb[92].mxu1  ;;  %v4444_v20 = vpop.f32.mrb[124].mxu0  ;;  %v4576_v12 = vmul.f32 0.044715, %v11988_v63  ;;  %v4577_v13 = vmul.f32 0.044715, %v11991_v14  ;;  %v12011_v29 = vadd.f32 %v4327_v18, %v11881_v26  ;;  %v12014_v0 = vadd.f32 %v4440_v61, %v11883_v6 }
0x121c   : >> { %13379 = vst [vmem:[#allocation44_spill] sm:$0xff] %v12002_v41  ;;  %v4333_v1 = vpop.f32.mrb[93].mxu1  ;;  %v4446_v58 = vpop.f32.mrb[125].mxu0  ;;  %v4579_v45 = vmul.f32 0.044715, %v11999_v40  ;;  %v12017_v56 = vadd.f32 %v4331_v10, %v11873_v27  ;;  %v12020_v21 = vmul.f32 %v4635_v59, %v11942_v37  ;;  %v4637_v32 = vmul.f32 %v4573_v24, %v11960_v39 }
0x121d   : >> { %v12007_v38 = vpop.eup %8700  ;;  %v4335_v8 = vpop.f32.mrb[94].mxu1  ;;  %v4639_v25 = vmul.f32 %v4575_v23, %v11963_v15  ;;  %v12025_v7 = vadd.f32 %v4444_v20, %v11877_v11  ;;  %v12028_v61 = vmul.f32 %v4634_v34, %v11951_v3  ;;  %v4578_v10 = vmul.f32 0.044715, %v12011_v29 }
0x121e   : >> { %v4448_v46 = vpop.f32.mrb[126].mxu0  ;;  %13380 = vst [vmem:[#allocation43_spill] sm:$0xff] %v12020_v21  ;;  %v4337_v18 = vpop.f32.mrb[95].mxu1  ;;  %v4580_v42 = vmul.f32 0.044715, %v12014_v0  ;;  %v12034_v2 = vmul.f32 %v4636_v50, %v11954_v31  ;;  %v4638_v24 = vmul.f32 %v4574_v17, %v11976_v54  ;;  %v12039_v23 = vadd.f32 %v4333_v1, %v11881_v26 }
0x121f   : >> { %13381 = vst [vmem:[#allocation42_spill] sm:$0xff] %v12025_v7  ;;  %v4450_v47 = vpop.f32.mrb[127].mxu0  ;;  %v4581_v4 = vmul.f32 0.044715, %v12017_v56  ;;  %v8703_v59 = vpop.eup %8702  ;;  %v4583_v20 = vmul.f32 0.044715, %v12025_v7  ;;  %v4640_v34 = vmul.f32 %v4576_v12, %v11988_v63  ;;  %v4641_v37 = vmul.f32 %v4577_v13, %v11991_v14 }
0x1220   : >> { %v8705_v21 = vpop.eup %8704  ;;  %v4643_v28 = vmul.f32 %v4579_v45, %v11999_v40  ;;  %v4642_v33 = vmul.f32 %v4578_v10, %v12011_v29  ;;  %v4644_v41 = vmul.f32 %v4580_v42, %v12014_v0  ;;  %v4582_v50 = vmul.f32 0.044715, %v12039_v23 }
0x1221   : >> { %v12048_v17 = vadd.f32 %v4446_v58, %v11883_v6  ;;  %v12051_v53 = vadd.f32 %v4335_v8, %v11873_v27  ;;  %v8707_v1 = vpop.eup %8706  ;;  %v12054_v60 = vmul.f32 %v4637_v32, %v11960_v39  ;;  %v12057_v13 = vmul.f32 %v4639_v25, %v11963_v15 }
0x1222   : >> { %v4645_v12 = vmul.f32 %v4581_v4, %v12017_v56  ;;  %v12061_v45 = vadd.f32 %v4448_v46, %v11877_v11  ;;  %v12064_v42 = vmul.f32 %v4638_v24, %v11976_v54  ;;  %v4647_v58 = vmul.f32 %v4583_v20, %v12025_v7 }
0x1223   : >> { %v4646_v8 = vmul.f32 %v4582_v50, %v12039_v23  ;;  %v4584_v10 = vmul.f32 0.044715, %v12048_v17  ;;  %v12070_v32 = vmul.f32 %v4640_v34, %v11988_v63  ;;  %v12073_v25 = vmul.f32 %v4641_v37, %v11991_v14 }
0x1224   : >> { %v4585_v4 = vmul.f32 0.044715, %v12051_v53  ;;  %v4587_v46 = vmul.f32 0.044715, %v12061_v45  ;;  %v12078_v11 = vmul.f32 %v4643_v28, %v11999_v40  ;;  %v12081_v24 = vmul.f32 %v4642_v33, %v12011_v29 }
0x1225   : >> { %v12084_v20 = vmul.f32 %v4644_v41, %v12014_v0  ;;  %v12087_v50 = vadd.f32 %v4337_v18, %v11881_v26  ;;  %v12090_v34 = vmul.f32 %v4645_v12, %v12017_v56  ;;  %v4648_v37 = vmul.f32 %v4584_v10, %v12048_v17 }
0x1226   : >> { %v12094_v27 = vadd.f32 %v4450_v47, %v11883_v6  ;;  %v4750_v28 = vadd.f32 %v11927_v30, %v11888_v16  ;;  %v12099_v33 = vmul.f32 %v4647_v58, %v12025_v7  ;;  %v12102_v41 = vmul.f32 %v4646_v8, %v12039_v23 }
0x1227   : >> { %v12105_v18 = vmul.f32 0.5, %v11888_v16  ;;  %v4754_v12 = vadd.f32 %v11957_v43, %v11898_v35  ;;  %v4649_v10 = vmul.f32 %v4585_v4, %v12051_v53  ;;  %v4651_v47 = vmul.f32 %v4587_v46, %v12061_v45 }
0x1228   : >> { %13382 = vst [vmem:[#allocation41_spill] sm:$0xff] %v12099_v33  ;;  %v12112_v6 = vmul.f32 0.5, %v11898_v35  ;;  %v4814_v30 = vmul.f32 0.7978846, %v4750_v28  ;;  %v4586_v58 = vmul.f32 0.044715, %v12087_v50  ;;  %v4752_v8 = vadd.f32 %v11930_v44, %v11891_v52 }
0x1229   : >> { %v4818_v26 = vmul.f32 0.7978846, %v4754_v12  ;;  %v4756_v16 = vadd.f32 %v11966_v62, %v11901_v57  ;;  %v12120_v33 = vmul.f32 %v4648_v37, %v12048_v17  ;;  %v4588_v43 = vmul.f32 0.044715, %v12094_v27 }
0x122a   : >> { %8708 = vtanh.f32 %v4814_v30  ;;  %v4941_v4 = vadd.f32 1.0, %v12007_v38  ;;  %v4816_v35 = vmul.f32 0.7978846, %v4752_v8  ;;  %v4945_v28 = vadd.f32 1.0, %v8705_v21 }
0x122b   : >> { %8710 = vtanh.f32 %v4818_v26  ;;  %v4820_v46 = vmul.f32 0.7978846, %v4756_v16  ;;  %v12125_v12 = vmul.f32 %v4649_v10, %v12051_v53  ;;  %v12128_v44 = vmul.f32 0.5, %v11891_v52 }
0x122c   : >> { %v4943_v7 = vadd.f32 1.0, %v8703_v59  ;;  %v4947_v62 = vadd.f32 1.0, %v8707_v1  ;;  %8712 = vtanh.f32 %v4816_v35  ;;  %v12131_v37 = vmul.f32 %v4941_v4, %v11912_v55  ;;  %v13384_v4 = vld [vmem:[#allocation80_spill] sm:$0xff] }
0x122d   : >> { %v12134_v30 = vmul.f32 %v4945_v28, %v11917_v19  ;;  %v4758_v38 = vadd.f32 %v11982_v48, %v11924_v49  ;;  %8714 = vtanh.f32 %v4820_v46  ;;  %v4762_v52 = vadd.f32 %v12028_v61, %v11951_v3  ;;  %v13385_v35 = vld [vmem:[#allocation44_spill] sm:$0xff]  ;;  %v13386_v28 = vld [vmem:[#allocation77_spill] sm:$0xff] }
0x122e   : >> { %v12139_v21 = vmul.f32 %v4943_v7, %v11914_v51  ;;  %v12142_v26 = vmul.f32 %v4947_v62, %v11919_v9  ;;  %v4650_v59 = vmul.f32 %v4586_v58, %v12087_v50  ;;  %v4652_v55 = vmul.f32 %v4588_v43, %v12094_v27  ;;  %v13383_v58 = vld [vmem:[#allocation46_spill] sm:$0xff]  ;;  %v13387_v62 = vld [vmem:[#allocation45_spill] sm:$0xff] }
0x122f   : >> { %v5069_v19 = vpack.c.bf16 %v12134_v30, %v12131_v37  ;;  %v4822_v1 = vmul.f32 0.7978846, %v4758_v38  ;;  %v4826_v10 = vmul.f32 0.7978846, %v4762_v52  ;;  %v4760_v7 = vadd.f32 %v11994_v5, %v11936_v36  ;;  %v13388_v52 = vld [vmem:[#allocation78_spill] sm:$0xff] }
0x1230   : >> { %v5071_v48 = vpack.c.bf16 %v12142_v26, %v12139_v21  ;;  %v4764_v51 = vadd.f32 %v12034_v2, %v11954_v31  ;;  %v12157_v9 = vmul.f32 %v4651_v47, %v12061_v45  ;;  %v4500_v61 = vmul.f32 0.5, %v11901_v57 }
0x1231   : >> { %8716 = vtanh.f32 %v4822_v1  ;;  %v4757_v8 = vadd.f32 %v13383_v58, %v11907_v22  ;;  %v4824_v16 = vmul.f32 0.7978846, %v4760_v7  ;;  %v4761_v46 = vadd.f32 %v13385_v35, %v13384_v4  ;;  %v13389_v1 = vld [vmem:[#allocation43_spill] sm:$0xff] }
0x1232   : >> { %8718 = vtanh.f32 %v4826_v10  ;;  %v4828_v43 = vmul.f32 0.7978846, %v4764_v51  ;;  %v12165_v5 = vmul.f32 %v4650_v59, %v12087_v50  ;;  %v12168_v2 = vmul.f32 %v4652_v55, %v12094_v27 }
0x1233   : >> { %v4821_v47 = vmul.f32 0.7978846, %v4757_v8  ;;  %v4759_v57 = vadd.f32 %v13387_v62, %v13386_v28  ;;  %v4502_v30 = vmul.f32 0.5, %v11924_v49  ;;  %8720 = vtanh.f32 %v4824_v16 }
0x1234   : >> { %v8709_v37 = vpop.eup %8708  ;;  %v4825_v38 = vmul.f32 0.7978846, %v4761_v46  ;;  %v4763_v10 = vadd.f32 %v13389_v1, %v13388_v52  ;;  %v4506_v59 = vmul.f32 0.5, %v11951_v3  ;;  %8722 = vtanh.f32 %v4828_v43 }
0x1235   : >> { %v8711_v7 = vpop.eup %8710  ;;  %v4942_v51 = vadd.f32 1.0, %v8709_v37  ;;  %v4823_v58 = vmul.f32 0.7978846, %v4759_v57  ;;  %8724 = vtanh.f32 %v4821_v47  ;;  %v4766_v35 = vadd.f32 %v12064_v42, %v11976_v54 }
0x1236   : >> { %v4946_v55 = vadd.f32 1.0, %v8711_v7  ;;  %v4827_v8 = vmul.f32 0.7978846, %v4763_v10  ;;  %v8713_v62 = vpop.eup %8712  ;;  %v4504_v16 = vmul.f32 0.5, %v11936_v36  ;;  %8726 = vtanh.f32 %v4825_v38 }
0x1237   : >> { %v5006_v49 = vmul.f32 %v4942_v51, %v12105_v18  ;;  %v4770_v46 = vadd.f32 %v12081_v24, %v12011_v29  ;;  %v8715_v37 = vpop.eup %8714  ;;  %v4944_v43 = vadd.f32 1.0, %v8713_v62  ;;  %8728 = vtanh.f32 %v4823_v58 }
0x1238   : >> { %v5010_v3 = vmul.f32 %v4946_v55, %v12112_v6  ;;  %v4830_v57 = vmul.f32 0.7978846, %v4766_v35  ;;  %v4948_v47 = vadd.f32 1.0, %v8715_v37  ;;  %v4508_v1 = vmul.f32 0.5, %v11954_v31  ;;  %v13390_v37 = vld [vmem:[#allocation55_spill] sm:$0xff] }
0x1239   : >> { %8730 = vtanh.f32 %v4827_v8  ;;  %v4834_v42 = vmul.f32 0.7978846, %v4770_v46  ;;  %v4501_v18 = vmul.f32 0.5, %v11907_v22  ;;  %v4768_v36 = vadd.f32 %v12070_v32, %v11988_v63 }
0x123a   : >> { %v5070_v10 = vpack.c.bf16 %v5010_v3, %v5006_v49  ;;  %8732 = vtanh.f32 %v4830_v57  ;;  %v5008_v24 = vmul.f32 %v4944_v43, %v12128_v44  ;;  %v5012_v7 = vmul.f32 %v4948_v47, %v4500_v61 }
0x123b   : >> { %v8717_v38 = vpop.eup %8716  ;;  %8734 = vtanh.f32 %v4834_v42  ;;  %v4772_v6 = vadd.f32 %v12084_v20, %v12014_v0  ;;  %v4505_v58 = vmul.f32 0.5, %v13384_v4  ;;  %v4832_v55 = vmul.f32 0.7978846, %v4768_v36 }
0x123c   : >> { %v8719_v51 = vpop.eup %8718  ;;  %5399 = vmatprep.mubr.bf16.mxu1 %v5070_v10  ;;  %v4950_v31 = vadd.f32 1.0, %v8717_v38  ;;  %v4765_v22 = vadd.f32 %v12054_v60, %v11960_v39  ;;  %v5072_v8 = vpack.c.bf16 %v5012_v7, %v5008_v24  ;;  %v4769_v44 = vadd.f32 %v12073_v25, %v11991_v14 }
0x123d   : >> { %5400 = vmatmul.mubr.bf16.vlgmr.msra.gmra.mrb[112].mxu1 %v5069_v19  ;;  %v4954_v32 = vadd.f32 1.0, %v8719_v51  ;;  %v4836_v35 = vmul.f32 0.7978846, %v4772_v6  ;;  %v8721_v61 = vpop.eup %8720  ;;  %v4503_v20 = vmul.f32 0.5, %v13386_v28  ;;  %8736 = vtanh.f32 %v4832_v55  ;;  %v13392_v55 = vld [vmem:[#allocation82_spill] sm:$0xff] }
0x123e   : >> { %v5014_v62 = vmul.f32 %v4950_v31, %v4502_v30  ;;  %v4829_v49 = vmul.f32 0.7978846, %v4765_v22  ;;  %7817 = vmatpush3.bf16.msra.mxu1 %v13390_v37  ;;  %v8723_v60 = vpop.eup %8722  ;;  %5496 = vmatprep.mubr.bf16.mxu0 %v5072_v8  ;;  %v4952_v3 = vadd.f32 1.0, %v8721_v61  ;;  %v4833_v43 = vmul.f32 0.7978846, %v4769_v44  ;;  %v13391_v30 = vld [vmem:[#allocation63_spill] sm:$0xff] }
0x123f   : >> { %v12196_v46 = vpop.f32.mrb[96].mxu1  ;;  %v12198_v4 = vpop.f32.mrb[128].mxu0  ;;  %v5018_v19 = vmul.f32 %v4954_v32, %v4506_v59  ;;  %8738 = vtanh.f32 %v4836_v35  ;;  %7810 = vmatprep.subr.bf16.mxu1 %v13391_v30  ;;  %5497 = vmatmul.mubr.bf16.vlgmr.msra.gmra.mrb[144].mxu0 %v5071_v48  ;;  %v4956_v47 = vadd.f32 1.0, %v8723_v60  ;;  %v4507_v42 = vmul.f32 0.5, %v13388_v52  ;;  %v13393_v44 = vld [vmem:[#allocation54_spill] sm:$0xff] }
0x1240   : >> { %v12201_v57 = vpop.f32.mrb[97].mxu1  ;;  %v12203_v25 = vpop.f32.mrb[129].mxu0  ;;  %8740 = vtanh.f32 %v4829_v49  ;;  %v4767_v59 = vadd.f32 %v12057_v13, %v11963_v15  ;;  %v5016_v7 = vmul.f32 %v4952_v3, %v4504_v16  ;;  %v4771_v31 = vadd.f32 %v12078_v11, %v11999_v40 }
0x1241   : >> { %v8725_v28 = vpop.eup %8724  ;;  %v12212_v10 = vpop.f32.mrb[98].mxu1  ;;  %v5074_v24 = vpack.c.bf16 %v5018_v19, %v5014_v62  ;;  %8742 = vtanh.f32 %v4833_v43  ;;  %v5020_v48 = vmul.f32 %v4956_v47, %v4508_v1  ;;  %v4510_v16 = vmul.f32 0.5, %v11976_v54 }
0x1242   : >> { %v12214_v36 = vpop.f32.mrb[130].mxu0  ;;  %v8727_v38 = vpop.eup %8726  ;;  %v4949_v6 = vadd.f32 1.0, %v8725_v28  ;;  %v4831_v13 = vmul.f32 0.7978846, %v4767_v59  ;;  %7818 = vmatpush3.bf16.msra.mxu1 %v13392_v55  ;;  %v4514_v35 = vmul.f32 0.5, %v12011_v29  ;;  %v4774_v3 = vadd.f32 %v12102_v41, %v12039_v23  ;;  %v13394_v28 = vld [vmem:[#allocation83_spill] sm:$0xff] }
0x1243   : >> { %v12216_v51 = vpop.f32.mrb[99].mxu1  ;;  %v12218_v21 = vpop.f32.mrb[131].mxu0  ;;  %v4953_v52 = vadd.f32 1.0, %v8727_v38  ;;  %5407 = vmatprep.mubr.bf16.mxu1 %v5074_v24  ;;  %7811 = vmatprep.subr.bf16.mxu1 %v13393_v44  ;;  %v5076_v62 = vpack.c.bf16 %v5020_v48, %v5016_v7  ;;  %v4835_v37 = vmul.f32 0.7978846, %v4771_v31  ;;  %v4778_v47 = vadd.f32 %v12165_v5, %v12087_v50  ;;  %v13396_v44 = vld [vmem:[#allocation68_spill] sm:$0xff] }
0x1244   : >> { %v8729_v26 = vpop.eup %8728  ;;  %v5013_v8 = vmul.f32 %v4949_v6, %v4501_v18  ;;  %8744 = vtanh.f32 %v4831_v13  ;;  %v4838_v59 = vmul.f32 0.7978846, %v4774_v3  ;;  %v4780_v13 = vadd.f32 %v12168_v2, %v12094_v27  ;;  %v13397_v2 = vld [vmem:[#allocation66_spill] sm:$0xff] }
0x1245   : >> { %v8731_v22 = vpop.eup %8730  ;;  %v4951_v32 = vadd.f32 1.0, %v8729_v26  ;;  %v5017_v1 = vmul.f32 %v4953_v52, %v4505_v58  ;;  %5504 = vmatprep.mubr.bf16.mxu0 %v5076_v62  ;;  %8746 = vtanh.f32 %v4835_v37  ;;  %v4512_v58 = vmul.f32 0.5, %v11988_v63 }
0x1246   : >> { %v8733_v61 = vpop.eup %8732  ;;  %v4955_v49 = vadd.f32 1.0, %v8731_v22  ;;  %7819 = vmatpush3.bf16.msra.mxu1 %v13394_v28  ;;  %v4776_v63 = vadd.f32 %v12120_v33, %v12048_v17  ;;  %v4842_v31 = vmul.f32 0.7978846, %v4778_v47  ;;  %8748 = vtanh.f32 %v4838_v59 }
0x1247   : >> { %v8735_v60 = vpop.eup %8734  ;;  %v5015_v11 = vmul.f32 %v4951_v32, %v4503_v20  ;;  %v4958_v19 = vadd.f32 1.0, %v8733_v61  ;;  %v5073_v18 = vpack.c.bf16 %v5017_v1, %v5013_v8  ;;  %v12228_v29 = vpop.f32.mrb[100].mxu1  ;;  %v4516_v20 = vmul.f32 0.5, %v12014_v0 }
0x1248   : >> { %v5019_v43 = vmul.f32 %v4955_v49, %v4507_v42  ;;  %v4962_v54 = vadd.f32 1.0, %v8735_v60  ;;  %v12230_v30 = vpop.f32.mrb[132].mxu0  ;;  %v12237_v41 = vpop.f32.mrb[101].mxu1  ;;  %v13395_v42 = vld [vmem:[#allocation81_spill] sm:$0xff]  ;;  %v4509_v33 = vmul.f32 0.5, %v11960_v39  ;;  %v4513_v62 = vmul.f32 0.5, %v11991_v14 }
0x1249   : >> { %v12239_v38 = vpop.f32.mrb[133].mxu0  ;;  %7812 = vmatprep.subr.bf16.mxu1 %v13395_v42  ;;  %v8737_v24 = vpop.eup %8736  ;;  %5408 = vmatmul.mubr.bf16.gmra.mrb[116].mxu1 %v5073_v18  ;;  %v5022_v6 = vmul.f32 %v4958_v19, %v4510_v16  ;;  %8750 = vtanh.f32 %v4842_v31  ;;  %v4844_v49 = vmul.f32 0.7978846, %v4780_v13  ;;  %v4511_v19 = vmul.f32 0.5, %v11963_v15  ;;  %v13399_v42 = vld [vmem:[#allocation42_spill] sm:$0xff]  ;;  %v13403_v13 = vld [vmem:[#allocation76_spill] sm:$0xff] }
0x124a   : >> { %v5075_v7 = vpack.c.bf16 %v5019_v43, %v5015_v11  ;;  %v5026_v26 = vmul.f32 %v4962_v54, %v4514_v35  ;;  %v12244_v48 = vpop.f32.mrb[102].mxu1  ;;  %v12246_v0 = vpop.f32.mrb[134].mxu0  ;;  %v4960_v52 = vadd.f32 1.0, %v8737_v24  ;;  %v4840_v35 = vmul.f32 0.7978846, %v4776_v63  ;;  %7820 = vmatpush3.bf16.msra.mxu1 %v13396_v44  ;;  %v13400_v24 = vld [vmem:[#allocation41_spill] sm:$0xff] }
0x124b   : >> { %v8739_v5 = vpop.eup %8738  ;;  %v12250_v55 = vpop.f32.mrb[103].mxu1  ;;  %7813 = vmatprep.subr.bf16.mxu1 %v13397_v2  ;;  %v4773_v39 = vadd.f32 %v12090_v34, %v12017_v56  ;;  %v4777_v3 = vadd.f32 %v12125_v12, %v12051_v53  ;;  %v4515_v54 = vmul.f32 0.5, %v11999_v40  ;;  %v4775_v34 = vadd.f32 %v13400_v24, %v13399_v42  ;;  %v13401_v40 = vld [vmem:[#allocation65_spill] sm:$0xff]  ;;  %v13404_v2 = vld [vmem:[#allocation74_spill] sm:$0xff] }
0x124c   : >> { %v12252_v22 = vpop.f32.mrb[135].mxu0  ;;  %v8741_v8 = vpop.eup %8740  ;;  %5505 = vmatmul.mubr.bf16.gmra.mrb[148].mxu0 %v5075_v7  ;;  %v5078_v32 = vpack.c.bf16 %v5026_v26, %v5022_v6  ;;  %v4964_v16 = vadd.f32 1.0, %v8739_v5  ;;  %v5024_v37 = vmul.f32 %v4960_v52, %v4512_v58  ;;  %8752 = vtanh.f32 %v4840_v35  ;;  %v13402_v52 = vld [vmem:[#allocation73_spill] sm:$0xff] }
0x124d   : >> { %v8743_v61 = vpop.eup %8742  ;;  %v4957_v1 = vadd.f32 1.0, %v8741_v8  ;;  %8754 = vtanh.f32 %v4844_v49  ;;  %v4837_v15 = vmul.f32 0.7978846, %v4773_v39  ;;  %v4841_v59 = vmul.f32 0.7978846, %v4777_v3 }
0x124e   : >> { %5415 = vmatprep.mubr.bf16.mxu1 %v5078_v32  ;;  %v5028_v60 = vmul.f32 %v4964_v16, %v4516_v20  ;;  %v4961_v11 = vadd.f32 1.0, %v8743_v61  ;;  %v13398_v20 = vld [vmem:[#allocation67_spill] sm:$0xff]  ;;  %v8745_v47 = vpop.eup %8744  ;;  %v4779_v12 = vadd.f32 %v12157_v9, %v12061_v45  ;;  %v12280_v31 = vadd.f32 %v12196_v46, %v13402_v52 }
0x124f   : >> { %v5021_v18 = vmul.f32 %v4957_v1, %v4509_v33  ;;  %v12264_v28 = vpop.f32.mrb[104].mxu1  ;;  %v12266_v58 = vpop.f32.mrb[136].mxu0  ;;  %7821 = vmatpush3.bf16.msra.mxu1 %v13398_v20  ;;  %v4959_v5 = vadd.f32 1.0, %v8745_v47  ;;  %v12284_v8 = vadd.f32 %v12198_v4, %v13403_v13  ;;  %8756 = vtanh.f32 %v4837_v15 }
0x1250   : >> { %v5080_v14 = vpack.c.bf16 %v5028_v60, %v5024_v37  ;;  %v5025_v43 = vmul.f32 %v4961_v11, %v4513_v62  ;;  %v12273_v7 = vpop.f32.mrb[105].mxu1  ;;  %v12275_v6 = vpop.f32.mrb[137].mxu0  ;;  %7814 = vmatprep.subr.bf16.mxu1 %v13401_v40  ;;  %v4839_v33 = vmul.f32 0.7978846, %v4775_v34  ;;  %v4843_v35 = vmul.f32 0.7978846, %v4779_v12 }
0x1251   : >> { %v8747_v26 = vpop.eup %8746  ;;  %v12286_v32 = vpop.f32.mrb[106].mxu1  ;;  %v5023_v61 = vmul.f32 %v4959_v5, %v4511_v19  ;;  %v4518_v62 = vmul.f32 0.5, %v12039_v23  ;;  %8758 = vtanh.f32 %v4841_v59  ;;  %v4589_v49 = vmul.f32 0.044715, %v12280_v31  ;;  %v13405_v60 = vld [vmem:[#allocation71_spill] sm:$0xff]  ;;  %v13406_v23 = vld [vmem:[#allocation69_spill] sm:$0xff] }
0x1252   : >> { %5512 = vmatprep.mubr.bf16.mxu0 %v5080_v14  ;;  %v5077_v63 = vpack.c.bf16 %v5025_v43, %v5021_v18  ;;  %v12288_v9 = vpop.f32.mrb[138].mxu0  ;;  %v4963_v16 = vadd.f32 1.0, %v8747_v26  ;;  %v12290_v44 = vpop.f32.mrb[107].mxu1  ;;  %8760 = vtanh.f32 %v4839_v33  ;;  %v12298_v37 = vadd.f32 %v12201_v57, %v13404_v2 }
0x1253   : >> { %v12293_v46 = vpop.f32.mrb[139].mxu0  ;;  %v8749_v1 = vpop.eup %8748  ;;  %7822 = vmatpush3.bf16.msra.mxu1 %v13405_v60  ;;  %v4522_v11 = vmul.f32 0.5, %v12087_v50  ;;  %v4520_v19 = vmul.f32 0.5, %v12048_v17  ;;  %8762 = vtanh.f32 %v4843_v35  ;;  %v4591_v18 = vmul.f32 0.044715, %v12284_v8 }
0x1254   : >> { %5416 = vmatmul.mubr.bf16.gmra.mrb[120].mxu1 %v5077_v63  ;;  %v5027_v4 = vmul.f32 %v4963_v16, %v4515_v54  ;;  %v4966_v39 = vadd.f32 1.0, %v8749_v1  ;;  %7815 = vmatprep.subr.bf16.mxu1 %v13406_v23  ;;  %v8751_v3 = vpop.eup %8750  ;;  %v4590_v43 = vmul.f32 0.044715, %v12298_v37  ;;  %v13407_v54 = vld [vmem:[#allocation79_spill] sm:$0xff]  ;;  %v4524_v50 = vmul.f32 0.5, %v12094_v27 }
0x1255   : >> { %v12308_v57 = vadd.f32 %v12203_v25, %v13407_v54  ;;  %v4970_v47 = vadd.f32 1.0, %v8751_v3  ;;  %v4517_v15 = vmul.f32 0.5, %v12017_v56  ;;  %v4521_v17 = vmul.f32 0.5, %v12051_v53  ;;  %v13408_v53 = vld [vmem:[#allocation72_spill] sm:$0xff] }
0x1256   : >> { %v5079_v14 = vpack.c.bf16 %v5027_v4, %v5023_v61  ;;  %v8753_v20 = vpop.eup %8752  ;;  %v4519_v40 = vmul.f32 0.5, %v13399_v42  ;;  %v4653_v25 = vmul.f32 %v4589_v49, %v12280_v31  ;;  %v12321_v26 = vadd.f32 %v12212_v10, %v13402_v52  ;;  %v13409_v61 = vld [vmem:[#allocation70_spill] sm:$0xff] }
0x1257   : >> { %v12313_v59 = vpop.f32.mrb[108].mxu1  ;;  %v12315_v24 = vpop.f32.mrb[140].mxu0  ;;  %v4968_v12 = vadd.f32 1.0, %v8753_v20  ;;  %7823 = vmatpush3.bf16.msra.mxu1 %v13408_v53  ;;  %v5030_v63 = vmul.f32 %v4966_v39, %v4518_v62  ;;  %v5034_v5 = vmul.f32 %v4970_v47, %v4522_v11  ;;  %v12330_v33 = vadd.f32 %v12214_v36, %v13403_v13  ;;  %v13410_v20 = vld [vmem:[#allocation75_spill] sm:$0xff] }
0x1258   : >> { %v8755_v34 = vpop.eup %8754  ;;  %5513 = vmatmul.mubr.bf16.gmra.mrb[152].mxu0 %v5079_v14  ;;  %v12323_v27 = vpop.f32.mrb[109].mxu1  ;;  %7816 = vmatprep.subr.bf16.mxu1 %v13409_v61  ;;  %v4523_v10 = vmul.f32 0.5, %v12061_v45  ;;  %v4655_v1 = vmul.f32 %v4591_v18, %v12284_v8  ;;  %v4654_v4 = vmul.f32 %v4590_v43, %v12298_v37  ;;  %v4592_v62 = vmul.f32 0.044715, %v12308_v57 }
0x1259   : >> { %v12325_v56 = vpop.f32.mrb[141].mxu0  ;;  %v4972_v16 = vadd.f32 1.0, %v8755_v34  ;;  %v12332_v42 = vpop.f32.mrb[110].mxu1  ;;  %v5082_v36 = vpack.c.bf16 %v5034_v5, %v5030_v63  ;;  %v5032_v11 = vmul.f32 %v4968_v12, %v4520_v19  ;;  %v12347_v23 = vadd.f32 %v12216_v51, %v13404_v2 }
0x125a   : >> { %v12334_v35 = vpop.f32.mrb[142].mxu0  ;;  %v12341_v49 = vpop.f32.mrb[111].mxu1  ;;  %v12350_v45 = vmul.f32 %v4653_v25, %v12280_v31  ;;  %v4593_v14 = vmul.f32 0.044715, %v12321_v26  ;;  %v4595_v18 = vmul.f32 0.044715, %v12330_v33  ;;  %v12356_v43 = vadd.f32 %v12218_v21, %v13407_v54 }
0x125b   : >> { %v12343_v60 = vpop.f32.mrb[143].mxu0  ;;  %v5036_v39 = vmul.f32 %v4972_v16, %v4524_v50  ;;  %v8757_v3 = vpop.eup %8756  ;;  %7824 = vmatpush3.bf16.msra.mxu1 %v13410_v20  ;;  %5423 = vmatprep.mubr.bf16.mxu1 %v5082_v36  ;;  %v12361_v51 = vadd.f32 %v12228_v29, %v13402_v52  ;;  %v12365_v34 = vadd.f32 %v12230_v30, %v13403_v13  ;;  %v4594_v30 = vmul.f32 0.044715, %v12347_v23 }
0x125c   : >> { %v8759_v19 = vpop.eup %8758  ;;  %v4965_v50 = vadd.f32 1.0, %v8757_v3  ;;  %v12368_v53 = vmul.f32 %v4655_v1, %v12284_v8  ;;  %v4656_v21 = vmul.f32 %v4592_v62, %v12308_v57  ;;  %v12373_v63 = vadd.f32 %v12237_v41, %v13404_v2 }
0x125d   : >> { %v5084_v47 = vpack.c.bf16 %v5036_v39, %v5032_v11  ;;  %13411 = vst [vmem:[#allocation40_spill] sm:$0xff] %v12365_v34  ;;  %v8761_v12 = vpop.eup %8760  ;;  %v4969_v25 = vadd.f32 1.0, %v8759_v19  ;;  %v12376_v29 = vmul.f32 %v4654_v4, %v12298_v37  ;;  %v4596_v61 = vmul.f32 0.044715, %v12356_v43 }
0x125e   : >> { %v8763_v5 = vpop.eup %8762  ;;  %v4967_v16 = vadd.f32 1.0, %v8761_v12  ;;  %v5029_v36 = vmul.f32 %v4965_v50, %v4517_v15  ;;  %v4657_v39 = vmul.f32 %v4593_v14, %v12321_v26  ;;  %v4659_v62 = vmul.f32 %v4595_v18, %v12330_v33 }
0x125f   : >> { %5520 = vmatprep.mubr.bf16.mxu0 %v5084_v47  ;;  %v5033_v11 = vmul.f32 %v4969_v25, %v4521_v17  ;;  %v4971_v1 = vadd.f32 1.0, %v8763_v5  ;;  %v4597_v41 = vmul.f32 0.044715, %v12361_v51  ;;  %v4599_v3 = vmul.f32 0.044715, %v12365_v34 }
0x1260   : >> { %v12386_v20 = vadd.f32 %v12239_v38, %v13407_v54  ;;  %v5031_v19 = vmul.f32 %v4967_v16, %v4519_v40  ;;  %v4598_v12 = vmul.f32 0.044715, %v12373_v63  ;;  %v4658_v15 = vmul.f32 %v4594_v30, %v12347_v23 }
0x1261   : >> { %v5081_v4 = vpack.c.bf16 %v5033_v11, %v5029_v36  ;;  %v5035_v47 = vmul.f32 %v4971_v1, %v4523_v10  ;;  %v4660_v17 = vmul.f32 %v4596_v61, %v12356_v43  ;;  %v12394_v18 = vadd.f32 %v12244_v48, %v13402_v52 }
0x1262   : >> { %v4600_v14 = vmul.f32 0.044715, %v12386_v20  ;;  %v12398_v38 = vadd.f32 %v12246_v0, %v13403_v13  ;;  %v12402_v40 = vadd.f32 %v12250_v55, %v13404_v2  ;;  %v12406_v10 = vadd.f32 %v12252_v22, %v13407_v54 }
0x1263   : >> { %5424 = vmatmul.mubr.bf16.gmra.mrb[124].mxu1 %v5081_v4  ;;  %v5083_v50 = vpack.c.bf16 %v5035_v47, %v5031_v19  ;;  %v12409_v25 = vmul.f32 %v4656_v21, %v12308_v57  ;;  %v12412_v48 = vmul.f32 %v4657_v39, %v12321_v26  ;;  %v4661_v5 = vmul.f32 %v4597_v41, %v12361_v51 }
0x1264   : >> { %13412 = vst [vmem:[#allocation39_spill] sm:$0xff] %v12398_v38  ;;  %v4663_v16 = vmul.f32 %v4599_v3, %v12365_v34  ;;  %v4662_v0 = vmul.f32 %v4598_v12, %v12373_v63  ;;  %v4664_v55 = vmul.f32 %v4600_v14, %v12386_v20  ;;  %v4601_v30 = vmul.f32 0.044715, %v12394_v18 }
0x1265   : >> { %5521 = vmatmul.mubr.bf16.gmra.mrb[156].mxu0 %v5083_v50  ;;  %v12421_v22 = vadd.f32 %v12264_v28, %v13402_v52  ;;  %v12424_v21 = vmul.f32 %v4659_v62, %v12330_v33  ;;  %v4603_v61 = vmul.f32 0.044715, %v12398_v38  ;;  %v4475_v36 = vadd.f32 %v12266_v58, %v13403_v13 }
0x1266   : >> { %v12431_v11 = vadd.f32 %v12273_v7, %v13404_v2  ;;  %v12434_v1 = vmul.f32 %v4658_v15, %v12347_v23  ;;  %v12437_v39 = vmul.f32 %v4660_v17, %v12356_v43  ;;  %v4602_v28 = vmul.f32 0.044715, %v12402_v40 }
0x1267   : >> { %13413 = vst [vmem:[#allocation38_spill] sm:$0xff] %v12421_v22  ;;  %v4604_v62 = vmul.f32 0.044715, %v12406_v10  ;;  %v12442_v41 = vmul.f32 %v4661_v5, %v12361_v51  ;;  %v4605_v3 = vmul.f32 0.044715, %v12421_v22  ;;  %v12447_v7 = vmul.f32 %v4663_v16, %v12365_v34 }
0x1268   : >> { %v4607_v58 = vmul.f32 0.044715, %v4475_v36  ;;  %v4606_v4 = vmul.f32 0.044715, %v12431_v11  ;;  %v12450_v19 = vmul.f32 %v4662_v0, %v12373_v63  ;;  %v12453_v47 = vmul.f32 %v4664_v55, %v12386_v20 }
0x1269   : >> { %13414 = vst [vmem:[#allocation37_spill] sm:$0xff] %v12447_v7  ;;  %v4665_v12 = vmul.f32 %v4601_v30, %v12394_v18  ;;  %v4667_v15 = vmul.f32 %v4603_v61, %v12398_v38  ;;  %v12459_v14 = vadd.f32 %v12275_v6, %v13407_v54  ;;  %v12463_v50 = vadd.f32 %v12286_v32, %v13402_v52 }
0x126a   : >> { %v4671_v17 = vmul.f32 %v4607_v58, %v4475_v36  ;;  %v4666_v5 = vmul.f32 %v4602_v28, %v12402_v40  ;;  %v4479_v16 = vadd.f32 %v12288_v9, %v13403_v13  ;;  %v12470_v0 = vadd.f32 %v12290_v44, %v13404_v2 }
0x126b   : >> { %v12474_v55 = vadd.f32 %v12293_v46, %v13407_v54  ;;  %v4668_v6 = vmul.f32 %v4604_v62, %v12406_v10  ;;  %v4669_v30 = vmul.f32 %v4605_v3, %v12421_v22  ;;  %v4670_v32 = vmul.f32 %v4606_v4, %v12431_v11 }
0x126c   : >> { %v4735_v61 = vmul.f32 %v4671_v17, %v4475_v36  ;;  %v12480_v28 = vmul.f32 %v4665_v12, %v12394_v18  ;;  %v4608_v9 = vmul.f32 0.044715, %v12459_v14  ;;  %v4611_v58 = vmul.f32 0.044715, %v4479_v16 }
0x126d   : >> { %v12485_v44 = vadd.f32 %v12313_v59, %v13402_v52  ;;  %v12488_v46 = vmul.f32 %v4667_v15, %v12398_v38  ;;  %v12490_v7 = vmul.f32 0.5, %v4475_v36  ;;  %v4609_v62 = vmul.f32 0.044715, %v12463_v50 }
0x126e   : >> { %v4610_v3 = vmul.f32 0.044715, %v12470_v0  ;;  %v4799_v4 = vadd.f32 %v4735_v61, %v4475_v36  ;;  %v4675_v17 = vmul.f32 %v4611_v58, %v4479_v16  ;;  %v4612_v12 = vmul.f32 0.044715, %v12474_v55 }
0x126f   : >> { %13415 = vst [vmem:[#allocation36_spill] sm:$0xff] %v12488_v46  ;;  %13416 = vst [vmem:[#allocation35_spill] sm:$0xff] %v12490_v7  ;;  %v12497_v34 = vadd.f32 %v12315_v24, %v13403_v13  ;;  %v12500_v59 = vmul.f32 %v4666_v5, %v12402_v40  ;;  %v12503_v15 = vmul.f32 %v4668_v6, %v12406_v10  ;;  %v4613_v58 = vmul.f32 0.044715, %v12485_v44 }
0x1270   : >> { %v12506_v7 = vmul.f32 %v4669_v30, %v12421_v22  ;;  %v12509_v46 = vmul.f32 %v4670_v32, %v12431_v11  ;;  %v4672_v36 = vmul.f32 %v4608_v9, %v12459_v14  ;;  %v4739_v61 = vmul.f32 %v4675_v17, %v4479_v16 }
0x1271   : >> { %v4615_v24 = vmul.f32 0.044715, %v12497_v34  ;;  %v4673_v38 = vmul.f32 %v4609_v62, %v12463_v50  ;;  %v4674_v5 = vmul.f32 %v4610_v3, %v12470_v0  ;;  %v12518_v6 = vadd.f32 %v12323_v27, %v13404_v2 }
0x1272   : >> { %13417 = vst [vmem:[#allocation34_spill] sm:$0xff] %v12506_v7  ;;  %13418 = vst [vmem:[#allocation33_spill] sm:$0xff] %v12509_v46  ;;  %v12522_v30 = vadd.f32 %v12325_v56, %v13407_v54  ;;  %v4863_v32 = vmul.f32 0.7978846, %v4799_v4  ;;  %v4803_v7 = vadd.f32 %v4739_v61, %v4479_v16  ;;  %v4676_v9 = vmul.f32 %v4612_v12, %v12474_v55 }
0x1273   : >> { %v12527_v17 = vadd.f32 %v12332_v42, %v13402_v52  ;;  %v4614_v62 = vmul.f32 0.044715, %v12518_v6  ;;  %v12533_v27 = vadd.f32 %v12334_v35, %v13403_v13  ;;  %v12537_v56 = vadd.f32 %v12341_v49, %v13404_v2 }
0x1274   : >> { %v4616_v3 = vmul.f32 0.044715, %v12522_v30  ;;  %v4867_v4 = vmul.f32 0.7978846, %v4803_v7  ;;  %v4677_v61 = vmul.f32 %v4613_v58, %v12485_v44  ;;  %v4679_v12 = vmul.f32 %v4615_v24, %v12497_v34 }
0x1275   : >> { %v4617_v52 = vmul.f32 0.044715, %v12527_v17  ;;  %v12543_v42 = vmul.f32 %v4672_v36, %v12459_v14  ;;  %v12545_v22 = vmul.f32 0.5, %v4479_v16  ;;  %v4618_v46 = vmul.f32 0.044715, %v12537_v56 }
0x1276   : >> { %v12550_v13 = vadd.f32 %v12343_v60, %v13407_v54  ;;  %v12553_v2 = vmul.f32 %v4673_v38, %v12463_v50  ;;  %v12556_v35 = vmul.f32 %v4674_v5, %v12470_v0  ;;  %v4678_v49 = vmul.f32 %v4614_v62, %v12518_v6 }
0x1277   : >> { %v4680_v7 = vmul.f32 %v4616_v3, %v12522_v30  ;;  %8764 = vtanh.f32 %v4863_v32  ;;  %v12561_v16 = vmul.f32 %v4676_v9, %v12474_v55  ;;  %v4681_v36 = vmul.f32 %v4617_v52, %v12527_v17 }
0x1278   : >> { %v4619_v58 = vmul.f32 0.044715, %v12533_v27  ;;  %8766 = vtanh.f32 %v4867_v4  ;;  %v12566_v54 = vmul.f32 %v4677_v61, %v12485_v44  ;;  %v12569_v60 = vmul.f32 %v4679_v12, %v12497_v34 }
0x1279   : >> { %v4782_v38 = vadd.f32 %v12376_v29, %v12298_v37  ;;  %v4682_v24 = vmul.f32 %v4618_v46, %v12537_v56  ;;  %v12575_v5 = vmul.f32 0.044715, %v12550_v13  ;;  %v12578_v32 = vmul.f32 0.5, %v12298_v37 }
0x127a   : >> { %13419 = vst [vmem:[#allocation32_spill] sm:$0xff] %v12569_v60  ;;  %v4786_v9 = vadd.f32 %v12434_v1, %v12347_v23  ;;  %v12583_v62 = vmul.f32 %v4678_v49, %v12518_v6  ;;  %v12586_v3 = vmul.f32 %v4680_v7, %v12522_v30  ;;  %v4784_v29 = vadd.f32 %v12409_v25, %v12308_v57 }
0x127b   : >> { %v4846_v4 = vmul.f32 0.7978846, %v4782_v38  ;;  %v12591_v46 = vmul.f32 %v4681_v36, %v12527_v17  ;;  %v12594_v61 = vmul.f32 %v4619_v58, %v12533_v27  ;;  %v4788_v1 = vadd.f32 %v12437_v39, %v12356_v43 }
0x127c   : >> { %v4850_v37 = vmul.f32 0.7978846, %v4786_v9  ;;  %v4848_v12 = vmul.f32 0.7978846, %v4784_v29  ;;  %v4781_v52 = vadd.f32 %v12350_v45, %v12280_v31  ;;  %v4785_v49 = vadd.f32 %v12412_v48, %v12321_v26 }
0x127d   : >> { %8768 = vtanh.f32 %v4846_v4  ;;  %v12603_v25 = vmul.f32 %v4682_v24, %v12537_v56  ;;  %v4530_v7 = vmul.f32 0.5, %v12347_v23  ;;  %v4852_v36 = vmul.f32 0.7978846, %v4788_v1 }
0x127e   : >> { %8770 = vtanh.f32 %v4850_v37  ;;  %v4845_v58 = vmul.f32 0.7978846, %v4781_v52  ;;  %v4849_v38 = vmul.f32 0.7978846, %v4785_v49  ;;  %v4783_v39 = vadd.f32 %v12368_v53, %v12284_v8 }
0x127f   : >> { %8772 = vtanh.f32 %v4848_v12  ;;  %v4528_v9 = vmul.f32 0.5, %v12308_v57  ;;  %v4532_v45 = vmul.f32 0.5, %v12356_v43  ;;  %v4787_v48 = vadd.f32 %v12424_v21, %v12330_v33 }
0x1280   : >> { %8774 = vtanh.f32 %v4852_v36  ;;  %v4847_v24 = vmul.f32 0.7978846, %v4783_v39  ;;  %v4790_v23 = vadd.f32 %v12450_v19, %v12373_v63  ;;  %v4794_v4 = vadd.f32 %v12500_v59, %v12402_v40  ;;  %v13421_v39 = vld [vmem:[#allocation37_spill] sm:$0xff] }
0x1281   : >> { %8776 = vtanh.f32 %v4845_v58  ;;  %v12616_v29 = vpop.eup %8764  ;;  %v4525_v53 = vmul.f32 0.5, %v12280_v31  ;;  %v12620_v57 = vmul.f32 0.5, %v12321_v26  ;;  %v4851_v43 = vmul.f32 0.7978846, %v4787_v48 }
0x1282   : >> { %8778 = vtanh.f32 %v4849_v38  ;;  %v12622_v37 = vpop.eup %8766  ;;  %v4854_v21 = vmul.f32 0.7978846, %v4790_v23  ;;  %v4858_v1 = vmul.f32 0.7978846, %v4794_v4  ;;  %v4792_v19 = vadd.f32 %v12453_v47, %v12386_v20  ;;  %v13423_v4 = vld [vmem:[#allocation36_spill] sm:$0xff] }
0x1283   : >> { %8780 = vtanh.f32 %v4847_v24  ;;  %v4527_v12 = vmul.f32 0.5, %v12284_v8  ;;  %v12628_v59 = vmul.f32 0.5, %v12330_v33  ;;  %v4796_v31 = vadd.f32 %v12503_v15, %v12406_v10  ;;  %v13420_v15 = vld [vmem:[#allocation40_spill] sm:$0xff] }
0x1284   : >> { %8782 = vtanh.f32 %v4851_v43  ;;  %v4856_v26 = vmul.f32 0.7978846, %v4792_v19  ;;  %v4789_v52 = vadd.f32 %v12442_v41, %v12361_v51  ;;  %v4793_v49 = vadd.f32 %v12480_v28, %v12394_v18  ;;  %v13422_v28 = vld [vmem:[#allocation39_spill] sm:$0xff] }
0x1285   : >> { %8784 = vtanh.f32 %v4854_v21  ;;  %v4534_v36 = vmul.f32 0.5, %v12373_v63  ;;  %v12638_v47 = vmul.f32 0.5, %v12402_v40  ;;  %v4860_v8 = vmul.f32 0.7978846, %v4796_v31 }
0x1286   : >> { %8786 = vtanh.f32 %v4858_v1  ;;  %v4853_v58 = vmul.f32 0.7978846, %v4789_v52  ;;  %v4857_v38 = vmul.f32 0.7978846, %v4793_v49  ;;  %v4791_v48 = vadd.f32 %v13421_v39, %v13420_v15 }
0x1287   : >> { %v8769_v33 = vpop.eup %8768  ;;  %8788 = vtanh.f32 %v4856_v26  ;;  %v4536_v41 = vmul.f32 0.5, %v12386_v20  ;;  %v4795_v63 = vadd.f32 %v13423_v4, %v13422_v28  ;;  %v12646_v21 = vmul.f32 0.5, %v12406_v10 }
0x1288   : >> { %v8771_v24 = vpop.eup %8770  ;;  %v4974_v23 = vadd.f32 1.0, %v8769_v33  ;;  %8790 = vtanh.f32 %v4860_v8  ;;  %v4855_v1 = vmul.f32 0.7978846, %v4791_v48  ;;  %v13424_v8 = vld [vmem:[#allocation33_spill] sm:$0xff]  ;;  %v4802_v10 = vadd.f32 %v12556_v35, %v12470_v0 }
0x1289   : >> { %v8773_v43 = vpop.eup %8772  ;;  %v4978_v40 = vadd.f32 1.0, %v8771_v24  ;;  %8792 = vtanh.f32 %v4853_v58  ;;  %v4859_v52 = vmul.f32 0.7978846, %v4795_v63  ;;  %v4798_v39 = vadd.f32 %v13424_v8, %v12431_v11 }
0x128a   : >> { %v8775_v19 = vpop.eup %8774  ;;  %v5038_v31 = vmul.f32 %v4974_v23, %v12578_v32  ;;  %v4976_v26 = vadd.f32 1.0, %v8773_v43  ;;  %8794 = vtanh.f32 %v4857_v38 }
0x128b   : >> { %v8777_v49 = vpop.eup %8776  ;;  %v5042_v33 = vmul.f32 %v4978_v40, %v4530_v7  ;;  %v4980_v20 = vadd.f32 1.0, %v8775_v19  ;;  %8796 = vtanh.f32 %v4855_v1  ;;  %v4862_v38 = vmul.f32 0.7978846, %v4798_v39 }
0x128c   : >> { %v8779_v4 = vpop.eup %8778  ;;  %v5040_v24 = vmul.f32 %v4976_v26, %v4528_v9  ;;  %v4973_v60 = vadd.f32 1.0, %v8777_v49  ;;  %8798 = vtanh.f32 %v4859_v52  ;;  %v4533_v40 = vmul.f32 0.5, %v12361_v51 }
0x128d   : >> { %v8781_v58 = vpop.eup %8780  ;;  %v5086_v48 = vpack.c.bf16 %v5042_v33, %v5038_v31  ;;  %v5044_v32 = vmul.f32 %v4980_v20, %v4532_v45  ;;  %v4977_v23 = vadd.f32 1.0, %v8779_v4  ;;  %v4866_v1 = vmul.f32 0.7978846, %v4802_v10  ;;  %v13425_v33 = vld [vmem:[#allocation38_spill] sm:$0xff] }
0x128e   : >> { %v8783_v63 = vpop.eup %8782  ;;  %v5037_v43 = vmul.f32 %v4973_v60, %v4525_v53  ;;  %v4975_v7 = vadd.f32 1.0, %v8781_v58  ;;  %8800 = vtanh.f32 %v4862_v38  ;;  %v4537_v45 = vmul.f32 0.5, %v12394_v18  ;;  %v13426_v20 = vld [vmem:[#allocation34_spill] sm:$0xff] }
0x128f   : >> { %v8785_v19 = vpop.eup %8784  ;;  %5431 = vmatprep.mubr.bf16.mxu1 %v5086_v48  ;;  %v5088_v8 = vpack.c.bf16 %v5044_v32, %v5040_v24  ;;  %v5041_v9 = vmul.f32 %v4977_v23, %v12620_v57  ;;  %v4979_v26 = vadd.f32 1.0, %v8783_v63  ;;  %8802 = vtanh.f32 %v4866_v1 }
0x1290   : >> { %v8787_v52 = vpop.eup %8786  ;;  %v5039_v35 = vmul.f32 %v4975_v7, %v4527_v12  ;;  %v4982_v49 = vadd.f32 1.0, %v8785_v19  ;;  %v4797_v39 = vadd.f32 %v13426_v20, %v13425_v33  ;;  %v4535_v10 = vmul.f32 0.5, %v13420_v15 }
0x1291   : >> { %v8789_v31 = vpop.eup %8788  ;;  %5528 = vmatprep.mubr.bf16.mxu0 %v5088_v8  ;;  %v5085_v60 = vpack.c.bf16 %v5041_v9, %v5037_v43  ;;  %v5043_v53 = vmul.f32 %v4979_v26, %v12628_v59  ;;  %v4986_v51 = vadd.f32 1.0, %v8787_v52  ;;  %v4801_v12 = vadd.f32 %v12553_v2, %v12463_v50 }
0x1292   : >> { %v8791_v4 = vpop.eup %8790  ;;  %v5046_v24 = vmul.f32 %v4982_v49, %v4534_v36  ;;  %v4984_v57 = vadd.f32 1.0, %v8789_v31  ;;  %v4861_v23 = vmul.f32 0.7978846, %v4797_v39  ;;  %v4539_v43 = vmul.f32 0.5, %v13422_v28 }
0x1293   : >> { %v8793_v58 = vpop.eup %8792  ;;  %5432 = vmatmul.mubr.bf16.gmra.mrb[128].mxu1 %v5085_v60  ;;  %v5087_v18 = vpack.c.bf16 %v5043_v53, %v5039_v35  ;;  %v5050_v48 = vmul.f32 %v4986_v51, %v12638_v47  ;;  %v4988_v32 = vadd.f32 1.0, %v8791_v4  ;;  %v4865_v7 = vmul.f32 0.7978846, %v4801_v12 }
0x1294   : >> { %v8795_v59 = vpop.eup %8794  ;;  %v5048_v38 = vmul.f32 %v4984_v57, %v4536_v41  ;;  %v4981_v63 = vadd.f32 1.0, %v8793_v58  ;;  %8804 = vtanh.f32 %v4861_v23  ;;  %v4806_v47 = vadd.f32 %v12583_v62, %v12518_v6 }
0x1295   : >> { %v8797_v36 = vpop.eup %8796  ;;  %5529 = vmatmul.mubr.bf16.gmra.mrb[160].mxu0 %v5087_v18  ;;  %v5090_v1 = vpack.c.bf16 %v5050_v48, %v5046_v24  ;;  %v5052_v15 = vmul.f32 %v4988_v32, %v12646_v21  ;;  %v4985_v19 = vadd.f32 1.0, %v8795_v59  ;;  %8806 = vtanh.f32 %v4865_v7 }
0x1296   : >> { %v8799_v2 = vpop.eup %8798  ;;  %v5045_v8 = vmul.f32 %v4981_v63, %v4533_v40  ;;  %v4983_v9 = vadd.f32 1.0, %v8797_v36  ;;  %v4810_v28 = vadd.f32 %v12603_v25, %v12537_v56  ;;  %v4684_v35 = vmul.f32 %v12575_v5, %v12550_v13 }
0x1297   : >> { %5439 = vmatprep.mubr.bf16.mxu1 %v5090_v1  ;;  %v5092_v41 = vpack.c.bf16 %v5052_v15, %v5048_v38  ;;  %v5049_v26 = vmul.f32 %v4985_v19, %v4537_v45  ;;  %v4987_v52 = vadd.f32 1.0, %v8799_v2  ;;  %v4542_v49 = vmul.f32 0.5, %v12431_v11  ;;  %v13427_v38 = vld [vmem:[#allocation35_spill] sm:$0xff] }
0x1298   : >> { %v5047_v21 = vmul.f32 %v4983_v9, %v4535_v10  ;;  %v4870_v31 = vmul.f32 0.7978846, %v4806_v47  ;;  %v8801_v40 = vpop.eup %8800  ;;  %v4874_v51 = vmul.f32 0.7978846, %v4810_v28  ;;  %v4805_v62 = vadd.f32 %v12566_v54, %v12485_v44 }
0x1299   : >> { %5536 = vmatprep.mubr.bf16.mxu0 %v5092_v41  ;;  %v5089_v60 = vpack.c.bf16 %v5049_v26, %v5045_v8  ;;  %v5051_v53 = vmul.f32 %v4987_v52, %v4539_v43  ;;  %v8803_v45 = vpop.eup %8802  ;;  %v4546_v20 = vmul.f32 0.5, %v12470_v0  ;;  %v4990_v39 = vadd.f32 1.0, %v8801_v40 }
0x129a   : >> { %8808 = vtanh.f32 %v4870_v31  ;;  %v4809_v5 = vadd.f32 %v12591_v46, %v12527_v17  ;;  %v4994_v11 = vadd.f32 1.0, %v8803_v45  ;;  %v4869_v4 = vmul.f32 0.7978846, %v4805_v62 }
0x129b   : >> { %5440 = vmatmul.mubr.bf16.gmra.mrb[132].mxu1 %v5089_v60  ;;  %v5091_v25 = vpack.c.bf16 %v5051_v53, %v5047_v21  ;;  %8810 = vtanh.f32 %v4874_v51  ;;  %v4748_v24 = vmul.f32 %v4684_v35, %v12550_v13  ;;  %v5054_v57 = vmul.f32 %v4990_v39, %v4542_v49 }
0x129c   : >> { %v4873_v10 = vmul.f32 0.7978846, %v4809_v5  ;;  %v4800_v54 = vadd.f32 %v12543_v42, %v12459_v14  ;;  %v5058_v12 = vmul.f32 %v4994_v11, %v4546_v20  ;;  %8812 = vtanh.f32 %v4869_v4 }
0x129d   : >> { %5537 = vmatmul.mubr.bf16.gmra.mrb[164].mxu0 %v5091_v25  ;;  %v4804_v0 = vadd.f32 %v12561_v16, %v12474_v55  ;;  %v4991_v46 = vadd.f32 1.0, %v12616_v29  ;;  %v4747_v58 = vmul.f32 %v12594_v61, %v12533_v27  ;;  %v4995_v48 = vadd.f32 1.0, %v12622_v37 }
0x129e   : >> { %8814 = vtanh.f32 %v4873_v10  ;;  %v4864_v18 = vmul.f32 0.7978846, %v4800_v54  ;;  %v8805_v32 = vpop.eup %8804  ;;  %v5094_v23 = vpack.c.bf16 %v5058_v12, %v5054_v57  ;;  %v4541_v59 = vmul.f32 0.5, %v13425_v33 }
0x129f   : >> { %v4868_v42 = vmul.f32 0.7978846, %v4804_v0  ;;  %v12688_v63 = vmul.f32 %v4991_v46, %v13427_v38  ;;  %v8807_v43 = vpop.eup %8806  ;;  %v4989_v7 = vadd.f32 1.0, %v8805_v32  ;;  %v12691_v16 = vmul.f32 %v4995_v48, %v12545_v22  ;;  %v13428_v22 = vld [vmem:[#allocation32_spill] sm:$0xff] }
0x12a0   : >> { %8816 = vtanh.f32 %v4864_v18  ;;  %v4808_v61 = vadd.f32 %v12586_v3, %v12522_v30  ;;  %5447 = vmatprep.mubr.bf16.mxu1 %v5094_v23  ;;  %v4545_v29 = vmul.f32 0.5, %v12463_v50  ;;  %v4993_v37 = vadd.f32 1.0, %v8807_v43 }
0x12a1   : >> { %8818 = vtanh.f32 %v4868_v42  ;;  %v4812_v33 = vadd.f32 %v4748_v24, %v12550_v13  ;;  %v5053_v36 = vmul.f32 %v4989_v7, %v4541_v59  ;;  %v5095_v1 = vpack.c.bf16 %v12691_v16, %v12688_v63  ;;  %v12716_v16 = vld [vmem:[%s5167_s2] ss:$0 sm:$0xff]  ;;  %s9164_s2 = sshll.u32 (%p12783_p8), %s9402_s6, 4  ;;  %s9165_s2 = int_to_ptr.vmem [resolvable:$false] %s9164_s2 }
0x12a2   : >> { %v4872_v15 = vmul.f32 0.7978846, %v4808_v61  ;;  %v5057_v19 = vmul.f32 %v4993_v37, %v4545_v29  ;;  %v4807_v8 = vadd.f32 %v13428_v22, %v12497_v34  ;;  %v4811_v9 = vadd.f32 %v4747_v58, %v12533_v27  ;;  %s9166_s18 = scalar_lea.vmem (%p12783_p8), %s9165_s2, 512  ;;  %p9167_p6 = scmp.lt.s32.totalorder (%p12783_p8), %s12945_s26, %s9165_s2 }
0x12a3   : >> { %v4876_v2 = vmul.f32 0.7978846, %v4812_v33  ;;  %v4550_v52 = vmul.f32 0.5, %v12518_v6  ;;  %v4554_v28 = vmul.f32 0.5, %v12537_v56  ;;  %v4549_v51 = vmul.f32 0.5, %v12485_v44  ;;  %p9168_p5 = scmp.lt.s32.totalorder (%p12783_p8), %s9166_s18, %s9160_s1 }
0x12a4   : >> { %v8809_v3 = vpop.eup %8808  ;;  %8820 = vtanh.f32 %v4872_v15  ;;  %v5093_v50 = vpack.c.bf16 %v5057_v19, %v5053_v36  ;;  %v4871_v26 = vmul.f32 0.7978846, %v4807_v8  ;;  %v4875_v21 = vmul.f32 0.7978846, %v4811_v9 }
0x12a5   : >> { %v8811_v47 = vpop.eup %8810  ;;  %v4998_v41 = vadd.f32 1.0, %v8809_v3  ;;  %8822 = vtanh.f32 %v4876_v2  ;;  %v4553_v62 = vmul.f32 0.5, %v12527_v17  ;;  %v4544_v11 = vmul.f32 0.5, %v12459_v14  ;;  %v13430_v3 = vld [vmem:[#allocation49_spill] sm:$0xff]  ;;  %p9169_p9 = por (%p12783_p8), %p9168_p5, %p9167_p6 }
0x12a6   : >> { %v5002_v35 = vadd.f32 1.0, %v8811_v47  ;;  %v8813_v49 = vpop.eup %8812  ;;  %5448 = vmatmul.mubr.bf16.gmra.mrb[136].mxu1 %v5093_v50  ;;  %8824 = vtanh.f32 %v4871_v26  ;;  %v4548_v4 = vmul.f32 0.5, %v12474_v55  ;;  %v4552_v46 = vmul.f32 0.5, %v12522_v30 }
0x12a7   : >> { %v5062_v40 = vmul.f32 %v4998_v41, %v4550_v52  ;;  %v4997_v53 = vadd.f32 1.0, %v8813_v49  ;;  %8826 = vtanh.f32 %v4875_v21  ;;  %v4556_v58 = vmul.f32 0.5, %v12550_v13  ;;  %v13432_v41 = vld [vmem:[#allocation50_spill] sm:$0xff]  ;;  %p9170_p12 = pnand (%p12783_p8), %p9169_p9, %p9163_p1 }
0x12a8   : >> { %v8815_v31 = vpop.eup %8814  ;;  %v5066_v60 = vmul.f32 %v5002_v35, %v4554_v28  ;;  %v4551_v59 = vmul.f32 0.5, %v12497_v34  ;;  %v4555_v42 = vmul.f32 0.5, %v12533_v27 }
0x12a9   : >> { %v5001_v45 = vadd.f32 1.0, %v8815_v31  ;;  %v5061_v5 = vmul.f32 %v4997_v53, %v4549_v51 }
0x12aa   : >> { %v8817_v20 = vpop.eup %8816  ;;  %v5098_v39 = vpack.c.bf16 %v5066_v60, %v5062_v40 }
0x12ab   : >> { %v8819_v6 = vpop.eup %8818  ;;  %v5065_v56 = vmul.f32 %v5001_v45, %v4553_v62  ;;  %v4992_v25 = vadd.f32 1.0, %v8817_v20 }
0x12ac   : >> { %5455 = vmatprep.mubr.bf16.mxu1 %v5098_v39  ;;  %v4996_v24 = vadd.f32 1.0, %v8819_v6 }
0x12ad   : >> { %v5097_v57 = vpack.c.bf16 %v5065_v56, %v5061_v5  ;;  %v5056_v54 = vmul.f32 %v4992_v25, %v4544_v11  ;;  %v13434_v5 = vld [vmem:[#allocation84_spill] sm:$0xff]  ;;  %v13436_v25 = vld [vmem:[#allocation85_spill] sm:$0xff] }
0x12ae   : >> { %v8821_v10 = vpop.eup %8820  ;;  %v5060_v12 = vmul.f32 %v4996_v24, %v4548_v4 }
0x12af   : >> { %v8823_v44 = vpop.eup %8822  ;;  %5456 = vmatmul.mubr.bf16.gmra.mrb[140].mxu1 %v5097_v57  ;;  %v5000_v17 = vadd.f32 1.0, %v8821_v10 }
0x12b0   : >> { %v5096_v0 = vpack.c.bf16 %v5060_v12, %v5056_v54  ;;  %v5004_v18 = vadd.f32 1.0, %v8823_v44  ;;  %v8825_v48 = vpop.eup %8824 }
0x12b1   : >> { %v8827_v32 = vpop.eup %8826  ;;  %v5064_v14 = vmul.f32 %v5000_v17, %v4552_v46  ;;  %v4999_v23 = vadd.f32 1.0, %v8825_v48 }
0x12b2   : >> { %5544 = vmatprep.mubr.bf16.mxu1 %v5096_v0  ;;  %v5068_v55 = vmul.f32 %v5004_v18, %v4556_v58  ;;  %v5003_v38 = vadd.f32 1.0, %v8827_v32 }
0x12b3   : >> { %v5063_v43 = vmul.f32 %v4999_v23, %v4551_v59  ;;  %v13438_v59 = vld [vmem:[#allocation52_spill] sm:$0xff] }
0x12b4   : >> { %v5100_v63 = vpack.c.bf16 %v5068_v55, %v5064_v14  ;;  %v5067_v7 = vmul.f32 %v5003_v38, %v4555_v42  ;;  %v13440_v38 = vld [vmem:[#allocation53_spill] sm:$0xff] }
0x12b6   : >> { %v5099_v30 = vpack.c.bf16 %v5067_v7, %v5063_v43 }
0x12b7   : >> { %5545 = vmatmul.mubr.bf16.vlgmr.msra.gmra.mrb[144].mxu1 %v5095_v1 }
0x12b8   : >> { %5552 = vmatprep.mubr.bf16.mxu1 %v5100_v63 }
0x12bf   : >> { %5553 = vmatmul.mubr.bf16.gmra.mrb[148].mxu1 %v5099_v30 }
0x1310   : >> { %v7125_v13 = vpop.f32.mrb[112].mxu1 }
0x1311   : >> { %v7126_v61 = vpop.f32.mrb[113].mxu1 }
0x1312   : >> { %v7127_v29 = vadd.f32 %v7126_v61, %v7125_v13  ;;  %v7128_v34 = vpop.f32.mrb[114].mxu1  ;;  %v7189_v37 = vpop.f32.mrb[144].mxu0 }
0x1313   : >> { %v7129_v27 = vpop.f32.mrb[115].mxu1  ;;  %v7190_v36 = vpop.f32.mrb[145].mxu0 }
0x1314   : >> { %v5402_v33 = vadd.f32 %v7127_v29, %v12716_v16  ;;  %v7130_v15 = vadd.f32 %v7129_v27, %v7128_v34  ;;  %v7191_v1 = vadd.f32 %v7190_v36, %v7189_v37  ;;  %v7192_v19 = vpop.f32.mrb[146].mxu0 }
0x1315   : >> { %v7193_v22 = vpop.f32.mrb[147].mxu0 }
0x1316   : >> { %v5405_v2 = vadd.f32 %v7130_v15, %v12716_v16  ;;  %v5499_v8 = vadd.f32 %v7191_v1, %v5402_v33  ;;  %v7194_v9 = vadd.f32 %v7193_v22, %v7192_v19  ;;  %v13442_v22 = vld [vmem:[#allocation57_spill] sm:$0xff] }
0x1318   : >> { %v12721_v51 = vadd.f32 %v5499_v8, %v13430_v3   ;;  %v5502_v50 = vadd.f32 %v7194_v9, %v5405_v2  ;;  %v13444_v3 = vld [vmem:[#allocation56_spill] sm:$0xff] }
0x131a   : >> { %v13431_v47 = vmov %v12721_v51  ;;  %v12724_v57 = vadd.f32 %v5502_v50, %v13432_v41  }
0x131c   : >> { %v13433_v26 = vmov %v12724_v57  ;;  %v7131_v52 = vpop.f32.mrb[116].mxu1 }
0x131d   : >> { %v7132_v28 = vpop.f32.mrb[117].mxu1 }
0x131e   : >> { %v7133_v21 = vadd.f32 %v7132_v28, %v7131_v52  ;;  %v7134_v49 = vpop.f32.mrb[118].mxu1 }
0x131f   : >> { %v7195_v35 = vpop.f32.mrb[148].mxu0  ;;  %v7135_v40 = vpop.f32.mrb[119].mxu1 }
0x1320   : >> { %v7196_v31 = vpop.f32.mrb[149].mxu0  ;;  %v5410_v60 = vadd.f32 %v7133_v21, %v12716_v16  ;;  %v7136_v45 = vadd.f32 %v7135_v40, %v7134_v49 }
0x1321   : >> { %v7197_v53 = vadd.f32 %v7196_v31, %v7195_v35  ;;  %v7198_v62 = vpop.f32.mrb[150].mxu0 }
0x1322   : >> { %v7199_v20 = vpop.f32.mrb[151].mxu0  ;;  %v5413_v51 = vadd.f32 %v7136_v45, %v12716_v16 }
0x1323   : >> { %v5507_v39 = vadd.f32 %v7197_v53, %v5410_v60  ;;  %v7200_v6 = vadd.f32 %v7199_v20, %v7198_v62 }
0x1325   : >> { %v12729_v43 = vadd.f32 %v5507_v39, %v13434_v5   ;;  %v5510_v56 = vadd.f32 %v7200_v6, %v5413_v51  ;;  %v13446_v6 = vld [vmem:[#allocation60_spill] sm:$0xff] }
0x1327   : >> { %v13435_v4 = vmov %v12729_v43  ;;  %v12732_v55 = vadd.f32 %v5510_v56, %v13436_v25   ;;  %v7137_v11 = vpop.f32.mrb[120].mxu1 }
0x1328   : >> { %v7138_v24 = vpop.f32.mrb[121].mxu1 }
0x1329   : >> { %v13437_v10 = vmov %v12732_v55  ;;  %v7139_v57 = vadd.f32 %v7138_v24, %v7137_v11  ;;  %v7140_v54 = vpop.f32.mrb[122].mxu1  ;;  %v13448_v24 = vld [vmem:[#allocation58_spill] sm:$0xff] }
0x132a   : >> { %v7141_v12 = vpop.f32.mrb[123].mxu1 }
0x132b   : >> { %v7142_v44 = vadd.f32 %v7141_v12, %v7140_v54  ;;  %v7201_v17 = vpop.f32.mrb[152].mxu0  ;;  %v5418_v0 = vadd.f32 %v7139_v57, %v12716_v16 }
0x132c   : >> { %v7202_v46 = vpop.f32.mrb[153].mxu0 }
0x132d   : >> { %v7203_v58 = vadd.f32 %v7202_v46, %v7201_v17  ;;  %v7204_v18 = vpop.f32.mrb[154].mxu0  ;;  %v5421_v48 = vadd.f32 %v7142_v44, %v12716_v16 }
0x132e   : >> { %v7205_v32 = vpop.f32.mrb[155].mxu0 }
0x132f   : >> { %v5515_v14 = vadd.f32 %v7203_v58, %v5418_v0  ;;  %v7206_v23 = vadd.f32 %v7205_v32, %v7204_v18 }
0x1331   : >> { %v12737_v19 = vadd.f32 %v5515_v14, %v13438_v59   ;;  %v5518_v55 = vadd.f32 %v7206_v23, %v5421_v48 }
0x1333   : >> { %v13439_v42 = vmov %v12737_v19  ;;  %v12740_v25 = vadd.f32 %v5518_v55, %v13440_v38   ;;  %v13450_v38 = vld [vmem:[#allocation62_spill] sm:$0xff] }
0x1335   : >> { %v13441_v63 = vmov %v12740_v25 }
0x1336   : >> { %v7143_v43 = vpop.f32.mrb[124].mxu1 }
0x1337   : >> { %v7144_v7 = vpop.f32.mrb[125].mxu1 }
0x1338   : >> { %v7207_v30 = vpop.f32.mrb[156].mxu0  ;;  %v7145_v13 = vadd.f32 %v7144_v7, %v7143_v43  ;;  %v7146_v61 = vpop.f32.mrb[126].mxu1 }
0x1339   : >> { %v7208_v29 = vpop.f32.mrb[157].mxu0  ;;  %v7147_v34 = vpop.f32.mrb[127].mxu1 }
0x133a   : >> { %v5426_v37 = vadd.f32 %v7145_v13, %v12716_v16  ;;  %v7209_v27 = vadd.f32 %v7208_v29, %v7207_v30  ;;  %v7210_v33 = vpop.f32.mrb[158].mxu0  ;;  %v7148_v36 = vadd.f32 %v7147_v34, %v7146_v61 }
0x133b   : >> { %v7211_v15 = vpop.f32.mrb[159].mxu0 }
0x133c   : >> { %v5523_v1 = vadd.f32 %v7209_v27, %v5426_v37  ;;  %v5429_v19 = vadd.f32 %v7148_v36, %v12716_v16  ;;  %v7212_v2 = vadd.f32 %v7211_v15, %v7210_v33 }
0x133e   : >> { %v12745_v11 = vadd.f32 %v5523_v1, %v13442_v22   ;;  %v5526_v9 = vadd.f32 %v7212_v2, %v5429_v19 }
0x1340   : >> { %v13443_v8 = vmov %v12745_v11  ;;  %v12748_v23 = vadd.f32 %v5526_v9, %v13444_v3  }
0x1342   : >> { %v13445_v50 = vmov %v12748_v23 }
0x1366   : >> { %v7149_v41 = vpop.f32.mrb[128].mxu1 }
0x1367   : >> { %v7150_v52 = vpop.f32.mrb[129].mxu1 }
0x1368   : >> { %v7213_v28 = vpop.f32.mrb[160].mxu0  ;;  %v7151_v35 = vadd.f32 %v7150_v52, %v7149_v41  ;;  %v7152_v21 = vpop.f32.mrb[130].mxu1 }
0x1369   : >> { %v7214_v49 = vpop.f32.mrb[161].mxu0  ;;  %v7153_v31 = vpop.f32.mrb[131].mxu1 }
0x136a   : >> { %v5434_v40 = vadd.f32 %v7151_v35, %v12716_v16  ;;  %v7215_v60 = vadd.f32 %v7214_v49, %v7213_v28  ;;  %v7216_v53 = vpop.f32.mrb[162].mxu0  ;;  %v7154_v62 = vadd.f32 %v7153_v31, %v7152_v21  ;;  %v13454_v31 = vld [vmem:[#allocation51_spill] sm:$0xff] }
0x136b   : >> { %v7217_v45 = vpop.f32.mrb[163].mxu0 }
0x136c   : >> { %v5531_v20 = vadd.f32 %v7215_v60, %v5434_v40  ;;  %v5437_v39 = vadd.f32 %v7154_v62, %v12716_v16  ;;  %v7218_v51 = vadd.f32 %v7217_v45, %v7216_v53  ;;  %v13456_v53 = vld [vmem:[#allocation61_spill] sm:$0xff] }
0x136e   : >> { %v12753_v52 = vadd.f32 %v5531_v20, %v13446_v6   ;;  %v5534_v56 = vadd.f32 %v7218_v51, %v5437_v39  ;;  %v7155_v25 = vpop.f32.mrb[132].mxu1 }
0x136f   : >> { %v7156_v11 = vpop.f32.mrb[133].mxu1 }
0x1370   : >> { %v13447_v5 = vmov %v12753_v52  ;;  %v12756_v58 = vadd.f32 %v5534_v56, %v13448_v24   ;;  %v7219_v57 = vpop.f32.mrb[164].mxu0  ;;  %v7157_v12 = vadd.f32 %v7156_v11, %v7155_v25  ;;  %v7158_v44 = vpop.f32.mrb[134].mxu1 }
0x1371   : >> { %v7220_v17 = vpop.f32.mrb[165].mxu0  ;;  %v7159_v0 = vpop.f32.mrb[135].mxu1 }
0x1372   : >> { %v13449_v54 = vmov %v12756_v58  ;;  %v5442_v46 = vadd.f32 %v7157_v12, %v12716_v16  ;;  %v7221_v18 = vadd.f32 %v7220_v17, %v7219_v57  ;;  %v7222_v48 = vpop.f32.mrb[166].mxu0  ;;  %v7160_v32 = vadd.f32 %v7159_v0, %v7158_v44  ;;  %v13452_v58 = vld [vmem:[#allocation59_spill] sm:$0xff]  ;;  %v13458_v12 = vld [vmem:[#allocation64_spill] sm:$0xff] }
0x1373   : >> { %v7223_v14 = vpop.f32.mrb[167].mxu0 }
0x1374   : >> { %v5539_v23 = vadd.f32 %v7221_v18, %v5442_v46  ;;  %v5445_v59 = vadd.f32 %v7160_v32, %v12716_v16  ;;  %v7224_v55 = vadd.f32 %v7223_v14, %v7222_v48  ;;  %v9400_v46 = vmov (%p12783_p8), 0.0   ;;  %v8845_v18 = vld [vmem:[#allocation16] sm:$0xff] (%p12783_p8)   ;;  %v8846_v48 = vld [vmem:[#allocation16 + $0x48] sm:$0xff] (%p12783_p8)   ;;  %v8848_v14 = vld [vmem:[#allocation16 + $0x50] sm:$0xff] (%p12783_p8)  }
0x1375   : > { %7647 = vmatprep.subr.bf16.mxu0 (%p12783_p8), %v9400_v46  ;;  %7667 = vmatprep.subr.bf16.mxu1 (%p12783_p8), %v9400_v46  ;;  %v8847_v32 = vld [vmem:[#allocation16 + $0x8] sm:$0xff] (%p12783_p8)  }
0x1376   : >> { %v12761_v44 = vadd.f32 %v5539_v23, %v13450_v38   ;;  %v5542_v43 = vadd.f32 %v7224_v55, %v5445_v59  ;;  %v13471_v23 = vmov %v13445_v50  ;;  %v13475_v55 = vmov %v13437_v10  ;;  %7663 = vmatprep.mubr.msk.bf16.mxu0 (%p12783_p8), %vm9401_vm5, %v9400_v46  ;;  %7668 = vmatpush3.bf16.msra.mxu1 (%p12783_p8), %v8845_v18  ;;  %v8850_v59 = vld [vmem:[#allocation16 + $0x58] sm:$0xff] (%p12783_p8)   ;;  %v8852_v38 = vld [vmem:[#allocation16 + $0x60] sm:$0xff] (%p12783_p8)   ;;  %v8894_v18 = vld [vmem:[#allocation16 + $0x188] sm:$0xff] (%p12783_p8)  }
0x1377   : > { %7669 = vmatprep.subr.bf16.mxu1 (%p12783_p8), %v9400_v46  ;;  %7683 = vmatprep.mubr.msk.bf16.mxu1 (%p12783_p8), %vm9401_vm5, %v9400_v46  ;;  %v8849_v23 = vld [vmem:[#allocation16 + $0x10] sm:$0xff] (%p12783_p8)   ;;  %v8851_v55 = vld [vmem:[#allocation16 + $0x18] sm:$0xff] (%p12783_p8)  }
0x1378   : >> { %v13451_v7 = vmov %v12761_v44  ;;  %v12764_v56 = vadd.f32 %v5542_v43, %v13452_v58   ;;  %v13469_v58 = vmov %v13449_v54  ;;  %v13476_v43 = vmov %v13435_v4 }
0x1379   : >> { %v7161_v13 = vpop.f32.mrb[136].mxu1  ;;  %v8853_v43 = vld [vmem:[#allocation16 + $0x20] sm:$0xff] (%p12783_p8)   ;;  %v8854_v58 = vld [vmem:[#allocation16 + $0x68] sm:$0xff] (%p12783_p8)  }
0x137a   : >> { %v13453_v30 = vmov %v12764_v56  ;;  %v7162_v61 = vpop.f32.mrb[137].mxu1  ;;  %7670 = vmatpush3.bf16.msra.mxu1 (%p12783_p8), %v8847_v32  ;;  %v8900_v32 = vld [vmem:[#allocation16 + $0x1a0] sm:$0xff] (%p12783_p8)  }
0x137b   : >> { %v7163_v29 = vadd.f32 %v7162_v61, %v7161_v13  ;;  %v7164_v34 = vpop.f32.mrb[138].mxu1  ;;  %7671 = vmatprep.subr.bf16.mxu1 (%p12783_p8), %v9400_v46  ;;  %v8855_v13 = vld [vmem:[#allocation16 + $0x28] sm:$0xff] (%p12783_p8)   ;;  %v8856_v61 = vld [vmem:[#allocation16 + $0x70] sm:$0xff] (%p12783_p8)  }
0x137c   : >> { %v7165_v37 = vpop.f32.mrb[139].mxu1 }
0x137d   : >> { %v7166_v27 = vadd.f32 %v7165_v37, %v7164_v34  ;;  %v5450_v3 = vadd.f32 %v7163_v29, %v12716_v16  ;;  %v8857_v29 = vld [vmem:[#allocation16 + $0x30] sm:$0xff] (%p12783_p8)   ;;  %v8858_v34 = vld [vmem:[#allocation16 + $0x78] sm:$0xff] (%p12783_p8)  }
0x137e   : > { %7672 = vmatpush3.bf16.msra.mxu1 (%p12783_p8), %v8849_v23  ;;  %v8859_v37 = vld [vmem:[#allocation16 + $0x38] sm:$0xff] (%p12783_p8)   ;;  %v8902_v23 = vld [vmem:[#allocation16 + $0x1a8] sm:$0xff] (%p12783_p8)  }
0x137f   : >> { %v5453_v35 = vadd.f32 %v7166_v27, %v12716_v16  ;;  %7673 = vmatprep.subr.bf16.mxu1 (%p12783_p8), %v9400_v46 }
0x1382   : >> { %v7167_v33 = vpop.f32.mrb[140].mxu1  ;;  %7674 = vmatpush3.bf16.msra.mxu1 (%p12783_p8), %v8851_v55  ;;  %v8904_v55 = vld [vmem:[#allocation16 + $0x1b0] sm:$0xff] (%p12783_p8)  }
0x1383   : >> { %v7168_v36 = vpop.f32.mrb[141].mxu1  ;;  %7675 = vmatprep.subr.bf16.mxu1 (%p12783_p8), %v9400_v46 }
0x1384   : >> { %v7169_v15 = vadd.f32 %v7168_v36, %v7167_v33  ;;  %v7170_v1 = vpop.f32.mrb[142].mxu1  ;;  %v5577_v33 = vpack.c.bf16 (%p12783_p8), %v13433_v26, %v13431_v47  ;;  %v8860_v36 = vld [vmem:[#allocation16 + $0x80] sm:$0xff] (%p12783_p8)  }
0x1385   : >> { %v7171_v19 = vpop.f32.mrb[143].mxu1 }
0x1386   : >> { %v7172_v2 = vadd.f32 %v7171_v19, %v7170_v1  ;;  %v5458_v51 = vadd.f32 %v7169_v15, %v12716_v16  ;;  %v13474_v19 = vmov %v13439_v42  ;;  %7676 = vmatpush3.bf16.msra.mxu1 (%p12783_p8), %v8853_v43  ;;  %v8861_v15 = vld [vmem:[#allocation16 + $0xc0] sm:$0xff] (%p12783_p8)   ;;  %v8862_v1 = vld [vmem:[#allocation16 + $0x88] sm:$0xff] (%p12783_p8)   ;;  %v8906_v43 = vld [vmem:[#allocation16 + $0x1b8] sm:$0xff] (%p12783_p8)  }
0x1387   : > { %7677 = vmatprep.subr.bf16.mxu1 (%p12783_p8), %v9400_v46  ;;  %v8863_v19 = vld [vmem:[#allocation16 + $0xc8] sm:$0xff] (%p12783_p8)  }
0x1388   : >> { %v5461_v11 = vadd.f32 %v7172_v2, %v12716_v16  ;;  %v8844_v16 = vld [vmem:[#allocation16 + $0x40] sm:$0xff] (%p12783_p8)  }
0x1389   : > { %7648 = vmatpush3.bf16.msra.mxu0 (%p12783_p8), %v8844_v16  ;;  %v8868_v2 = vld [vmem:[#allocation16 + $0xa0] sm:$0xff] (%p12783_p8)  }
0x138a   : >> { %v7225_v22 = vpop.f32.mrb[144].mxu1  ;;  %7649 = vmatprep.subr.bf16.mxu0 (%p12783_p8), %v9400_v46  ;;  %7678 = vmatpush3.bf16.msra.mxu1 (%p12783_p8), %v8855_v13  ;;  %v8893_v16 = vld [vmem:[#allocation16 + $0x1c0] sm:$0xff] (%p12783_p8)  }
0x138b   : >> { %v7226_v9 = vpop.f32.mrb[145].mxu1  ;;  %7679 = vmatprep.subr.bf16.mxu1 (%p12783_p8), %v9400_v46 }
0x138c   : >> { %v7227_v41 = vadd.f32 %v7226_v9, %v7225_v22  ;;  %v7228_v52 = vpop.f32.mrb[146].mxu1  ;;  %v8869_v22 = vld [vmem:[#allocation16 + $0xe0] sm:$0xff] (%p12783_p8)   ;;  %v8870_v9 = vld [vmem:[#allocation16 + $0xa8] sm:$0xff] (%p12783_p8)  }
0x138d   : >> { %v7229_v28 = vpop.f32.mrb[147].mxu1  ;;  %7650 = vmatpush3.bf16.msra.mxu0 (%p12783_p8), %v8846_v48  ;;  %v8895_v48 = vld [vmem:[#allocation16 + $0x1c8] sm:$0xff] (%p12783_p8)  }
0x138e   : >> { %v5547_v21 = vadd.f32 %v7227_v41, %v5450_v3  ;;  %v7230_v49 = vadd.f32 %v7229_v28, %v7228_v52  ;;  %v13470_v52 = vmov %v13447_v5  ;;  %7651 = vmatprep.subr.bf16.mxu0 (%p12783_p8), %v9400_v46  ;;  %7680 = vmatpush3.bf16.msra.mxu1 (%p12783_p8), %v8857_v29  ;;  %v8871_v3 = vld [vmem:[#allocation16 + $0xe8] sm:$0xff] (%p12783_p8)   ;;  %v8872_v41 = vld [vmem:[#allocation16 + $0xb0] sm:$0xff] (%p12783_p8)   ;;  %v8874_v28 = vld [vmem:[#allocation16 + $0xb8] sm:$0xff] (%p12783_p8)  }
0x138f   : > { %7681 = vmatprep.subr.bf16.mxu1 (%p12783_p8), %v9400_v46  ;;  %v8873_v52 = vld [vmem:[#allocation16 + $0xf0] sm:$0xff] (%p12783_p8)  }
0x1390   : >> { %v12769_v20 = vadd.f32 %v5547_v21, %v13454_v31   ;;  %v5550_v60 = vadd.f32 %v7230_v49, %v5453_v35  ;;  %v8875_v35 = vld [vmem:[#allocation16 + $0xf8] sm:$0xff] (%p12783_p8)   ;;  %v5579_v21 = vpack.c.bf16 (%p12783_p8), %v13441_v63, %v13439_v42  ;;  %v5580_v49 = vpack.c.bf16 (%p12783_p8), %v13445_v50, %v13443_v8  ;;  %v8876_v31 = vld [vmem:[#allocation16 + $0x100] sm:$0xff] (%p12783_p8)   ;;  %v8880_v42 = vld [vmem:[#allocation16 + $0x110] sm:$0xff] (%p12783_p8)  }
0x1391   : > { %7652 = vmatpush3.bf16.msra.mxu0 (%p12783_p8), %v8848_v14  ;;  %v8883_v50 = vld [vmem:[#allocation16 + $0x158] sm:$0xff] (%p12783_p8)   ;;  %v8901_v14 = vld [vmem:[#allocation16 + $0x1e0] sm:$0xff] (%p12783_p8)  }
0x1392   : >> { %v13455_v40 = vmov %v12769_v20  ;;  %v12772_v27 = vadd.f32 %v5550_v60, %v13456_v53   ;;  %v7231_v45 = vpop.f32.mrb[148].mxu1  ;;  %v13460_v20 = vld [vmem:[#allocation48_spill] sm:$0xff]  ;;  %7653 = vmatprep.subr.bf16.mxu0 (%p12783_p8), %v9400_v46  ;;  %7682 = vmatpush3.bf16.msra.mxu1 (%p12783_p8), %v8859_v37  ;;  %v8877_v60 = vld [vmem:[#allocation16 + $0x140] sm:$0xff] (%p12783_p8)  }
0x1393   : >> { %v7232_v39 = vpop.f32.mrb[149].mxu1  ;;  %7707 = vmatprep.subr.bf16.mxu1 (%p12783_p8), %v9400_v46  ;;  %v8878_v53 = vld [vmem:[#allocation16 + $0x108] sm:$0xff] (%p12783_p8)  }
0x1394   : >> { %v13457_v62 = vmov %v12772_v27  ;;  %v7233_v6 = vadd.f32 %v7232_v39, %v7231_v45  ;;  %v7234_v56 = vpop.f32.mrb[150].mxu1  ;;  %v8879_v45 = vld [vmem:[#allocation16 + $0x148] sm:$0xff] (%p12783_p8)   ;;  %v8884_v39 = vld [vmem:[#allocation16 + $0x120] sm:$0xff] (%p12783_p8)  }
0x1395   : >> { %v7235_v25 = vpop.f32.mrb[151].mxu1  ;;  %v13465_v27 = vmov %v13457_v62  ;;  %7654 = vmatpush3.bf16.msra.mxu0 (%p12783_p8), %v8850_v59  ;;  %7684 = vmatmul.mubr.bf16.vlgmr.msra.gmra.mrb[0].mxu1 (%p12783_p8), %v5577_v33  ;;  %v8903_v59 = vld [vmem:[#allocation16 + $0x1e8] sm:$0xff] (%p12783_p8)   ;;  %v5583_v13 = vpack.c.bf16 (%p12783_p8), %v13457_v62, %v13455_v40 }
0x1396   : >> { %v5555_v24 = vadd.f32 %v7233_v6, %v5458_v51  ;;  %v7236_v57 = vadd.f32 %v7235_v25, %v7234_v56  ;;  %v13467_v56 = vmov %v13453_v30  ;;  %v13473_v25 = vmov %v13441_v63  ;;  %7655 = vmatprep.subr.bf16.mxu0 (%p12783_p8), %v9400_v46  ;;  %7708 = vmatpush3.bf16.msra.mxu1 (%p12783_p8), %v8861_v15  ;;  %v8881_v63 = vld [vmem:[#allocation16 + $0x150] sm:$0xff] (%p12783_p8)   ;;  %v8886_v6 = vld [vmem:[#allocation16 + $0x128] sm:$0xff] (%p12783_p8)  }
0x1397   : >> { %v13478_v51 = vmov %v13431_v47  ;;  %926 = sbr.rel (!%p12783_p8) target bundleno = 516 (0x204), region = 194  ;;  %v5578_v27 = vpack.c.bf16 (%p12783_p8), %v13437_v10, %v13435_v4  ;;  %7709 = vmatprep.subr.bf16.mxu1 (%p12783_p8), %v9400_v46  ;;  %7723 = vmatprep.mubr.msk.bf16.mxu1 (%p12783_p8), %vm9401_vm5, %v9400_v46  ;;  %v8864_v47 = vld [vmem:[#allocation16 + $0x90] sm:$0xff] (%p12783_p8)   ;;  %v8866_v4 = vld [vmem:[#allocation16 + $0x98] sm:$0xff] (%p12783_p8)   ;;  %v8887_v56 = vld [vmem:[#allocation16 + $0x168] sm:$0xff] (%p12783_p8)  }
0x1398   : >> { %v12777_v12 = vadd.f32 %v5555_v24, %v13458_v12   ;;  %v5558_v44 = vadd.f32 %v7236_v57, %v5461_v11  ;;  %v13472_v11 = vmov %v13443_v8  ;;  %v13477_v57 = vmov %v13433_v26  ;;  %v8865_v26 = vld [vmem:[#allocation16 + $0xd0] sm:$0xff] (%p12783_p8)   ;;  %v8867_v10 = vld [vmem:[#allocation16 + $0xd8] sm:$0xff] (%p12783_p8)   ;;  %v8885_v51 = vld [vmem:[#allocation16 + $0x160] sm:$0xff] (%p12783_p8)  }
0x1399   : > { %7656 = vmatpush3.bf16.msra.mxu0 (%p12783_p8), %v8852_v38  ;;  %v8882_v8 = vld [vmem:[#allocation16 + $0x118] sm:$0xff] (%p12783_p8)   ;;  %v8888_v25 = vld [vmem:[#allocation16 + $0x130] sm:$0xff] (%p12783_p8)  }
0x139a   : >> { %v13459_v17 = vmov %v12777_v12  ;;  %v12780_v24 = vadd.f32 %v5558_v44, %v13460_v20   ;;  %v13466_v20 = vmov %v13455_v40  ;;  %v13468_v44 = vmov %v13451_v7  ;;  %7657 = vmatprep.subr.bf16.mxu0 (%p12783_p8), %v9400_v46  ;;  %7710 = vmatpush3.bf16.msra.mxu1 (%p12783_p8), %v8863_v19  ;;  %v8889_v11 = vld [vmem:[#allocation16 + $0x170] sm:$0xff] (%p12783_p8)   ;;  %v8891_v57 = vld [vmem:[#allocation16 + $0x178] sm:$0xff] (%p12783_p8)  }
0x139b   : >> { %v13464_v12 = vmov %v13459_v17  ;;  %7711 = vmatprep.subr.bf16.mxu1 (%p12783_p8), %v9400_v46  ;;  %v5582_v44 = vpack.c.bf16 (%p12783_p8), %v13453_v30, %v13451_v7  ;;  %v8892_v20 = vld [vmem:[#allocation16 + $0x180] sm:$0xff] (%p12783_p8)   ;;  %v8898_v7 = vld [vmem:[#allocation16 + $0x198] sm:$0xff] (%p12783_p8)   ;;  %v8905_v38 = vld [vmem:[#allocation16 + $0x1f0] sm:$0xff] (%p12783_p8)  }
0x139c   : >> { %v13461_v0 = vmov %v12780_v24  ;;  %v5581_v12 = vpack.c.bf16 (%p12783_p8), %v13449_v54, %v13447_v5  ;;  %v8896_v5 = vld [vmem:[#allocation16 + $0x190] sm:$0xff] (%p12783_p8)   ;;  %v8899_v30 = vld [vmem:[#allocation16 + $0x1d8] sm:$0xff] (%p12783_p8)  }
0x139d   : >> { %v13463_v24 = vmov %v13461_v0  ;;  %7658 = vmatpush3.bf16.msra.mxu0 (%p12783_p8), %v8854_v58  ;;  %v8897_v54 = vld [vmem:[#allocation16 + $0x1d0] sm:$0xff] (%p12783_p8)   ;;  %v8907_v58 = vld [vmem:[#allocation16 + $0x1f8] sm:$0xff] (%p12783_p8)  }
0x139e   : > { %7659 = vmatprep.subr.bf16.mxu0 %v9400_v46  ;;  %7712 = vmatpush3.bf16.msra.mxu1 %v8865_v26  ;;  %v8890_v24 = vld [vmem:[#allocation16 + $0x138] sm:$0xff]  }
0x139f   : > { %7713 = vmatprep.subr.bf16.mxu1 %v9400_v46 }
0x13a1   : > { %7660 = vmatpush3.bf16.msra.mxu0 %v8856_v61  ;;  %v5584_v61 = vpack.c.bf16 %v13461_v0, %v13459_v17 }
0x13a2   : > { %7661 = vmatprep.subr.bf16.mxu0 %v9400_v46  ;;  %7714 = vmatpush3.bf16.msra.mxu1 %v8867_v10 }
0x13a3   : > { %7715 = vmatprep.subr.bf16.mxu1 %v9400_v46 }
0x13a5   : > { %7662 = vmatpush3.bf16.msra.mxu0 %v8858_v34 }
0x13a6   : > { %7687 = vmatprep.subr.bf16.mxu0 %v9400_v46  ;;  %7716 = vmatpush3.bf16.msra.mxu1 %v8869_v22 }
0x13a7   : > { %7717 = vmatprep.subr.bf16.mxu1 %v9400_v46 }
0x13a8   : > { %7664 = vmatmul.mubr.bf16.vlgmr.msra.gmra.mrb[0].mxu0 %v5578_v27 }
0x13a9   : > { %7688 = vmatpush3.bf16.msra.mxu0 %v8860_v36  ;;  %7703 = vmatprep.mubr.msk.bf16.mxu0 %vm9401_vm5, %v9400_v46 }
0x13aa   : > { %7689 = vmatprep.subr.bf16.mxu0 %v9400_v46  ;;  %7718 = vmatpush3.bf16.msra.mxu1 %v8871_v3 }
0x13ab   : > { %7719 = vmatprep.subr.bf16.mxu1 %v9400_v46 }
0x13ad   : > { %7690 = vmatpush3.bf16.msra.mxu0 %v8862_v1 }
0x13ae   : > { %7691 = vmatprep.subr.bf16.mxu0 %v9400_v46  ;;  %7720 = vmatpush3.bf16.msra.mxu1 %v8873_v52 }
0x13af   : > { %7721 = vmatprep.subr.bf16.mxu1 %v9400_v46 }
0x13b1   : > { %7692 = vmatpush3.bf16.msra.mxu0 %v8864_v47 }
0x13b2   : > { %7693 = vmatprep.subr.bf16.mxu0 %v9400_v46  ;;  %7722 = vmatpush3.bf16.msra.mxu1 %v8875_v35 }
0x13b3   : > { %7747 = vmatprep.subr.bf16.mxu1 %v9400_v46 }
0x13b5   : > { %7694 = vmatpush3.bf16.msra.mxu0 %v8866_v4  ;;  %7724 = vmatmul.mubr.bf16.vlgmr.msra.gmra.mrb[4].mxu1 %v5580_v49 }
0x13b6   : > { %7695 = vmatprep.subr.bf16.mxu0 %v9400_v46  ;;  %7748 = vmatpush3.bf16.msra.mxu1 %v8877_v60 }
0x13b7   : > { %7749 = vmatprep.subr.bf16.mxu1 %v9400_v46  ;;  %7763 = vmatprep.mubr.msk.bf16.mxu1 %vm9401_vm5, %v9400_v46 }
0x13b9   : > { %7696 = vmatpush3.bf16.msra.mxu0 %v8868_v2 }
0x13ba   : > { %7697 = vmatprep.subr.bf16.mxu0 %v9400_v46  ;;  %7750 = vmatpush3.bf16.msra.mxu1 %v8879_v45 }
0x13bb   : > { %7751 = vmatprep.subr.bf16.mxu1 %v9400_v46 }
0x13bd   : > { %7698 = vmatpush3.bf16.msra.mxu0 %v8870_v9 }
0x13be   : > { %7699 = vmatprep.subr.bf16.mxu0 %v9400_v46  ;;  %7752 = vmatpush3.bf16.msra.mxu1 %v8881_v63 }
0x13bf   : > { %7753 = vmatprep.subr.bf16.mxu1 %v9400_v46 }
0x13c1   : > { %7700 = vmatpush3.bf16.msra.mxu0 %v8872_v41 }
0x13c2   : > { %7701 = vmatprep.subr.bf16.mxu0 %v9400_v46  ;;  %7754 = vmatpush3.bf16.msra.mxu1 %v8883_v50 }
0x13c3   : > { %7755 = vmatprep.subr.bf16.mxu1 %v9400_v46 }
0x13c5   : > { %7702 = vmatpush3.bf16.msra.mxu0 %v8874_v28 }
0x13c6   : > { %7727 = vmatprep.subr.bf16.mxu0 %v9400_v46  ;;  %7756 = vmatpush3.bf16.msra.mxu1 %v8885_v51 }
0x13c7   : > { %7757 = vmatprep.subr.bf16.mxu1 %v9400_v46 }
0x13c8   : > { %7704 = vmatmul.mubr.bf16.vlgmr.msra.gmra.mrb[4].mxu0 %v5579_v21 }
0x13c9   : > { %7728 = vmatpush3.bf16.msra.mxu0 %v8876_v31  ;;  %7743 = vmatprep.mubr.msk.bf16.mxu0 %vm9401_vm5, %v9400_v46 }
0x13ca   : > { %7729 = vmatprep.subr.bf16.mxu0 %v9400_v46  ;;  %7758 = vmatpush3.bf16.msra.mxu1 %v8887_v56 }
0x13cb   : > { %7759 = vmatprep.subr.bf16.mxu1 %v9400_v46 }
0x13cd   : > { %7730 = vmatpush3.bf16.msra.mxu0 %v8878_v53 }
0x13ce   : > { %7731 = vmatprep.subr.bf16.mxu0 %v9400_v46  ;;  %7760 = vmatpush3.bf16.msra.mxu1 %v8889_v11 }
0x13cf   : > { %7761 = vmatprep.subr.bf16.mxu1 %v9400_v46 }
0x13d1   : > { %7732 = vmatpush3.bf16.msra.mxu0 %v8880_v42 }
0x13d2   : > { %7733 = vmatprep.subr.bf16.mxu0 %v9400_v46  ;;  %7762 = vmatpush3.bf16.msra.mxu1 %v8891_v57 }
0x13d3   : > { %7787 = vmatprep.subr.bf16.mxu1 %v9400_v46 }
0x13d5   : > { %7734 = vmatpush3.bf16.msra.mxu0 %v8882_v8  ;;  %7764 = vmatmul.mubr.bf16.vlgmr.msra.gmra.mrb[8].mxu1 %v5582_v44 }
0x13d6   : > { %7735 = vmatprep.subr.bf16.mxu0 %v9400_v46  ;;  %7788 = vmatpush3.bf16.msra.mxu1 %v8893_v16 }
0x13d7   : > { %7789 = vmatprep.subr.bf16.mxu1 %v9400_v46  ;;  %7803 = vmatprep.mubr.msk.bf16.mxu1 %vm9401_vm5, %v9400_v46 }
0x13d9   : > { %7736 = vmatpush3.bf16.msra.mxu0 %v8884_v39 }
0x13da   : > { %7737 = vmatprep.subr.bf16.mxu0 %v9400_v46  ;;  %7790 = vmatpush3.bf16.msra.mxu1 %v8895_v48 }
0x13db   : > { %7791 = vmatprep.subr.bf16.mxu1 %v9400_v46 }
0x13dd   : > { %7738 = vmatpush3.bf16.msra.mxu0 %v8886_v6  ;;  %v6929_v6 = vld [vmem:[%s13479_s24] ss:$0 sm:$0xff] }
0x13de   : > { %7739 = vmatprep.subr.bf16.mxu0 %v9400_v46  ;;  %7792 = vmatpush3.bf16.msra.mxu1 %v8897_v54 }
0x13df   : > { %7793 = vmatprep.subr.bf16.mxu1 %v9400_v46 }
0x13e1   : > { %7740 = vmatpush3.bf16.msra.mxu0 %v8888_v25 }
0x13e2   : > { %7741 = vmatprep.subr.bf16.mxu0 %v9400_v46  ;;  %7794 = vmatpush3.bf16.msra.mxu1 %v8899_v30 }
0x13e3   : > { %7795 = vmatprep.subr.bf16.mxu1 %v9400_v46 }
0x13e5   : > { %7742 = vmatpush3.bf16.msra.mxu0 %v8890_v24 }
0x13e6   : > { %7767 = vmatprep.subr.bf16.mxu0 %v9400_v46  ;;  %7796 = vmatpush3.bf16.msra.mxu1 %v8901_v14 }
0x13e7   : > { %7797 = vmatprep.subr.bf16.mxu1 %v9400_v46 }
0x13e8   : > { %7744 = vmatmul.mubr.bf16.vlgmr.msra.gmra.mrb[8].mxu0 %v5581_v12 }
0x13e9   : > { %7768 = vmatpush3.bf16.msra.mxu0 %v8892_v20  ;;  %7783 = vmatprep.mubr.msk.bf16.mxu0 %vm9401_vm5, %v9400_v46 }
0x13ea   : > { %7769 = vmatprep.subr.bf16.mxu0 %v9400_v46  ;;  %7798 = vmatpush3.bf16.msra.mxu1 %v8903_v59 }
0x13eb   : > { %7799 = vmatprep.subr.bf16.mxu1 %v9400_v46 }
0x13ed   : > { %7770 = vmatpush3.bf16.msra.mxu0 %v8894_v18 }
0x13ee   : > { %7771 = vmatprep.subr.bf16.mxu0 %v9400_v46  ;;  %7800 = vmatpush3.bf16.msra.mxu1 %v8905_v38 }
0x13ef   : > { %7801 = vmatprep.subr.bf16.mxu1 %v9400_v46 }
0x13f1   : > { %7772 = vmatpush3.bf16.msra.mxu0 %v8896_v5 }
0x13f2   : > { %7773 = vmatprep.subr.bf16.mxu0 %v9400_v46  ;;  %7802 = vmatpush3.bf16.msra.mxu1 %v8907_v58 }
0x13f5   : > { %7774 = vmatpush3.bf16.msra.mxu0 %v8898_v7  ;;  %7804 = vmatmul.mubr.bf16.vlgmr.msra.gmra.mrb[12].mxu1 %v5584_v61 }
0x13f6   : > { %7775 = vmatprep.subr.bf16.mxu0 %v9400_v46 }
0x13f9   : > { %7776 = vmatpush3.bf16.msra.mxu0 %v8900_v32 }
0x13fa   : > { %7777 = vmatprep.subr.bf16.mxu0 %v9400_v46 }
0x13fd   : > { %7778 = vmatpush3.bf16.msra.mxu0 %v8902_v23 }
0x13fe   : > { %7779 = vmatprep.subr.bf16.mxu0 %v9400_v46 }
0x1401   : > { %7780 = vmatpush3.bf16.msra.mxu0 %v8904_v55 }
0x1402   : > { %7781 = vmatprep.subr.bf16.mxu0 %v9400_v46 }
0x1405   : > { %7782 = vmatpush3.bf16.msra.mxu0 %v8906_v43 }
0x1408   : > { %7784 = vmatmul.mubr.bf16.vlgmr.msra.gmra.mrb[12].mxu0 %v5583_v13 }
0x1468   : > { %v5789_v34 = vpop.f32.mrb[0].mxu1 }
0x1469   : > { %v7685_v33 = vpop.f32.mrb[1].mxu1 }
0x146a   : > { %v5792_v15 = vpop.f32.mrb[2].mxu1 }
0x146b   : > { %v7686_v46 = vpop.f32.mrb[3].mxu1 }
0x147b   : > { %v5700_v29 = vpop.f32.mrb[0].mxu0 }
0x147c   : > { %v7665_v37 = vpop.f32.mrb[1].mxu0  ;;  %v5790_v27 = vadd.f32 %v5789_v34, %v5700_v29 }
0x147d   : > { %v5703_v36 = vpop.f32.mrb[2].mxu0 }
0x147e   : > { %v7666_v1 = vpop.f32.mrb[3].mxu0  ;;  %v5793_v19 = vadd.f32 %v5792_v15, %v5703_v36 }
0x1488   : > { %v6003_v40 = vpop.f32.mrb[4].mxu1 }
0x1489   : > { %v7725_v4 = vpop.f32.mrb[5].mxu1 }
0x148a   : > { %v6006_v2 = vpop.f32.mrb[6].mxu1 }
0x148b   : > { %v7726_v9 = vpop.f32.mrb[7].mxu1 }
0x149b   : > { %v5895_v47 = vpop.f32.mrb[4].mxu0 }
0x149c   : > { %v5902_v26 = vadd.f32 %v5895_v47, %v5790_v27  ;;  %v7705_v62 = vpop.f32.mrb[5].mxu0 }
0x149d   : > { %v5898_v10 = vpop.f32.mrb[6].mxu0 }
0x149e   : > { %v6010_v17 = vadd.f32 %v6003_v40, %v5902_v26  ;;  %v5903_v0 = vadd.f32 %v5898_v10, %v5793_v19  ;;  %v7706_v22 = vpop.f32.mrb[7].mxu0 }
0x14a0   : > { %v6011_v3 = vadd.f32 %v6006_v2, %v5903_v0 }
0x14a8   : > { %v6219_v28 = vpop.f32.mrb[8].mxu1 }
0x14a9   : > { %v7765_v21 = vpop.f32.mrb[9].mxu1 }
0x14aa   : > { %v6222_v53 = vpop.f32.mrb[10].mxu1 }
0x14ab   : > { %v7766_v42 = vpop.f32.mrb[11].mxu1 }
0x14bb   : > { %v6111_v41 = vpop.f32.mrb[8].mxu0 }
0x14bc   : > { %v6118_v52 = vadd.f32 %v6111_v41, %v6010_v17  ;;  %v7745_v35 = vpop.f32.mrb[9].mxu0 }
0x14bd   : > { %v6114_v49 = vpop.f32.mrb[10].mxu0 }
0x14be   : > { %v6226_v31 = vadd.f32 %v6219_v28, %v6118_v52  ;;  %v6119_v60 = vadd.f32 %v6114_v49, %v6011_v3  ;;  %v7746_v45 = vpop.f32.mrb[11].mxu0 }
0x14c0   : > { %v6227_v63 = vadd.f32 %v6222_v53, %v6119_v60 }
0x14c8   : > { %v6435_v39 = vpop.f32.mrb[12].mxu1 }
0x14c9   : > { %v7805_v56 = vpop.f32.mrb[13].mxu1 }
0x14ca   : > { %v6438_v57 = vpop.f32.mrb[14].mxu1 }
0x14cb   : > { %v7806_v44 = vpop.f32.mrb[15].mxu1 }
0x14db   : > { %v6327_v8 = vpop.f32.mrb[12].mxu0 }
0x14dc   : > { %v6334_v50 = vadd.f32 %v6327_v8, %v6226_v31  ;;  %v7785_v51 = vpop.f32.mrb[13].mxu0 }
0x14dd   : > { %v6330_v25 = vpop.f32.mrb[14].mxu0 }
0x14de   : > { %v6442_v11 = vadd.f32 %v6435_v39, %v6334_v50  ;;  %v6335_v24 = vadd.f32 %v6330_v25, %v6227_v63  ;;  %v7786_v12 = vpop.f32.mrb[15].mxu0 }
0x14e0   : > { %v6451_v20 = vadd.f32 %v6929_v6, %v6442_v11  ;;  %v6443_v16 = vadd.f32 %v6438_v57, %v6335_v24 }
0x14e2   : > { %6453 = vst [vmem:[%s9866_s0] sm:$0xff] %v6451_v20  ;;  %v6452_v18 = vadd.f32 %v6929_v6, %v6443_v16 }
0x14e4   : > { %6454 = vst [vmem:[%s9866_s0 + $0x8] sm:$0xff] %v6452_v18 }
0x14e5   : > { %9173 = shalt.err (!%p9170_p12)
}
0x14e6   : > { %s9174_s19 = scalar_lea.hbm %s12943_s21, 256  ;;  %s9178_s27 = scalar_lea.hbm %s13481_s29, 512 }
0x14e7   : > { %p9175_p10 = scmp.ne.s32.totalorder %s12943_s21, %s9174_s19  ;;  %p9179_p4 = scmp.lt.u32.totalorder %s12943_s21, %s13481_s29 }
0x14e8   : > { %p9180_p7 = scmp.lt.u32.totalorder %s9178_s27, %s9174_s19  ;;  %p9182_p11 = scmp.lt.u32.totalorder %s9174_s19, %s12943_s21 }
0x14e9   : > { %p9176_p2 = pnand %p9175_p10, %p13482_p13 }
0x14ea   : > { %p9181_p8 = por %p9180_p7, %p9179_p4 }
0x14eb   : > { %p9177_p3 = pneg %p9176_p2 }
0x14ec   : > { %p9183_p0 = por %p9182_p11, %p9181_p8 }
0x14ee   : > { %p9184_p1 = pnand %p9183_p0, %p9177_p3 }
0x14f0   : > { %9187 = shalt.err (!%p9184_p1)
}
0x14f1   : > { %s9403_s14 = smov 128   ;;  %s9404_s20 = smov 8  }
0x14f2   : > { %7895 = dma.vmem_to_hbm [thread:$0]  (%p13482_p13), %s12945_s26, 256, %s12943_s21, %s12951_s16, %s9403_s14, %s9403_s14, %s9404_s20  }
0x14f3 PF: > { %s13483_s1 = sld [smem:[#allocation26_spill]]  ;;  %s13484_s6 = sld [smem:[#allocation24_spill]] }
0x14f4   : > { %s13485_s2 = sld [smem:[#allocation30_spill]] }
0x14f9   : > { %p7947_p6 = scmp.ge.s32.totalorder %s13483_s1, 2  ;;  %s6484_s18 = sand.u32 1, %s13484_s6  }
0x14fa   : > { %p13486_p5 = scmp.ne.s32.totalorder %s13485_s2, 0  ;;  %s6485_s19 = scalar_lea.sflag [#allocation4], %s6484_s18 }
0x14fc   : > { %p7926_p9 = pnand %p7947_p6, %p13486_p5 }
0x14fe   : > { %9293 = dma.done.wait (!%p7926_p9), %s6485_s19, 256  }
0x14ff   : > { %9295 = vsyncadd (!%p7926_p9), %s6485_s19, 4294967040  ;;  %s13487_s21 = sld [smem:[#allocation27_spill]]  ;;  %s13488_s22 = sld [smem:[#allocation25_spill]] }
0x1500   : > { %s13489_s20 = sld [smem:[#allocation28_spill]]  ;;  %s13490_s0 = smov %s9302_s30 }
0x1505   : > { %p34_p12 = scmp.ge.s32.totalorder %s13487_s21, 4   ;;  %s13491_s30 = smov %s13488_s22 }
0x1507   :  { %36 = sbr.rel (!%p34_p12) target bundleno = 19 (0x13), region = 205 }
0x150e   :  { %6490 = vsyncpa [#allocation3], 1 }
0x150f   :  { %6492 = vsyncpa [#allocation3 + $0x1], 1 }
0x1510   :  { %6493 = vsyncpa [#allocation6], 1 }
0x1511   :  { %6494 = vsyncpa [#allocation9], 1 }
0x1512   :  { %6495 = vsyncpa [#allocation12], 1 }
0x1513   :  { %6496 = vsyncpa [#allocation15], 1 }
0x1514   :  { %6497 = vsyncpa [#allocation4], 1 }
0x1515   :  { %6499 = vsyncpa [#allocation4 + $0x1], 1 }

</bundles_post_ra>
